<compile_context>
chip_gen: v7x
topology: tpu7x:2x2x1
jax: 0.10.0
libtpu: 0.0.40
codegen_flags: <defaults>
</compile_context>

<pallas_src>
import jax
import jax.numpy as jnp
from jax.experimental import pallas as pl
from jax.experimental.pallas import tpu as pltpu


def _edge_net_kernel(x_ref, w1_ref, b1_ref, w2_ref, b2_ref, w3_ref, b3_ref,
                     o_ref, a1_ref, a2_ref):
    """Fused Edge_Net forward for one batch element.

    x_ref : (1, H+2, W+2, 3)   zero-padded input tile (VMEM)
    w*_ref: (9*Cin, Cout)      im2col-packed weights (VMEM)
    b*_ref: (1, Cout)          biases (VMEM)
    o_ref : (1, 1, H*W)        lane-dense output tile (VMEM)
    a1_ref: (H+2, W+2, 16)     VMEM scratch: padded activation of conv1
    a2_ref: (H+2, W+2, 32)     VMEM scratch: padded activation of conv2
    """
    _, hp, wp, cin = x_ref.shape
    H, W = hp - 2, wp - 2
    HW = H * W
    c1 = a1_ref.shape[-1]
    c2 = a2_ref.shape[-1]

    def im2col(ref, c, squeeze_batch):
        # Build the (H*W, 9*c) patch matrix.  Taps are sliced straight from the
        # ref so only the active 3x3 window is loaded (no full-tensor copy).
        taps = []
        for kh in range(3):
            for kw in range(3):
                if squeeze_batch:
                    t = ref[0, kh:kh + H, kw:kw + W, :]
                else:
                    t = ref[kh:kh + H, kw:kw + W, :]
                taps.append(t.reshape(HW, c).astype(jnp.float32))
        return jnp.concatenate(taps, axis=-1)

    def store_padded(ref, y, c):
        # Zero halo + interior write: the 'same' padding for the next layer is
        # produced entirely in VMEM (no HBM traffic, megacore-safe re-zero).
        ref[...] = jnp.zeros_like(ref)
        ref[pl.ds(1, H), pl.ds(1, W), :] = y.reshape(H, W, c)

    # conv1: 3 -> 16, ReLU.   One MXU matmul, K = 27.
    p1 = im2col(x_ref, cin, True)
    y1 = jnp.dot(p1, w1_ref[...], preferred_element_type=jnp.float32)
    y1 = jnp.maximum(y1 + b1_ref[...], 0.0)
    store_padded(a1_ref, y1, c1)

    # conv2: 16 -> 32, ReLU.  K = 144.
    p2 = im2col(a1_ref, c1, False)
    y2 = jnp.dot(p2, w2_ref[...], preferred_element_type=jnp.float32)
    y2 = jnp.maximum(y2 + b2_ref[...], 0.0)
    store_padded(a2_ref, y2, c2)

    # conv3: 32 -> 1, no ReLU.  K = 288.
    p3 = im2col(a2_ref, c2, False)
    y3 = jnp.dot(p3, w3_ref[...], preferred_element_type=jnp.float32)
    y3 = y3 + b3_ref[...]                                   # (HW, 1) column

    # Lane-dense store: move the per-pixel column (HW, 1) onto the 128-lane
    # axis with an MXU ones @ diag(y) transpose (uses only iota/where/dot,
    # avoiding a sublane<->lane reshape).
    r = jax.lax.broadcasted_iota(jnp.int32, (HW, HW), 0)
    s = jax.lax.broadcasted_iota(jnp.int32, (HW, HW), 1)
    y3_diag = jnp.where(r == s, y3, 0.0)                    # (HW, HW)
    y3_row = jnp.dot(jnp.ones((1, HW), jnp.float32), y3_diag,
                     preferred_element_type=jnp.float32)     # (1, HW)
    o_ref[...] = y3_row.reshape(1, 1, HW).astype(o_ref.dtype)


def _pack_conv_params(w, b):
    """(Cout, Cin, 3, 3), (Cout,) -> im2col weight (9*Cin, Cout), bias (1, Cout)."""
    cout, cin, kh, kw = w.shape
    w_mat = jnp.transpose(w, (2, 3, 1, 0)).reshape(kh * kw * cin, cout)
    return w_mat, b.reshape(1, cout)


def edge_net_pallas(x_nchw, params):
    N, Cin, H, W = x_nchw.shape
    HW = H * W

    # Layout plumbing in the wrapper: NCHW -> NHWC, single 'same' pad for conv1.
    x = jnp.transpose(x_nchw, (0, 2, 3, 1))
    x_pad = jnp.pad(x, ((0, 0), (1, 1), (1, 1), (0, 0)))

    w1, b1 = _pack_conv_params(params["w1"], params["b1"])   # (27, 16), (1, 16)
    w2, b2 = _pack_conv_params(params["w2"], params["b2"])   # (144, 32), (1, 32)
    w3, b3 = _pack_conv_params(params["w3"], params["b3"])   # (288, 1),  (1, 1)
    c1 = w1.shape[1]
    c2 = w2.shape[1]

    out_flat = pl.pallas_call(
        _edge_net_kernel,
        out_shape=jax.ShapeDtypeStruct((N, 1, HW), x.dtype),
        grid_spec=pltpu.PrefetchScalarGridSpec(
            num_scalar_prefetch=0,
            grid=(N,),
            in_specs=[
                pl.BlockSpec((1, H + 2, W + 2, Cin), lambda n: (n, 0, 0, 0)),
                pl.BlockSpec(w1.shape, lambda n: (0, 0)),
                pl.BlockSpec(b1.shape, lambda n: (0, 0)),
                pl.BlockSpec(w2.shape, lambda n: (0, 0)),
                pl.BlockSpec(b2.shape, lambda n: (0, 0)),
                pl.BlockSpec(w3.shape, lambda n: (0, 0)),
                pl.BlockSpec(b3.shape, lambda n: (0, 0)),
            ],
            out_specs=pl.BlockSpec((1, 1, HW), lambda n: (n, 0, 0)),
            scratch_shapes=[
                pltpu.VMEM((H + 2, W + 2, c1), jnp.float32),
                pltpu.VMEM((H + 2, W + 2, c2), jnp.float32),
            ],
        ),
        compiler_params=pltpu.CompilerParams(
            dimension_semantics=("parallel",),
        ),
    )(x_pad, w1, b1, w2, b2, w3, b3)

    # (N, 1, H*W) -> (N, 1, H, W): contiguous reshape in the wrapper (NCHW out).
    return out_flat.reshape(N, 1, H, W)


@jax.jit
def edge_net_forward(x_nchw, params):
    return edge_net_pallas(x_nchw, params)


def init_edge_net_params(key):
    """Deterministic synthetic parameters matching Edge_Net.__init__ shapes."""
    ks = jax.random.split(key, 6)

    def conv_params(kw_, kb, cout, cin):
        fan_in = cin * 9
        bound = 1.0 / jnp.sqrt(fan_in)
        w = jax.random.uniform(kw_, (cout, cin, 3, 3), jnp.float32, -bound, bound)
        b = jax.random.uniform(kb, (cout,), jnp.float32, -bound, bound)
        return w, b

    w1, b1 = conv_params(ks[0], ks[1], 16, 3)
    w2, b2 = conv_params(ks[2], ks[3], 32, 16)
    w3, b3 = conv_params(ks[4], ks[5], 1, 32)
    return {"w1": w1, "b1": b1, "w2": w2, "b2": b2, "w3": w3, "b3": b3}


def _reference_forward(x_nchw, params):
    """Pure-JAX reference using lax.conv for correctness checking."""
    dn = jax.lax.conv_dimension_numbers(x_nchw.shape, params["w1"].shape,
                                        ("NCHW", "OIHW", "NCHW"))

    def conv(x, w, b):
        y = jax.lax.conv_general_dilated(x, w, (1, 1), ((1, 1), (1, 1)),
                                         dimension_numbers=dn)
        return y + b[None, :, None, None]

    x1 = jax.nn.relu(conv(x_nchw, params["w1"], params["b1"]))
    x2 = jax.nn.relu(conv(x1, params["w2"], params["b2"]))
    return conv(x2, params["w3"], params["b3"])


if __name__ == "__main__":
    key = jax.random.PRNGKey(0)
    k_x, k_p = jax.random.split(key)

    # Small shapes consistent with the module: batch=2, in_channels=3, 16x16.
    x = jax.random.normal(k_x, (2, 3, 16, 16), jnp.float32)
    params = init_edge_net_params(k_p)

    out = jax.block_until_ready(edge_net_forward(x, params))
    assert out.shape == (2, 1, 16, 16), out.shape

    ref = _reference_forward(x, params)
    err = float(jnp.max(jnp.abs(out - ref)))
    assert jnp.allclose(out, ref, atol=5e-4, rtol=5e-4), err

    print("KERNEL_OK")
</pallas_src>

<mosaic_0001>
module attributes {stable_mosaic.version = 11 : i64} {
  func.func @_edge_net_kernel(%arg0: i32, %arg1: memref<1x18x18x3xf32, #tpu.memory_space<vmem>>, %arg2: memref<27x16xf32, #tpu.memory_space<vmem>>, %arg3: memref<1x16xf32, #tpu.memory_space<vmem>>, %arg4: memref<144x32xf32, #tpu.memory_space<vmem>>, %arg5: memref<1x32xf32, #tpu.memory_space<vmem>>, %arg6: memref<288x1xf32, #tpu.memory_space<vmem>>, %arg7: memref<1x1xf32, #tpu.memory_space<vmem>>, %arg8: memref<1x1x256xf32, #tpu.memory_space<vmem>>, %arg9: memref<18x18x16xf32, #tpu.memory_space<vmem>>, %arg10: memref<18x18x32xf32, #tpu.memory_space<vmem>>) attributes {dimension_semantics = [#tpu.dimension_semantics<parallel>], iteration_bounds = array<i64: 2>, scalar_prefetch = 0 : i64, scratch_operands = 2 : i64, tpu.core_type = #tpu.core_type<tc>, window_params = [{transform_indices = @transform_0, window_bounds = array<i64: 1, 18, 18, 3>}, {pipeline_mode = #tpu.pipeline_mode<synchronous>, transform_indices = @transform_1, window_bounds = array<i64: 27, 16>}, {pipeline_mode = #tpu.pipeline_mode<synchronous>, transform_indices = @transform_2, window_bounds = array<i64: 1, 16>}, {pipeline_mode = #tpu.pipeline_mode<synchronous>, transform_indices = @transform_3, window_bounds = array<i64: 144, 32>}, {pipeline_mode = #tpu.pipeline_mode<synchronous>, transform_indices = @transform_4, window_bounds = array<i64: 1, 32>}, {pipeline_mode = #tpu.pipeline_mode<synchronous>, transform_indices = @transform_5, window_bounds = array<i64: 288, 1>}, {pipeline_mode = #tpu.pipeline_mode<synchronous>, transform_indices = @transform_6, window_bounds = array<i64: 1, 1>}, {transform_indices = @transform_7, window_bounds = array<i64: 1, 1, 256>}]} {
    %c0 = arith.constant 0 : index
    %c0_0 = arith.constant 0 : index
    %c0_1 = arith.constant 0 : index
    %c0_2 = arith.constant 0 : index
    %0 = vector.load %arg1[%c0, %c0_0, %c0_1, %c0_2] : memref<1x18x18x3xf32, #tpu.memory_space<vmem>>, vector<1x16x16x3xf32>
    %1 = vector.shape_cast %0 : vector<1x16x16x3xf32> to vector<16x16x3xf32>
    %2 = vector.shape_cast %1 : vector<16x16x3xf32> to vector<256x3xf32>
    %c0_3 = arith.constant 0 : index
    %c0_4 = arith.constant 0 : index
    %c1 = arith.constant 1 : index
    %c0_5 = arith.constant 0 : index
    %3 = vector.load %arg1[%c0_3, %c0_4, %c1, %c0_5] : memref<1x18x18x3xf32, #tpu.memory_space<vmem>>, vector<1x16x16x3xf32>
    %4 = vector.shape_cast %3 : vector<1x16x16x3xf32> to vector<16x16x3xf32>
    %5 = vector.shape_cast %4 : vector<16x16x3xf32> to vector<256x3xf32>
    %c0_6 = arith.constant 0 : index
    %c0_7 = arith.constant 0 : index
    %c2 = arith.constant 2 : index
    %c0_8 = arith.constant 0 : index
    %6 = vector.load %arg1[%c0_6, %c0_7, %c2, %c0_8] : memref<1x18x18x3xf32, #tpu.memory_space<vmem>>, vector<1x16x16x3xf32>
    %7 = vector.shape_cast %6 : vector<1x16x16x3xf32> to vector<16x16x3xf32>
    %8 = vector.shape_cast %7 : vector<16x16x3xf32> to vector<256x3xf32>
    %c0_9 = arith.constant 0 : index
    %c1_10 = arith.constant 1 : index
    %c0_11 = arith.constant 0 : index
    %c0_12 = arith.constant 0 : index
    %9 = vector.load %arg1[%c0_9, %c1_10, %c0_11, %c0_12] : memref<1x18x18x3xf32, #tpu.memory_space<vmem>>, vector<1x16x16x3xf32>
    %10 = vector.shape_cast %9 : vector<1x16x16x3xf32> to vector<16x16x3xf32>
    %11 = vector.shape_cast %10 : vector<16x16x3xf32> to vector<256x3xf32>
    %c0_13 = arith.constant 0 : index
    %c1_14 = arith.constant 1 : index
    %c1_15 = arith.constant 1 : index
    %c0_16 = arith.constant 0 : index
    %12 = vector.load %arg1[%c0_13, %c1_14, %c1_15, %c0_16] : memref<1x18x18x3xf32, #tpu.memory_space<vmem>>, vector<1x16x16x3xf32>
    %13 = vector.shape_cast %12 : vector<1x16x16x3xf32> to vector<16x16x3xf32>
    %14 = vector.shape_cast %13 : vector<16x16x3xf32> to vector<256x3xf32>
    %c0_17 = arith.constant 0 : index
    %c1_18 = arith.constant 1 : index
    %c2_19 = arith.constant 2 : index
    %c0_20 = arith.constant 0 : index
    %15 = vector.load %arg1[%c0_17, %c1_18, %c2_19, %c0_20] : memref<1x18x18x3xf32, #tpu.memory_space<vmem>>, vector<1x16x16x3xf32>
    %16 = vector.shape_cast %15 : vector<1x16x16x3xf32> to vector<16x16x3xf32>
    %17 = vector.shape_cast %16 : vector<16x16x3xf32> to vector<256x3xf32>
    %c0_21 = arith.constant 0 : index
    %c2_22 = arith.constant 2 : index
    %c0_23 = arith.constant 0 : index
    %c0_24 = arith.constant 0 : index
    %18 = vector.load %arg1[%c0_21, %c2_22, %c0_23, %c0_24] : memref<1x18x18x3xf32, #tpu.memory_space<vmem>>, vector<1x16x16x3xf32>
    %19 = vector.shape_cast %18 : vector<1x16x16x3xf32> to vector<16x16x3xf32>
    %20 = vector.shape_cast %19 : vector<16x16x3xf32> to vector<256x3xf32>
    %c0_25 = arith.constant 0 : index
    %c2_26 = arith.constant 2 : index
    %c1_27 = arith.constant 1 : index
    %c0_28 = arith.constant 0 : index
    %21 = vector.load %arg1[%c0_25, %c2_26, %c1_27, %c0_28] : memref<1x18x18x3xf32, #tpu.memory_space<vmem>>, vector<1x16x16x3xf32>
    %22 = vector.shape_cast %21 : vector<1x16x16x3xf32> to vector<16x16x3xf32>
    %23 = vector.shape_cast %22 : vector<16x16x3xf32> to vector<256x3xf32>
    %c0_29 = arith.constant 0 : index
    %c2_30 = arith.constant 2 : index
    %c2_31 = arith.constant 2 : index
    %c0_32 = arith.constant 0 : index
    %24 = vector.load %arg1[%c0_29, %c2_30, %c2_31, %c0_32] : memref<1x18x18x3xf32, #tpu.memory_space<vmem>>, vector<1x16x16x3xf32>
    %25 = vector.shape_cast %24 : vector<1x16x16x3xf32> to vector<16x16x3xf32>
    %26 = vector.shape_cast %25 : vector<16x16x3xf32> to vector<256x3xf32>
    %27 = tpu.concatenate %2, %5, %8, %11, %14, %17, %20, %23, %26 in 1 : vector<256x3xf32>, vector<256x3xf32>, vector<256x3xf32>, vector<256x3xf32>, vector<256x3xf32>, vector<256x3xf32>, vector<256x3xf32>, vector<256x3xf32>, vector<256x3xf32> -> vector<256x27xf32>
    %c0_33 = arith.constant 0 : index
    %c0_34 = arith.constant 0 : index
    %28 = vector.load %arg2[%c0_33, %c0_34] : memref<27x16xf32, #tpu.memory_space<vmem>>, vector<27x16xf32>
    %cst = arith.constant dense<0.000000e+00> : vector<256x16xf32>
    %29 = tpu.matmul %27, %28, %cst {dimension_numbers = #tpu.dot_dimension_numbers<[1], [0], [0], [1], [0, 0, 1, 1], [], []>} : vector<256x27xf32>, vector<27x16xf32>, vector<256x16xf32> -> vector<256x16xf32>
    %c0_35 = arith.constant 0 : index
    %c0_36 = arith.constant 0 : index
    %30 = vector.load %arg3[%c0_35, %c0_36] : memref<1x16xf32, #tpu.memory_space<vmem>>, vector<1x16xf32>
    %31 = vector.broadcast %30 : vector<1x16xf32> to vector<256x16xf32>
    %32 = arith.addf %29, %31 : vector<256x16xf32>
    %cst_37 = arith.constant 0.000000e+00 : f32
    %33 = vector.broadcast %cst_37 : f32 to vector<256x16xf32>
    %34 = arith.maximumf %32, %33 : vector<256x16xf32>
    %cst_38 = arith.constant 0.000000e+00 : f32
    %35 = vector.broadcast %cst_38 : f32 to vector<18x18x16xf32>
    %c0_39 = arith.constant 0 : index
    %c0_40 = arith.constant 0 : index
    %c0_41 = arith.constant 0 : index
    %36 = vector.load %arg9[%c0_39, %c0_40, %c0_41] : memref<18x18x16xf32, #tpu.memory_space<vmem>>, vector<18x18x16xf32>
    tpu.vector_store %arg9[%c0_39, %c0_40, %c0_41], %35 {strides = array<i32>} : memref<18x18x16xf32, #tpu.memory_space<vmem>>, vector<18x18x16xf32>,
    %37 = vector.shape_cast %34 : vector<256x16xf32> to vector<16x16x16xf32>
    %c1_42 = arith.constant 1 : index
    %c1_43 = arith.constant 1 : index
    %c0_44 = arith.constant 0 : index
    %38 = vector.load %arg9[%c1_42, %c1_43, %c0_44] : memref<18x18x16xf32, #tpu.memory_space<vmem>>, vector<16x16x16xf32>
    tpu.vector_store %arg9[%c1_42, %c1_43, %c0_44], %37 {strides = array<i32>} : memref<18x18x16xf32, #tpu.memory_space<vmem>>, vector<16x16x16xf32>,
    %c0_45 = arith.constant 0 : index
    %c0_46 = arith.constant 0 : index
    %c0_47 = arith.constant 0 : index
    %39 = vector.load %arg9[%c0_45, %c0_46, %c0_47] : memref<18x18x16xf32, #tpu.memory_space<vmem>>, vector<16x16x16xf32>
    %40 = vector.shape_cast %39 : vector<16x16x16xf32> to vector<256x16xf32>
    %c0_48 = arith.constant 0 : index
    %c1_49 = arith.constant 1 : index
    %c0_50 = arith.constant 0 : index
    %41 = vector.load %arg9[%c0_48, %c1_49, %c0_50] : memref<18x18x16xf32, #tpu.memory_space<vmem>>, vector<16x16x16xf32>
    %42 = vector.shape_cast %41 : vector<16x16x16xf32> to vector<256x16xf32>
    %c0_51 = arith.constant 0 : index
    %c2_52 = arith.constant 2 : index
    %c0_53 = arith.constant 0 : index
    %43 = vector.load %arg9[%c0_51, %c2_52, %c0_53] : memref<18x18x16xf32, #tpu.memory_space<vmem>>, vector<16x16x16xf32>
    %44 = vector.shape_cast %43 : vector<16x16x16xf32> to vector<256x16xf32>
    %c1_54 = arith.constant 1 : index
    %c0_55 = arith.constant 0 : index
    %c0_56 = arith.constant 0 : index
    %45 = vector.load %arg9[%c1_54, %c0_55, %c0_56] : memref<18x18x16xf32, #tpu.memory_space<vmem>>, vector<16x16x16xf32>
    %46 = vector.shape_cast %45 : vector<16x16x16xf32> to vector<256x16xf32>
    %c1_57 = arith.constant 1 : index
    %c1_58 = arith.constant 1 : index
    %c0_59 = arith.constant 0 : index
    %47 = vector.load %arg9[%c1_57, %c1_58, %c0_59] : memref<18x18x16xf32, #tpu.memory_space<vmem>>, vector<16x16x16xf32>
    %48 = vector.shape_cast %47 : vector<16x16x16xf32> to vector<256x16xf32>
    %c1_60 = arith.constant 1 : index
    %c2_61 = arith.constant 2 : index
    %c0_62 = arith.constant 0 : index
    %49 = vector.load %arg9[%c1_60, %c2_61, %c0_62] : memref<18x18x16xf32, #tpu.memory_space<vmem>>, vector<16x16x16xf32>
    %50 = vector.shape_cast %49 : vector<16x16x16xf32> to vector<256x16xf32>
    %c2_63 = arith.constant 2 : index
    %c0_64 = arith.constant 0 : index
    %c0_65 = arith.constant 0 : index
    %51 = vector.load %arg9[%c2_63, %c0_64, %c0_65] : memref<18x18x16xf32, #tpu.memory_space<vmem>>, vector<16x16x16xf32>
    %52 = vector.shape_cast %51 : vector<16x16x16xf32> to vector<256x16xf32>
    %c2_66 = arith.constant 2 : index
    %c1_67 = arith.constant 1 : index
    %c0_68 = arith.constant 0 : index
    %53 = vector.load %arg9[%c2_66, %c1_67, %c0_68] : memref<18x18x16xf32, #tpu.memory_space<vmem>>, vector<16x16x16xf32>
    %54 = vector.shape_cast %53 : vector<16x16x16xf32> to vector<256x16xf32>
    %c2_69 = arith.constant 2 : index
    %c2_70 = arith.constant 2 : index
    %c0_71 = arith.constant 0 : index
    %55 = vector.load %arg9[%c2_69, %c2_70, %c0_71] : memref<18x18x16xf32, #tpu.memory_space<vmem>>, vector<16x16x16xf32>
    %56 = vector.shape_cast %55 : vector<16x16x16xf32> to vector<256x16xf32>
    %57 = tpu.concatenate %40, %42, %44, %46, %48, %50, %52, %54, %56 in 1 : vector<256x16xf32>, vector<256x16xf32>, vector<256x16xf32>, vector<256x16xf32>, vector<256x16xf32>, vector<256x16xf32>, vector<256x16xf32>, vector<256x16xf32>, vector<256x16xf32> -> vector<256x144xf32>
    %c0_72 = arith.constant 0 : index
    %c0_73 = arith.constant 0 : index
    %58 = vector.load %arg4[%c0_72, %c0_73] : memref<144x32xf32, #tpu.memory_space<vmem>>, vector<144x32xf32>
    %cst_74 = arith.constant dense<0.000000e+00> : vector<256x32xf32>
    %59 = tpu.matmul %57, %58, %cst_74 {dimension_numbers = #tpu.dot_dimension_numbers<[1], [0], [0], [1], [0, 0, 1, 1], [], []>} : vector<256x144xf32>, vector<144x32xf32>, vector<256x32xf32> -> vector<256x32xf32>
    %c0_75 = arith.constant 0 : index
    %c0_76 = arith.constant 0 : index
    %60 = vector.load %arg5[%c0_75, %c0_76] : memref<1x32xf32, #tpu.memory_space<vmem>>, vector<1x32xf32>
    %61 = vector.broadcast %60 : vector<1x32xf32> to vector<256x32xf32>
    %62 = arith.addf %59, %61 : vector<256x32xf32>
    %cst_77 = arith.constant 0.000000e+00 : f32
    %63 = vector.broadcast %cst_77 : f32 to vector<256x32xf32>
    %64 = arith.maximumf %62, %63 : vector<256x32xf32>
    %cst_78 = arith.constant 0.000000e+00 : f32
    %65 = vector.broadcast %cst_78 : f32 to vector<18x18x32xf32>
    %c0_79 = arith.constant 0 : index
    %c0_80 = arith.constant 0 : index
    %c0_81 = arith.constant 0 : index
    %66 = vector.load %arg10[%c0_79, %c0_80, %c0_81] : memref<18x18x32xf32, #tpu.memory_space<vmem>>, vector<18x18x32xf32>
    tpu.vector_store %arg10[%c0_79, %c0_80, %c0_81], %65 {strides = array<i32>} : memref<18x18x32xf32, #tpu.memory_space<vmem>>, vector<18x18x32xf32>,
    %67 = vector.shape_cast %64 : vector<256x32xf32> to vector<16x16x32xf32>
    %c1_82 = arith.constant 1 : index
    %c1_83 = arith.constant 1 : index
    %c0_84 = arith.constant 0 : index
    %68 = vector.load %arg10[%c1_82, %c1_83, %c0_84] : memref<18x18x32xf32, #tpu.memory_space<vmem>>, vector<16x16x32xf32>
    tpu.vector_store %arg10[%c1_82, %c1_83, %c0_84], %67 {strides = array<i32>} : memref<18x18x32xf32, #tpu.memory_space<vmem>>, vector<16x16x32xf32>,
    %c0_85 = arith.constant 0 : index
    %c0_86 = arith.constant 0 : index
    %c0_87 = arith.constant 0 : index
    %69 = vector.load %arg10[%c0_85, %c0_86, %c0_87] : memref<18x18x32xf32, #tpu.memory_space<vmem>>, vector<16x16x32xf32>
    %70 = vector.shape_cast %69 : vector<16x16x32xf32> to vector<256x32xf32>
    %c0_88 = arith.constant 0 : index
    %c1_89 = arith.constant 1 : index
    %c0_90 = arith.constant 0 : index
    %71 = vector.load %arg10[%c0_88, %c1_89, %c0_90] : memref<18x18x32xf32, #tpu.memory_space<vmem>>, vector<16x16x32xf32>
    %72 = vector.shape_cast %71 : vector<16x16x32xf32> to vector<256x32xf32>
    %c0_91 = arith.constant 0 : index
    %c2_92 = arith.constant 2 : index
    %c0_93 = arith.constant 0 : index
    %73 = vector.load %arg10[%c0_91, %c2_92, %c0_93] : memref<18x18x32xf32, #tpu.memory_space<vmem>>, vector<16x16x32xf32>
    %74 = vector.shape_cast %73 : vector<16x16x32xf32> to vector<256x32xf32>
    %c1_94 = arith.constant 1 : index
    %c0_95 = arith.constant 0 : index
    %c0_96 = arith.constant 0 : index
    %75 = vector.load %arg10[%c1_94, %c0_95, %c0_96] : memref<18x18x32xf32, #tpu.memory_space<vmem>>, vector<16x16x32xf32>
    %76 = vector.shape_cast %75 : vector<16x16x32xf32> to vector<256x32xf32>
    %c1_97 = arith.constant 1 : index
    %c1_98 = arith.constant 1 : index
    %c0_99 = arith.constant 0 : index
    %77 = vector.load %arg10[%c1_97, %c1_98, %c0_99] : memref<18x18x32xf32, #tpu.memory_space<vmem>>, vector<16x16x32xf32>
    %78 = vector.shape_cast %77 : vector<16x16x32xf32> to vector<256x32xf32>
    %c1_100 = arith.constant 1 : index
    %c2_101 = arith.constant 2 : index
    %c0_102 = arith.constant 0 : index
    %79 = vector.load %arg10[%c1_100, %c2_101, %c0_102] : memref<18x18x32xf32, #tpu.memory_space<vmem>>, vector<16x16x32xf32>
    %80 = vector.shape_cast %79 : vector<16x16x32xf32> to vector<256x32xf32>
    %c2_103 = arith.constant 2 : index
    %c0_104 = arith.constant 0 : index
    %c0_105 = arith.constant 0 : index
    %81 = vector.load %arg10[%c2_103, %c0_104, %c0_105] : memref<18x18x32xf32, #tpu.memory_space<vmem>>, vector<16x16x32xf32>
    %82 = vector.shape_cast %81 : vector<16x16x32xf32> to vector<256x32xf32>
    %c2_106 = arith.constant 2 : index
    %c1_107 = arith.constant 1 : index
    %c0_108 = arith.constant 0 : index
    %83 = vector.load %arg10[%c2_106, %c1_107, %c0_108] : memref<18x18x32xf32, #tpu.memory_space<vmem>>, vector<16x16x32xf32>
    %84 = vector.shape_cast %83 : vector<16x16x32xf32> to vector<256x32xf32>
    %c2_109 = arith.constant 2 : index
    %c2_110 = arith.constant 2 : index
    %c0_111 = arith.constant 0 : index
    %85 = vector.load %arg10[%c2_109, %c2_110, %c0_111] : memref<18x18x32xf32, #tpu.memory_space<vmem>>, vector<16x16x32xf32>
    %86 = vector.shape_cast %85 : vector<16x16x32xf32> to vector<256x32xf32>
    %87 = tpu.concatenate %70, %72, %74, %76, %78, %80, %82, %84, %86 in 1 : vector<256x32xf32>, vector<256x32xf32>, vector<256x32xf32>, vector<256x32xf32>, vector<256x32xf32>, vector<256x32xf32>, vector<256x32xf32>, vector<256x32xf32>, vector<256x32xf32> -> vector<256x288xf32>
    %c0_112 = arith.constant 0 : index
    %c0_113 = arith.constant 0 : index
    %88 = vector.load %arg6[%c0_112, %c0_113] : memref<288x1xf32, #tpu.memory_space<vmem>>, vector<288x1xf32>
    %cst_114 = arith.constant dense<0.000000e+00> : vector<256x1xf32>
    %89 = tpu.matmul %87, %88, %cst_114 {dimension_numbers = #tpu.dot_dimension_numbers<[1], [0], [0], [1], [0, 0, 1, 1], [], []>} : vector<256x288xf32>, vector<288x1xf32>, vector<256x1xf32> -> vector<256x1xf32>
    %c0_115 = arith.constant 0 : index
    %c0_116 = arith.constant 0 : index
    %90 = vector.load %arg7[%c0_115, %c0_116] : memref<1x1xf32, #tpu.memory_space<vmem>>, vector<1x1xf32>
    %91 = vector.broadcast %90 : vector<1x1xf32> to vector<256x1xf32>
    %92 = arith.addf %89, %91 : vector<256x1xf32>
    %93 = tpu.iota {dimensions = array<i32: 0>} : vector<256x256xi32>
    %94 = tpu.iota {dimensions = array<i32: 1>} : vector<256x256xi32>
    %95 = arith.cmpi eq, %93, %94 : vector<256x256xi32>
    %cst_117 = arith.constant 0.000000e+00 : f32
    %96 = vector.shape_cast %92 : vector<256x1xf32> to vector<256x1xf32>
    %97 = vector.broadcast %96 : vector<256x1xf32> to vector<256x256xf32>
    %98 = vector.broadcast %cst_117 : f32 to vector<256x256xf32>
    %99 = arith.select %95, %97, %98 : vector<256x256xi1>, vector<256x256xf32>
    %cst_118 = arith.constant 1.000000e+00 : f32
    %100 = vector.broadcast %cst_118 : f32 to vector<1x256xf32>
    %cst_119 = arith.constant dense<0.000000e+00> : vector<1x256xf32>
    %101 = tpu.matmul %100, %99, %cst_119 {dimension_numbers = #tpu.dot_dimension_numbers<[1], [0], [0], [1], [0, 0, 1, 1], [], []>} : vector<1x256xf32>, vector<256x256xf32>, vector<1x256xf32> -> vector<1x256xf32>
    %102 = vector.shape_cast %101 : vector<1x256xf32> to vector<1x1x256xf32>
    %c0_120 = arith.constant 0 : index
    %c0_121 = arith.constant 0 : index
    %c0_122 = arith.constant 0 : index
    %103 = vector.load %arg8[%c0_120, %c0_121, %c0_122] : memref<1x1x256xf32, #tpu.memory_space<vmem>>, vector<1x1x256xf32>
    tpu.vector_store %arg8[%c0_120, %c0_121, %c0_122], %102 {strides = array<i32>} : memref<1x1x256xf32, #tpu.memory_space<vmem>>, vector<1x1x256xf32>,
    return
  }
  func.func @transform_0(%arg0: i32) -> (i32, i32, i32, i32) {
    %c0_i32 = arith.constant 0 : i32
    %c0_i32_0 = arith.constant 0 : i32
    %c0_i32_1 = arith.constant 0 : i32
    %c0_i32_2 = arith.constant 0 : i32
    return %arg0, %c0_i32, %c0_i32_0, %c0_i32_1 : i32, i32, i32, i32
  }
  func.func @transform_1(%arg0: i32) -> (i32, i32) {
    %c0_i32 = arith.constant 0 : i32
    %c0_i32_0 = arith.constant 0 : i32
    %c0_i32_1 = arith.constant 0 : i32
    return %c0_i32, %c0_i32_0 : i32, i32
  }
  func.func @transform_2(%arg0: i32) -> (i32, i32) {
    %c0_i32 = arith.constant 0 : i32
    %c0_i32_0 = arith.constant 0 : i32
    %c0_i32_1 = arith.constant 0 : i32
    return %c0_i32, %c0_i32_0 : i32, i32
  }
  func.func @transform_3(%arg0: i32) -> (i32, i32) {
    %c0_i32 = arith.constant 0 : i32
    %c0_i32_0 = arith.constant 0 : i32
    %c0_i32_1 = arith.constant 0 : i32
    return %c0_i32, %c0_i32_0 : i32, i32
  }
  func.func @transform_4(%arg0: i32) -> (i32, i32) {
    %c0_i32 = arith.constant 0 : i32
    %c0_i32_0 = arith.constant 0 : i32
    %c0_i32_1 = arith.constant 0 : i32
    return %c0_i32, %c0_i32_0 : i32, i32
  }
  func.func @transform_5(%arg0: i32) -> (i32, i32) {
    %c0_i32 = arith.constant 0 : i32
    %c0_i32_0 = arith.constant 0 : i32
    %c0_i32_1 = arith.constant 0 : i32
    return %c0_i32, %c0_i32_0 : i32, i32
  }
  func.func @transform_6(%arg0: i32) -> (i32, i32) {
    %c0_i32 = arith.constant 0 : i32
    %c0_i32_0 = arith.constant 0 : i32
    %c0_i32_1 = arith.constant 0 : i32
    return %c0_i32, %c0_i32_0 : i32, i32
  }
  func.func @transform_7(%arg0: i32) -> (i32, i32, i32) {
    %c0_i32 = arith.constant 0 : i32
    %c0_i32_0 = arith.constant 0 : i32
    %c0_i32_1 = arith.constant 0 : i32
    return %arg0, %c0_i32, %c0_i32_0 : i32, i32, i32
  }
}

</mosaic_0001>

<bundles_post_ra>
// kernel: edge_net_forward.1
= control target key start
LH: loop header
LB: loop body
LE: loop exit
PB: predicated region body
PF: predicated region fallthrough
CT: control target
= control target key end

     0   :  { %s8415_s26 = smov 0   ;;  %s11753_s0 = inlined_call_operand.vmem [shape: f32[2,18,18,3], index: 0, kind: input, shape index: {}]   ;;  %s11754_s1 = inlined_call_operand.vmem [shape: f32[27,16], index: 1, kind: input, shape index: {}]   ;;  %s11755_s2 = inlined_call_operand.vmem [shape: f32[1,16], index: 2, kind: input, shape index: {}]   ;;  %s11756_s3 = inlined_call_operand.vmem [shape: f32[144,32], index: 3, kind: input, shape index: {}]   ;;  %s11757_s4 = inlined_call_operand.vmem [shape: f32[1,32], index: 4, kind: input, shape index: {}]   ;;  %s11758_s5 = inlined_call_operand.vmem [shape: f32[288,1], index: 5, kind: input, shape index: {}]   ;;  %s11759_s6 = inlined_call_operand.<no memory space> [shape: f32[1,1], index: 6, kind: input, shape index: {}]   ;;  %s11760_s7 = inlined_call_operand.vmem [shape: f32[2,1,256], index: 7, kind: output, shape index: {}]  }
   0x1   :  { %v12_v0 = vstv %s11759_s6 }
   0x2   :  { %13 = vst [vmem:[#allocation4] sm:$0x1] %v12_v0 }
   0x3 LB: > { %s6505_s27 = sadd.s32 4294967295, %s8349_s26   ;;  %p6509_p0 = scmp.ge.s32.totalorder %s8349_s26, 1  ;;  %s8349_s26 = sphi %s8415_s26, %s19_s26  }
   0x4   : > { %p239_p1 = scmp.lt.s32.totalorder %s8349_s26, 3 }
   0x6   : > { %p240_p2 = pnand %p6509_p0, %p239_p1 }
   0x8   : > { %243 = sbr.rel (%p240_p2) target bundleno = 1949 (0x79d), region = 48 }
   0xf   : > { %p270_p3 = scmp.lt.s32.totalorder %s6505_s27, 1  ;;  %s8351_s8 = smov 3   ;;  %vm1593_vm0 = vcmask 23552   ;;  %vm1626_vm1 = vcmask 48128   ;;  %vm1965_vm2 = vcmask 1042432   ;;  %vm8357_vm3 = vmmov 1  }
  0x10   : > { %s8352_s9 = smov 6   ;;  %s8353_s10 = smov 9   ;;  %vm7027_vm4 = vmpackc.low %vm1965_vm2, %vm8357_vm3  ;;  %vm1659_vm5 = vcmask 72704   ;;  %vm1692_vm6 = vcmask 97280   ;;  %vm1725_vm7 = vcmask 121856   ;;  %vm1758_vm8 = vcmask 146432  }
  0x11   : > { %s11872_s27 = smov (!%p270_p3, %s6505_s27), 1  ;;  %s8354_s11 = smov 12   ;;  %vm1791_vm9 = vcmask 171008   ;;  %vm1824_vm10 = vcmask 195584   ;;  %vm1868_vm11 = vcmask 220160   ;;  %vm2226_vm12 = vcmask 130048  }
  0x12   : > { %s7179_s6 = smul.u32 432, %s11872_s27  ;;  %s8355_s16 = smov 15   ;;  %vm2229_vm13 = vcmask 123904   ;;  %vm3532_vm14 = vcmask 261120   ;;  %vm3565_vm15 = vcmask 392192   ;;  %vm3664_vm2 = vcmask 785408  }
  0x13   : > { %s8356_s21 = smov 18   ;;  %s8358_s22 = smov 21   ;;  %vm3697_vm3 = vcmask 916480  }
  0x14   : > { %s8429_s30 = scalar_lea.vmem %s11753_s0, %s7179_s6  ;;  %s8359_s23 = smov 24  }
  0x15   : > { %v8432_v1 = vld [vmem:[%s8429_s30 + $0x19] sm:$0xff]  ;;  %v311_v2 = vld [vmem:[%s8429_s30 + $0x1] sm:$0xff]  ;;  %v312_v4 = vld [vmem:[%s8429_s30 + $0x9] sm:$0xff]  ;;  %s8361_s24 = smov 32   ;;  %s8362_s25 = smov 16  }
  0x16   : > { %605 = vrot.lane.b32.xlu1 %v8432_v1, %s8351_s8  ;;  %601 = vrot.lane.b32.xlu0 %v311_v2, %s8351_s8  ;;  %v8439_v3 = vld [vmem:[%s8429_s30 + $0x21] sm:$0xff]  ;;  %v8446_v5 = vld [vmem:[%s8429_s30 + $0x39] sm:$0xff]  ;;  %s8366_s6 = smov 80   ;;  %s8367_s28 = smov 96  }
  0x17   : > { %v8449_v6 = vld [vmem:[%s8429_s30 + $0x31] sm:$0xff]  ;;  %v8459_v8 = vld [vmem:[%s8429_s30 + $0x49] sm:$0xff]  ;;  %v8469_v10 = vld [vmem:[%s8429_s30 + $0x61] sm:$0xff]  ;;  %s8368_s29 = smov 112  }
  0x18   : > { %v8456_v7 = vld [vmem:[%s8429_s30 + $0x51] sm:$0xff]  ;;  %v8466_v9 = vld [vmem:[%s8429_s30 + $0x69] sm:$0xff]  ;;  %11800 = vst [vmem:[#allocation6_spill] sm:$0xff] %v8469_v10  ;;  %v8476_v11 = vld [vmem:[%s8429_s30 + $0x81] sm:$0xff] }
  0x19   : > { %11799 = vst [vmem:[#allocation5_spill] sm:$0xff] %v8466_v9  ;;  %11801 = vst [vmem:[#allocation7_spill] sm:$0xff] %v8476_v11  ;;  %v8479_v12 = vld [vmem:[%s8429_s30 + $0x79] sm:$0xff]  ;;  %v8489_v14 = vld [vmem:[%s8429_s30 + $0x91] sm:$0xff] }
  0x1a   : > { %607 = vrot.lane.b32.xlu1 %v8439_v3, %s8351_s8  ;;  %603 = vrot.lane.b32.xlu0 %v312_v4, %s8351_s8  ;;  %11802 = vst [vmem:[#allocation8_spill] sm:$0xff] %v8479_v12  ;;  %v8486_v13 = vld [vmem:[%s8429_s30 + $0x99] sm:$0xff]  ;;  %11804 = vst [vmem:[#allocation10_spill] sm:$0xff] %v8489_v14  ;;  %v8496_v15 = vld [vmem:[%s8429_s30 + $0xb1] sm:$0xff] }
  0x1b   : > { %11803 = vst [vmem:[#allocation9_spill] sm:$0xff] %v8486_v13  ;;  %11805 = vst [vmem:[#allocation11_spill] sm:$0xff] %v8496_v15  ;;  %v8499_v16 = vld [vmem:[%s8429_s30 + $0xa9] sm:$0xff]  ;;  %v327_v18 = vld [vmem:[%s8429_s30 + $0xc1] sm:$0xff] }
  0x1c   : > { %11806 = vst [vmem:[#allocation12_spill] sm:$0xff] %v8499_v16  ;;  %v328_v17 = vld [vmem:[%s8429_s30 + $0xc9] sm:$0xff]  ;;  %v330_v19 = vld [vmem:[%s8429_s30 + $0xe1] sm:$0xff]  ;;  %v329_v20 = vld [vmem:[%s8429_s30 + $0xd9] sm:$0xff] }
  0x1d   : > { %v332_v21 = vld [vmem:[%s8429_s30 + $0xf9] sm:$0xff]  ;;  %v331_v22 = vld [vmem:[%s8429_s30 + $0xf1] sm:$0xff]  ;;  %v333_v24 = vld [vmem:[%s8429_s30 + $0x109] sm:$0xff] }
  0x1e   : > { %611 = vrot.lane.b32.xlu1 %v8446_v5, %s8351_s8  ;;  %609 = vrot.lane.b32.xlu0 %v8449_v6, %s8351_s8  ;;  %v334_v23 = vld [vmem:[%s8429_s30 + $0x111] sm:$0xff]  ;;  %v336_v25 = vld [vmem:[%s8429_s30 + $0x129] sm:$0xff] }
  0x1f   : > { %v335_v26 = vld [vmem:[%s8429_s30 + $0x121] sm:$0xff]  ;;  %v337_v28 = vld [vmem:[%s8429_s30 + $0x139] sm:$0xff]  ;;  %v339_v30 = vld [vmem:[%s8429_s30 + $0x151] sm:$0xff] }
  0x20   : > { %v338_v27 = vld [vmem:[%s8429_s30 + $0x141] sm:$0xff]  ;;  %v340_v29 = vld [vmem:[%s8429_s30 + $0x159] sm:$0xff]  ;;  %v342_v31 = vld [vmem:[%s8429_s30 + $0x171] sm:$0xff] }
  0x21   : > { %v341_v32 = vld [vmem:[%s8429_s30 + $0x169] sm:$0xff]  ;;  %v8545_v36 = vld [vmem:[%s8429_s30 + $0x1a] sm:$0xff]  ;;  %v8555_v38 = vld [vmem:[%s8429_s30 + $0x32] sm:$0xff] }
  0x22   : > { %615 = vrot.lane.b32.xlu1 %v8456_v7, %s8351_s8  ;;  %613 = vrot.lane.b32.xlu0 %v8459_v8, %s8351_s8  ;;  %v344_v33 = vld [vmem:[%s8429_s30 + $0xa] sm:$0xff]  ;;  %v343_v34 = vld [vmem:[%s8429_s30 + $0x2] sm:$0xff] }
  0x23   : > { %v8542_v35 = vld [vmem:[%s8429_s30 + $0x22] sm:$0xff]  ;;  %v8552_v37 = vld [vmem:[%s8429_s30 + $0x3a] sm:$0xff]  ;;  %v8562_v39 = vld [vmem:[%s8429_s30 + $0x52] sm:$0xff] }
  0x24   : > { %11807 = vst [vmem:[#allocation13_spill] sm:$0xff] %v8562_v39  ;;  %v8565_v40 = vld [vmem:[%s8429_s30 + $0x4a] sm:$0xff]  ;;  %v8575_v42 = vld [vmem:[%s8429_s30 + $0x62] sm:$0xff]  ;;  %v8585_v44 = vld [vmem:[%s8429_s30 + $0x7a] sm:$0xff] }
  0x25   : > { %11808 = vst [vmem:[#allocation14_spill] sm:$0xff] %v8565_v40  ;;  %v8572_v41 = vld [vmem:[%s8429_s30 + $0x6a] sm:$0xff]  ;;  %11810 = vst [vmem:[#allocation16_spill] sm:$0xff] %v8575_v42  ;;  %v8582_v43 = vld [vmem:[%s8429_s30 + $0x82] sm:$0xff] }
  0x26   : > { %619 = vrot.lane.b32.xlu1 %v8466_v9, %s8351_s8  ;;  %617 = vrot.lane.b32.xlu0 %v8469_v10, %s8351_s8  ;;  %11809 = vst [vmem:[#allocation15_spill] sm:$0xff] %v8572_v41  ;;  %11811 = vst [vmem:[#allocation17_spill] sm:$0xff] %v8582_v43  ;;  %v8592_v45 = vld [vmem:[%s8429_s30 + $0x9a] sm:$0xff]  ;;  %v8595_v46 = vld [vmem:[%s8429_s30 + $0x92] sm:$0xff] }
  0x27   : > { %11812 = vst [vmem:[#allocation18_spill] sm:$0xff] %v8585_v44  ;;  %11813 = vst [vmem:[#allocation19_spill] sm:$0xff] %v8592_v45  ;;  %v8602_v47 = vld [vmem:[%s8429_s30 + $0xb2] sm:$0xff]  ;;  %v8605_v48 = vld [vmem:[%s8429_s30 + $0xaa] sm:$0xff] }
  0x28   : > { %11814 = vst [vmem:[#allocation20_spill] sm:$0xff] %v8595_v46  ;;  %11815 = vst [vmem:[#allocation21_spill] sm:$0xff] %v8602_v47  ;;  %v8612_v49 = vld [vmem:[%s8429_s30 + $0xca] sm:$0xff]  ;;  %v8615_v50 = vld [vmem:[%s8429_s30 + $0xc2] sm:$0xff] }
  0x29   : > { %11816 = vst [vmem:[#allocation22_spill] sm:$0xff] %v8605_v48  ;;  %11817 = vst [vmem:[#allocation23_spill] sm:$0xff] %v8612_v49  ;;  %v362_v51 = vld [vmem:[%s8429_s30 + $0xe2] sm:$0xff]  ;;  %v361_v52 = vld [vmem:[%s8429_s30 + $0xda] sm:$0xff] }
  0x2a   : > { %623 = vrot.lane.b32.xlu1 %v8476_v11, %s8351_s8  ;;  %621 = vrot.lane.b32.xlu0 %v8479_v12, %s8351_s8  ;;  %11818 = vst [vmem:[#allocation24_spill] sm:$0xff] %v8615_v50  ;;  %v364_v53 = vld [vmem:[%s8429_s30 + $0xfa] sm:$0xff]  ;;  %v363_v54 = vld [vmem:[%s8429_s30 + $0xf2] sm:$0xff] }
  0x2b   : > { %v366_v55 = vld [vmem:[%s8429_s30 + $0x112] sm:$0xff]  ;;  %v365_v56 = vld [vmem:[%s8429_s30 + $0x10a] sm:$0xff]  ;;  %v367_v58 = vld [vmem:[%s8429_s30 + $0x122] sm:$0xff] }
  0x2c   : > { %v368_v57 = vld [vmem:[%s8429_s30 + $0x12a] sm:$0xff]  ;;  %v370_v59 = vld [vmem:[%s8429_s30 + $0x142] sm:$0xff]  ;;  %v369_v60 = vld [vmem:[%s8429_s30 + $0x13a] sm:$0xff] }
  0x2d   : > { %v372_v63 = vld [vmem:[%s8429_s30 + $0x15a] sm:$0xff]  ;;  %v371_v0 = vld [vmem:[%s8429_s30 + $0x152] sm:$0xff] }
  0x2e   : > { %627 = vrot.lane.b32.xlu1 %v8486_v13, %s8351_s8  ;;  %625 = vrot.lane.b32.xlu0 %v8489_v14, %s8351_s8  ;;  %v308_v12 = vld [vmem:[%s8429_s30 + $0x158] sm:$0xff]  ;;  %v307_v11 = vld [vmem:[%s8429_s30 + $0x150] sm:$0xff] }
  0x32   : > { %631 = vrot.lane.b32.xlu1 %v8496_v15, %s8351_s8  ;;  %629 = vrot.lane.b32.xlu0 %v8499_v16, %s8351_s8 }
  0x36   : > { %635 = vrot.lane.b32.xlu1 %v328_v17, %s8351_s8  ;;  %633 = vrot.lane.b32.xlu0 %v327_v18, %s8351_s8  ;;  %v374_v17 = vld [vmem:[%s8429_s30 + $0x172] sm:$0xff]  ;;  %v373_v18 = vld [vmem:[%s8429_s30 + $0x16a] sm:$0xff] }
  0x3a   : > { %639 = vrot.lane.b32.xlu1 %v330_v19, %s8351_s8  ;;  %637 = vrot.lane.b32.xlu0 %v329_v20, %s8351_s8 }
  0x3e   : > { %643 = vrot.lane.b32.xlu1 %v332_v21, %s8351_s8  ;;  %641 = vrot.lane.b32.xlu0 %v331_v22, %s8351_s8 }
  0x42   : > { %647 = vrot.lane.b32.xlu1 %v334_v23, %s8351_s8  ;;  %645 = vrot.lane.b32.xlu0 %v333_v24, %s8351_s8  ;;  %v8666_v23 = vld [vmem:[%s8429_s30 + $0x18] sm:$0xff]  ;;  %v8669_v24 = vld [vmem:[%s8429_s30 + $0x20] sm:$0xff] }
  0x43   : > { %11827 = vst [vmem:[#allocation33_spill] sm:$0xff] %v8666_v23  ;;  %11828 = vst [vmem:[#allocation34_spill] sm:$0xff] %v8669_v24 }
  0x46   : > { %651 = vrot.lane.b32.xlu1 %v336_v25, %s8351_s8  ;;  %649 = vrot.lane.b32.xlu0 %v335_v26, %s8351_s8 }
  0x4a   : > { %655 = vrot.lane.b32.xlu1 %v338_v27, %s8351_s8  ;;  %653 = vrot.lane.b32.xlu0 %v337_v28, %s8351_s8  ;;  %v8680_v27 = vld [vmem:[%s8429_s30 + $0x38] sm:$0xff]  ;;  %v8683_v28 = vld [vmem:[%s8429_s30 + $0x30] sm:$0xff] }
  0x4e   : > { %659 = vrot.lane.b32.xlu1 %v340_v29, %s8351_s8  ;;  %657 = vrot.lane.b32.xlu0 %v339_v30, %s8351_s8 }
  0x52   : > { %663 = vrot.lane.b32.xlu1 %v342_v31, %s8351_s8  ;;  %661 = vrot.lane.b32.xlu0 %v341_v32, %s8351_s8  ;;  %v8694_v31 = vld [vmem:[%s8429_s30 + $0x50] sm:$0xff]  ;;  %v8697_v32 = vld [vmem:[%s8429_s30 + $0x48] sm:$0xff] }
  0x56   : > { %731 = vrot.lane.b32.xlu1 %v344_v33, %s8352_s9  ;;  %729 = vrot.lane.b32.xlu0 %v343_v34, %s8352_s9 }
  0x5a   : > { %735 = vrot.lane.b32.xlu1 %v8542_v35, %s8352_s9  ;;  %733 = vrot.lane.b32.xlu0 %v8545_v36, %s8352_s9 }
  0x5e   : > { %739 = vrot.lane.b32.xlu1 %v8552_v37, %s8352_s9  ;;  %737 = vrot.lane.b32.xlu0 %v8555_v38, %s8352_s9 }
  0x62   : > { %743 = vrot.lane.b32.xlu1 %v8562_v39, %s8352_s9  ;;  %741 = vrot.lane.b32.xlu0 %v8565_v40, %s8352_s9 }
  0x66   : > { %747 = vrot.lane.b32.xlu1 %v8572_v41, %s8352_s9  ;;  %745 = vrot.lane.b32.xlu0 %v8575_v42, %s8352_s9 }
  0x6a   : > { %751 = vrot.lane.b32.xlu1 %v8582_v43, %s8352_s9  ;;  %749 = vrot.lane.b32.xlu0 %v8585_v44, %s8352_s9  ;;  %v8808_v44 = vld [vmem:[%s8429_s30 + $0x110] sm:$0xff]  ;;  %v8811_v43 = vld [vmem:[%s8429_s30 + $0x108] sm:$0xff] }
  0x6e   : > { %755 = vrot.lane.b32.xlu1 %v8592_v45, %s8352_s9  ;;  %753 = vrot.lane.b32.xlu0 %v8595_v46, %s8352_s9  ;;  %v306_v46 = vld [vmem:[%s8429_s30 + $0x140] sm:$0xff]  ;;  %v305_v45 = vld [vmem:[%s8429_s30 + $0x138] sm:$0xff] }
  0x72   : > { %759 = vrot.lane.b32.xlu1 %v8602_v47, %s8352_s9  ;;  %757 = vrot.lane.b32.xlu0 %v8605_v48, %s8352_s9  ;;  %v8790_v48 = vld [vmem:[%s8429_s30 + $0xf8] sm:$0xff]  ;;  %v8793_v47 = vld [vmem:[%s8429_s30 + $0xf0] sm:$0xff] }
  0x76   : > { %763 = vrot.lane.b32.xlu1 %v8612_v49, %s8352_s9  ;;  %761 = vrot.lane.b32.xlu0 %v8615_v50, %s8352_s9  ;;  %v304_v50 = vld [vmem:[%s8429_s30 + $0x128] sm:$0xff]  ;;  %v303_v49 = vld [vmem:[%s8429_s30 + $0x120] sm:$0xff] }
  0x7a   : > { %767 = vrot.lane.b32.xlu1 %v362_v51, %s8352_s9  ;;  %765 = vrot.lane.b32.xlu0 %v361_v52, %s8352_s9  ;;  %v8708_v51 = vld [vmem:[%s8429_s30 + $0x68] sm:$0xff]  ;;  %v8711_v52 = vld [vmem:[%s8429_s30 + $0x60] sm:$0xff] }
  0x7e   : > { %771 = vrot.lane.b32.xlu1 %v364_v53, %s8352_s9  ;;  %769 = vrot.lane.b32.xlu0 %v363_v54, %s8352_s9 }
  0x82   : > { %775 = vrot.lane.b32.xlu1 %v366_v55, %s8352_s9  ;;  %773 = vrot.lane.b32.xlu0 %v365_v56, %s8352_s9  ;;  %v8722_v55 = vld [vmem:[%s8429_s30 + $0x80] sm:$0xff]  ;;  %v8725_v56 = vld [vmem:[%s8429_s30 + $0x78] sm:$0xff] }
  0x86   : > { %779 = vrot.lane.b32.xlu1 %v368_v57, %s8352_s9  ;;  %777 = vrot.lane.b32.xlu0 %v367_v58, %s8352_s9 }
  0x88   : > { %v8639_v61 = vpop.permute.xlu1 %605  ;;  %v8641_v62 = vpop.permute.xlu0 %601 }
  0x89   : > { %11819 = vst [vmem:[#allocation25_spill] sm:$0xff] %v8639_v61  ;;  %11820 = vst [vmem:[#allocation26_spill] sm:$0xff] %v8641_v62  ;;  %v8781_v61 = vld [vmem:[%s8429_s30 + $0xd8] sm:$0xff] }
  0x8a   : > { %783 = vrot.lane.b32.xlu1 %v370_v59, %s8352_s9  ;;  %781 = vrot.lane.b32.xlu0 %v369_v60, %s8352_s9  ;;  %v8736_v59 = vld [vmem:[%s8429_s30 + $0x98] sm:$0xff]  ;;  %v8739_v60 = vld [vmem:[%s8429_s30 + $0x90] sm:$0xff] }
  0x8c   : > { %v8647_v2 = vpop.permute.xlu1 %607  ;;  %v8649_v4 = vpop.permute.xlu0 %603 }
  0x8d   : > { %11821 = vst [vmem:[#allocation27_spill] sm:$0xff] %v8647_v2  ;;  %11822 = vst [vmem:[#allocation28_spill] sm:$0xff] %v8649_v4 }
  0x8e   : > { %787 = vrot.lane.b32.xlu1 %v372_v63, %s8352_s9  ;;  %785 = vrot.lane.b32.xlu0 %v371_v0, %s8352_s9 }
  0x90   : > { %v8655_v19 = vpop.permute.xlu1 %611  ;;  %v8657_v20 = vpop.permute.xlu0 %609 }
  0x91   : > { %11823 = vst [vmem:[#allocation29_spill] sm:$0xff] %v8655_v19  ;;  %11824 = vst [vmem:[#allocation30_spill] sm:$0xff] %v8657_v20  ;;  %v8764_v20 = vld [vmem:[%s8429_s30 + $0xc8] sm:$0xff]  ;;  %v8767_v19 = vld [vmem:[%s8429_s30 + $0xc0] sm:$0xff] }
  0x92   : > { %791 = vrot.lane.b32.xlu1 %v374_v17, %s8352_s9  ;;  %789 = vrot.lane.b32.xlu0 %v373_v18, %s8352_s9  ;;  %v8750_v17 = vld [vmem:[%s8429_s30 + $0xb0] sm:$0xff]  ;;  %v8753_v18 = vld [vmem:[%s8429_s30 + $0xa8] sm:$0xff] }
  0x94   : > { %v8661_v21 = vpop.permute.xlu1 %615  ;;  %v8663_v22 = vpop.permute.xlu0 %613 }
  0x95   : > { %11825 = vst [vmem:[#allocation31_spill] sm:$0xff] %v8661_v21  ;;  %11826 = vst [vmem:[#allocation32_spill] sm:$0xff] %v8663_v22 }
  0x96   : > { %859 = vrot.lane.b32.xlu1 %v8669_v24, %s8353_s10  ;;  %857 = vrot.lane.b32.xlu0 %v8666_v23, %s8353_s10  ;;  %v8778_v23 = vld [vmem:[%s8429_s30 + $0xe0] sm:$0xff] }
  0x98   : > { %v8675_v25 = vpop.permute.xlu1 %619  ;;  %v8677_v26 = vpop.permute.xlu0 %617 }
  0x9a   : > { %863 = vrot.lane.b32.xlu1 %v8680_v27, %s8353_s10  ;;  %861 = vrot.lane.b32.xlu0 %v8683_v28, %s8353_s10 }
  0x9c   : > { %v8689_v29 = vpop.permute.xlu1 %623  ;;  %v8691_v30 = vpop.permute.xlu0 %621 }
  0x9e   : > { %867 = vrot.lane.b32.xlu1 %v8694_v31, %s8353_s10  ;;  %865 = vrot.lane.b32.xlu0 %v8697_v32, %s8353_s10 }
  0xa0   : > { %v8703_v33 = vpop.permute.xlu1 %627  ;;  %v8705_v34 = vpop.permute.xlu0 %625 }
  0xa2   : > { %871 = vrot.lane.b32.xlu1 %v8708_v51, %s8353_s10  ;;  %869 = vrot.lane.b32.xlu0 %v8711_v52, %s8353_s10 }
  0xa4   : > { %v8717_v53 = vpop.permute.xlu1 %631  ;;  %v8719_v54 = vpop.permute.xlu0 %629 }
  0xa6   : > { %875 = vrot.lane.b32.xlu1 %v8722_v55, %s8353_s10  ;;  %873 = vrot.lane.b32.xlu0 %v8725_v56, %s8353_s10 }
  0xa8   : > { %v8731_v57 = vpop.permute.xlu1 %635  ;;  %v8733_v58 = vpop.permute.xlu0 %633 }
  0xaa   : > { %879 = vrot.lane.b32.xlu1 %v8736_v59, %s8353_s10  ;;  %877 = vrot.lane.b32.xlu0 %v8739_v60, %s8353_s10 }
  0xac   : > { %v8745_v63 = vpop.permute.xlu1 %639  ;;  %v8747_v0 = vpop.permute.xlu0 %637 }
  0xae   : > { %883 = vrot.lane.b32.xlu1 %v8750_v17, %s8353_s10  ;;  %881 = vrot.lane.b32.xlu0 %v8753_v18, %s8353_s10 }
  0xb0   : > { %v8759_v22 = vpop.permute.xlu1 %643  ;;  %v8761_v21 = vpop.permute.xlu0 %641 }
  0xb2   : > { %887 = vrot.lane.b32.xlu1 %v8764_v20, %s8353_s10  ;;  %885 = vrot.lane.b32.xlu0 %v8767_v19, %s8353_s10 }
  0xb4   : > { %v8773_v24 = vpop.permute.xlu1 %647  ;;  %v8775_v2 = vpop.permute.xlu0 %645 }
  0xb6   : > { %891 = vrot.lane.b32.xlu1 %v8778_v23, %s8353_s10  ;;  %889 = vrot.lane.b32.xlu0 %v8781_v61, %s8353_s10 }
  0xb8   : > { %v652_v4 = vpop.permute.xlu1 %651  ;;  %v650_v62 = vpop.permute.xlu0 %649 }
  0xb9   : > { %v8796_v16 = vsel %vm1593_vm0, %v304_v50, %v652_v4  ;;  %v8799_v15 = vsel %vm1593_vm0, %v303_v49, %v650_v62 }
  0xba   : > { %895 = vrot.lane.b32.xlu1 %v8790_v48, %s8353_s10  ;;  %893 = vrot.lane.b32.xlu0 %v8793_v47, %s8353_s10 }
  0xbc   : > { %v656_v14 = vpop.permute.xlu1 %655  ;;  %v654_v13 = vpop.permute.xlu0 %653 }
  0xbd   : > { %v8814_v4 = vsel %vm1593_vm0, %v306_v46, %v656_v14  ;;  %v8817_v62 = vsel %vm1593_vm0, %v305_v45, %v654_v13  ;;  %v310_v13 = vld [vmem:[%s8429_s30 + $0x170] sm:$0xff]  ;;  %v309_v14 = vld [vmem:[%s8429_s30 + $0x168] sm:$0xff] }
  0xbe   : > { %11829 = vst [vmem:[#allocation35_spill] sm:$0xff] %v8814_v4  ;;  %11830 = vst [vmem:[#allocation36_spill] sm:$0xff] %v8817_v62  ;;  %899 = vrot.lane.b32.xlu1 %v8808_v44, %s8353_s10  ;;  %897 = vrot.lane.b32.xlu0 %v8811_v43, %s8353_s10 }
  0xc0   : > { %v660_v42 = vpop.permute.xlu1 %659  ;;  %v658_v41 = vpop.permute.xlu0 %657 }
  0xc1   : > { %v8826_v10 = vsel %vm1593_vm0, %v308_v12, %v660_v42  ;;  %v8829_v9 = vsel %vm1593_vm0, %v307_v11, %v658_v41 }
  0xc2   : > { %903 = vrot.lane.b32.xlu1 %v304_v50, %s8353_s10  ;;  %901 = vrot.lane.b32.xlu0 %v303_v49, %s8353_s10 }
  0xc4   : > { %v664_v62 = vpop.permute.xlu1 %663  ;;  %v662_v4 = vpop.permute.xlu0 %661 }
  0xc5   : > { %v8836_v40 = vsel %vm1593_vm0, %v310_v13, %v664_v62  ;;  %v8839_v39 = vsel %vm1593_vm0, %v309_v14, %v662_v4  ;;  %v6543_v4 = vld [vmem:[%s8429_s30 + $0x188] sm:$0xff] }
  0xc6   : > { %907 = vrot.lane.b32.xlu1 %v306_v46, %s8353_s10  ;;  %905 = vrot.lane.b32.xlu0 %v305_v45, %s8353_s10  ;;  %v6542_v46 = vld [vmem:[%s8429_s30 + $0x180] sm:$0xff] }
  0xc8   : > { %v8843_v41 = vpop.permute.xlu1 %731  ;;  %v8845_v42 = vpop.permute.xlu0 %729 }
  0xca   : > { %911 = vrot.lane.b32.xlu1 %v308_v12, %s8353_s10  ;;  %909 = vrot.lane.b32.xlu0 %v307_v11, %s8353_s10 }
  0xcc   : > { %v8849_v49 = vpop.permute.xlu1 %735  ;;  %v8851_v50 = vpop.permute.xlu0 %733 }
  0xce   : > { %915 = vrot.lane.b32.xlu1 %v310_v13, %s8353_s10  ;;  %913 = vrot.lane.b32.xlu0 %v309_v14, %s8353_s10  ;;  %v1857_v13 = vld [vmem:[%s11754_s1] sm:$0xff]  ;;  %v1858_v14 = vld [vmem:[%s11754_s1 + $0x8] sm:$0xff] }
  0xd0   : > { %v8857_v62 = vpop.permute.xlu1 %739  ;;  %v8859_v45 = vpop.permute.xlu0 %737 }
  0xd1   : > { %11831 = vst [vmem:[#allocation37_spill] sm:$0xff] %v8859_v45 }
  0xd2   : > { %919 = vrot.lane.b32.xlu1 %v6543_v4, %s8353_s10  ;;  %917 = vrot.lane.b32.xlu0 %v6542_v46, %s8353_s10  ;;  %v1603_v4 = vsel %vm1593_vm0, %v8708_v51, %v8675_v25  ;;  %v1602_v46 = vsel %vm1593_vm0, %v8711_v52, %v8677_v26  ;;  %v1605_v25 = vsel %vm1593_vm0, %v8722_v55, %v8689_v29 }
  0xd3   : > { %v1604_v26 = vsel %vm1593_vm0, %v8725_v56, %v8691_v30  ;;  %v1607_v30 = vsel %vm1593_vm0, %v8736_v59, %v8703_v33  ;;  %v1608_v33 = vsel %vm1593_vm0, %v8753_v18, %v8719_v54 }
  0xd4   : > { %v8863_v12 = vpop.permute.xlu1 %743  ;;  %v8865_v11 = vpop.permute.xlu0 %741 }
  0xd5   : > { %11832 = vst [vmem:[#allocation38_spill] sm:$0xff] %v8863_v12  ;;  %11833 = vst [vmem:[#allocation39_spill] sm:$0xff] %v8865_v11 }
  0xd6   : > { %987 = vrot.lane.b32.xlu1 %v8439_v3, %s8354_s11  ;;  %985 = vrot.lane.b32.xlu0 %v8432_v1, %s8354_s11  ;;  %v7022_v1 = vpack.c.bf16 %v1858_v14, %v1857_v13 }
  0xd8   : > { %v748_v3 = vpop.permute.xlu1 %747  ;;  %v746_v11 = vpop.permute.xlu0 %745  ;;  %7023 = vmatprep.subr.bf16.mxu0 %v7022_v1 }
  0xd9   : > { %v8884_v12 = vsel %vm1626_vm1, %v1603_v4, %v748_v3  ;;  %v8887_v45 = vsel %vm1626_vm1, %v1602_v46, %v746_v11  ;;  %7025 = vmatpush3.bf16.msra.mxu0 %v7022_v1  ;;  %v1859_v11 = vld [vmem:[%s11754_s1 + $0x10] sm:$0xff]  ;;  %v1606_v3 = vsel %vm1593_vm0, %v8739_v60, %v8705_v34 }
  0xda   : > { %1113 = vrot.lane.b32.xlu1 %v8545_v36, %s8355_s16  ;;  %989 = vrot.lane.b32.xlu0 %v8449_v6, %s8354_s11  ;;  %v1860_v36 = vld [vmem:[%s11754_s1 + $0x18] sm:$0x7] }
  0xdb   : > { %v7026_v46 = vpack.c.bf16 %v1860_v36, %v1859_v11 }
  0xdc   : > { %v752_v13 = vpop.permute.xlu1 %751  ;;  %v750_v14 = vpop.permute.xlu0 %749 }
  0xdd   : > { %v8906_v4 = vsel %vm1626_vm1, %v1605_v25, %v752_v13  ;;  %v8909_v29 = vsel %vm1626_vm1, %v1604_v26, %v750_v14  ;;  %7028 = vmatprep.subr.msk.bf16.mxu0 %vm7027_vm4, %v7026_v46 }
  0xde   : > { %1241 = vrot.lane.b32.xlu1 %v8683_v28, %s8356_s21  ;;  %1115 = vrot.lane.b32.xlu0 %v8542_v35, %s8355_s16  ;;  %v1609_v35 = vsel %vm1593_vm0, %v8750_v17, %v8717_v53  ;;  %v1610_v53 = vsel %vm1593_vm0, %v8767_v19, %v8733_v58  ;;  %v1612_v58 = vsel %vm1593_vm0, %v8781_v61, %v8747_v0 }
  0xdf   : > { %7031 = vmatpush3.bf16.msk.msra.mxu0 %vm7027_vm4, %v7026_v46  ;;  %vm4110_vm4 = vcmask 254976  }
  0xe0   : > { %v756_v1 = vpop.permute.xlu1 %755  ;;  %v754_v25 = vpop.permute.xlu0 %753 }
  0xe1   : > { %v8922_v26 = vsel %vm1626_vm1, %v1607_v30, %v756_v1  ;;  %v8925_v13 = vsel %vm1626_vm1, %v1606_v3, %v754_v25 }
  0xe2   : > { %1369 = vrot.lane.b32.xlu1 %v8449_v6, %s8358_s22  ;;  %1243 = vrot.lane.b32.xlu0 %v8680_v27, %s8356_s21  ;;  %v1611_v6 = vsel %vm1593_vm0, %v8764_v20, %v8731_v57  ;;  %v1613_v57 = vsel %vm1593_vm0, %v8778_v23, %v8745_v63 }
  0xe4   : > { %v760_v34 = vpop.permute.xlu1 %759  ;;  %v758_v14 = vpop.permute.xlu0 %757 }
  0xe5   : > { %v8938_v11 = vsel %vm1626_vm1, %v1609_v35, %v760_v34  ;;  %v8941_v36 = vsel %vm1626_vm1, %v1608_v33, %v758_v14 }
  0xe6   : > { %1497 = vrot.lane.b32.xlu1 %v8555_v38, %s8359_s23  ;;  %1371 = vrot.lane.b32.xlu0 %v8446_v5, %s8358_s22 }
  0xe8   : > { %v764_v54 = vpop.permute.xlu1 %763  ;;  %v762_v46 = vpop.permute.xlu0 %761 }
  0xe9   : > { %v8954_v30 = vsel %vm1626_vm1, %v1611_v6, %v764_v54  ;;  %v8957_v3 = vsel %vm1626_vm1, %v1610_v53, %v762_v46 }
  0xea   : > { %1117 = vrot.lane.b32.xlu1 %v8555_v38, %s8355_s16  ;;  %991 = vrot.lane.b32.xlu0 %v8446_v5, %s8354_s11  ;;  %v1615_v5 = vsel %vm1593_vm0, %v8790_v48, %v8759_v22  ;;  %v1614_v38 = vsel %vm1593_vm0, %v8793_v47, %v8761_v21  ;;  %v1616_v21 = vsel %vm1593_vm0, %v8811_v43, %v8775_v2 }
  0xec   : > { %v768_v1 = vpop.permute.xlu1 %767  ;;  %v766_v25 = vpop.permute.xlu0 %765 }
  0xed   : > { %v8970_v35 = vsel %vm1626_vm1, %v1613_v57, %v768_v1  ;;  %v8973_v33 = vsel %vm1626_vm1, %v1612_v58, %v766_v25  ;;  %v11834_v58 = vld [vmem:[#allocation13_spill] sm:$0xff]  ;;  %v11835_v1 = vld [vmem:[#allocation14_spill] sm:$0xff] }
  0xee   : > { %1119 = vrot.lane.b32.xlu1 %v8552_v37, %s8355_s16  ;;  %1499 = vrot.lane.b32.xlu0 %v8552_v37, %s8359_s23  ;;  %v1617_v37 = vsel %vm1593_vm0, %v8808_v44, %v8773_v24 }
  0xf0   : > { %v772_v63 = vpop.permute.xlu1 %771  ;;  %v770_v0 = vpop.permute.xlu0 %769 }
  0xf1   : > { %v8986_v34 = vsel %vm1626_vm1, %v1615_v5, %v772_v63  ;;  %v8989_v14 = vsel %vm1626_vm1, %v1614_v38, %v770_v0  ;;  %v11836_v38 = vld [vmem:[#allocation35_spill] sm:$0xff]  ;;  %v11837_v0 = vld [vmem:[#allocation36_spill] sm:$0xff] }
  0xf2   : > { %1247 = vrot.lane.b32.xlu1 %v8694_v31, %s8356_s21  ;;  %1245 = vrot.lane.b32.xlu0 %v8697_v32, %s8356_s21 }
  0xf4   : > { %v776_v22 = vpop.permute.xlu1 %775  ;;  %v774_v6 = vpop.permute.xlu0 %773 }
  0xf5   : > { %v9002_v53 = vsel %vm1626_vm1, %v1617_v37, %v776_v22  ;;  %v9005_v54 = vsel %vm1626_vm1, %v1616_v21, %v774_v6 }
  0xf6   : > { %1375 = vrot.lane.b32.xlu1 %v8456_v7, %s8358_s22  ;;  %1373 = vrot.lane.b32.xlu0 %v8459_v8, %s8358_s22 }
  0xf8   : > { %v780_v46 = vpop.permute.xlu1 %779  ;;  %v778_v24 = vpop.permute.xlu0 %777 }
  0xf9   : > { %v9013_v57 = vsel %vm1626_vm1, %v8796_v16, %v780_v46  ;;  %v9017_v2 = vsel %vm1626_vm1, %v8799_v15, %v778_v24  ;;  %v11838_v24 = vld [vmem:[#allocation5_spill] sm:$0xff] }
  0xfa   : > { %1503 = vrot.lane.b32.xlu1 %v11834_v58, %s8359_s23  ;;  %1501 = vrot.lane.b32.xlu0 %v11835_v1, %s8359_s23 }
  0xfc   : > { %v784_v25 = vpop.permute.xlu1 %783  ;;  %v782_v5 = vpop.permute.xlu0 %781 }
  0xfd   : > { %v9025_v63 = vsel %vm1626_vm1, %v11836_v38, %v784_v25  ;;  %v9029_v16 = vsel %vm1626_vm1, %v11837_v0, %v782_v5 }
  0xfe   : > { %995 = vrot.lane.b32.xlu1 %v8456_v7, %s8354_s11  ;;  %993 = vrot.lane.b32.xlu0 %v8459_v8, %s8354_s11 }
 0x100   : > { %v788_v15 = vpop.permute.xlu1 %787  ;;  %v786_v37 = vpop.permute.xlu0 %785 }
 0x101   : > { %v9037_v21 = vsel %vm1626_vm1, %v8826_v10, %v788_v15  ;;  %v9041_v22 = vsel %vm1626_vm1, %v8829_v9, %v786_v37 }
 0x102   : > { %1123 = vrot.lane.b32.xlu1 %v11834_v58, %s8355_s16  ;;  %1121 = vrot.lane.b32.xlu0 %v11835_v1, %s8355_s16  ;;  %v11840_v1 = vld [vmem:[#allocation15_spill] sm:$0xff] }
 0x104   : > { %v792_v7 = vpop.permute.xlu1 %791  ;;  %v790_v6 = vpop.permute.xlu0 %789 }
 0x105   : > { %v9049_v8 = vsel %vm1626_vm1, %v8836_v40, %v792_v7  ;;  %v9053_v10 = vsel %vm1626_vm1, %v8839_v39, %v790_v6  ;;  %v11839_v40 = vld [vmem:[#allocation6_spill] sm:$0xff] }
 0x106   : > { %1251 = vrot.lane.b32.xlu1 %v8708_v51, %s8356_s21  ;;  %1249 = vrot.lane.b32.xlu0 %v8711_v52, %s8356_s21  ;;  %v11841_v51 = vld [vmem:[#allocation16_spill] sm:$0xff] }
 0x108   : > { %v9059_v9 = vpop.permute.xlu1 %859  ;;  %v9061_v46 = vpop.permute.xlu0 %857 }
 0x10a   : > { %1379 = vrot.lane.b32.xlu1 %v11838_v24, %s8358_s22  ;;  %1377 = vrot.lane.b32.xlu0 %v11839_v40, %s8358_s22 }
 0x10c   : > { %v9067_v58 = vpop.permute.xlu1 %863  ;;  %v9069_v39 = vpop.permute.xlu0 %861 }
 0x10e   : > { %1507 = vrot.lane.b32.xlu1 %v11840_v1, %s8359_s23  ;;  %1505 = vrot.lane.b32.xlu0 %v11841_v51, %s8359_s23 }
 0x110   : > { %v9075_v52 = vpop.permute.xlu1 %867  ;;  %v9077_v25 = vpop.permute.xlu0 %865 }
 0x112   : > { %999 = vrot.lane.b32.xlu1 %v11838_v24, %s8354_s11  ;;  %997 = vrot.lane.b32.xlu0 %v11839_v40, %s8354_s11 }
 0x114   : > { %v9083_v5 = vpop.permute.xlu1 %871  ;;  %v9085_v38 = vpop.permute.xlu0 %869 }
 0x116   : > { %1127 = vrot.lane.b32.xlu1 %v11840_v1, %s8355_s16  ;;  %1125 = vrot.lane.b32.xlu0 %v11841_v51, %s8355_s16  ;;  %v11842_v1 = vld [vmem:[#allocation7_spill] sm:$0xff] }
 0x118   : > { %v876_v0 = vpop.permute.xlu1 %875  ;;  %v874_v15 = vpop.permute.xlu0 %873 }
 0x119   : > { %v9093_v37 = vsel %vm1659_vm5, %v8884_v12, %v876_v0  ;;  %v9097_v7 = vsel %vm1659_vm5, %v8887_v45, %v874_v15  ;;  %v11843_v45 = vld [vmem:[#allocation8_spill] sm:$0xff]  ;;  %v11844_v0 = vld [vmem:[#allocation17_spill] sm:$0xff] }
 0x11a   : > { %1255 = vrot.lane.b32.xlu1 %v8722_v55, %s8356_s21  ;;  %1253 = vrot.lane.b32.xlu0 %v8725_v56, %s8356_s21 }
 0x11c   : > { %v880_v6 = vpop.permute.xlu1 %879  ;;  %v878_v24 = vpop.permute.xlu0 %877 }
 0x11d   : > { %v9105_v40 = vsel %vm1659_vm5, %v8906_v4, %v880_v6  ;;  %v9109_v12 = vsel %vm1659_vm5, %v8909_v29, %v878_v24  ;;  %v11845_v29 = vld [vmem:[#allocation18_spill] sm:$0xff] }
 0x11e   : > { %1383 = vrot.lane.b32.xlu1 %v11842_v1, %s8358_s22  ;;  %1381 = vrot.lane.b32.xlu0 %v11843_v45, %s8358_s22 }
 0x120   : > { %v884_v55 = vpop.permute.xlu1 %883  ;;  %v882_v51 = vpop.permute.xlu0 %881 }
 0x121   : > { %v9117_v56 = vsel %vm1659_vm5, %v8922_v26, %v884_v55  ;;  %v9121_v4 = vsel %vm1659_vm5, %v8925_v13, %v882_v51 }
 0x122   : > { %1511 = vrot.lane.b32.xlu1 %v11844_v0, %s8359_s23  ;;  %1509 = vrot.lane.b32.xlu0 %v11845_v29, %s8359_s23 }
 0x124   : > { %v888_v15 = vpop.permute.xlu1 %887  ;;  %v886_v6 = vpop.permute.xlu0 %885 }
 0x125   : > { %v9129_v24 = vsel %vm1659_vm5, %v8938_v11, %v888_v15  ;;  %v9133_v26 = vsel %vm1659_vm5, %v8941_v36, %v886_v6  ;;  %v11846_v15 = vld [vmem:[#allocation9_spill] sm:$0xff] }
 0x126   : > { %1003 = vrot.lane.b32.xlu1 %v11842_v1, %s8354_s11  ;;  %1001 = vrot.lane.b32.xlu0 %v11843_v45, %s8354_s11 }
 0x128   : > { %v892_v13 = vpop.permute.xlu1 %891  ;;  %v890_v55 = vpop.permute.xlu0 %889 }
 0x129   : > { %v9141_v51 = vsel %vm1659_vm5, %v8954_v30, %v892_v13  ;;  %v9145_v11 = vsel %vm1659_vm5, %v8957_v3, %v890_v55  ;;  %v11848_v13 = vld [vmem:[#allocation19_spill] sm:$0xff] }
 0x12a   : > { %1131 = vrot.lane.b32.xlu1 %v11844_v0, %s8355_s16  ;;  %1129 = vrot.lane.b32.xlu0 %v11845_v29, %s8355_s16 }
 0x12c   : > { %v896_v36 = vpop.permute.xlu1 %895  ;;  %v894_v1 = vpop.permute.xlu0 %893 }
 0x12d   : > { %v9153_v45 = vsel %vm1659_vm5, %v8970_v35, %v896_v36  ;;  %v9157_v30 = vsel %vm1659_vm5, %v8973_v33, %v894_v1  ;;  %v11847_v33 = vld [vmem:[#allocation10_spill] sm:$0xff] }
 0x12e   : > { %1259 = vrot.lane.b32.xlu1 %v8736_v59, %s8356_s21  ;;  %1257 = vrot.lane.b32.xlu0 %v8739_v60, %s8356_s21 }
 0x130   : > { %v900_v3 = vpop.permute.xlu1 %899  ;;  %v898_v0 = vpop.permute.xlu0 %897 }
 0x131   : > { %v9165_v29 = vsel %vm1659_vm5, %v8986_v34, %v900_v3  ;;  %v9169_v35 = vsel %vm1659_vm5, %v8989_v14, %v898_v0  ;;  %v11849_v14 = vld [vmem:[#allocation20_spill] sm:$0xff] }
 0x132   : > { %1387 = vrot.lane.b32.xlu1 %v11846_v15, %s8358_s22  ;;  %1385 = vrot.lane.b32.xlu0 %v11847_v33, %s8358_s22 }
 0x134   : > { %v904_v59 = vpop.permute.xlu1 %903  ;;  %v902_v6 = vpop.permute.xlu0 %901 }
 0x135   : > { %v9177_v60 = vsel %vm1659_vm5, %v9002_v53, %v904_v59  ;;  %v9181_v34 = vsel %vm1659_vm5, %v9005_v54, %v902_v6 }
 0x136   : > { %1515 = vrot.lane.b32.xlu1 %v11848_v13, %s8359_s23  ;;  %1513 = vrot.lane.b32.xlu0 %v11849_v14, %s8359_s23 }
 0x138   : > { %v908_v55 = vpop.permute.xlu1 %907  ;;  %v906_v36 = vpop.permute.xlu0 %905 }
 0x139   : > { %v9189_v1 = vsel %vm1659_vm5, %v9013_v57, %v908_v55  ;;  %v9193_v53 = vsel %vm1659_vm5, %v9017_v2, %v906_v36  ;;  %v11854_v55 = vld [vmem:[#allocation22_spill] sm:$0xff] }
 0x13a   : > { %1007 = vrot.lane.b32.xlu1 %v11846_v15, %s8354_s11  ;;  %1005 = vrot.lane.b32.xlu0 %v11847_v33, %s8354_s11  ;;  %v6556_v36 = vld [vmem:[%s8429_s30 + $0xa9] sm:$0xff] }
 0x13c   : > { %v912_v54 = vpop.permute.xlu1 %911  ;;  %v910_v3 = vpop.permute.xlu0 %909 }
 0x13d   : > { %v9201_v0 = vsel %vm1659_vm5, %v9025_v63, %v912_v54  ;;  %v9205_v57 = vsel %vm1659_vm5, %v9029_v16, %v910_v3 }
 0x13e   : > { %1135 = vrot.lane.b32.xlu1 %v11848_v13, %s8355_s16  ;;  %1133 = vrot.lane.b32.xlu0 %v11849_v14, %s8355_s16  ;;  %v11852_v13 = vld [vmem:[#allocation12_spill] sm:$0xff] }
 0x140   : > { %v916_v2 = vpop.permute.xlu1 %915  ;;  %v914_v15 = vpop.permute.xlu0 %913 }
 0x141   : > { %v9213_v33 = vsel %vm1659_vm5, %v9037_v21, %v916_v2  ;;  %v9217_v63 = vsel %vm1659_vm5, %v9041_v22, %v914_v15  ;;  %v11851_v22 = vld [vmem:[#allocation11_spill] sm:$0xff] }
 0x142   : > { %1263 = vrot.lane.b32.xlu1 %v8750_v17, %s8356_s21  ;;  %1261 = vrot.lane.b32.xlu0 %v8753_v18, %s8356_s21  ;;  %v11853_v18 = vld [vmem:[#allocation21_spill] sm:$0xff] }
 0x144   : > { %v920_v16 = vpop.permute.xlu1 %919  ;;  %v918_v59 = vpop.permute.xlu0 %917 }
 0x145   : > { %v9225_v6 = vsel %vm1659_vm5, %v9049_v8, %v920_v16  ;;  %v9229_v21 = vsel %vm1659_vm5, %v9053_v10, %v918_v59  ;;  %v6557_v8 = vld [vmem:[%s8429_s30 + $0xb1] sm:$0xff]  ;;  %v279_v10 = vld [vmem:[%s8429_s30] sm:$0xff]  ;;  %v11855_v16 = vld [vmem:[#allocation26_spill] sm:$0xff] }
 0x146   : > { %11850 = vst [vmem:[#allocation13_spill] sm:$0xff] %v9229_v21  ;;  %1391 = vrot.lane.b32.xlu1 %v11851_v22, %s8358_s22  ;;  %1389 = vrot.lane.b32.xlu0 %v11852_v13, %s8358_s22  ;;  %v1594_v59 = vsel %vm1593_vm0, %v279_v10, %v11855_v16  ;;  %v6653_v16 = vld [vmem:[%s8429_s30 + $0xc9] sm:$0xff] }
 0x147   : > { %v1627_v22 = vsel %vm1626_vm1, %v1594_v59, %v8845_v42  ;;  %v280_v42 = vld [vmem:[%s8429_s30 + $0x8] sm:$0xff] }
 0x148   : > { %v988_v17 = vpop.permute.xlu1 %987  ;;  %v986_v14 = vpop.permute.xlu0 %985  ;;  %v1660_v13 = vsel %vm1659_vm5, %v1627_v22, %v9061_v46  ;;  %v6652_v46 = vld [vmem:[%s8429_s30 + $0xc1] sm:$0xff] }
 0x149   : > { %v1693_v10 = vsel %vm1692_vm6, %v1660_v13, %v986_v14 }
 0x14a   : > { %1519 = vrot.lane.b32.xlu1 %v11853_v18, %s8359_s23  ;;  %1517 = vrot.lane.b32.xlu0 %v11854_v55, %s8359_s23 }
 0x14c   : > { %v1114_v54 = vpop.permute.xlu1 %1113  ;;  %v9241_v3 = vpop.permute.xlu0 %989 }
 0x14e   : > { %1011 = vrot.lane.b32.xlu1 %v6557_v8, %s8354_s11  ;;  %1009 = vrot.lane.b32.xlu0 %v6556_v36, %s8354_s11 }
 0x150   : > { %v1242_v2 = vpop.permute.xlu1 %1241  ;;  %v1116_v15 = vpop.permute.xlu0 %1115 }
 0x152   : > { %1139 = vrot.lane.b32.xlu1 %v11853_v18, %s8355_s16  ;;  %1137 = vrot.lane.b32.xlu0 %v11854_v55, %s8355_s16  ;;  %v1726_v18 = vsel %vm1725_vm7, %v1693_v10, %v1114_v54  ;;  %v11856_v54 = vld [vmem:[#allocation28_spill] sm:$0xff] }
 0x153   : > { %v1759_v55 = vsel %vm1758_vm8, %v1726_v18, %v1242_v2  ;;  %v1595_v13 = vsel %vm1593_vm0, %v280_v42, %v11856_v54  ;;  %v11857_v42 = vld [vmem:[#allocation23_spill] sm:$0xff] }
 0x154   : > { %v1370_v8 = vpop.permute.xlu1 %1369  ;;  %v1244_v36 = vpop.permute.xlu0 %1243 }
 0x155   : > { %v1792_v59 = vsel %vm1791_vm9, %v1759_v55, %v1370_v8  ;;  %v11858_v55 = vld [vmem:[#allocation24_spill] sm:$0xff] }
 0x156   : > { %1267 = vrot.lane.b32.xlu1 %v8764_v20, %s8356_s21  ;;  %1265 = vrot.lane.b32.xlu0 %v8767_v19, %s8356_s21  ;;  %v1628_v19 = vsel %vm1626_vm1, %v1595_v13, %v8843_v41 }
 0x157   : > { %v1661_v20 = vsel %vm1659_vm5, %v1628_v19, %v9059_v9  ;;  %v11859_v19 = vld [vmem:[#allocation25_spill] sm:$0xff] }
 0x158   : > { %v1498_v22 = vpop.permute.xlu1 %1497  ;;  %v1372_v21 = vpop.permute.xlu0 %1371  ;;  %v1694_v10 = vsel %vm1692_vm6, %v1661_v20, %v988_v17  ;;  %v6591_v17 = vld [vmem:[%s8429_s30 + $0xca] sm:$0xff]  ;;  %v11860_v20 = vld [vmem:[#allocation33_spill] sm:$0xff] }
 0x159   : > { %v1825_v14 = vsel %vm1824_vm10, %v1792_v59, %v1498_v22  ;;  %v1727_v18 = vsel %vm1725_vm7, %v1694_v10, %v1116_v15  ;;  %v6590_v15 = vld [vmem:[%s8429_s30 + $0xc2] sm:$0xff]  ;;  %v11861_v10 = vld [vmem:[#allocation27_spill] sm:$0xff] }
 0x15a   : > { %1395 = vrot.lane.b32.xlu1 %v6653_v16, %s8358_s22  ;;  %1393 = vrot.lane.b32.xlu0 %v6652_v46, %s8358_s22  ;;  %v1760_v41 = vsel %vm1758_vm8, %v1727_v18, %v1244_v36  ;;  %v1596_v36 = vsel %vm1593_vm0, %v11860_v20, %v11859_v19 }
 0x15b   : > { %6918 = vmatprep.mubr.msk.f32.mxu0 %vm1868_vm11, %v1825_v14  ;;  %v1793_v59 = vsel %vm1791_vm9, %v1760_v41, %v1372_v21  ;;  %v11862_v21 = vld [vmem:[#allocation34_spill] sm:$0xff] }
 0x15c   : > { %v1118_v2 = vpop.permute.xlu1 %1117  ;;  %v992_v8 = vpop.permute.xlu0 %991  ;;  %v1597_v18 = vsel %vm1593_vm0, %v11862_v21, %v11861_v10 }
 0x15e   : > { %1523 = vrot.lane.b32.xlu1 %v11857_v42, %s8359_s23  ;;  %1521 = vrot.lane.b32.xlu0 %v11858_v55, %s8359_s23 }
 0x160   : > { %v1120_v22 = vpop.permute.xlu1 %1119  ;;  %v1500_v14 = vpop.permute.xlu0 %1499 }
 0x161   : > { %v1826_v9 = vsel %vm1824_vm10, %v1793_v59, %v1500_v14 }
 0x162   : > { %1015 = vrot.lane.b32.xlu1 %v6653_v16, %s8354_s11  ;;  %1013 = vrot.lane.b32.xlu0 %v6652_v46, %s8354_s11  ;;  %v1630_v16 = vsel %vm1626_vm1, %v1597_v18, %v8849_v49  ;;  %v1629_v46 = vsel %vm1626_vm1, %v1596_v36, %v8851_v50 }
 0x163   : > { %6919 = vmatmul.mubr.msk.f32.vlgmr.msra.gmra.mrb[0].mxu0 %vm1868_vm11, %v1826_v9  ;;  %v1663_v42 = vsel %vm1659_vm5, %v1630_v16, %v9067_v58  ;;  %v1662_v55 = vsel %vm1659_vm5, %v1629_v46, %v9069_v39  ;;  %v6655_v39 = vld [vmem:[%s8429_s30 + $0xe1] sm:$0xff] }
 0x164   : > { %v1248_v54 = vpop.permute.xlu1 %1247  ;;  %v1246_v13 = vpop.permute.xlu0 %1245  ;;  %v1695_v14 = vsel %vm1692_vm6, %v1662_v55, %v9241_v3  ;;  %v1696_v9 = vsel %vm1692_vm6, %v1663_v42, %v992_v8  ;;  %v6654_v3 = vld [vmem:[%s8429_s30 + $0xd9] sm:$0xff]  ;;  %v11863_v16 = vld [vmem:[#allocation29_spill] sm:$0xff]  ;;  %v11864_v42 = vld [vmem:[#allocation30_spill] sm:$0xff] }
 0x165   : > { %v1729_v49 = vsel %vm1725_vm7, %v1696_v9, %v1120_v22  ;;  %v1599_v46 = vsel %vm1593_vm0, %v8680_v27, %v11863_v16  ;;  %v1598_v55 = vsel %vm1593_vm0, %v8683_v28, %v11864_v42  ;;  %v11867_v16 = vld [vmem:[#allocation32_spill] sm:$0xff]  ;;  %v11868_v42 = vld [vmem:[#allocation38_spill] sm:$0xff] }
 0x166   : > { %1143 = vrot.lane.b32.xlu1 %v6591_v17, %s8355_s16  ;;  %1141 = vrot.lane.b32.xlu0 %v6590_v15, %s8355_s16  ;;  %v1728_v17 = vsel %vm1725_vm7, %v1695_v14, %v1118_v2  ;;  %v1762_v50 = vsel %vm1758_vm8, %v1729_v49, %v1248_v54  ;;  %v6686_v54 = vld [vmem:[%s8429_s30 + $0xda] sm:$0xff] }
 0x167   : > { %v1761_v58 = vsel %vm1758_vm8, %v1728_v17, %v1246_v13 }
 0x168   : > { %v1376_v41 = vpop.permute.xlu1 %1375  ;;  %v1374_v59 = vpop.permute.xlu0 %1373 }
 0x169   : > { %v1795_v8 = vsel %vm1791_vm9, %v1762_v50, %v1376_v41  ;;  %v1794_v2 = vsel %vm1791_vm9, %v1761_v58, %v1374_v59  ;;  %v1632_v41 = vsel %vm1626_vm1, %v1599_v46, %v8857_v62  ;;  %v11865_v59 = vld [vmem:[#allocation37_spill] sm:$0xff]  ;;  %v1600_v46 = vsel %vm1593_vm0, %v8697_v32, %v11867_v16 }
 0x16a   : > { %1271 = vrot.lane.b32.xlu1 %v8778_v23, %s8356_s21  ;;  %1269 = vrot.lane.b32.xlu0 %v8781_v61, %s8356_s21  ;;  %v6687_v61 = vld [vmem:[%s8429_s30 + $0xe2] sm:$0xff]  ;;  %v1631_v14 = vsel %vm1626_vm1, %v1598_v55, %v11865_v59  ;;  %v1665_v9 = vsel %vm1659_vm5, %v1632_v41, %v9075_v52  ;;  %v11869_v41 = vld [vmem:[#allocation39_spill] sm:$0xff] }
 0x16b   : > { %v1664_v27 = vsel %vm1659_vm5, %v1631_v14, %v9077_v25  ;;  %v6657_v25 = vld [vmem:[%s8429_s30 + $0xf9] sm:$0xff]  ;;  %v1633_v59 = vsel %vm1626_vm1, %v1600_v46, %v11869_v41  ;;  %v6661_v46 = vld [vmem:[%s8429_s30 + $0x129] sm:$0xff] }
 0x16c   : > { %v1504_v15 = vpop.permute.xlu1 %1503  ;;  %v1502_v22 = vpop.permute.xlu0 %1501 }
 0x16d   : > { %v1828_v19 = vsel %vm1824_vm10, %v1795_v8, %v1504_v15  ;;  %v1827_v23 = vsel %vm1824_vm10, %v1794_v2, %v1502_v22 }
 0x16e   : > { %1399 = vrot.lane.b32.xlu1 %v6655_v39, %s8358_s22  ;;  %1397 = vrot.lane.b32.xlu0 %v6654_v3, %s8358_s22 }
 0x16f   : > { %6921 = vmatprep.mubr.msk.f32.mxu0 %vm1868_vm11, %v1827_v23  ;;  %v6688_v23 = vld [vmem:[%s8429_s30 + $0xf2] sm:$0xff] }
 0x170   : > { %6922 = vmatmul.mubr.msk.f32.gmra.mrb[2].mxu0 %vm1868_vm11, %v1828_v19  ;;  %v996_v13 = vpop.permute.xlu1 %995  ;;  %v994_v20 = vpop.permute.xlu0 %993 }
 0x171   : > { %v1698_v49 = vsel %vm1692_vm6, %v1665_v9, %v996_v13  ;;  %v1697_v50 = vsel %vm1692_vm6, %v1664_v27, %v994_v20 }
 0x172   : > { %1527 = vrot.lane.b32.xlu1 %v6687_v61, %s8359_s23  ;;  %1525 = vrot.lane.b32.xlu0 %v6686_v54, %s8359_s23 }
 0x174   : > { %v1124_v36 = vpop.permute.xlu1 %1123  ;;  %v1122_v10 = vpop.permute.xlu0 %1121 }
 0x175   : > { %v1731_v58 = vsel %vm1725_vm7, %v1698_v49, %v1124_v36 }
 0x176   : > { %1019 = vrot.lane.b32.xlu1 %v6655_v39, %s8354_s11  ;;  %1017 = vrot.lane.b32.xlu0 %v6654_v3, %s8354_s11  ;;  %v1730_v39 = vsel %vm1725_vm7, %v1697_v50, %v1122_v10  ;;  %v6656_v3 = vld [vmem:[%s8429_s30 + $0xf1] sm:$0xff] }
 0x177   : > { %v6659_v50 = vld [vmem:[%s8429_s30 + $0x111] sm:$0xff] }
 0x178   : > { %v1252_v21 = vpop.permute.xlu1 %1251  ;;  %v1250_v18 = vpop.permute.xlu0 %1249 }
 0x179   : > { %v1764_v62 = vsel %vm1758_vm8, %v1731_v58, %v1252_v21  ;;  %v1763_v52 = vsel %vm1758_vm8, %v1730_v39, %v1250_v18  ;;  %v11866_v21 = vld [vmem:[#allocation31_spill] sm:$0xff]  ;;  %v6658_v58 = vld [vmem:[%s8429_s30 + $0x109] sm:$0xff] }
 0x17a   : > { %1147 = vrot.lane.b32.xlu1 %v6687_v61, %s8355_s16  ;;  %1145 = vrot.lane.b32.xlu0 %v6686_v54, %s8355_s16  ;;  %v1601_v18 = vsel %vm1593_vm0, %v8694_v31, %v11866_v21  ;;  %v1666_v31 = vsel %vm1659_vm5, %v1633_v59, %v9085_v38  ;;  %vm3598_vm0 = vcmask 523264  }
 0x17b   : > { %v1634_v55 = vsel %vm1626_vm1, %v1601_v18, %v11868_v42  ;;  %v6660_v42 = vld [vmem:[%s8429_s30 + $0x121] sm:$0xff]  ;;  %vm3631_vm1 = vcmask 654336  }
 0x17c   : > { %v1380_v17 = vpop.permute.xlu1 %1379  ;;  %v1378_v28 = vpop.permute.xlu0 %1377  ;;  %v1667_v14 = vsel %vm1659_vm5, %v1634_v55, %v9083_v5 }
 0x17d   : > { %v1797_v8 = vsel %vm1791_vm9, %v1764_v62, %v1380_v17  ;;  %v1796_v2 = vsel %vm1791_vm9, %v1763_v52, %v1378_v28 }
 0x17e   : > { %1275 = vrot.lane.b32.xlu1 %v8790_v48, %s8356_s21  ;;  %1273 = vrot.lane.b32.xlu0 %v8793_v47, %s8356_s21  ;;  %v6689_v47 = vld [vmem:[%s8429_s30 + $0xfa] sm:$0xff] }
 0x180   : > { %v1508_v15 = vpop.permute.xlu1 %1507  ;;  %v1506_v22 = vpop.permute.xlu0 %1505 }
 0x181   : > { %v1830_v19 = vsel %vm1824_vm10, %v1797_v8, %v1508_v15  ;;  %v1829_v48 = vsel %vm1824_vm10, %v1796_v2, %v1506_v22  ;;  %v6690_v8 = vld [vmem:[%s8429_s30 + $0x10a] sm:$0xff] }
 0x182   : > { %1403 = vrot.lane.b32.xlu1 %v6657_v25, %s8358_s22  ;;  %1401 = vrot.lane.b32.xlu0 %v6656_v3, %s8358_s22 }
 0x183   : > { %6924 = vmatprep.mubr.msk.f32.mxu0 %vm1868_vm11, %v1829_v48 }
 0x184   : > { %6925 = vmatmul.mubr.msk.f32.gmra.mrb[4].mxu0 %vm1868_vm11, %v1830_v19  ;;  %v1000_v61 = vpop.permute.xlu1 %999  ;;  %v998_v54 = vpop.permute.xlu0 %997 }
 0x185   : > { %v1700_v27 = vsel %vm1692_vm6, %v1667_v14, %v1000_v61  ;;  %v1699_v17 = vsel %vm1692_vm6, %v1666_v31, %v998_v54  ;;  %v6628_v61 = vld [vmem:[%s8429_s30 + $0x120] sm:$0xff]  ;;  %v6693_v31 = vld [vmem:[%s8429_s30 + $0x12a] sm:$0xff] }
 0x186   : > { %1531 = vrot.lane.b32.xlu1 %v6689_v47, %s8359_s23  ;;  %1529 = vrot.lane.b32.xlu0 %v6688_v23, %s8359_s23 }
 0x188   : > { %v1128_v13 = vpop.permute.xlu1 %1127  ;;  %v1126_v20 = vpop.permute.xlu0 %1125 }
 0x189   : > { %v1733_v28 = vsel %vm1725_vm7, %v1700_v27, %v1128_v13  ;;  %v1732_v49 = vsel %vm1725_vm7, %v1699_v17, %v1126_v20 }
 0x18a   : > { %1023 = vrot.lane.b32.xlu1 %v6657_v25, %s8354_s11  ;;  %1021 = vrot.lane.b32.xlu0 %v6656_v3, %s8354_s11 }
 0x18c   : > { %v1256_v36 = vpop.permute.xlu1 %1255  ;;  %v1254_v10 = vpop.permute.xlu0 %1253 }
 0x18d   : > { %v1766_v5 = vsel %vm1758_vm8, %v1733_v28, %v1256_v36  ;;  %v1765_v38 = vsel %vm1758_vm8, %v1732_v49, %v1254_v10 }
 0x18e   : > { %1151 = vrot.lane.b32.xlu1 %v6689_v47, %s8355_s16  ;;  %1149 = vrot.lane.b32.xlu0 %v6688_v23, %s8355_s16  ;;  %v6629_v23 = vld [vmem:[%s8429_s30 + $0x128] sm:$0xff] }
 0x190   : > { %v1384_v9 = vpop.permute.xlu1 %1383  ;;  %v1382_v32 = vpop.permute.xlu0 %1381 }
 0x191   : > { %v1799_v39 = vsel %vm1791_vm9, %v1766_v5, %v1384_v9  ;;  %v1798_v62 = vsel %vm1791_vm9, %v1765_v38, %v1382_v32  ;;  %v6692_v9 = vld [vmem:[%s8429_s30 + $0x122] sm:$0xff] }
 0x192   : > { %1279 = vrot.lane.b32.xlu1 %v8808_v44, %s8356_s21  ;;  %1277 = vrot.lane.b32.xlu0 %v8811_v43, %s8356_s21  ;;  %v6691_v43 = vld [vmem:[%s8429_s30 + $0x112] sm:$0xff]  ;;  %v9463_v38 = vld [vmem:[%s8429_s30 + $0x140] sm:$0xff] }
 0x194   : > { %v1512_v52 = vpop.permute.xlu1 %1511  ;;  %v1510_v25 = vpop.permute.xlu0 %1509 }
 0x195   : > { %v1832_v3 = vsel %vm1824_vm10, %v1799_v39, %v1512_v52  ;;  %v1831_v44 = vsel %vm1824_vm10, %v1798_v62, %v1510_v25  ;;  %v8360_v62 = vmov 0.0  }
 0x196   : > { %1407 = vrot.lane.b32.xlu1 %v6659_v50, %s8358_s22  ;;  %1405 = vrot.lane.b32.xlu0 %v6658_v58, %s8358_s22  ;;  %2232 = vst.msk [vmem:[#allocation2 + $0x20] sm:$0xff] %vm2226_vm12, %v8360_v62  ;;  %2227 = vst.msk [vmem:[#allocation2] sm:$0xff] %vm2226_vm12, %v8360_v62 }
 0x197   : > { %6927 = vmatprep.mubr.msk.f32.mxu0 %vm1868_vm11, %v1831_v44  ;;  %2233 = vst.msk [vmem:[#allocation2 + $0x28] sm:$0x3] %vm2229_vm13, %v8360_v62  ;;  %2230 = vst.msk [vmem:[#allocation2 + $0x10] sm:$0x3] %vm2229_vm13, %v8360_v62 }
 0x198   : > { %6928 = vmatmul.mubr.msk.f32.gmra.mrb[6].mxu0 %vm1868_vm11, %v1832_v3  ;;  %v1004_v2 = vpop.permute.xlu1 %1003  ;;  %v1002_v15 = vpop.permute.xlu0 %1001  ;;  %2228 = vst.msk [vmem:[#allocation2 + $0x8] sm:$0xff] %vm2226_vm12, %v8360_v62  ;;  %2231 = vst.msk [vmem:[#allocation2 + $0x18] sm:$0xff] %vm2226_vm12, %v8360_v62 }
 0x199   : > { %v1702_v20 = vsel %vm1692_vm6, %v9093_v37, %v1004_v2  ;;  %v1701_v36 = vsel %vm1692_vm6, %v9097_v7, %v1002_v15  ;;  %2234 = vst.msk [vmem:[#allocation2 + $0x30] sm:$0xff] %vm2226_vm12, %v8360_v62  ;;  %2235 = vst.msk [vmem:[#allocation2 + $0x38] sm:$0xff] %vm2226_vm12, %v8360_v62 }
 0x19a   : > { %1535 = vrot.lane.b32.xlu1 %v6691_v43, %s8359_s23  ;;  %1533 = vrot.lane.b32.xlu0 %v6690_v8, %s8359_s23  ;;  %2236 = vst.msk [vmem:[#allocation2 + $0x40] sm:$0x3] %vm2229_vm13, %v8360_v62  ;;  %2239 = vst.msk [vmem:[#allocation2 + $0x58] sm:$0x3] %vm2229_vm13, %v8360_v62 }
 0x19b   : > { %2237 = vst.msk [vmem:[#allocation2 + $0x48] sm:$0xff] %vm2226_vm12, %v8360_v62  ;;  %2238 = vst.msk [vmem:[#allocation2 + $0x50] sm:$0xff] %vm2226_vm12, %v8360_v62 }
 0x19c   : > { %v1132_v22 = vpop.permute.xlu1 %1131  ;;  %v1130_v19 = vpop.permute.xlu0 %1129  ;;  %2240 = vst.msk [vmem:[#allocation2 + $0x60] sm:$0xff] %vm2226_vm12, %v8360_v62  ;;  %2241 = vst.msk [vmem:[#allocation2 + $0x68] sm:$0xff] %vm2226_vm12, %v8360_v62 }
 0x19d   : > { %v1735_v10 = vsel %vm1725_vm7, %v1702_v20, %v1132_v22  ;;  %v1734_v21 = vsel %vm1725_vm7, %v1701_v36, %v1130_v19  ;;  %2242 = vst.msk [vmem:[#allocation2 + $0x70] sm:$0x3] %vm2229_vm13, %v8360_v62  ;;  %2245 = vst.msk [vmem:[#allocation2 + $0x88] sm:$0x3] %vm2229_vm13, %v8360_v62 }
 0x19e   : > { %1027 = vrot.lane.b32.xlu1 %v6659_v50, %s8354_s11  ;;  %1025 = vrot.lane.b32.xlu0 %v6658_v58, %s8354_s11  ;;  %v9466_v50 = vld [vmem:[%s8429_s30 + $0x138] sm:$0xff]  ;;  %2243 = vst.msk [vmem:[#allocation2 + $0x78] sm:$0xff] %vm2226_vm12, %v8360_v62  ;;  %2244 = vst.msk [vmem:[#allocation2 + $0x80] sm:$0xff] %vm2226_vm12, %v8360_v62 }
 0x19f   : > { %2246 = vst.msk [vmem:[#allocation2 + $0x90] sm:$0xff] %vm2226_vm12, %v8360_v62  ;;  %2247 = vst.msk [vmem:[#allocation2 + $0x98] sm:$0xff] %vm2226_vm12, %v8360_v62 }
 0x1a0   : > { %v1260_v48 = vpop.permute.xlu1 %1259  ;;  %v1258_v47 = vpop.permute.xlu0 %1257  ;;  %2248 = vst.msk [vmem:[#allocation2 + $0xa0] sm:$0x3] %vm2229_vm13, %v8360_v62  ;;  %2251 = vst.msk [vmem:[#allocation2 + $0xb8] sm:$0x3] %vm2229_vm13, %v8360_v62 }
 0x1a1   : > { %v1768_v18 = vsel %vm1758_vm8, %v1735_v10, %v1260_v48  ;;  %v1767_v16 = vsel %vm1758_vm8, %v1734_v21, %v1258_v47  ;;  %2249 = vst.msk [vmem:[#allocation2 + $0xa8] sm:$0xff] %vm2226_vm12, %v8360_v62  ;;  %2250 = vst.msk [vmem:[#allocation2 + $0xb0] sm:$0xff] %vm2226_vm12, %v8360_v62 }
 0x1a2   : > { %1155 = vrot.lane.b32.xlu1 %v6691_v43, %s8355_s16  ;;  %1153 = vrot.lane.b32.xlu0 %v6690_v8, %s8355_s16  ;;  %2252 = vst.msk [vmem:[#allocation2 + $0xc0] sm:$0xff] %vm2226_vm12, %v8360_v62  ;;  %2253 = vst.msk [vmem:[#allocation2 + $0xc8] sm:$0xff] %vm2226_vm12, %v8360_v62  ;;  %v6663_v43 = vld [vmem:[%s8429_s30 + $0x141] sm:$0xff]  ;;  %v6662_v8 = vld [vmem:[%s8429_s30 + $0x139] sm:$0xff] }
 0x1a3   : > { %2254 = vst.msk [vmem:[#allocation2 + $0xd0] sm:$0x3] %vm2229_vm13, %v8360_v62  ;;  %2257 = vst.msk [vmem:[#allocation2 + $0xe8] sm:$0x3] %vm2229_vm13, %v8360_v62 }
 0x1a4   : > { %v1388_v54 = vpop.permute.xlu1 %1387  ;;  %v1386_v13 = vpop.permute.xlu0 %1385  ;;  %2255 = vst.msk [vmem:[#allocation2 + $0xd8] sm:$0xff] %vm2226_vm12, %v8360_v62  ;;  %2256 = vst.msk [vmem:[#allocation2 + $0xe0] sm:$0xff] %vm2226_vm12, %v8360_v62 }
 0x1a5   : > { %v1801_v37 = vsel %vm1791_vm9, %v1768_v18, %v1388_v54  ;;  %v1800_v7 = vsel %vm1791_vm9, %v1767_v16, %v1386_v13  ;;  %2258 = vst.msk [vmem:[#allocation2 + $0xf0] sm:$0xff] %vm2226_vm12, %v8360_v62  ;;  %2259 = vst.msk [vmem:[#allocation2 + $0xf8] sm:$0xff] %vm2226_vm12, %v8360_v62  ;;  %v6633_v18 = vld [vmem:[%s8429_s30 + $0x158] sm:$0xff]  ;;  %v6632_v16 = vld [vmem:[%s8429_s30 + $0x150] sm:$0xff] }
 0x1a6   : > { %1283 = vrot.lane.b32.xlu1 %v6629_v23, %s8356_s21  ;;  %1281 = vrot.lane.b32.xlu0 %v6628_v61, %s8356_s21  ;;  %2260 = vst.msk [vmem:[#allocation2 + $0x100] sm:$0x3] %vm2229_vm13, %v8360_v62  ;;  %2263 = vst.msk [vmem:[#allocation2 + $0x118] sm:$0x3] %vm2229_vm13, %v8360_v62  ;;  %v6695_v23 = vld [vmem:[%s8429_s30 + $0x142] sm:$0xff]  ;;  %v6694_v61 = vld [vmem:[%s8429_s30 + $0x13a] sm:$0xff] }
 0x1a7   : > { %2261 = vst.msk [vmem:[#allocation2 + $0x108] sm:$0xff] %vm2226_vm12, %v8360_v62  ;;  %2262 = vst.msk [vmem:[#allocation2 + $0x110] sm:$0xff] %vm2226_vm12, %v8360_v62 }
 0x1a8   : > { %v1516_v55 = vpop.permute.xlu1 %1515  ;;  %v1514_v41 = vpop.permute.xlu0 %1513  ;;  %2264 = vst.msk [vmem:[#allocation2 + $0x120] sm:$0xff] %vm2226_vm12, %v8360_v62  ;;  %2265 = vst.msk [vmem:[#allocation2 + $0x128] sm:$0xff] %vm2226_vm12, %v8360_v62 }
 0x1a9   : > { %v1834_v59 = vsel %vm1824_vm10, %v1801_v37, %v1516_v55  ;;  %v1833_v14 = vsel %vm1824_vm10, %v1800_v7, %v1514_v41  ;;  %2266 = vst.msk [vmem:[#allocation2 + $0x130] sm:$0x3] %vm2229_vm13, %v8360_v62  ;;  %2269 = vst.msk [vmem:[#allocation2 + $0x148] sm:$0x3] %vm2229_vm13, %v8360_v62 }
 0x1aa   : > { %1411 = vrot.lane.b32.xlu1 %v6661_v46, %s8358_s22  ;;  %1409 = vrot.lane.b32.xlu0 %v6660_v42, %s8358_s22  ;;  %2267 = vst.msk [vmem:[#allocation2 + $0x138] sm:$0xff] %vm2226_vm12, %v8360_v62  ;;  %2268 = vst.msk [vmem:[#allocation2 + $0x140] sm:$0xff] %vm2226_vm12, %v8360_v62 }
 0x1ab   : > { %6930 = vmatprep.mubr.msk.f32.mxu0 %vm1868_vm11, %v1833_v14  ;;  %2270 = vst.msk [vmem:[#allocation2 + $0x150] sm:$0xff] %vm2226_vm12, %v8360_v62  ;;  %2271 = vst.msk [vmem:[#allocation2 + $0x158] sm:$0xff] %vm2226_vm12, %v8360_v62 }
 0x1ac   : > { %6931 = vmatmul.mubr.msk.f32.gmra.mrb[8].mxu0 %vm1868_vm11, %v1834_v59  ;;  %v9444_v32 = vpop.permute.xlu1 %1007  ;;  %v9446_v27 = vpop.permute.xlu0 %1005  ;;  %2272 = vst.msk [vmem:[#allocation2 + $0x160] sm:$0x3] %vm2229_vm13, %v8360_v62  ;;  %2275 = vst.msk [vmem:[#allocation2 + $0x178] sm:$0x3] %vm2229_vm13, %v8360_v62 }
 0x1ad   : > { %2273 = vst.msk [vmem:[#allocation2 + $0x168] sm:$0xff] %vm2226_vm12, %v8360_v62  ;;  %2274 = vst.msk [vmem:[#allocation2 + $0x170] sm:$0xff] %vm2226_vm12, %v8360_v62  ;;  %v1704_v52 = vsel %vm1692_vm6, %v9105_v40, %v9444_v32  ;;  %v1703_v25 = vsel %vm1692_vm6, %v9109_v12, %v9446_v27 }
 0x1ae   : > { %1539 = vrot.lane.b32.xlu1 %v6693_v31, %s8359_s23  ;;  %1537 = vrot.lane.b32.xlu0 %v6692_v9, %s8359_s23  ;;  %2276 = vst.msk [vmem:[#allocation2 + $0x180] sm:$0xff] %vm2226_vm12, %v8360_v62  ;;  %2277 = vst.msk [vmem:[#allocation2 + $0x188] sm:$0xff] %vm2226_vm12, %v8360_v62 }
 0x1af   : > { %2278 = vst.msk [vmem:[#allocation2 + $0x190] sm:$0x3] %vm2229_vm13, %v8360_v62  ;;  %2281 = vst.msk [vmem:[#allocation2 + $0x1a8] sm:$0x3] %vm2229_vm13, %v8360_v62 }
 0x1b0   : > { %v9450_v17 = vpop.permute.xlu1 %1135  ;;  %v9452_v28 = vpop.permute.xlu0 %1133  ;;  %2279 = vst.msk [vmem:[#allocation2 + $0x198] sm:$0xff] %vm2226_vm12, %v8360_v62  ;;  %2280 = vst.msk [vmem:[#allocation2 + $0x1a0] sm:$0xff] %vm2226_vm12, %v8360_v62 }
 0x1b1   : > { %v1737_v3 = vsel %vm1725_vm7, %v1704_v52, %v9450_v17  ;;  %v1736_v44 = vsel %vm1725_vm7, %v1703_v25, %v9452_v28  ;;  %4108 = vst.msk [vmem:[#allocation3] sm:$0xff] %vm3532_vm14, %v8360_v62  ;;  %4109 = vst.msk [vmem:[#allocation3 + $0x8] sm:$0xff] %vm3532_vm14, %v8360_v62 }
 0x1b2   : > { %1031 = vrot.lane.b32.xlu1 %v6661_v46, %s8354_s11  ;;  %1029 = vrot.lane.b32.xlu0 %v6660_v42, %s8354_s11  ;;  %4112 = vst.msk [vmem:[#allocation3 + $0x18] sm:$0xff] %vm3532_vm14, %v8360_v62  ;;  %4113 = vst.msk [vmem:[#allocation3 + $0x20] sm:$0xff] %vm3532_vm14, %v8360_v62 }
 0x1b3   : > { %4115 = vst.msk [vmem:[#allocation3 + $0x30] sm:$0xff] %vm3532_vm14, %v8360_v62  ;;  %4116 = vst.msk [vmem:[#allocation3 + $0x38] sm:$0xff] %vm3532_vm14, %v8360_v62 }
 0x1b4   : > { %v9456_v49 = vpop.permute.xlu1 %1263  ;;  %v9458_v5 = vpop.permute.xlu0 %1261  ;;  %4118 = vst.msk [vmem:[#allocation3 + $0x48] sm:$0xff] %vm3532_vm14, %v8360_v62  ;;  %4119 = vst.msk [vmem:[#allocation3 + $0x50] sm:$0xff] %vm3532_vm14, %v8360_v62 }
 0x1b5   : > { %v1770_v40 = vsel %vm1758_vm8, %v1737_v3, %v9456_v49  ;;  %v1769_v12 = vsel %vm1758_vm8, %v1736_v44, %v9458_v5  ;;  %v6697_v49 = vld [vmem:[%s8429_s30 + $0x15a] sm:$0xff]  ;;  %v6696_v5 = vld [vmem:[%s8429_s30 + $0x152] sm:$0xff]  ;;  %v6634_v44 = vld [vmem:[%s8429_s30 + $0x168] sm:$0xff]  ;;  %4121 = vst.msk [vmem:[#allocation3 + $0x60] sm:$0xff] %vm3532_vm14, %v8360_v62 }
 0x1b6   : > { %1159 = vrot.lane.b32.xlu1 %v6693_v31, %s8355_s16  ;;  %1157 = vrot.lane.b32.xlu0 %v6692_v9, %s8355_s16  ;;  %v6665_v31 = vld [vmem:[%s8429_s30 + $0x159] sm:$0xff]  ;;  %v6664_v9 = vld [vmem:[%s8429_s30 + $0x151] sm:$0xff]  ;;  %4122 = vst.msk [vmem:[#allocation3 + $0x68] sm:$0xff] %vm3532_vm14, %v8360_v62  ;;  %4124 = vst.msk [vmem:[#allocation3 + $0x78] sm:$0xff] %vm3532_vm14, %v8360_v62 }
 0x1b7   : > { %v6635_v3 = vld [vmem:[%s8429_s30 + $0x170] sm:$0xff]  ;;  %4125 = vst.msk [vmem:[#allocation3 + $0x80] sm:$0xff] %vm3532_vm14, %v8360_v62  ;;  %4127 = vst.msk [vmem:[#allocation3 + $0x90] sm:$0xff] %vm3532_vm14, %v8360_v62 }
 0x1b8   : > { %v9468_v58 = vpop.permute.xlu1 %1391  ;;  %v9470_v39 = vpop.permute.xlu0 %1389  ;;  %4128 = vst.msk [vmem:[#allocation3 + $0x98] sm:$0xff] %vm3532_vm14, %v8360_v62  ;;  %4130 = vst.msk [vmem:[#allocation3 + $0xa8] sm:$0xff] %vm3532_vm14, %v8360_v62 }
 0x1b9   : > { %v1803_v2 = vsel %vm1791_vm9, %v1770_v40, %v9468_v58  ;;  %v1802_v15 = vsel %vm1791_vm9, %v1769_v12, %v9470_v39  ;;  %4131 = vst.msk [vmem:[#allocation3 + $0xb0] sm:$0xff] %vm3532_vm14, %v8360_v62  ;;  %4133 = vst.msk [vmem:[#allocation3 + $0xc0] sm:$0xff] %vm3532_vm14, %v8360_v62 }
 0x1ba   : > { %1287 = vrot.lane.b32.xlu1 %v9463_v38, %s8356_s21  ;;  %1285 = vrot.lane.b32.xlu0 %v9466_v50, %s8356_s21  ;;  %4134 = vst.msk [vmem:[#allocation3 + $0xc8] sm:$0xff] %vm3532_vm14, %v8360_v62  ;;  %4136 = vst.msk [vmem:[#allocation3 + $0xd8] sm:$0xff] %vm3532_vm14, %v8360_v62 }
 0x1bb   : > { %4137 = vst.msk [vmem:[#allocation3 + $0xe0] sm:$0xff] %vm3532_vm14, %v8360_v62  ;;  %4139 = vst.msk [vmem:[#allocation3 + $0xf0] sm:$0xff] %vm3532_vm14, %v8360_v62 }
 0x1bc   : > { %v1520_v22 = vpop.permute.xlu1 %1519  ;;  %v1518_v19 = vpop.permute.xlu0 %1517  ;;  %4140 = vst.msk [vmem:[#allocation3 + $0xf8] sm:$0xff] %vm3532_vm14, %v8360_v62  ;;  %4142 = vst.msk [vmem:[#allocation3 + $0x108] sm:$0xff] %vm3532_vm14, %v8360_v62 }
 0x1bd   : > { %v1836_v48 = vsel %vm1824_vm10, %v1803_v2, %v1520_v22  ;;  %v1835_v47 = vsel %vm1824_vm10, %v1802_v15, %v1518_v19  ;;  %4143 = vst.msk [vmem:[#allocation3 + $0x110] sm:$0xff] %vm3532_vm14, %v8360_v62  ;;  %4145 = vst.msk [vmem:[#allocation3 + $0x120] sm:$0xff] %vm3532_vm14, %v8360_v62 }
 0x1be   : > { %1415 = vrot.lane.b32.xlu1 %v6663_v43, %s8358_s22  ;;  %1413 = vrot.lane.b32.xlu0 %v6662_v8, %s8358_s22  ;;  %4146 = vst.msk [vmem:[#allocation3 + $0x128] sm:$0xff] %vm3532_vm14, %v8360_v62  ;;  %4148 = vst.msk [vmem:[#allocation3 + $0x138] sm:$0xff] %vm3532_vm14, %v8360_v62 }
 0x1bf   : > { %6933 = vmatprep.mubr.msk.f32.mxu0 %vm1868_vm11, %v1835_v47  ;;  %v6666_v47 = vld [vmem:[%s8429_s30 + $0x169] sm:$0xff]  ;;  %4149 = vst.msk [vmem:[#allocation3 + $0x140] sm:$0xff] %vm3532_vm14, %v8360_v62  ;;  %4151 = vst.msk [vmem:[#allocation3 + $0x150] sm:$0xff] %vm3532_vm14, %v8360_v62 }
 0x1c0   : > { %6934 = vmatmul.mubr.msk.f32.gmra.mrb[10].mxu0 %vm1868_vm11, %v1836_v48  ;;  %v1012_v54 = vpop.permute.xlu1 %1011  ;;  %v1010_v13 = vpop.permute.xlu0 %1009  ;;  %v6667_v48 = vld [vmem:[%s8429_s30 + $0x171] sm:$0xff]  ;;  %4152 = vst.msk [vmem:[#allocation3 + $0x158] sm:$0xff] %vm3532_vm14, %v8360_v62  ;;  %4154 = vst.msk [vmem:[#allocation3 + $0x168] sm:$0xff] %vm3532_vm14, %v8360_v62 }
 0x1c1   : > { %v1706_v37 = vsel %vm1692_vm6, %v9117_v56, %v1012_v54  ;;  %v1705_v7 = vsel %vm1692_vm6, %v9121_v4, %v1010_v13  ;;  %4155 = vst.msk [vmem:[#allocation3 + $0x170] sm:$0xff] %vm3532_vm14, %v8360_v62  ;;  %4157 = vst.msk [vmem:[#allocation3 + $0x180] sm:$0xff] %vm3532_vm14, %v8360_v62 }
 0x1c2   : > { %1543 = vrot.lane.b32.xlu1 %v6695_v23, %s8359_s23  ;;  %1541 = vrot.lane.b32.xlu0 %v6694_v61, %s8359_s23  ;;  %4158 = vst.msk [vmem:[#allocation3 + $0x188] sm:$0xff] %vm3532_vm14, %v8360_v62  ;;  %4160 = vst.msk [vmem:[#allocation3 + $0x198] sm:$0xff] %vm3532_vm14, %v8360_v62 }
 0x1c3   : > { %4161 = vst.msk [vmem:[#allocation3 + $0x1a0] sm:$0xff] %vm3532_vm14, %v8360_v62 }
 0x1c4   : > { %v1140_v20 = vpop.permute.xlu1 %1139  ;;  %v1138_v36 = vpop.permute.xlu0 %1137  ;;  %4114 = vst.msk [vmem:[#allocation3 + $0x28] sm:$0x3] %vm4110_vm4, %v8360_v62  ;;  %4111 = vst.msk [vmem:[#allocation3 + $0x10] sm:$0x3] %vm4110_vm4, %v8360_v62 }
 0x1c5   : > { %v1739_v55 = vsel %vm1725_vm7, %v1706_v37, %v1140_v20  ;;  %v1738_v41 = vsel %vm1725_vm7, %v1705_v7, %v1138_v36  ;;  %v6699_v20 = vld [vmem:[%s8429_s30 + $0x172] sm:$0xff]  ;;  %v6698_v36 = vld [vmem:[%s8429_s30 + $0x16a] sm:$0xff]  ;;  %v6636_v7 = vld [vmem:[%s8429_s30 + $0x180] sm:$0xff]  ;;  %4117 = vst.msk [vmem:[#allocation3 + $0x40] sm:$0x3] %vm4110_vm4, %v8360_v62 }
 0x1c6   : > { %1035 = vrot.lane.b32.xlu1 %v6663_v43, %s8354_s11  ;;  %1033 = vrot.lane.b32.xlu0 %v6662_v8, %s8354_s11  ;;  %v6637_v37 = vld [vmem:[%s8429_s30 + $0x188] sm:$0xff]  ;;  %4120 = vst.msk [vmem:[#allocation3 + $0x58] sm:$0x3] %vm4110_vm4, %v8360_v62  ;;  %4123 = vst.msk [vmem:[#allocation3 + $0x70] sm:$0x3] %vm4110_vm4, %v8360_v62 }
 0x1c7   : > { %4126 = vst.msk [vmem:[#allocation3 + $0x88] sm:$0x3] %vm4110_vm4, %v8360_v62  ;;  %4129 = vst.msk [vmem:[#allocation3 + $0xa0] sm:$0x3] %vm4110_vm4, %v8360_v62 }
 0x1c8   : > { %v1268_v10 = vpop.permute.xlu1 %1267  ;;  %v1266_v21 = vpop.permute.xlu0 %1265  ;;  %4132 = vst.msk [vmem:[#allocation3 + $0xb8] sm:$0x3] %vm4110_vm4, %v8360_v62  ;;  %4135 = vst.msk [vmem:[#allocation3 + $0xd0] sm:$0x3] %vm4110_vm4, %v8360_v62 }
 0x1c9   : > { %v1772_v59 = vsel %vm1758_vm8, %v1739_v55, %v1268_v10  ;;  %v1771_v14 = vsel %vm1758_vm8, %v1738_v41, %v1266_v21  ;;  %4138 = vst.msk [vmem:[#allocation3 + $0xe8] sm:$0x3] %vm4110_vm4, %v8360_v62  ;;  %4141 = vst.msk [vmem:[#allocation3 + $0x100] sm:$0x3] %vm4110_vm4, %v8360_v62 }
 0x1ca   : > { %1163 = vrot.lane.b32.xlu1 %v6695_v23, %s8355_s16  ;;  %1161 = vrot.lane.b32.xlu0 %v6694_v61, %s8355_s16  ;;  %4144 = vst.msk [vmem:[#allocation3 + $0x118] sm:$0x3] %vm4110_vm4, %v8360_v62  ;;  %4147 = vst.msk [vmem:[#allocation3 + $0x130] sm:$0x3] %vm4110_vm4, %v8360_v62 }
 0x1cb   : > { %4150 = vst.msk [vmem:[#allocation3 + $0x148] sm:$0x3] %vm4110_vm4, %v8360_v62  ;;  %4153 = vst.msk [vmem:[#allocation3 + $0x160] sm:$0x3] %vm4110_vm4, %v8360_v62 }
 0x1cc   : > { %v1396_v46 = vpop.permute.xlu1 %1395  ;;  %v1394_v42 = vpop.permute.xlu0 %1393  ;;  %4156 = vst.msk [vmem:[#allocation3 + $0x178] sm:$0x3] %vm4110_vm4, %v8360_v62  ;;  %4159 = vst.msk [vmem:[#allocation3 + $0x190] sm:$0x3] %vm4110_vm4, %v8360_v62 }
 0x1cd   : > { %v1805_v56 = vsel %vm1791_vm9, %v1772_v59, %v1396_v46  ;;  %v1804_v4 = vsel %vm1791_vm9, %v1771_v14, %v1394_v42  ;;  %4162 = vst.msk [vmem:[#allocation3 + $0x1a8] sm:$0x3] %vm4110_vm4, %v8360_v62 }
 0x1ce   : > { %1291 = vrot.lane.b32.xlu1 %v6633_v18, %s8356_s21  ;;  %1289 = vrot.lane.b32.xlu0 %v6632_v16, %s8356_s21 }
 0x1d0   : > { %v1524_v32 = vpop.permute.xlu1 %1523  ;;  %v1522_v27 = vpop.permute.xlu0 %1521 }
 0x1d1   : > { %v1838_v17 = vsel %vm1824_vm10, %v1805_v56, %v1524_v32  ;;  %v1837_v28 = vsel %vm1824_vm10, %v1804_v4, %v1522_v27  ;;  %v6669_v32 = vld [vmem:[%s8429_s30 + $0x189] sm:$0xff]  ;;  %v6668_v27 = vld [vmem:[%s8429_s30 + $0x181] sm:$0xff] }
 0x1d2   : > { %1419 = vrot.lane.b32.xlu1 %v6665_v31, %s8358_s22  ;;  %1417 = vrot.lane.b32.xlu0 %v6664_v9, %s8358_s22 }
 0x1d3   : > { %6936 = vmatprep.mubr.msk.f32.mxu0 %vm1868_vm11, %v1837_v28 }
 0x1d4   : > { %6937 = vmatmul.mubr.msk.f32.gmra.mrb[12].mxu0 %vm1868_vm11, %v1838_v17  ;;  %v1016_v38 = vpop.permute.xlu1 %1015  ;;  %v1014_v50 = vpop.permute.xlu0 %1013 }
 0x1d5   : > { %v1708_v43 = vsel %vm1692_vm6, %v9129_v24, %v1016_v38  ;;  %v1707_v8 = vsel %vm1692_vm6, %v9133_v26, %v1014_v50  ;;  %v6701_v38 = vld [vmem:[%s8429_s30 + $0x18a] sm:$0xff]  ;;  %v6700_v50 = vld [vmem:[%s8429_s30 + $0x182] sm:$0xff] }
 0x1d6   : > { %1547 = vrot.lane.b32.xlu1 %v6697_v49, %s8359_s23  ;;  %1545 = vrot.lane.b32.xlu0 %v6696_v5, %s8359_s23 }
 0x1d8   : > { %v1144_v58 = vpop.permute.xlu1 %1143  ;;  %v1142_v39 = vpop.permute.xlu0 %1141 }
 0x1d9   : > { %v1741_v2 = vsel %vm1725_vm7, %v1708_v43, %v1144_v58  ;;  %v1740_v15 = vsel %vm1725_vm7, %v1707_v8, %v1142_v39 }
 0x1da   : > { %1039 = vrot.lane.b32.xlu1 %v6665_v31, %s8354_s11  ;;  %1037 = vrot.lane.b32.xlu0 %v6664_v9, %s8354_s11 }
 0x1dc   : > { %v1272_v52 = vpop.permute.xlu1 %1271  ;;  %v1270_v25 = vpop.permute.xlu0 %1269 }
 0x1dd   : > { %v1774_v22 = vsel %vm1758_vm8, %v1741_v2, %v1272_v52  ;;  %v1773_v19 = vsel %vm1758_vm8, %v1740_v15, %v1270_v25 }
 0x1de   : > { %1167 = vrot.lane.b32.xlu1 %v6697_v49, %s8355_s16  ;;  %1165 = vrot.lane.b32.xlu0 %v6696_v5, %s8355_s16 }
 0x1e0   : > { %v1400_v40 = vpop.permute.xlu1 %1399  ;;  %v1398_v12 = vpop.permute.xlu0 %1397 }
 0x1e1   : > { %v1807_v24 = vsel %vm1791_vm9, %v1774_v22, %v1400_v40  ;;  %v1806_v26 = vsel %vm1791_vm9, %v1773_v19, %v1398_v12  ;;  %v6639_v40 = vld [vmem:[%s8429_s30 + $0x1a0] sm:$0xff]  ;;  %v6638_v12 = vld [vmem:[%s8429_s30 + $0x198] sm:$0xff] }
 0x1e2   : > { %1295 = vrot.lane.b32.xlu1 %v6635_v3, %s8356_s21  ;;  %1293 = vrot.lane.b32.xlu0 %v6634_v44, %s8356_s21 }
 0x1e4   : > { %v1528_v23 = vpop.permute.xlu1 %1527  ;;  %v1526_v61 = vpop.permute.xlu0 %1525 }
 0x1e5   : > { %v1840_v54 = vsel %vm1824_vm10, %v1807_v24, %v1528_v23  ;;  %v1839_v13 = vsel %vm1824_vm10, %v1806_v26, %v1526_v61  ;;  %v6671_v24 = vld [vmem:[%s8429_s30 + $0x1a1] sm:$0xff]  ;;  %v6670_v26 = vld [vmem:[%s8429_s30 + $0x199] sm:$0xff] }
 0x1e6   : > { %1423 = vrot.lane.b32.xlu1 %v6667_v48, %s8358_s22  ;;  %1421 = vrot.lane.b32.xlu0 %v6666_v47, %s8358_s22 }
 0x1e7   : > { %6939 = vmatprep.mubr.msk.f32.mxu0 %vm1868_vm11, %v1839_v13 }
 0x1e8   : > { %6940 = vmatmul.mubr.msk.f32.gmra.mrb[14].mxu0 %vm1868_vm11, %v1840_v54  ;;  %v1020_v10 = vpop.permute.xlu1 %1019  ;;  %v1018_v21 = vpop.permute.xlu0 %1017 }
 0x1e9   : > { %v1710_v59 = vsel %vm1692_vm6, %v9141_v51, %v1020_v10  ;;  %v1709_v14 = vsel %vm1692_vm6, %v9145_v11, %v1018_v21  ;;  %v2379_v10 = vld [vmem:[#allocation2 + $0x2] sm:$0xff]  ;;  %v2380_v21 = vld [vmem:[#allocation2 + $0xa] sm:$0xff] }
 0x1ea   : > { %1551 = vrot.lane.b32.xlu1 %v6699_v20, %s8359_s23  ;;  %1549 = vrot.lane.b32.xlu0 %v6698_v36, %s8359_s23 }
 0x1ec   : > { %v1148_v18 = vpop.permute.xlu1 %1147  ;;  %v1146_v16 = vpop.permute.xlu0 %1145 }
 0x1ed   : > { %v1743_v31 = vsel %vm1725_vm7, %v1710_v59, %v1148_v18  ;;  %v1742_v9 = vsel %vm1725_vm7, %v1709_v14, %v1146_v16  ;;  %v2347_v18 = vld [vmem:[#allocation2 + $0x1] sm:$0xff]  ;;  %v2348_v16 = vld [vmem:[#allocation2 + $0x9] sm:$0xff] }
 0x1ee   : > { %1043 = vrot.lane.b32.xlu1 %v6667_v48, %s8354_s11  ;;  %1041 = vrot.lane.b32.xlu0 %v6666_v47, %s8354_s11 }
 0x1f0   : > { %v1276_v46 = vpop.permute.xlu1 %1275  ;;  %v1274_v42 = vpop.permute.xlu0 %1273 }
 0x1f1   : > { %v1776_v56 = vsel %vm1758_vm8, %v1743_v31, %v1276_v46  ;;  %v1775_v4 = vsel %vm1758_vm8, %v1742_v9, %v1274_v42 }
 0x1f2   : > { %1171 = vrot.lane.b32.xlu1 %v6699_v20, %s8355_s16  ;;  %1169 = vrot.lane.b32.xlu0 %v6698_v36, %s8355_s16  ;;  %v6703_v20 = vld [vmem:[%s8429_s30 + $0x1a2] sm:$0xff]  ;;  %v6702_v36 = vld [vmem:[%s8429_s30 + $0x19a] sm:$0xff] }
 0x1f4   : > { %v1404_v55 = vpop.permute.xlu1 %1403  ;;  %v1402_v41 = vpop.permute.xlu0 %1401 }
 0x1f5   : > { %v1809_v51 = vsel %vm1791_vm9, %v1776_v56, %v1404_v55  ;;  %v1808_v11 = vsel %vm1791_vm9, %v1775_v4, %v1402_v41 }
 0x1f6   : > { %1299 = vrot.lane.b32.xlu1 %v6637_v37, %s8356_s21  ;;  %1297 = vrot.lane.b32.xlu0 %v6636_v7, %s8356_s21  ;;  %v7214_v37 = vpack.i.bf16 %v2380_v21, %v2379_v10  ;;  %v7209_v7 = vpack.i.bf16 %v2348_v16, %v2347_v18  ;;  %v9798_v16 = vld [vmem:[%s11755_s2] ss:$0 sm:$0xff] }
 0x1f8   : > { %v1532_v17 = vpop.permute.xlu1 %1531  ;;  %v1530_v28 = vpop.permute.xlu0 %1529 }
 0x1f9   : > { %v1842_v49 = vsel %vm1824_vm10, %v1809_v51, %v1532_v17  ;;  %v1841_v5 = vsel %vm1824_vm10, %v1808_v11, %v1530_v28 }
 0x1fa   : > { %1427 = vrot.lane.b32.xlu1 %v6669_v32, %s8358_s22  ;;  %1425 = vrot.lane.b32.xlu0 %v6668_v27, %s8358_s22 }
 0x1fb   : > { %6942 = vmatprep.mubr.msk.f32.mxu0 %vm1868_vm11, %v1841_v5 }
 0x1fc   : > { %6943 = vmatmul.mubr.msk.f32.gmra.mrb[16].mxu0 %vm1868_vm11, %v1842_v49  ;;  %v1024_v58 = vpop.permute.xlu1 %1023  ;;  %v1022_v39 = vpop.permute.xlu0 %1021 }
 0x1fd   : > { %v1712_v2 = vsel %vm1692_vm6, %v9153_v45, %v1024_v58  ;;  %v1711_v15 = vsel %vm1692_vm6, %v9157_v30, %v1022_v39  ;;  %v8363_v58 = vmov 0.0|0.0   ;;  %v3730_v39 = vld [vmem:[%s11756_s3] sm:$0xff] }
 0x1fe   : > { %1555 = vrot.lane.b32.xlu1 %v6701_v38, %s8359_s23  ;;  %1553 = vrot.lane.b32.xlu0 %v6700_v50, %s8359_s23 }
 0x1ff   : > { %7032 = vmatprep.subr.bf16.mxu1 %v8363_v58  ;;  %7059 = vmatprep.subr.bf16.mxu0 %v8363_v58 }
 0x200   : > { %v1152_v52 = vpop.permute.xlu1 %1151  ;;  %v1150_v25 = vpop.permute.xlu0 %1149 }
 0x201   : > { %v1745_v22 = vsel %vm1725_vm7, %v1712_v2, %v1152_v52  ;;  %v1744_v19 = vsel %vm1725_vm7, %v1711_v15, %v1150_v25  ;;  %v3731_v52 = vld [vmem:[%s11756_s3 + $0x8] sm:$0xff]  ;;  %v3734_v15 = vld [vmem:[%s11756_s3 + $0x20] sm:$0xff] }
 0x202   : > { %1047 = vrot.lane.b32.xlu1 %v6669_v32, %s8354_s11  ;;  %1045 = vrot.lane.b32.xlu0 %v6668_v27, %s8354_s11  ;;  %v7033_v25 = vpack.c.bf16 %v3731_v52, %v3730_v39 }
 0x204   : > { %v1280_v3 = vpop.permute.xlu1 %1279  ;;  %v1278_v44 = vpop.permute.xlu0 %1277  ;;  %7034 = vmatpush1.bf16.msra.mxu1 %v7033_v25 }
 0x205   : > { %v1778_v48 = vsel %vm1758_vm8, %v1745_v22, %v1280_v3  ;;  %v1777_v47 = vsel %vm1758_vm8, %v1744_v19, %v1278_v44  ;;  %7035 = vmatprep.subr.bf16.mxu1 %v8363_v58  ;;  %v3735_v22 = vld [vmem:[%s11756_s3 + $0x28] sm:$0xff] }
 0x206   : > { %1175 = vrot.lane.b32.xlu1 %v6701_v38, %s8355_s16  ;;  %1173 = vrot.lane.b32.xlu0 %v6700_v50, %s8355_s16  ;;  %v7039_v19 = vpack.c.bf16 %v3735_v22, %v3734_v15 }
 0x208   : > { %v1408_v43 = vpop.permute.xlu1 %1407  ;;  %v1406_v8 = vpop.permute.xlu0 %1405 }
 0x209   : > { %v1811_v45 = vsel %vm1791_vm9, %v1778_v48, %v1408_v43  ;;  %v1810_v30 = vsel %vm1791_vm9, %v1777_v47, %v1406_v8  ;;  %v3736_v48 = vld [vmem:[%s11756_s3 + $0x30] sm:$0xff]  ;;  %v3737_v47 = vld [vmem:[%s11756_s3 + $0x38] sm:$0xff] }
 0x20a   : > { %1303 = vrot.lane.b32.xlu1 %v6639_v40, %s8356_s21  ;;  %1301 = vrot.lane.b32.xlu0 %v6638_v12, %s8356_s21  ;;  %v3732_v40 = vld [vmem:[%s11756_s3 + $0x10] sm:$0xff]  ;;  %v3733_v12 = vld [vmem:[%s11756_s3 + $0x18] sm:$0xff] }
 0x20b   : > { %v7036_v43 = vpack.c.bf16 %v3733_v12, %v3732_v40 }
 0x20c   : > { %v1536_v23 = vpop.permute.xlu1 %1535  ;;  %v1534_v61 = vpop.permute.xlu0 %1533 }
 0x20d   : > { %v1844_v54 = vsel %vm1824_vm10, %v1811_v45, %v1536_v23  ;;  %v1843_v13 = vsel %vm1824_vm10, %v1810_v30, %v1534_v61  ;;  %7037 = vmatpush1.bf16.msra.mxu1 %v7036_v43  ;;  %v7042_v45 = vpack.c.bf16 %v3737_v47, %v3736_v48  ;;  %v3738_v61 = vld [vmem:[%s11756_s3 + $0x40] sm:$0xff] }
 0x20e   : > { %1431 = vrot.lane.b32.xlu1 %v6671_v24, %s8358_s22  ;;  %1429 = vrot.lane.b32.xlu0 %v6670_v26, %s8358_s22  ;;  %s8364_s22 = smov 64  }
 0x20f   : > { %6945 = vmatprep.mubr.msk.f32.mxu0 %vm1868_vm11, %v1843_v13  ;;  %7038 = vmatprep.subr.bf16.mxu1 %v8363_v58 }
 0x210   : > { %6946 = vmatmul.mubr.msk.f32.gmra.mrb[18].mxu0 %vm1868_vm11, %v1844_v54  ;;  %v1028_v46 = vpop.permute.xlu1 %1027  ;;  %v1026_v42 = vpop.permute.xlu0 %1025  ;;  %v3739_v54 = vld [vmem:[%s11756_s3 + $0x48] sm:$0xff] }
 0x211   : > { %v1714_v56 = vsel %vm1692_vm6, %v9165_v29, %v1028_v46  ;;  %v1713_v4 = vsel %vm1692_vm6, %v9169_v35, %v1026_v42  ;;  %7040 = vmatpush1.bf16.msra.mxu1 %v7039_v19  ;;  %v7045_v46 = vpack.c.bf16 %v3739_v54, %v3738_v61 }
 0x212   : > { %1559 = vrot.lane.b32.xlu1 %v6703_v20, %s8359_s23  ;;  %1557 = vrot.lane.b32.xlu0 %v6702_v36, %s8359_s23  ;;  %s8365_s23 = smov 48  }
 0x213   : > { %7041 = vmatprep.subr.bf16.mxu1 %v8363_v58 }
 0x214   : > { %v1156_v55 = vpop.permute.xlu1 %1155  ;;  %v1154_v41 = vpop.permute.xlu0 %1153 }
 0x215   : > { %v1747_v32 = vsel %vm1725_vm7, %v1714_v56, %v1156_v55  ;;  %v1746_v27 = vsel %vm1725_vm7, %v1713_v4, %v1154_v41  ;;  %7043 = vmatpush1.bf16.msra.mxu1 %v7042_v45  ;;  %v3740_v56 = vld [vmem:[%s11756_s3 + $0x50] sm:$0xff]  ;;  %v3741_v4 = vld [vmem:[%s11756_s3 + $0x58] sm:$0xff] }
 0x216   : > { %7215 = vrot.lane.b32.xlu1 %v7214_v37, %s8361_s24  ;;  %7210 = vrot.lane.b32.xlu0 %v7209_v7, %s8362_s25 }
 0x217   : > { %7044 = vmatprep.subr.bf16.mxu1 %v8363_v58 }
 0x218   : > { %v1284_v59 = vpop.permute.xlu1 %1283  ;;  %v1282_v14 = vpop.permute.xlu0 %1281 }
 0x219   : > { %v1780_v51 = vsel %vm1758_vm8, %v1747_v32, %v1284_v59  ;;  %v1779_v11 = vsel %vm1758_vm8, %v1746_v27, %v1282_v14  ;;  %7046 = vmatpush1.bf16.msra.mxu1 %v7045_v46  ;;  %v7048_v27 = vpack.c.bf16 %v3741_v4, %v3740_v56 }
 0x21a   : > { %7047 = vmatprep.subr.bf16.mxu1 %v8363_v58 }
 0x21c   : > { %v1412_v31 = vpop.permute.xlu1 %1411  ;;  %v1410_v9 = vpop.permute.xlu0 %1409 }
 0x21d   : > { %v1813_v17 = vsel %vm1791_vm9, %v1780_v51, %v1412_v31  ;;  %v1812_v28 = vsel %vm1791_vm9, %v1779_v11, %v1410_v9  ;;  %7049 = vmatpush1.bf16.msra.mxu1 %v7048_v27 }
 0x21e   : > { %7050 = vmatprep.subr.bf16.mxu1 %v8363_v58 }
 0x220   : > { %v1540_v49 = vpop.permute.xlu1 %1539  ;;  %v1538_v5 = vpop.permute.xlu0 %1537 }
 0x221   : > { %v1846_v38 = vsel %vm1824_vm10, %v1813_v17, %v1540_v49  ;;  %v1845_v29 = vsel %vm1824_vm10, %v1812_v28, %v1538_v5  ;;  %v3742_v17 = vld [vmem:[%s11756_s3 + $0x60] sm:$0xff]  ;;  %v3743_v28 = vld [vmem:[%s11756_s3 + $0x68] sm:$0xff] }
 0x222   : > { %6948 = vmatprep.mubr.msk.f32.mxu0 %vm1868_vm11, %v1845_v29  ;;  %v7051_v49 = vpack.c.bf16 %v3743_v28, %v3742_v17  ;;  %v3744_v29 = vld [vmem:[%s11756_s3 + $0x70] sm:$0xff] }
 0x223   : > { %6949 = vmatmul.mubr.msk.f32.gmra.mrb[20].mxu0 %vm1868_vm11, %v1846_v38 }
 0x224   : > { %v1032_v35 = vpop.permute.xlu1 %1031  ;;  %v1030_v50 = vpop.permute.xlu0 %1029  ;;  %7052 = vmatpush1.bf16.msra.mxu1 %v7051_v49 }
 0x225   : > { %v1716_v30 = vsel %vm1692_vm6, %v9177_v60, %v1032_v35  ;;  %v1715_v23 = vsel %vm1692_vm6, %v9181_v34, %v1030_v50  ;;  %7053 = vmatprep.subr.bf16.mxu1 %v8363_v58  ;;  %v3745_v35 = vld [vmem:[%s11756_s3 + $0x78] sm:$0xff] }
 0x226   : > { %v7054_v39 = vpack.c.bf16 %v3745_v35, %v3744_v29 }
 0x228   : > { %v1160_v3 = vpop.permute.xlu1 %1159  ;;  %v1158_v44 = vpop.permute.xlu0 %1157  ;;  %7055 = vmatpush1.bf16.msra.mxu1 %v7054_v39 }
 0x229   : > { %v1749_v13 = vsel %vm1725_vm7, %v1716_v30, %v1160_v3  ;;  %v1748_v20 = vsel %vm1725_vm7, %v1715_v23, %v1158_v44  ;;  %7056 = vmatprep.subr.bf16.mxu1 %v8363_v58 }
 0x22c   : > { %v1288_v8 = vpop.permute.xlu1 %1287  ;;  %v1286_v2 = vpop.permute.xlu0 %1285 }
 0x22d   : > { %v1782_v36 = vsel %vm1758_vm8, %v1749_v13, %v1288_v8  ;;  %v1781_v60 = vsel %vm1758_vm8, %v1748_v20, %v1286_v2 }
 0x230   : > { %v1416_v24 = vpop.permute.xlu1 %1415  ;;  %v1414_v26 = vpop.permute.xlu0 %1413 }
 0x231   : > { %v1815_v34 = vsel %vm1791_vm9, %v1782_v36, %v1416_v24  ;;  %v1814_v10 = vsel %vm1791_vm9, %v1781_v60, %v1414_v26  ;;  %v3746_v24 = vld [vmem:[%s11756_s3 + $0x80] sm:$0xff]  ;;  %v3747_v26 = vld [vmem:[%s11756_s3 + $0x88] sm:$0xff] }
 0x232   : > { %v7057_v23 = vpack.c.bf16 %v3747_v26, %v3746_v24 }
 0x234   : > { %v1544_v21 = vpop.permute.xlu1 %1543  ;;  %v1542_v18 = vpop.permute.xlu0 %1541  ;;  %7058 = vmatpush1.bf16.msra.mxu1 %v7057_v23 }
 0x235   : > { %v1848_v42 = vsel %vm1824_vm10, %v1815_v34, %v1544_v21  ;;  %v1847_v37 = vsel %vm1824_vm10, %v1814_v10, %v1542_v18 }
 0x236   : > { %v6920_v7 = vpop.f32.mrb[0].mxu0  ;;  %6951 = vmatprep.mubr.msk.f32.mxu0 %vm1868_vm11, %v1847_v37 }
 0x237   : > { %v2041_v55 = vadd.f32 %v6920_v7, %v9798_v16  ;;  %v2035_v41 = vpop.f32.mrb[1].mxu0  ;;  %6952 = vmatmul.mubr.msk.f32.gmra.mrb[22].mxu0 %vm1868_vm11, %v1848_v42 }
 0x238   : > { %v2036_v59 = vadd.f32 %v9798_v16, %v2035_v41  ;;  %v9807_v14 = vpop.permute.xlu1 %1035  ;;  %v9809_v31 = vpop.permute.xlu0 %1033 }
 0x239   : > { %v2195_v9 = vmax.f32 %v2041_v55, 0.0  ;;  %v1718_v22 = vsel %vm1692_vm6, %v9189_v1, %v9807_v14  ;;  %v1717_v45 = vsel %vm1692_vm6, %v9193_v53, %v9809_v31 }
 0x23a   : > { %v2194_v32 = vmax.f32 %v2036_v59, 0.0 }
 0x23b   : > { %2284 = vst.msk [vmem:[#allocation2 + $0x21] sm:$0xff] %vm2226_vm12, %v2195_v9 }
 0x23c   : > { %2283 = vst.msk [vmem:[#allocation2 + $0x19] sm:$0xff] %vm2226_vm12, %v2194_v32  ;;  %v1164_v51 = vpop.permute.xlu1 %1163  ;;  %v1162_v11 = vpop.permute.xlu0 %1161 }
 0x23d   : > { %v1751_v1 = vsel %vm1725_vm7, %v1718_v22, %v1164_v51  ;;  %v1750_v61 = vsel %vm1725_vm7, %v1717_v45, %v1162_v11 }
 0x240   : > { %v1292_v5 = vpop.permute.xlu1 %1291  ;;  %v1290_v38 = vpop.permute.xlu0 %1289 }
 0x241   : > { %v1784_v54 = vsel %vm1758_vm8, %v1751_v1, %v1292_v5  ;;  %v1783_v20 = vsel %vm1758_vm8, %v1750_v61, %v1290_v38 }
 0x242   : > { %v2444_v50 = vld [vmem:[#allocation2 + $0x21] sm:$0xff] }
 0x243   : > { %v6923_v52 = vpop.f32.mrb[2].mxu0  ;;  %v2443_v25 = vld [vmem:[#allocation2 + $0x19] sm:$0xff]  ;;  %v2476_v15 = vld [vmem:[#allocation2 + $0x22] sm:$0xff] }
 0x244   : > { %v9906_v3 = vld [vmem:[#allocation2 + $0x18] sm:$0xff]  ;;  %v9908_v44 = vld [vmem:[#allocation2 + $0x20] sm:$0xff]  ;;  %v2051_v40 = vadd.f32 %v6923_v52, %v9798_v16  ;;  %v2045_v12 = vpop.f32.mrb[3].mxu0  ;;  %v1420_v43 = vpop.permute.xlu1 %1419  ;;  %v7224_v8 = vpack.i.bf16 %v2444_v50, %v2443_v25 }
 0x245   : > { %v7219_v2 = vpack.i.bf16 %v9908_v44, %v9906_v3  ;;  %v2046_v19 = vadd.f32 %v9798_v16, %v2045_v12  ;;  %v1418_v48 = vpop.permute.xlu0 %1417  ;;  %v2475_v47 = vld [vmem:[#allocation2 + $0x1a] sm:$0xff]  ;;  %v1817_v53 = vsel %vm1791_vm9, %v1784_v54, %v1420_v43 }
 0x246   : > { %v2197_v30 = vmax.f32 %v2051_v40, 0.0  ;;  %7225 = vrot.lane.b32.xlu1 %v7224_v8, %s8364_s22  ;;  %v7229_v60 = vpack.i.bf16 %v2476_v15, %v2475_v47  ;;  %v1816_v34 = vsel %vm1791_vm9, %v1783_v20, %v1418_v48 }
 0x247   : > { %7220 = vrot.lane.b32.xlu0 %v7219_v2, %s8365_s23  ;;  %v2196_v13 = vmax.f32 %v2046_v19, 0.0 }
 0x248   : > { %2286 = vst.msk [vmem:[#allocation2 + $0x39] sm:$0xff] %vm2226_vm12, %v2197_v30  ;;  %v1548_v36 = vpop.permute.xlu1 %1547 }
 0x249   : > { %2285 = vst.msk [vmem:[#allocation2 + $0x31] sm:$0xff] %vm2226_vm12, %v2196_v13  ;;  %v1850_v10 = vsel %vm1824_vm10, %v1817_v53, %v1548_v36  ;;  %v1546_v21 = vpop.permute.xlu0 %1545 }
 0x24a   : > { %v1849_v18 = vsel %vm1824_vm10, %v1816_v34, %v1546_v21 }
 0x24b   : > { %7230 = vrot.lane.b32.xlu0 %v7229_v60, %s8366_s6  ;;  %6954 = vmatprep.mubr.msk.f32.mxu0 %vm1868_vm11, %v1849_v18 }
 0x24c   : > { %6955 = vmatmul.mubr.msk.f32.gmra.mrb[24].mxu0 %vm1868_vm11, %v1850_v10  ;;  %v1040_v46 = vpop.permute.xlu1 %1039 }
 0x24d   : > { %v1038_v42 = vpop.permute.xlu0 %1037  ;;  %v1720_v28 = vsel %vm1692_vm6, %v9201_v0, %v1040_v46 }
 0x24e   : > { %v1719_v38 = vsel %vm1692_vm6, %v9205_v57, %v1038_v42 }
 0x24f   : > { %v2541_v37 = vld [vmem:[#allocation2 + $0x39] sm:$0xff] }
 0x250   : > { %v1168_v7 = vpop.permute.xlu1 %1167  ;;  %v2572_v55 = vld [vmem:[#allocation2 + $0x32] sm:$0xff]  ;;  %v9960_v50 = vld [vmem:[#allocation2 + $0x3a] sm:$0xff] }
 0x251   : > { %v9942_v41 = vld [vmem:[#allocation2 + $0x30] sm:$0xff]  ;;  %v9944_v59 = vld [vmem:[#allocation2 + $0x38] sm:$0xff]  ;;  %v1166_v14 = vpop.permute.xlu0 %1165  ;;  %6739 = vmatprep.mubr.msk.f32.mxu1 %vm2226_vm12, %v2572_v55  ;;  %v1753_v29 = vsel %vm1725_vm7, %v1720_v28, %v1168_v7  ;;  %v7264_v2 = vpack.i.bf16 %v9960_v50, %v2572_v55 }
 0x252   : > { %v7234_v31 = vpack.i.bf16 %v9944_v59, %v9942_v41  ;;  %v2540_v9 = vld [vmem:[#allocation2 + $0x31] sm:$0xff]  ;;  %v1752_v39 = vsel %vm1725_vm7, %v1719_v38, %v1166_v14 }
 0x253   : > { %v7239_v56 = vpack.i.bf16 %v2541_v37, %v2540_v9 }
 0x254   : > { %7235 = vrot.lane.b32.xlu1 %v7234_v31, %s8367_s28  ;;  %v1296_v4 = vpop.permute.xlu1 %1295 }
 0x255   : > { %7240 = vrot.lane.b32.xlu0 %v7239_v56, %s8368_s29  ;;  %v1294_v32 = vpop.permute.xlu0 %1293  ;;  %v1786_v52 = vsel %vm1758_vm8, %v1753_v29, %v1296_v4 }
 0x256   : > { %v1785_v0 = vsel %vm1758_vm8, %v1752_v39, %v1294_v32 }
 0x257   : > { %v6926_v27 = vpop.f32.mrb[4].mxu0 }
 0x258   : > { %7245 = vrot.lane.b32.xlu1 %v7224_v8, %s8362_s25  ;;  %v2061_v51 = vadd.f32 %v6926_v27, %v9798_v16  ;;  %v2055_v11 = vpop.f32.mrb[5].mxu0  ;;  %v1424_v17 = vpop.permute.xlu1 %1423 }
 0x259   : > { %7250 = vrot.lane.b32.xlu0 %v7229_v60, %s8361_s24  ;;  %v2056_v49 = vadd.f32 %v9798_v16, %v2055_v11  ;;  %v1422_v5 = vpop.permute.xlu0 %1421  ;;  %v1819_v40 = vsel %vm1791_vm9, %v1786_v52, %v1424_v17 }
 0x25a   : > { %v2199_v35 = vmax.f32 %v2061_v51, 0.0  ;;  %v1818_v12 = vsel %vm1791_vm9, %v1785_v0, %v1422_v5 }
 0x25b   : > { %v2198_v25 = vmax.f32 %v2056_v49, 0.0 }
 0x25c   : > { %7255 = vrot.lane.b32.xlu1 %v7234_v31, %s8365_s23  ;;  %2288 = vst.msk [vmem:[#allocation2 + $0x51] sm:$0xff] %vm2226_vm12, %v2199_v35  ;;  %v1552_v57 = vpop.permute.xlu1 %1551 }
 0x25d   : > { %7260 = vrot.lane.b32.xlu0 %v7239_v56, %s8364_s22  ;;  %2287 = vst.msk [vmem:[#allocation2 + $0x49] sm:$0xff] %vm2226_vm12, %v2198_v25  ;;  %v1852_v43 = vsel %vm1824_vm10, %v1819_v40, %v1552_v57  ;;  %v1550_v8 = vpop.permute.xlu0 %1549 }
 0x25e   : > { %v1851_v15 = vsel %vm1824_vm10, %v1818_v12, %v1550_v8 }
 0x25f   : > { %6957 = vmatprep.mubr.msk.f32.mxu0 %vm1868_vm11, %v1851_v15  ;;  %v11870_v15 = vld [vmem:[#allocation13_spill] sm:$0xff] }
 0x260   : > { %7265 = vrot.lane.b32.xlu1 %v7264_v2, %s8366_s6  ;;  %6958 = vmatmul.mubr.msk.f32.gmra.mrb[26].mxu0 %vm1868_vm11, %v1852_v43  ;;  %v1044_v22 = vpop.permute.xlu1 %1043 }
 0x261   : > { %v1042_v19 = vpop.permute.xlu0 %1041  ;;  %v1722_v60 = vsel %vm1692_vm6, %v9213_v33, %v1044_v22 }
 0x262   : > { %v1721_v21 = vsel %vm1692_vm6, %v9217_v63, %v1042_v19 }
 0x263   : > { %v2543_v48 = vld [vmem:[#allocation2 + $0x51] sm:$0xff] }
 0x264   : > { %v1172_v47 = vpop.permute.xlu1 %1171  ;;  %v9977_v24 = vld [vmem:[#allocation2 + $0x48] sm:$0xff]  ;;  %v9979_v26 = vld [vmem:[#allocation2 + $0x50] sm:$0xff] }
 0x265   : > { %v2542_v45 = vld [vmem:[#allocation2 + $0x49] sm:$0xff]  ;;  %v1170_v1 = vpop.permute.xlu0 %1169  ;;  %v7269_v30 = vpack.i.bf16 %v9979_v26, %v9977_v24  ;;  %v1755_v18 = vsel %vm1725_vm7, %v1722_v60, %v1172_v47  ;;  %v9996_v37 = vld [vmem:[#allocation2 + $0x52] sm:$0xff] }
 0x266   : > { %v7274_v23 = vpack.i.bf16 %v2543_v48, %v2542_v45  ;;  %v9994_v42 = vld [vmem:[#allocation2 + $0x4a] sm:$0xff]  ;;  %v1754_v7 = vsel %vm1725_vm7, %v1721_v21, %v1170_v1 }
 0x267   : > { %7270 = vrot.lane.b32.xlu0 %v7269_v30, %s8367_s28  ;;  %v7299_v32 = vpack.i.bf16 %v9996_v37, %v9994_v42 }
 0x268   : > { %7275 = vrot.lane.b32.xlu1 %v7274_v23, %s8368_s29  ;;  %v1300_v61 = vpop.permute.xlu1 %1299 }
 0x269   : > { %v1298_v54 = vpop.permute.xlu0 %1297  ;;  %v1788_v55 = vsel %vm1758_vm8, %v1755_v18, %v1300_v61 }
 0x26a   : > { %v1787_v33 = vsel %vm1758_vm8, %v1754_v7, %v1298_v54 }
 0x26b   : > { %v6929_v13 = vpop.f32.mrb[6].mxu0  ;;  %7280 = vrot.lane.b32.xlu0 %v7239_v56, %s8362_s25 }
 0x26c   : > { %7285 = vrot.lane.b32.xlu1 %v7264_v2, %s8361_s24  ;;  %v2071_v20 = vadd.f32 %v6929_v13, %v9798_v16  ;;  %v2065_v53 = vpop.f32.mrb[7].mxu0  ;;  %v1428_v36 = vpop.permute.xlu1 %1427 }
 0x26d   : > { %v2066_v34 = vadd.f32 %v9798_v16, %v2065_v53  ;;  %v1426_v10 = vpop.permute.xlu0 %1425  ;;  %v1821_v63 = vsel %vm1791_vm9, %v1788_v55, %v1428_v36 }
 0x26e   : > { %v2201_v46 = vmax.f32 %v2071_v20, 0.0  ;;  %v1820_v9 = vsel %vm1791_vm9, %v1787_v33, %v1426_v10 }
 0x26f   : > { %v2200_v14 = vmax.f32 %v2066_v34, 0.0  ;;  %7290 = vrot.lane.b32.xlu0 %v7269_v30, %s8365_s23 }
 0x270   : > { %7295 = vrot.lane.b32.xlu1 %v7274_v23, %s8364_s22  ;;  %2290 = vst.msk [vmem:[#allocation2 + $0x69] sm:$0xff] %vm2226_vm12, %v2201_v46  ;;  %v1556_v31 = vpop.permute.xlu1 %1555 }
 0x271   : > { %2289 = vst.msk [vmem:[#allocation2 + $0x61] sm:$0xff] %vm2226_vm12, %v2200_v14  ;;  %v1854_v56 = vsel %vm1824_vm10, %v1821_v63, %v1556_v31  ;;  %v1554_v4 = vpop.permute.xlu0 %1553 }
 0x272   : > { %v1853_v27 = vsel %vm1824_vm10, %v1820_v9, %v1554_v4 }
 0x273   : > { %6960 = vmatprep.mubr.msk.f32.mxu0 %vm1868_vm11, %v1853_v27  ;;  %7300 = vrot.lane.b32.xlu0 %v7299_v32, %s8366_s6 }
 0x274   : > { %6961 = vmatmul.mubr.msk.f32.gmra.mrb[28].mxu0 %vm1868_vm11, %v1854_v56  ;;  %v1048_v51 = vpop.permute.xlu1 %1047 }
 0x275   : > { %v1046_v11 = vpop.permute.xlu0 %1045  ;;  %v1724_v43 = vsel %vm1692_vm6, %v9225_v6, %v1048_v51 }
 0x276   : > { %v1723_v22 = vsel %vm1692_vm6, %v11870_v15, %v1046_v11 }
 0x277   : > { %v2545_v17 = vld [vmem:[#allocation2 + $0x69] sm:$0xff] }
 0x278   : > { %v1176_v28 = vpop.permute.xlu1 %1175  ;;  %v2544_v49 = vld [vmem:[#allocation2 + $0x61] sm:$0xff]  ;;  %v10033_v45 = vld [vmem:[#allocation2 + $0x6a] sm:$0xff] }
 0x279   : > { %v10014_v5 = vld [vmem:[#allocation2 + $0x60] sm:$0xff]  ;;  %v10016_v38 = vld [vmem:[#allocation2 + $0x68] sm:$0xff]  ;;  %v1174_v29 = vpop.permute.xlu0 %1173  ;;  %v7309_v35 = vpack.i.bf16 %v2545_v17, %v2544_v49  ;;  %v1757_v19 = vsel %vm1725_vm7, %v1724_v43, %v1176_v28 }
 0x27a   : > { %v7304_v39 = vpack.i.bf16 %v10016_v38, %v10014_v5  ;;  %v10031_v47 = vld [vmem:[#allocation2 + $0x62] sm:$0xff]  ;;  %v1756_v1 = vsel %vm1725_vm7, %v1723_v22, %v1174_v29 }
 0x27b   : > { %7310 = vrot.lane.b32.xlu0 %v7309_v35, %s8368_s29  ;;  %v7334_v36 = vpack.i.bf16 %v10033_v45, %v10031_v47 }
 0x27c   : > { %7305 = vrot.lane.b32.xlu1 %v7304_v39, %s8367_s28  ;;  %v1304_v52 = vpop.permute.xlu1 %1303 }
 0x27d   : > { %v1302_v25 = vpop.permute.xlu0 %1301  ;;  %v1790_v30 = vsel %vm1758_vm8, %v1757_v19, %v1304_v52 }
 0x27e   : > { %v1789_v6 = vsel %vm1758_vm8, %v1756_v1, %v1302_v25 }
 0x27f   : > { %v6932_v0 = vpop.f32.mrb[8].mxu0  ;;  %7320 = vrot.lane.b32.xlu0 %v7299_v32, %s8361_s24 }
 0x280   : > { %7315 = vrot.lane.b32.xlu1 %v7274_v23, %s8362_s25  ;;  %v2081_v40 = vadd.f32 %v6932_v0, %v9798_v16  ;;  %v2075_v57 = vpop.f32.mrb[9].mxu0  ;;  %v1432_v12 = vpop.permute.xlu1 %1431 }
 0x281   : > { %v2076_v8 = vadd.f32 %v9798_v16, %v2075_v57  ;;  %v1430_v2 = vpop.permute.xlu0 %1429  ;;  %v1823_v61 = vsel %vm1791_vm9, %v1790_v30, %v1432_v12 }
 0x282   : > { %v2203_v48 = vmax.f32 %v2081_v40, 0.0  ;;  %v1822_v13 = vsel %vm1791_vm9, %v1789_v6, %v1430_v2 }
 0x283   : > { %v2202_v23 = vmax.f32 %v2076_v8, 0.0  ;;  %7330 = vrot.lane.b32.xlu0 %v7309_v35, %s8364_s22 }
 0x284   : > { %7325 = vrot.lane.b32.xlu1 %v7304_v39, %s8365_s23  ;;  %2292 = vst.msk [vmem:[#allocation2 + $0x81] sm:$0xff] %vm2226_vm12, %v2203_v48  ;;  %v1560_v54 = vpop.permute.xlu1 %1559 }
 0x285   : > { %2291 = vst.msk [vmem:[#allocation2 + $0x79] sm:$0xff] %vm2226_vm12, %v2202_v23  ;;  %v1856_v20 = vsel %vm1824_vm10, %v1823_v61, %v1560_v54  ;;  %v1558_v53 = vpop.permute.xlu0 %1557  ;;  %v2315_v23 = vld [vmem:[#allocation2] sm:$0xff]  ;;  %v2316_v54 = vld [vmem:[#allocation2 + $0x8] sm:$0xff] }
 0x286   : > { %v1855_v60 = vsel %vm1824_vm10, %v1822_v13, %v1558_v53 }
 0x287   : > { %6963 = vmatprep.mubr.msk.f32.mxu0 %vm1868_vm11, %v1855_v60 }
 0x288   : > { %7335 = vrot.lane.b32.xlu1 %v7334_v36, %s8366_s6  ;;  %6964 = vmatmul.mubr.msk.f32.gmra.mrb[30].mxu0 %vm1868_vm11, %v1856_v20  ;;  %v7216_v1 = vpop.permute.xlu1 %7215 }
 0x289   : > { %v7211_v8 = vpop.permute.xlu0 %7210  ;;  %v7217_v20 = vunpack.i.l.bf16 %v7216_v1  ;;  %v7218_v60 = vunpack.i.h.bf16 %v7216_v1 }
 0x28a   : > { %v7212_v30 = vunpack.i.l.bf16 %v7211_v8  ;;  %v7213_v6 = vunpack.i.h.bf16 %v7211_v8 }
 0x28b   : > { %v2547_v34 = vld [vmem:[#allocation2 + $0x81] sm:$0xff] }
 0x28c   : > { %v2514_v10 = vld [vmem:[#allocation2 + $0x78] sm:$0xff]  ;;  %v2515_v21 = vld [vmem:[#allocation2 + $0x80] sm:$0xff] }
 0x28d   : > { %v2546_v18 = vld [vmem:[#allocation2 + $0x79] sm:$0xff]  ;;  %v7339_v46 = vpack.i.bf16 %v2515_v21, %v2514_v10  ;;  %v10059_v56 = vld [vmem:[#allocation2 + $0x82] sm:$0xff]  ;;  %v3501_v21 = vsel %vm2226_vm12, %v2316_v54, %v7213_v6 }
 0x28e   : > { %v7344_v7 = vpack.i.bf16 %v2547_v34, %v2546_v18  ;;  %v10057_v9 = vld [vmem:[#allocation2 + $0x7a] sm:$0xff]  ;;  %v3500_v34 = vsel %vm2226_vm12, %v2315_v23, %v7212_v30 }
 0x28f   : > { %7340 = vrot.lane.b32.xlu0 %v7339_v46, %s8367_s28  ;;  %v7369_v32 = vpack.i.bf16 %v10059_v56, %v10057_v9 }
 0x290   : > { %7345 = vrot.lane.b32.xlu1 %v7344_v7, %s8368_s29 }
 0x293   : > { %v6935_v55 = vpop.f32.mrb[10].mxu0  ;;  %7350 = vrot.lane.b32.xlu0 %v7309_v35, %s8362_s25 }
 0x294   : > { %7355 = vrot.lane.b32.xlu1 %v7334_v36, %s8361_s24  ;;  %v2091_v14 = vadd.f32 %v6935_v55, %v9798_v16  ;;  %v2085_v33 = vpop.f32.mrb[11].mxu0 }
 0x295   : > { %v2086_v63 = vadd.f32 %v9798_v16, %v2085_v33 }
 0x296   : > { %v2205_v31 = vmax.f32 %v2091_v14, 0.0 }
 0x297   : > { %v2204_v4 = vmax.f32 %v2086_v63, 0.0  ;;  %7360 = vrot.lane.b32.xlu0 %v7339_v46, %s8365_s23  ;;  %v3533_v63 = vsel %vm3532_vm14, %v3500_v34, %v7217_v20 }
 0x298   : > { %7365 = vrot.lane.b32.xlu1 %v7344_v7, %s8364_s22  ;;  %2294 = vst.msk [vmem:[#allocation2 + $0x99] sm:$0xff] %vm2226_vm12, %v2205_v31 }
 0x299   : > { %2293 = vst.msk [vmem:[#allocation2 + $0x91] sm:$0xff] %vm2226_vm12, %v2204_v4 }
 0x29b   : > { %7370 = vrot.lane.b32.xlu0 %v7369_v32, %s8366_s6 }
 0x29f   : > { %v2549_v27 = vld [vmem:[#allocation2 + $0x99] sm:$0xff] }
 0x2a0   : > { %v2548_v51 = vld [vmem:[#allocation2 + $0x91] sm:$0xff]  ;;  %v10076_v40 = vld [vmem:[#allocation2 + $0x9a] sm:$0xff] }
 0x2a1   : > { %v2516_v11 = vld [vmem:[#allocation2 + $0x90] sm:$0xff]  ;;  %v2517_v17 = vld [vmem:[#allocation2 + $0x98] sm:$0xff]  ;;  %v7379_v28 = vpack.i.bf16 %v2549_v27, %v2548_v51 }
 0x2a2   : > { %v7374_v49 = vpack.i.bf16 %v2517_v17, %v2516_v11  ;;  %v10074_v0 = vld [vmem:[#allocation2 + $0x92] sm:$0xff] }
 0x2a3   : > { %7380 = vrot.lane.b32.xlu0 %v7379_v28, %s8368_s29  ;;  %v7404_v12 = vpack.i.bf16 %v10076_v40, %v10074_v0 }
 0x2a4   : > { %7375 = vrot.lane.b32.xlu1 %v7374_v49, %s8367_s28 }
 0x2a7   : > { %v6938_v29 = vpop.f32.mrb[12].mxu0  ;;  %7390 = vrot.lane.b32.xlu0 %v7369_v32, %s8361_s24  ;;  %v3534_v32 = vsel %vm3532_vm14, %v3501_v21, %v7218_v60 }
 0x2a8   : > { %7385 = vrot.lane.b32.xlu1 %v7344_v7, %s8362_s25  ;;  %v2101_v35 = vadd.f32 %v6938_v29, %v9798_v16  ;;  %v2095_v39 = vpop.f32.mrb[13].mxu0 }
 0x2a9   : > { %v2096_v52 = vadd.f32 %v9798_v16, %v2095_v39 }
 0x2aa   : > { %v2207_v25 = vmax.f32 %v2101_v35, 0.0 }
 0x2ab   : > { %v2206_v57 = vmax.f32 %v2096_v52, 0.0  ;;  %7400 = vrot.lane.b32.xlu0 %v7379_v28, %s8364_s22 }
 0x2ac   : > { %7395 = vrot.lane.b32.xlu1 %v7374_v49, %s8365_s23  ;;  %2296 = vst.msk [vmem:[#allocation2 + $0xb1] sm:$0xff] %vm2226_vm12, %v2207_v25 }
 0x2ad   : > { %2295 = vst.msk [vmem:[#allocation2 + $0xa9] sm:$0xff] %vm2226_vm12, %v2206_v57 }
 0x2b0   : > { %7405 = vrot.lane.b32.xlu1 %v7404_v12, %s8366_s6 }
 0x2b3   : > { %v2551_v43 = vld [vmem:[#allocation2 + $0xb1] sm:$0xff] }
 0x2b4   : > { %v2518_v2 = vld [vmem:[#allocation2 + $0xa8] sm:$0xff]  ;;  %v2519_v15 = vld [vmem:[#allocation2 + $0xb0] sm:$0xff] }
 0x2b5   : > { %v2550_v22 = vld [vmem:[#allocation2 + $0xa9] sm:$0xff]  ;;  %v7409_v19 = vpack.i.bf16 %v2519_v15, %v2518_v2  ;;  %v10098_v7 = vld [vmem:[#allocation2 + $0xb2] sm:$0xff] }
 0x2b6   : > { %v10085_v48 = vpack.i.bf16 %v2551_v43, %v2550_v22  ;;  %v10096_v46 = vld [vmem:[#allocation2 + $0xaa] sm:$0xff] }
 0x2b7   : > { %7410 = vrot.lane.b32.xlu0 %v7409_v19, %s8367_s28  ;;  %v7439_v27 = vpack.i.bf16 %v10098_v7, %v10096_v46 }
 0x2b8   : > { %7415 = vrot.lane.b32.xlu1 %v10085_v48, %s8368_s29  ;;  %v7226_v55 = vpop.permute.xlu1 %7225 }
 0x2b9   : > { %v7221_v61 = vpop.permute.xlu0 %7220  ;;  %v7227_v51 = vunpack.i.l.bf16 %v7226_v55  ;;  %v7228_v11 = vunpack.i.h.bf16 %v7226_v55 }
 0x2ba   : > { %v7222_v14 = vunpack.i.l.bf16 %v7221_v61  ;;  %v7223_v31 = vunpack.i.h.bf16 %v7221_v61 }
 0x2bb   : > { %v6941_v13 = vpop.f32.mrb[14].mxu0  ;;  %7420 = vrot.lane.b32.xlu0 %v7379_v28, %s8362_s25 }
 0x2bc   : > { %7425 = vrot.lane.b32.xlu1 %v7404_v12, %s8361_s24  ;;  %v2111_v53 = vadd.f32 %v6941_v13, %v9798_v16  ;;  %v2105_v36 = vpop.f32.mrb[15].mxu0  ;;  %v3566_v17 = vsel %vm3565_vm15, %v3533_v63, %v7222_v14  ;;  %v3567_v49 = vsel %vm3565_vm15, %v3534_v32, %v7223_v31 }
 0x2bd   : > { %v2106_v10 = vadd.f32 %v9798_v16, %v2105_v36  ;;  %v7231_v4 = vpop.permute.xlu0 %7230  ;;  %v3599_v57 = vsel %vm3598_vm0, %v3566_v17, %v7227_v51  ;;  %v3600_v2 = vsel %vm3598_vm0, %v3567_v49, %v7228_v11 }
 0x2be   : > { %v2209_v18 = vmax.f32 %v2111_v53, 0.0  ;;  %v7232_v28 = vunpack.i.l.bf16 %v7231_v4  ;;  %v7233_v29 = vunpack.i.h.bf16 %v7231_v4 }
 0x2bf   : > { %v2208_v33 = vmax.f32 %v2106_v10, 0.0  ;;  %7430 = vrot.lane.b32.xlu0 %v7409_v19, %s8365_s23 }
 0x2c0   : > { %7435 = vrot.lane.b32.xlu1 %v10085_v48, %s8364_s22  ;;  %2298 = vst.msk [vmem:[#allocation2 + $0xc9] sm:$0xff] %vm2226_vm12, %v2209_v18  ;;  %v3632_v43 = vsel %vm3631_vm1, %v3599_v57, %v7232_v28  ;;  %v3633_v30 = vsel %vm3631_vm1, %v3600_v2, %v7233_v29 }
 0x2c1   : > { %2297 = vst.msk [vmem:[#allocation2 + $0xc1] sm:$0xff] %vm2226_vm12, %v2208_v33 }
 0x2c3   : > { %7440 = vrot.lane.b32.xlu0 %v7439_v27, %s8366_s6 }
 0x2c6   : > { %v7236_v35 = vpop.permute.xlu1 %7235 }
 0x2c7   : > { %v7238_v39 = vunpack.i.h.bf16 %v7236_v35  ;;  %v7237_v52 = vunpack.i.l.bf16 %v7236_v35  ;;  %v7241_v25 = vpop.permute.xlu0 %7240  ;;  %v2553_v8 = vld [vmem:[#allocation2 + $0xc9] sm:$0xff] }
 0x2c8   : > { %v7242_v12 = vunpack.i.l.bf16 %v7241_v25  ;;  %v2552_v22 = vld [vmem:[#allocation2 + $0xc1] sm:$0xff]  ;;  %v7243_v23 = vunpack.i.h.bf16 %v7241_v25  ;;  %v10140_v51 = vld [vmem:[#allocation2 + $0xca] sm:$0xff] }
 0x2c9   : > { %v3665_v15 = vsel %vm3664_vm2, %v3632_v43, %v7237_v52  ;;  %v2520_v19 = vld [vmem:[#allocation2 + $0xc0] sm:$0xff]  ;;  %v2521_v1 = vld [vmem:[#allocation2 + $0xc8] sm:$0xff]  ;;  %v10118_v54 = vpack.i.bf16 %v2553_v8, %v2552_v22  ;;  %v3666_v20 = vsel %vm3664_vm2, %v3633_v30, %v7238_v39 }
 0x2ca   : > { %v7246_v6 = vpop.permute.xlu1 %7245  ;;  %v3698_v61 = vsel %vm3697_vm3, %v3665_v15, %v7242_v12  ;;  %v7444_v13 = vpack.i.bf16 %v2521_v1, %v2520_v19  ;;  %v3699_v36 = vsel %vm3697_vm3, %v3666_v20, %v7243_v23 }
 0x2cb   : > { %3916 = vmatmul.mubr.f32.vlgmr.msra.gmra.mrb[0].mxu1 %v3698_v61  ;;  %7450 = vrot.lane.b32.xlu0 %v10118_v54, %s8368_s29  ;;  %v7251_v53 = vpop.permute.xlu0 %7250  ;;  %v7247_v34 = vunpack.i.l.bf16 %v7246_v6  ;;  %v7248_v21 = vunpack.i.h.bf16 %v7246_v6 }
 0x2cc   : > { %6740 = vmatprep.mubr.msk.f32.mxu1 %vm2226_vm12, %v9960_v50  ;;  %7445 = vrot.lane.b32.xlu1 %v7444_v13, %s8367_s28  ;;  %v7252_v14 = vunpack.i.l.bf16 %v7251_v53  ;;  %v7253_v63 = vunpack.i.h.bf16 %v7251_v53 }
 0x2cd   : > { %v3502_v31 = vsel %vm2226_vm12, %v9906_v3, %v7247_v34 }
 0x2ce   : > { %v7256_v60 = vpop.permute.xlu1 %7255  ;;  %v3535_v28 = vsel %vm3532_vm14, %v3502_v31, %v7252_v14 }
 0x2cf   : > { %3921 = vmatmul.mubr.f32.gmra.mrb[2].mxu1 %v3699_v36  ;;  %v6944_v10 = vpop.f32.mrb[16].mxu0  ;;  %7460 = vrot.lane.b32.xlu0 %v7439_v27, %s8361_s24  ;;  %v7261_v4 = vpop.permute.xlu0 %7260  ;;  %v7257_v32 = vunpack.i.l.bf16 %v7256_v60  ;;  %v10138_v27 = vld [vmem:[#allocation2 + $0xc2] sm:$0xff]  ;;  %v7258_v11 = vunpack.i.h.bf16 %v7256_v60 }
 0x2d0   : > { %6741 = vmatprep.mubr.msk.f32.mxu1 %vm2226_vm12, %v9994_v42  ;;  %v2121_v50 = vadd.f32 %v6944_v10, %v9798_v16  ;;  %7455 = vrot.lane.b32.xlu1 %v10085_v48, %s8362_s25  ;;  %v2115_v18 = vpop.f32.mrb[17].mxu0  ;;  %v3503_v48 = vsel %vm2226_vm12, %v9908_v44, %v7248_v21  ;;  %v7262_v3 = vunpack.i.l.bf16 %v7261_v4  ;;  %v7474_v49 = vpack.i.bf16 %v10140_v51, %v10138_v27 }
 0x2d1   : > { %v2116_v55 = vadd.f32 %v9798_v16, %v2115_v18  ;;  %v7263_v29 = vunpack.i.h.bf16 %v7261_v4  ;;  %v3536_v35 = vsel %vm3532_vm14, %v3503_v48, %v7253_v63  ;;  %v3568_v39 = vsel %vm3565_vm15, %v3535_v28, %v7257_v32 }
 0x2d2   : > { %v2211_v33 = vmax.f32 %v2121_v50, 0.0  ;;  %v7266_v17 = vpop.permute.xlu1 %7265  ;;  %v3569_v52 = vsel %vm3565_vm15, %v3536_v35, %v7258_v11  ;;  %v3601_v15 = vsel %vm3598_vm0, %v3568_v39, %v7262_v3 }
 0x2d3   : > { %v2210_v42 = vmax.f32 %v2116_v55, 0.0  ;;  %7470 = vrot.lane.b32.xlu0 %v10118_v54, %s8364_s22  ;;  %v7267_v44 = vunpack.i.l.bf16 %v7266_v17  ;;  %v7268_v25 = vunpack.i.h.bf16 %v7266_v17  ;;  %v3602_v1 = vsel %vm3598_vm0, %v3569_v52, %v7263_v29 }
 0x2d4   : > { %2300 = vst.msk [vmem:[#allocation2 + $0xe1] sm:$0xff] %vm2226_vm12, %v2211_v33  ;;  %7465 = vrot.lane.b32.xlu1 %v7444_v13, %s8365_s23 }
 0x2d5   : > { %2299 = vst.msk [vmem:[#allocation2 + $0xd9] sm:$0xff] %vm2226_vm12, %v2210_v42  ;;  %v3634_v22 = vsel %vm3631_vm1, %v3601_v15, %v7267_v44  ;;  %v3635_v13 = vsel %vm3631_vm1, %v3602_v1, %v7268_v25 }
 0x2d8   : > { %7475 = vrot.lane.b32.xlu1 %v7474_v49, %s8366_s6 }
 0x2d9   : > { %v7271_v57 = vpop.permute.xlu0 %7270 }
 0x2da   : > { %v7276_v12 = vpop.permute.xlu1 %7275  ;;  %v7273_v43 = vunpack.i.h.bf16 %v7271_v57  ;;  %v7272_v8 = vunpack.i.l.bf16 %v7271_v57 }
 0x2db   : > { %v7277_v2 = vunpack.i.l.bf16 %v7276_v12  ;;  %v2555_v19 = vld [vmem:[#allocation2 + $0xe1] sm:$0xff]  ;;  %v7278_v20 = vunpack.i.h.bf16 %v7276_v12 }
 0x2dc   : > { %v3667_v30 = vsel %vm3664_vm2, %v3634_v22, %v7272_v8  ;;  %v2522_v23 = vld [vmem:[#allocation2 + $0xd8] sm:$0xff]  ;;  %v2523_v6 = vld [vmem:[#allocation2 + $0xe0] sm:$0xff]  ;;  %v3668_v10 = vsel %vm3664_vm2, %v3635_v13, %v7273_v43 }
 0x2dd   : > { %v2554_v61 = vld [vmem:[#allocation2 + $0xd9] sm:$0xff]  ;;  %v7281_v53 = vpop.permute.xlu0 %7280  ;;  %v3700_v36 = vsel %vm3697_vm3, %v3667_v30, %v7277_v2  ;;  %v7479_v60 = vpack.i.bf16 %v2523_v6, %v2522_v23  ;;  %v3701_v50 = vsel %vm3697_vm3, %v3668_v10, %v7278_v20  ;;  %v10178_v48 = vld [vmem:[#allocation2 + $0xe2] sm:$0xff] }
 0x2de   : > { %v10160_v34 = vpack.i.bf16 %v2555_v19, %v2554_v61  ;;  %3926 = vmatmul.mubr.f32.gmra.mrb[4].mxu1 %v3700_v36  ;;  %v7286_v21 = vpop.permute.xlu1 %7285  ;;  %v7282_v55 = vunpack.i.l.bf16 %v7281_v53  ;;  %v7283_v33 = vunpack.i.h.bf16 %v7281_v53  ;;  %v10176_v42 = vld [vmem:[#allocation2 + $0xda] sm:$0xff] }
 0x2df   : > { %7480 = vrot.lane.b32.xlu0 %v7479_v60, %s8367_s28  ;;  %6742 = vmatprep.mubr.msk.f32.mxu1 %vm2226_vm12, %v9996_v37  ;;  %v7287_v4 = vunpack.i.l.bf16 %v7286_v21  ;;  %v7288_v11 = vunpack.i.h.bf16 %v7286_v21 }
 0x2e0   : > { %7485 = vrot.lane.b32.xlu1 %v10160_v34, %s8368_s29 }
 0x2e1   : > { %v7291_v18 = vpop.permute.xlu0 %7290 }
 0x2e2   : > { %3931 = vmatmul.mubr.f32.gmra.mrb[6].mxu1 %v3701_v50  ;;  %v7292_v17 = vunpack.i.l.bf16 %v7291_v18  ;;  %v7296_v3 = vpop.permute.xlu1 %7295 }
 0x2e3   : > { %v6947_v14 = vpop.f32.mrb[18].mxu0  ;;  %7490 = vrot.lane.b32.xlu0 %v10118_v54, %s8362_s25  ;;  %6743 = vmatprep.mubr.msk.f32.mxu1 %vm2226_vm12, %v10031_v47  ;;  %v3504_v54 = vsel %vm2226_vm12, %v9942_v41, %v7282_v55  ;;  %v7293_v47 = vunpack.i.h.bf16 %v7291_v18  ;;  %v7509_v41 = vpack.i.bf16 %v10178_v48, %v10176_v42  ;;  %v7297_v35 = vunpack.i.l.bf16 %v7296_v3 }
 0x2e4   : > { %7495 = vrot.lane.b32.xlu1 %v7474_v49, %s8361_s24  ;;  %v2131_v63 = vadd.f32 %v6947_v14, %v9798_v16  ;;  %v2125_v31 = vpop.f32.mrb[19].mxu0  ;;  %v3537_v29 = vsel %vm3532_vm14, %v3504_v54, %v7287_v4  ;;  %v7298_v52 = vunpack.i.h.bf16 %v7296_v3 }
 0x2e5   : > { %v2126_v37 = vadd.f32 %v9798_v16, %v2125_v31  ;;  %v3505_v16 = vsel %vm2226_vm12, %v9944_v59, %v7283_v33  ;;  %v7301_v49 = vpop.permute.xlu0 %7300  ;;  %v3570_v44 = vsel %vm3565_vm15, %v3537_v29, %v7292_v17  ;;  %v10214_v31 = vld [vmem:[%s11755_s2] ss:$0 sm:$0xff] }
 0x2e6   : > { %v2213_v32 = vmax.f32 %v2131_v63, 0.0  ;;  %v3538_v39 = vsel %vm3532_vm14, %v3505_v16, %v7288_v11  ;;  %v7302_v25 = vunpack.i.l.bf16 %v7301_v49  ;;  %v7303_v57 = vunpack.i.h.bf16 %v7301_v49 }
 0x2e7   : > { %v2212_v28 = vmax.f32 %v2126_v37, 0.0  ;;  %7500 = vrot.lane.b32.xlu0 %v7479_v60, %s8365_s23  ;;  %v3571_v59 = vsel %vm3565_vm15, %v3538_v39, %v7293_v47  ;;  %v3603_v8 = vsel %vm3598_vm0, %v3570_v44, %v7297_v35 }
 0x2e8   : > { %7505 = vrot.lane.b32.xlu1 %v10160_v34, %s8364_s22  ;;  %2302 = vst.msk [vmem:[#allocation2 + $0xf9] sm:$0xff] %vm2226_vm12, %v2213_v32  ;;  %v3604_v19 = vsel %vm3598_vm0, %v3571_v59, %v7298_v52  ;;  %v3636_v1 = vsel %vm3631_vm1, %v3603_v8, %v7302_v25 }
 0x2e9   : > { %2301 = vst.msk [vmem:[#allocation2 + $0xf1] sm:$0xff] %vm2226_vm12, %v2212_v28  ;;  %v3637_v20 = vsel %vm3631_vm1, %v3604_v19, %v7303_v57 }
 0x2eb   : > { %7510 = vrot.lane.b32.xlu0 %v7509_v41, %s8366_s6 }
 0x2ed   : > { %v7311_v12 = vpop.permute.xlu0 %7310 }
 0x2ee   : > { %v7306_v43 = vpop.permute.xlu1 %7305  ;;  %v7312_v2 = vunpack.i.l.bf16 %v7311_v12  ;;  %v7313_v53 = vunpack.i.h.bf16 %v7311_v12 }
 0x2ef   : > { %v7308_v15 = vunpack.i.h.bf16 %v7306_v43  ;;  %v7307_v22 = vunpack.i.l.bf16 %v7306_v43  ;;  %v2557_v30 = vld [vmem:[#allocation2 + $0xf9] sm:$0xff] }
 0x2f0   : > { %v2556_v6 = vld [vmem:[#allocation2 + $0xf1] sm:$0xff]  ;;  %v10225_v28 = vld [vmem:[#allocation2 + $0xfa] sm:$0xff] }
 0x2f1   : > { %v3669_v23 = vsel %vm3664_vm2, %v3636_v1, %v7307_v22  ;;  %v2524_v61 = vld [vmem:[#allocation2 + $0xf0] sm:$0xff]  ;;  %v2525_v13 = vld [vmem:[#allocation2 + $0xf8] sm:$0xff]  ;;  %v10202_v10 = vpack.i.bf16 %v2557_v30, %v2556_v6  ;;  %v3670_v50 = vsel %vm3664_vm2, %v3637_v20, %v7308_v15  ;;  %v7321_v18 = vpop.permute.xlu0 %7320 }
 0x2f2   : > { %v7316_v36 = vpop.permute.xlu1 %7315  ;;  %v3702_v60 = vsel %vm3697_vm3, %v3669_v23, %v7312_v2  ;;  %v7514_v21 = vpack.i.bf16 %v2525_v13, %v2524_v61  ;;  %v3703_v55 = vsel %vm3697_vm3, %v3670_v50, %v7313_v53  ;;  %v7322_v11 = vunpack.i.l.bf16 %v7321_v18  ;;  %v10223_v3 = vld [vmem:[#allocation2 + $0xf2] sm:$0xff] }
 0x2f3   : > { %3936 = vmatmul.mubr.f32.gmra.mrb[8].mxu1 %v3702_v60  ;;  %7520 = vrot.lane.b32.xlu0 %v10202_v10, %s8368_s29  ;;  %v7317_v63 = vunpack.i.l.bf16 %v7316_v36  ;;  %v7318_v32 = vunpack.i.h.bf16 %v7316_v36 }
 0x2f4   : > { %7515 = vrot.lane.b32.xlu1 %v7514_v21, %s8367_s28  ;;  %6744 = vmatprep.mubr.msk.f32.mxu1 %vm2226_vm12, %v10033_v45 }
 0x2f5   : > { %v3506_v16 = vsel %vm2226_vm12, %v9977_v24, %v7317_v63  ;;  %v7331_v47 = vpop.permute.xlu0 %7330  ;;  %v7544_v24 = vpack.i.bf16 %v10225_v28, %v10223_v3 }
 0x2f6   : > { %v7326_v14 = vpop.permute.xlu1 %7325  ;;  %v6950_v33 = vpop.f32.mrb[20].mxu0  ;;  %v7332_v35 = vunpack.i.l.bf16 %v7331_v47  ;;  %v3539_v39 = vsel %vm3532_vm14, %v3506_v16, %v7322_v11  ;;  %v7333_v25 = vunpack.i.h.bf16 %v7331_v47 }
 0x2f7   : > { %3941 = vmatmul.mubr.f32.gmra.mrb[10].mxu1 %v3703_v55  ;;  %v2141_v37 = vadd.f32 %v10214_v31, %v6950_v33  ;;  %7530 = vrot.lane.b32.xlu0 %v7509_v41, %s8361_s24  ;;  %v2135_v45 = vpop.f32.mrb[21].mxu0  ;;  %v7327_v49 = vunpack.i.l.bf16 %v7326_v14  ;;  %v3507_v41 = vsel %vm2226_vm12, %v9979_v26, %v7318_v32  ;;  %v7328_v29 = vunpack.i.h.bf16 %v7326_v14 }
 0x2f8   : > { %7525 = vrot.lane.b32.xlu1 %v10160_v34, %s8362_s25  ;;  %6745 = vmatprep.mubr.msk.f32.mxu1 %vm2226_vm12, %v10057_v9  ;;  %v2136_v4 = vadd.f32 %v10214_v31, %v2135_v45  ;;  %v7323_v9 = vunpack.i.h.bf16 %v7321_v18 }
 0x2f9   : > { %v2215_v54 = vmax.f32 %v2141_v37, 0.0  ;;  %v3572_v44 = vsel %vm3565_vm15, %v3539_v39, %v7327_v49 }
 0x2fa   : > { %v2214_v17 = vmax.f32 %v2136_v4, 0.0  ;;  %v7336_v34 = vpop.permute.xlu1 %7335  ;;  %v3540_v59 = vsel %vm3532_vm14, %v3507_v41, %v7323_v9  ;;  %v3605_v22 = vsel %vm3598_vm0, %v3572_v44, %v7332_v35 }
 0x2fb   : > { %2304 = vst.msk [vmem:[#allocation2 + $0x111] sm:$0xff] %vm2226_vm12, %v2215_v54  ;;  %7540 = vrot.lane.b32.xlu0 %v10202_v10, %s8364_s22  ;;  %v7337_v52 = vunpack.i.l.bf16 %v7336_v34  ;;  %v3573_v57 = vsel %vm3565_vm15, %v3540_v59, %v7328_v29  ;;  %v7338_v12 = vunpack.i.h.bf16 %v7336_v34 }
 0x2fc   : > { %7535 = vrot.lane.b32.xlu1 %v7514_v21, %s8365_s23  ;;  %2303 = vst.msk [vmem:[#allocation2 + $0x109] sm:$0xff] %vm2226_vm12, %v2214_v17  ;;  %v3606_v53 = vsel %vm3598_vm0, %v3573_v57, %v7333_v25 }
 0x2fd   : > { %v3638_v1 = vsel %vm3631_vm1, %v3605_v22, %v7337_v52  ;;  %v3639_v50 = vsel %vm3631_vm1, %v3606_v53, %v7338_v12 }
 0x300   : > { %7545 = vrot.lane.b32.xlu1 %v7544_v24, %s8366_s6 }
 0x301   : > { %v7341_v43 = vpop.permute.xlu0 %7340 }
 0x302   : > { %v7346_v26 = vpop.permute.xlu1 %7345  ;;  %v7343_v8 = vunpack.i.h.bf16 %v7341_v43  ;;  %v7342_v2 = vunpack.i.l.bf16 %v7341_v43  ;;  %v2559_v19 = vld [vmem:[#allocation2 + $0x111] sm:$0xff] }
 0x303   : > { %v7347_v15 = vunpack.i.l.bf16 %v7346_v26  ;;  %v2526_v30 = vld [vmem:[#allocation2 + $0x108] sm:$0xff]  ;;  %v2527_v23 = vld [vmem:[#allocation2 + $0x110] sm:$0xff]  ;;  %v7348_v36 = vunpack.i.h.bf16 %v7346_v26 }
 0x304   : > { %v2558_v6 = vld [vmem:[#allocation2 + $0x109] sm:$0xff]  ;;  %v3671_v61 = vsel %vm3664_vm2, %v3638_v1, %v7342_v2  ;;  %v7549_v13 = vpack.i.bf16 %v2527_v23, %v2526_v30  ;;  %v3672_v18 = vsel %vm3664_vm2, %v3639_v50, %v7343_v8  ;;  %v10267_v17 = vld [vmem:[#allocation2 + $0x112] sm:$0xff] }
 0x305   : > { %v10246_v20 = vpack.i.bf16 %v2559_v19, %v2558_v6  ;;  %v7351_v60 = vpop.permute.xlu0 %7350  ;;  %v3704_v21 = vsel %vm3697_vm3, %v3671_v61, %v7347_v15  ;;  %v3705_v14 = vsel %vm3697_vm3, %v3672_v18, %v7348_v36  ;;  %v10265_v11 = vld [vmem:[#allocation2 + $0x10a] sm:$0xff] }
 0x306   : > { %3946 = vmatmul.mubr.f32.gmra.mrb[12].mxu1 %v3704_v21  ;;  %7550 = vrot.lane.b32.xlu0 %v7549_v13, %s8367_s28  ;;  %v7356_v55 = vpop.permute.xlu1 %7355  ;;  %v7352_v37 = vunpack.i.l.bf16 %v7351_v60  ;;  %v7353_v32 = vunpack.i.h.bf16 %v7351_v60  ;;  %v7579_v41 = vpack.i.bf16 %v10267_v17, %v10265_v11 }
 0x307   : > { %7555 = vrot.lane.b32.xlu1 %v10246_v20, %s8368_s29  ;;  %6746 = vmatprep.mubr.msk.f32.mxu1 %vm2226_vm12, %v10059_v56  ;;  %v7357_v16 = vunpack.i.l.bf16 %v7356_v55 }
 0x308   : > { %v3509_v29 = vsel %vm2226_vm12, %v10016_v38, %v7353_v32  ;;  %v2325_v32 = vld [vmem:[#allocation2 + $0x78] sm:$0xff] }
 0x309   : > { %v7361_v33 = vpop.permute.xlu0 %7360 }
 0x30a   : > { %3951 = vmatmul.mubr.f32.gmra.mrb[14].mxu1 %v3705_v14  ;;  %v6953_v63 = vpop.f32.mrb[22].mxu0  ;;  %7560 = vrot.lane.b32.xlu0 %v10202_v10, %s8362_s25  ;;  %v3508_v10 = vsel %vm2226_vm12, %v10014_v5, %v7352_v37  ;;  %v7362_v49 = vunpack.i.l.bf16 %v7361_v33  ;;  %v7366_v9 = vpop.permute.xlu1 %7365 }
 0x30b   : > { %v2151_v45 = vadd.f32 %v10214_v31, %v6953_v63  ;;  %7565 = vrot.lane.b32.xlu1 %v7544_v24, %s8361_s24  ;;  %6747 = vmatprep.mubr.msk.f32.mxu1 %vm2226_vm12, %v10074_v0  ;;  %v2145_v4 = vpop.f32.mrb[23].mxu0  ;;  %v7358_v0 = vunpack.i.h.bf16 %v7356_v55  ;;  %v7363_v24 = vunpack.i.h.bf16 %v7361_v33  ;;  %v3541_v5 = vsel %vm3532_vm14, %v3508_v10, %v7357_v16  ;;  %v2326_v10 = vld [vmem:[#allocation2 + $0x80] sm:$0xff] }
 0x30c   : > { %v2146_v56 = vadd.f32 %v10214_v31, %v2145_v4  ;;  %v7367_v35 = vunpack.i.l.bf16 %v7366_v9  ;;  %v3574_v39 = vsel %vm3565_vm15, %v3541_v5, %v7362_v49  ;;  %v7368_v25 = vunpack.i.h.bf16 %v7366_v9 }
 0x30d   : > { %v2217_v54 = vmax.f32 %v2151_v45, 0.0  ;;  %v7371_v34 = vpop.permute.xlu0 %7370  ;;  %v3542_v52 = vsel %vm3532_vm14, %v3509_v29, %v7358_v0 }
 0x30e   : > { %v2216_v47 = vmax.f32 %v2146_v56, 0.0  ;;  %7570 = vrot.lane.b32.xlu0 %v7549_v13, %s8365_s23  ;;  %v7372_v44 = vunpack.i.l.bf16 %v7371_v34  ;;  %v3575_v59 = vsel %vm3565_vm15, %v3542_v52, %v7363_v24  ;;  %v7373_v57 = vunpack.i.h.bf16 %v7371_v34 }
 0x30f   : > { %2306 = vst.msk [vmem:[#allocation2 + $0x129] sm:$0xff] %vm2226_vm12, %v2217_v54  ;;  %7575 = vrot.lane.b32.xlu1 %v10246_v20, %s8364_s22  ;;  %v3607_v26 = vsel %vm3598_vm0, %v3574_v39, %v7367_v35  ;;  %v3608_v23 = vsel %vm3598_vm0, %v3575_v59, %v7368_v25 }
 0x310   : > { %2305 = vst.msk [vmem:[#allocation2 + $0x121] sm:$0xff] %vm2226_vm12, %v2216_v47  ;;  %v3640_v22 = vsel %vm3631_vm1, %v3607_v26, %v7372_v44  ;;  %v3641_v21 = vsel %vm3631_vm1, %v3608_v23, %v7373_v57 }
 0x312   : > { %7580 = vrot.lane.b32.xlu0 %v7579_v41, %s8366_s6 }
 0x315   : > { %v7381_v12 = vpop.permute.xlu0 %7380 }
 0x316   : > { %v7376_v43 = vpop.permute.xlu1 %7375  ;;  %v7382_v38 = vunpack.i.l.bf16 %v7381_v12  ;;  %v2561_v15 = vld [vmem:[#allocation2 + $0x129] sm:$0xff]  ;;  %v7383_v53 = vunpack.i.h.bf16 %v7381_v12 }
 0x317   : > { %v7378_v8 = vunpack.i.h.bf16 %v7376_v43  ;;  %v7377_v2 = vunpack.i.l.bf16 %v7376_v43  ;;  %v2560_v19 = vld [vmem:[#allocation2 + $0x121] sm:$0xff]  ;;  %v10311_v47 = vld [vmem:[#allocation2 + $0x12a] sm:$0xff] }
 0x318   : > { %v2528_v1 = vld [vmem:[#allocation2 + $0x120] sm:$0xff]  ;;  %v2529_v30 = vld [vmem:[#allocation2 + $0x128] sm:$0xff]  ;;  %v10289_v61 = vpack.i.bf16 %v2561_v15, %v2560_v19 }
 0x319   : > { %v3673_v6 = vsel %vm3664_vm2, %v3640_v22, %v7377_v2  ;;  %v7584_v13 = vpack.i.bf16 %v2529_v30, %v2528_v1  ;;  %v3674_v50 = vsel %vm3664_vm2, %v3641_v21, %v7378_v8  ;;  %v7391_v18 = vpop.permute.xlu0 %7390  ;;  %v10309_v16 = vld [vmem:[#allocation2 + $0x122] sm:$0xff] }
 0x31a   : > { %v7386_v36 = vpop.permute.xlu1 %7385  ;;  %v3706_v60 = vsel %vm3697_vm3, %v3673_v6, %v7382_v38  ;;  %7590 = vrot.lane.b32.xlu0 %v10289_v61, %s8368_s29  ;;  %v3707_v55 = vsel %vm3697_vm3, %v3674_v50, %v7383_v53  ;;  %v7392_v56 = vunpack.i.l.bf16 %v7391_v18  ;;  %v7614_v24 = vpack.i.bf16 %v10311_v47, %v10309_v16 }
 0x31b   : > { %3956 = vmatmul.mubr.f32.gmra.mrb[16].mxu1 %v3706_v60  ;;  %7585 = vrot.lane.b32.xlu1 %v7584_v13, %s8367_s28  ;;  %v7387_v33 = vunpack.i.l.bf16 %v7386_v36  ;;  %v7388_v37 = vunpack.i.h.bf16 %v7386_v36 }
 0x31c   : > { %6748 = vmatprep.mubr.msk.f32.mxu1 %vm2226_vm12, %v10076_v40 }
 0x31d   : > { %v7401_v49 = vpop.permute.xlu0 %7400  ;;  %v3511_v34 = vsel %vm2226_vm12, %v2326_v10, %v7388_v37 }
 0x31e   : > { %v7396_v14 = vpop.permute.xlu1 %7395  ;;  %7600 = vrot.lane.b32.xlu0 %v7579_v41, %s8361_s24  ;;  %v7402_v5 = vunpack.i.l.bf16 %v7401_v49  ;;  %v7403_v39 = vunpack.i.h.bf16 %v7401_v49  ;;  %v2328_v49 = vld [vmem:[#allocation2 + $0x98] sm:$0xff] }
 0x31f   : > { %3961 = vmatmul.mubr.f32.gmra.mrb[18].mxu1 %v3707_v55  ;;  %v6956_v63 = vpop.f32.mrb[24].mxu0  ;;  %7595 = vrot.lane.b32.xlu1 %v10246_v20, %s8362_s25  ;;  %v7393_v20 = vunpack.i.h.bf16 %v7391_v18  ;;  %v7397_v9 = vunpack.i.l.bf16 %v7396_v14  ;;  %v7398_v41 = vunpack.i.h.bf16 %v7396_v14 }
 0x320   : > { %6749 = vmatprep.mubr.msk.f32.mxu1 %vm2226_vm12, %v10096_v46  ;;  %v2161_v45 = vadd.f32 %v10214_v31, %v6956_v63  ;;  %v2155_v4 = vpop.f32.mrb[25].mxu0  ;;  %v3510_v46 = vsel %vm2226_vm12, %v2325_v32, %v7387_v33 }
 0x321   : > { %v2156_v40 = vadd.f32 %v10214_v31, %v2155_v4  ;;  %v3543_v35 = vsel %vm3532_vm14, %v3510_v46, %v7392_v56  ;;  %v3544_v44 = vsel %vm3532_vm14, %v3511_v34, %v7393_v20 }
 0x322   : > { %v2219_v54 = vmax.f32 %v2161_v45, 0.0  ;;  %7610 = vrot.lane.b32.xlu0 %v10289_v61, %s8364_s22  ;;  %v7406_v29 = vpop.permute.xlu1 %7405  ;;  %v3576_v52 = vsel %vm3565_vm15, %v3543_v35, %v7397_v9  ;;  %v3577_v59 = vsel %vm3565_vm15, %v3544_v44, %v7398_v41 }
 0x323   : > { %v2218_v0 = vmax.f32 %v2156_v40, 0.0  ;;  %7605 = vrot.lane.b32.xlu1 %v7584_v13, %s8365_s23  ;;  %v7407_v25 = vunpack.i.l.bf16 %v7406_v29  ;;  %v7408_v57 = vunpack.i.h.bf16 %v7406_v29  ;;  %v3609_v62 = vsel %vm3598_vm0, %v3576_v52, %v7402_v5 }
 0x324   : > { %2308 = vst.msk [vmem:[#allocation2 + $0x141] sm:$0xff] %vm2226_vm12, %v2219_v54  ;;  %v3610_v22 = vsel %vm3598_vm0, %v3577_v59, %v7403_v39  ;;  %v2327_v54 = vld [vmem:[#allocation2 + $0x90] sm:$0xff] }
 0x325   : > { %2307 = vst.msk [vmem:[#allocation2 + $0x139] sm:$0xff] %vm2226_vm12, %v2218_v0  ;;  %v3642_v2 = vsel %vm3631_vm1, %v3609_v62, %v7407_v25  ;;  %v3643_v6 = vsel %vm3631_vm1, %v3610_v22, %v7408_v57 }
 0x327   : > { %7615 = vrot.lane.b32.xlu1 %v7614_v24, %s8366_s6 }
 0x329   : > { %v7411_v12 = vpop.permute.xlu0 %7410 }
 0x32a   : > { %v7416_v43 = vpop.permute.xlu1 %7415  ;;  %v7413_v26 = vunpack.i.h.bf16 %v7411_v12  ;;  %v7412_v38 = vunpack.i.l.bf16 %v7411_v12 }
 0x32b   : > { %v7417_v8 = vunpack.i.l.bf16 %v7416_v43  ;;  %v2563_v15 = vld [vmem:[#allocation2 + $0x141] sm:$0xff]  ;;  %v7418_v13 = vunpack.i.h.bf16 %v7416_v43 }
 0x32c   : > { %v3675_v19 = vsel %vm3664_vm2, %v3642_v2, %v7412_v38  ;;  %v2530_v1 = vld [vmem:[#allocation2 + $0x138] sm:$0xff]  ;;  %v2531_v30 = vld [vmem:[#allocation2 + $0x140] sm:$0xff]  ;;  %v3676_v50 = vsel %vm3664_vm2, %v3643_v6, %v7413_v26 }
 0x32d   : > { %v2562_v23 = vld [vmem:[#allocation2 + $0x139] sm:$0xff]  ;;  %v7421_v53 = vpop.permute.xlu0 %7420  ;;  %v3708_v36 = vsel %vm3697_vm3, %v3675_v19, %v7417_v8  ;;  %v7619_v60 = vpack.i.bf16 %v2531_v30, %v2530_v1  ;;  %v3709_v18 = vsel %vm3697_vm3, %v3676_v50, %v7418_v13  ;;  %v10385_v32 = vld [vmem:[#allocation2 + $0x142] sm:$0xff] }
 0x32e   : > { %v10367_v21 = vpack.i.bf16 %v2563_v15, %v2562_v23  ;;  %3966 = vmatmul.mubr.f32.gmra.mrb[20].mxu1 %v3708_v36  ;;  %v7426_v55 = vpop.permute.xlu1 %7425  ;;  %v7422_v63 = vunpack.i.l.bf16 %v7421_v53  ;;  %v7423_v4 = vunpack.i.h.bf16 %v7421_v53  ;;  %v10383_v56 = vld [vmem:[#allocation2 + $0x13a] sm:$0xff] }
 0x32f   : > { %7620 = vrot.lane.b32.xlu0 %v7619_v60, %s8367_s28  ;;  %6750 = vmatprep.mubr.msk.f32.mxu1 %vm2226_vm12, %v10098_v7  ;;  %v7427_v20 = vunpack.i.l.bf16 %v7426_v55  ;;  %v7428_v9 = vunpack.i.h.bf16 %v7426_v55  ;;  %v7649_v34 = vpack.i.bf16 %v10385_v32, %v10383_v56 }
 0x330   : > { %7625 = vrot.lane.b32.xlu1 %v10367_v21, %s8368_s29  ;;  %v3512_v10 = vsel %vm2226_vm12, %v2327_v54, %v7422_v63  ;;  %v3513_v41 = vsel %vm2226_vm12, %v2328_v49, %v7423_v4 }
 0x331   : > { %v7431_v14 = vpop.permute.xlu0 %7430  ;;  %v3546_v44 = vsel %vm3532_vm14, %v3513_v41, %v7428_v9 }
 0x332   : > { %3971 = vmatmul.mubr.f32.gmra.mrb[22].mxu1 %v3709_v18  ;;  %v7436_v46 = vpop.permute.xlu1 %7435  ;;  %v7433_v29 = vunpack.i.h.bf16 %v7431_v14 }
 0x333   : > { %v6959_v33 = vpop.f32.mrb[26].mxu0  ;;  %7630 = vrot.lane.b32.xlu0 %v10289_v61, %s8362_s25  ;;  %6751 = vmatprep.mubr.msk.f32.mxu1 %vm2226_vm12, %v10138_v27  ;;  %v7432_v27 = vunpack.i.l.bf16 %v7431_v14  ;;  %v7437_v5 = vunpack.i.l.bf16 %v7436_v46  ;;  %v7438_v52 = vunpack.i.h.bf16 %v7436_v46 }
 0x334   : > { %7635 = vrot.lane.b32.xlu1 %v7614_v24, %s8361_s24  ;;  %v2171_v37 = vadd.f32 %v10214_v31, %v6959_v33  ;;  %v2165_v45 = vpop.f32.mrb[27].mxu0  ;;  %v3545_v24 = vsel %vm3532_vm14, %v3512_v10, %v7427_v20  ;;  %v3579_v59 = vsel %vm3565_vm15, %v3546_v44, %v7433_v29 }
 0x335   : > { %v2166_v7 = vadd.f32 %v10214_v31, %v2165_v45  ;;  %v7441_v0 = vpop.permute.xlu0 %7440  ;;  %v3578_v35 = vsel %vm3565_vm15, %v3545_v24, %v7432_v27  ;;  %v3612_v1 = vsel %vm3598_vm0, %v3579_v59, %v7438_v52 }
 0x336   : > { %v2221_v40 = vmax.f32 %v2171_v37, 0.0  ;;  %v7442_v39 = vunpack.i.l.bf16 %v7441_v0  ;;  %v7443_v57 = vunpack.i.h.bf16 %v7441_v0  ;;  %v3611_v26 = vsel %vm3598_vm0, %v3578_v35, %v7437_v5 }
 0x337   : > { %v2220_v61 = vmax.f32 %v2166_v7, 0.0  ;;  %7640 = vrot.lane.b32.xlu0 %v7619_v60, %s8365_s23 }
 0x338   : > { %7645 = vrot.lane.b32.xlu1 %v10367_v21, %s8364_s22  ;;  %2310 = vst.msk [vmem:[#allocation2 + $0x159] sm:$0xff] %vm2226_vm12, %v2221_v40  ;;  %v3644_v2 = vsel %vm3631_vm1, %v3611_v26, %v7442_v39  ;;  %v3645_v60 = vsel %vm3631_vm1, %v3612_v1, %v7443_v57  ;;  %v2329_v40 = vld [vmem:[#allocation2 + $0xa8] sm:$0xff] }
 0x339   : > { %2309 = vst.msk [vmem:[#allocation2 + $0x151] sm:$0xff] %vm2226_vm12, %v2220_v61  ;;  %v2330_v61 = vld [vmem:[#allocation2 + $0xb0] sm:$0xff] }
 0x33b   : > { %7650 = vrot.lane.b32.xlu0 %v7649_v34, %s8366_s6 }
 0x33d   : > { %v7451_v25 = vpop.permute.xlu0 %7450 }
 0x33e   : > { %v7452_v12 = vunpack.i.l.bf16 %v7451_v25  ;;  %v7446_v43 = vpop.permute.xlu1 %7445  ;;  %v7453_v13 = vunpack.i.h.bf16 %v7451_v25 }
 0x33f   : > { %v7448_v38 = vunpack.i.h.bf16 %v7446_v43  ;;  %v7447_v8 = vunpack.i.l.bf16 %v7446_v43  ;;  %v2565_v62 = vld [vmem:[#allocation2 + $0x159] sm:$0xff] }
 0x340   : > { %v2564_v15 = vld [vmem:[#allocation2 + $0x151] sm:$0xff]  ;;  %v10428_v9 = vld [vmem:[#allocation2 + $0x15a] sm:$0xff] }
 0x341   : > { %v2532_v22 = vld [vmem:[#allocation2 + $0x150] sm:$0xff]  ;;  %v2533_v19 = vld [vmem:[#allocation2 + $0x158] sm:$0xff]  ;;  %v3677_v30 = vsel %vm3664_vm2, %v3644_v2, %v7447_v8  ;;  %v10405_v23 = vpack.i.bf16 %v2565_v62, %v2564_v15  ;;  %v3678_v50 = vsel %vm3664_vm2, %v3645_v60, %v7448_v38  ;;  %v7461_v18 = vpop.permute.xlu0 %7460 }
 0x342   : > { %v7654_v6 = vpack.i.bf16 %v2533_v19, %v2532_v22  ;;  %v7456_v53 = vpop.permute.xlu1 %7455  ;;  %v3710_v36 = vsel %vm3697_vm3, %v3677_v30, %v7452_v12  ;;  %v3711_v14 = vsel %vm3697_vm3, %v3678_v50, %v7453_v13  ;;  %v7462_v4 = vunpack.i.l.bf16 %v7461_v18 }
 0x343   : > { %3976 = vmatmul.mubr.f32.gmra.mrb[24].mxu1 %v3710_v36  ;;  %7660 = vrot.lane.b32.xlu0 %v10405_v23, %s8368_s29  ;;  %v7457_v33 = vunpack.i.l.bf16 %v7456_v53  ;;  %v7458_v37 = vunpack.i.h.bf16 %v7456_v53  ;;  %v7463_v20 = vunpack.i.h.bf16 %v7461_v18 }
 0x344   : > { %7655 = vrot.lane.b32.xlu1 %v7654_v6, %s8367_s28  ;;  %6752 = vmatprep.mubr.msk.f32.mxu1 %vm2226_vm12, %v10140_v51 }
 0x345   : > { %v3514_v10 = vsel %vm2226_vm12, %v2329_v40, %v7457_v33  ;;  %v7471_v27 = vpop.permute.xlu0 %7470 }
 0x346   : > { %v7466_v55 = vpop.permute.xlu1 %7465  ;;  %v7472_v41 = vunpack.i.l.bf16 %v7471_v27  ;;  %v3547_v29 = vsel %vm3532_vm14, %v3514_v10, %v7462_v4  ;;  %v7473_v5 = vunpack.i.h.bf16 %v7471_v27 }
 0x347   : > { %3981 = vmatmul.mubr.f32.gmra.mrb[26].mxu1 %v3711_v14  ;;  %v6962_v63 = vpop.f32.mrb[28].mxu0  ;;  %7670 = vrot.lane.b32.xlu0 %v7649_v34, %s8361_s24  ;;  %v7467_v46 = vunpack.i.l.bf16 %v7466_v55  ;;  %v7468_v0 = vunpack.i.h.bf16 %v7466_v55 }
 0x348   : > { %v2181_v45 = vadd.f32 %v10214_v31, %v6962_v63  ;;  %7665 = vrot.lane.b32.xlu1 %v10367_v21, %s8362_s25  ;;  %6753 = vmatprep.mubr.msk.f32.mxu1 %vm2226_vm12, %v10176_v42  ;;  %v2175_v7 = vpop.f32.mrb[29].mxu0  ;;  %v10426_v21 = vld [vmem:[#allocation2 + $0x152] sm:$0xff]  ;;  %v3515_v42 = vsel %vm2226_vm12, %v2330_v61, %v7458_v37  ;;  %v2332_v61 = vld [vmem:[#allocation2 + $0xc8] sm:$0xff] }
 0x349   : > { %v2176_v51 = vadd.f32 %v10214_v31, %v2175_v7  ;;  %v7684_v24 = vpack.i.bf16 %v10428_v9, %v10426_v21  ;;  %v3548_v35 = vsel %vm3532_vm14, %v3515_v42, %v7463_v20  ;;  %v3580_v39 = vsel %vm3565_vm15, %v3547_v29, %v7467_v46 }
 0x34a   : > { %v2223_v54 = vmax.f32 %v2181_v45, 0.0  ;;  %v7476_v34 = vpop.permute.xlu1 %7475  ;;  %v3581_v52 = vsel %vm3565_vm15, %v3548_v35, %v7468_v0  ;;  %v3613_v38 = vsel %vm3598_vm0, %v3580_v39, %v7472_v41 }
 0x34b   : > { %v2222_v49 = vmax.f32 %v2176_v51, 0.0  ;;  %7680 = vrot.lane.b32.xlu0 %v10405_v23, %s8364_s22  ;;  %v7477_v44 = vunpack.i.l.bf16 %v7476_v34  ;;  %v7478_v25 = vunpack.i.h.bf16 %v7476_v34  ;;  %v3614_v2 = vsel %vm3598_vm0, %v3581_v52, %v7473_v5  ;;  %v2331_v51 = vld [vmem:[#allocation2 + $0xc0] sm:$0xff] }
 0x34c   : > { %2312 = vst.msk [vmem:[#allocation2 + $0x171] sm:$0xff] %vm2226_vm12, %v2223_v54  ;;  %7675 = vrot.lane.b32.xlu1 %v7654_v6, %s8365_s23 }
 0x34d   : > { %2311 = vst.msk [vmem:[#allocation2 + $0x169] sm:$0xff] %vm2226_vm12, %v2222_v49  ;;  %v3646_v8 = vsel %vm3631_vm1, %v3613_v38, %v7477_v44  ;;  %v3647_v30 = vsel %vm3631_vm1, %v3614_v2, %v7478_v25 }
 0x350   : > { %7685 = vrot.lane.b32.xlu1 %v7684_v24, %s8366_s6 }
 0x351   : > { %v7481_v59 = vpop.permute.xlu0 %7480 }
 0x352   : > { %v7486_v57 = vpop.permute.xlu1 %7485  ;;  %v7483_v12 = vunpack.i.h.bf16 %v7481_v59  ;;  %v7482_v43 = vunpack.i.l.bf16 %v7481_v59 }
 0x353   : > { %v7487_v26 = vunpack.i.l.bf16 %v7486_v57  ;;  %v2567_v62 = vld [vmem:[#allocation2 + $0x171] sm:$0xff]  ;;  %v7488_v6 = vunpack.i.h.bf16 %v7486_v57 }
 0x354   : > { %v3679_v15 = vsel %vm3664_vm2, %v3646_v8, %v7482_v43  ;;  %v2534_v22 = vld [vmem:[#allocation2 + $0x168] sm:$0xff]  ;;  %v2535_v19 = vld [vmem:[#allocation2 + $0x170] sm:$0xff]  ;;  %v3680_v50 = vsel %vm3664_vm2, %v3647_v30, %v7483_v12 }
 0x355   : > { %v2566_v1 = vld [vmem:[#allocation2 + $0x169] sm:$0xff]  ;;  %v7491_v13 = vpop.permute.xlu0 %7490  ;;  %v3712_v53 = vsel %vm3697_vm3, %v3679_v15, %v7487_v26  ;;  %v7689_v36 = vpack.i.bf16 %v2535_v19, %v2534_v22  ;;  %v3713_v55 = vsel %vm3697_vm3, %v3680_v50, %v7488_v6  ;;  %v10465_v20 = vld [vmem:[#allocation2 + $0x172] sm:$0xff] }
 0x356   : > { %v10447_v60 = vpack.i.bf16 %v2567_v62, %v2566_v1  ;;  %3986 = vmatmul.mubr.f32.gmra.mrb[28].mxu1 %v3712_v53  ;;  %v7496_v18 = vpop.permute.xlu1 %7495  ;;  %v7492_v33 = vunpack.i.l.bf16 %v7491_v13  ;;  %v7493_v37 = vunpack.i.h.bf16 %v7491_v13  ;;  %v10463_v54 = vld [vmem:[#allocation2 + $0x16a] sm:$0xff] }
 0x357   : > { %7690 = vrot.lane.b32.xlu0 %v7689_v36, %s8367_s28  ;;  %6754 = vmatprep.mubr.msk.f32.mxu1 %vm2226_vm12, %v10178_v48  ;;  %v7497_v4 = vunpack.i.l.bf16 %v7496_v18  ;;  %v7498_v10 = vunpack.i.h.bf16 %v7496_v18  ;;  %v7719_v0 = vpack.i.bf16 %v10465_v20, %v10463_v54 }
 0x358   : > { %7695 = vrot.lane.b32.xlu1 %v10447_v60, %s8368_s29 }
 0x359   : > { %v7501_v14 = vpop.permute.xlu0 %7500 }
 0x35a   : > { %3991 = vmatmul.mubr.f32.gmra.mrb[30].mxu1 %v3713_v55  ;;  %v7502_v27 = vunpack.i.l.bf16 %v7501_v14  ;;  %v7506_v46 = vpop.permute.xlu1 %7505 }
 0x35b   : > { %v6965_v63 = vpop.f32.mrb[30].mxu0  ;;  %7700 = vrot.lane.b32.xlu0 %v10405_v23, %s8362_s25  ;;  %6755 = vmatprep.mubr.msk.f32.mxu1 %vm2226_vm12, %v10223_v3  ;;  %v3516_v23 = vsel %vm2226_vm12, %v2331_v51, %v7492_v33  ;;  %v7503_v3 = vunpack.i.h.bf16 %v7501_v14  ;;  %v7507_v41 = vunpack.i.l.bf16 %v7506_v46  ;;  %v7508_v5 = vunpack.i.h.bf16 %v7506_v46  ;;  %v2538_v33 = vld [vmem:[#allocation2 + $0x198] sm:$0xff] }
 0x35c   : > { %7705 = vrot.lane.b32.xlu1 %v7684_v24, %s8361_s24  ;;  %v2191_v45 = vadd.f32 %v10214_v31, %v6965_v63  ;;  %v2185_v7 = vpop.f32.mrb[31].mxu0  ;;  %v3549_v34 = vsel %vm3532_vm14, %v3516_v23, %v7497_v4 }
 0x35d   : > { %v2186_v48 = vadd.f32 %v10214_v31, %v2185_v7  ;;  %v3517_v31 = vsel %vm2226_vm12, %v2332_v61, %v7493_v37  ;;  %v7511_v42 = vpop.permute.xlu0 %7510  ;;  %v3582_v24 = vsel %vm3565_vm15, %v3549_v34, %v7502_v27  ;;  %v2539_v37 = vld [vmem:[#allocation2 + $0x1a0] sm:$0xff]  ;;  %v5480_v34 = vld [vmem:[%s11758_s5 + $0x118] sm:$0xff] }
 0x35e   : > { %v2225_v40 = vmax.f32 %v2191_v45, 0.0  ;;  %v3550_v29 = vsel %vm3532_vm14, %v3517_v31, %v7498_v10  ;;  %v7512_v35 = vunpack.i.l.bf16 %v7511_v42  ;;  %v7513_v44 = vunpack.i.h.bf16 %v7511_v42  ;;  %v5478_v45 = vld [vmem:[%s11758_s5 + $0x108] sm:$0xff]  ;;  %v2334_v10 = vld [vmem:[#allocation2 + $0xe0] sm:$0xff] }
 0x35f   : > { %v2224_v49 = vmax.f32 %v2186_v48, 0.0  ;;  %7710 = vrot.lane.b32.xlu0 %v7689_v36, %s8365_s23  ;;  %v3583_v39 = vsel %vm3565_vm15, %v3550_v29, %v7503_v3  ;;  %v3615_v59 = vsel %vm3598_vm0, %v3582_v24, %v7507_v41  ;;  %v2333_v48 = vld [vmem:[#allocation2 + $0xd8] sm:$0xff]  ;;  %v7759_v46 = vpack.i.bf16 %v2539_v37, %v2538_v33  ;;  %v2571_v42 = vld [vmem:[#allocation2 + $0x1a1] sm:$0xff] }
 0x360   : > { %7715 = vrot.lane.b32.xlu1 %v10447_v60, %s8364_s22  ;;  %2314 = vst.msk [vmem:[#allocation2 + $0x189] sm:$0xff] %vm2226_vm12, %v2225_v40  ;;  %v3616_v26 = vsel %vm3598_vm0, %v3583_v39, %v7508_v5  ;;  %v3648_v38 = vsel %vm3631_vm1, %v3615_v59, %v7512_v35  ;;  %v5445_v59 = vld [vmem:[%s11758_s5] sm:$0xff]  ;;  %v5450_v37 = vld [vmem:[%s11758_s5 + $0x28] sm:$0xff] }
 0x361   : > { %2313 = vst.msk [vmem:[#allocation2 + $0x181] sm:$0xff] %vm2226_vm12, %v2224_v49  ;;  %v3649_v19 = vsel %vm3631_vm1, %v3616_v26, %v7513_v44  ;;  %v2570_v49 = vld [vmem:[#allocation2 + $0x199] sm:$0xff] }
 0x363   : > { %7720 = vrot.lane.b32.xlu0 %v7719_v0, %s8366_s6 }
 0x365   : > { %v7521_v52 = vpop.permute.xlu0 %7520 }
 0x366   : > { %v7516_v25 = vpop.permute.xlu1 %7515  ;;  %v7522_v57 = vunpack.i.l.bf16 %v7521_v52  ;;  %v7523_v1 = vunpack.i.h.bf16 %v7521_v52 }
 0x367   : > { %v7518_v12 = vunpack.i.h.bf16 %v7516_v25  ;;  %v7517_v43 = vunpack.i.l.bf16 %v7516_v25  ;;  %v2569_v8 = vld [vmem:[#allocation2 + $0x189] sm:$0xff]  ;;  %v7764_v25 = vpack.i.bf16 %v2571_v42, %v2570_v49 }
 0x368   : > { %v2568_v2 = vld [vmem:[#allocation2 + $0x181] sm:$0xff]  ;;  %v10507_v23 = vld [vmem:[#allocation2 + $0x18a] sm:$0xff] }
 0x369   : > { %v3681_v62 = vsel %vm3664_vm2, %v3648_v38, %v7517_v43  ;;  %v2536_v15 = vld [vmem:[#allocation2 + $0x180] sm:$0xff]  ;;  %v2537_v22 = vld [vmem:[#allocation2 + $0x188] sm:$0xff]  ;;  %v7729_v13 = vpack.i.bf16 %v2569_v8, %v2568_v2  ;;  %v3682_v36 = vsel %vm3664_vm2, %v3649_v19, %v7518_v12  ;;  %v7531_v50 = vpop.permute.xlu0 %7530 }
 0x36a   : > { %v7526_v30 = vpop.permute.xlu1 %7525  ;;  %v3714_v6 = vsel %vm3697_vm3, %v3681_v62, %v7522_v57  ;;  %v7724_v53 = vpack.i.bf16 %v2537_v22, %v2536_v15  ;;  %v3715_v55 = vsel %vm3697_vm3, %v3682_v36, %v7523_v1  ;;  %v7532_v7 = vunpack.i.l.bf16 %v7531_v50  ;;  %v10505_v61 = vld [vmem:[#allocation2 + $0x182] sm:$0xff] }
 0x36b   : > { %3996 = vmatmul.mubr.f32.gmra.mrb[32].mxu1 %v3714_v6  ;;  %7730 = vrot.lane.b32.xlu0 %v7729_v13, %s8368_s29  ;;  %v7527_v14 = vunpack.i.l.bf16 %v7526_v30  ;;  %v7528_v63 = vunpack.i.h.bf16 %v7526_v30  ;;  %v7754_v24 = vpack.i.bf16 %v10507_v23, %v10505_v61  ;;  %v5446_v57 = vld [vmem:[%s11758_s5 + $0x8] sm:$0xff] }
 0x36c   : > { %7725 = vrot.lane.b32.xlu1 %v7724_v53, %s8367_s28  ;;  %6756 = vmatprep.mubr.msk.f32.mxu1 %vm2226_vm12, %v10225_v28  ;;  %v5477_v28 = vld [vmem:[%s11758_s5 + $0x100] sm:$0xff]  ;;  %v7060_v38 = vpack.c.bf16 %v5446_v57, %v5445_v59  ;;  %v5454_v42 = vld [vmem:[%s11758_s5 + $0x48] sm:$0xff] }
 0x36d   : > { %v7107_v51 = vpack.c.bf16 %v5478_v45, %v5477_v28  ;;  %v3518_v4 = vsel %vm2226_vm12, %v2333_v48, %v7527_v14  ;;  %v3519_v31 = vsel %vm2226_vm12, %v2334_v10, %v7528_v63  ;;  %v5449_v63 = vld [vmem:[%s11758_s5 + $0x20] sm:$0xff]  ;;  %v5451_v48 = vld [vmem:[%s11758_s5 + $0x30] sm:$0xff] }
 0x36e   : > { %v7536_v18 = vpop.permute.xlu1 %7535  ;;  %v3551_v29 = vsel %vm3532_vm14, %v3518_v4, %v7532_v7  ;;  %7061 = vmatpush1.bf16.msra.mxu0 %v7060_v38  ;;  %v7066_v45 = vpack.c.bf16 %v5450_v37, %v5449_v63 }
 0x36f   : > { %4001 = vmatmul.mubr.f32.gmra.mrb[34].mxu1 %v3715_v55  ;;  %7740 = vrot.lane.b32.xlu0 %v7719_v0, %s8361_s24  ;;  %v7537_v40 = vunpack.i.l.bf16 %v7536_v18  ;;  %v7538_v3 = vunpack.i.h.bf16 %v7536_v18  ;;  %v5479_v0 = vld [vmem:[%s11758_s5 + $0x110] sm:$0xff]  ;;  %v5448_v18 = vld [vmem:[%s11758_s5 + $0x18] sm:$0xff] }
 0x370   : > { %7735 = vrot.lane.b32.xlu1 %v10447_v60, %s8362_s25  ;;  %6757 = vmatprep.mubr.msk.f32.mxu1 %vm2226_vm12, %v10265_v11  ;;  %v7541_v60 = vpop.permute.xlu0 %7540  ;;  %v7533_v11 = vunpack.i.h.bf16 %v7531_v50  ;;  %v7111_v5 = vpack.c.bf16 %v5480_v34, %v5479_v0  ;;  %v5447_v50 = vld [vmem:[%s11758_s5 + $0x10] sm:$0xff] }
 0x371   : > { %7108 = vmatprep.subr.bf16.mxu1 %v7107_v51  ;;  %v7542_v41 = vunpack.i.l.bf16 %v7541_v60  ;;  %v3584_v35 = vsel %vm3565_vm15, %v3551_v29, %v7537_v40  ;;  %v7543_v44 = vunpack.i.h.bf16 %v7541_v60  ;;  %7062 = vmatprep.subr.bf16.mxu0 %v8363_v58  ;;  %v7063_v14 = vpack.c.bf16 %v5448_v18, %v5447_v50  ;;  %v2335_v40 = vld [vmem:[#allocation2 + $0xf0] sm:$0xff] }
 0x372   : > { %v7546_v27 = vpop.permute.xlu1 %7545  ;;  %7110 = vmatpush3.bf16.msra.mxu1 %v7107_v51  ;;  %v3552_v52 = vsel %vm3532_vm14, %v3519_v31, %v7533_v11  ;;  %v5452_v51 = vld [vmem:[%s11758_s5 + $0x38] sm:$0xff] }
 0x373   : > { %7750 = vrot.lane.b32.xlu0 %v7729_v13, %s8364_s22  ;;  %v7547_v39 = vunpack.i.l.bf16 %v7546_v27  ;;  %v3585_v12 = vsel %vm3565_vm15, %v3552_v52, %v7538_v3  ;;  %v7548_v43 = vunpack.i.h.bf16 %v7546_v27  ;;  %7112 = vmatprep.subr.bf16.mxu1 %v7111_v5  ;;  %v3617_v15 = vsel %vm3598_vm0, %v3584_v35, %v7542_v41  ;;  %v5453_v3 = vld [vmem:[%s11758_s5 + $0x40] sm:$0xff]  ;;  %v5456_v35 = vld [vmem:[%s11758_s5 + $0x58] sm:$0xff] }
 0x374   : > { %7745 = vrot.lane.b32.xlu1 %v7724_v53, %s8365_s23  ;;  %v3618_v30 = vsel %vm3598_vm0, %v3585_v12, %v7543_v44  ;;  %7064 = vmatpush1.bf16.msra.mxu0 %v7063_v14  ;;  %v7069_v60 = vpack.c.bf16 %v5452_v51, %v5451_v48  ;;  %v7072_v41 = vpack.c.bf16 %v5454_v42, %v5453_v3  ;;  %v5460_v14 = vld [vmem:[%s11758_s5 + $0x78] sm:$0xff] }
 0x375   : > { %v3650_v19 = vsel %vm3631_vm1, %v3617_v15, %v7547_v39  ;;  %v3651_v36 = vsel %vm3631_vm1, %v3618_v30, %v7548_v43  ;;  %7065 = vmatprep.subr.bf16.mxu0 %v8363_v58  ;;  %v5458_v30 = vld [vmem:[%s11758_s5 + $0x68] sm:$0xff] }
 0x376   : > { %7114 = vmatpush3.bf16.msra.mxu1 %v7111_v5  ;;  %v5455_v5 = vld [vmem:[%s11758_s5 + $0x50] sm:$0xff] }
 0x377   : > { %7760 = vrot.lane.b32.xlu0 %v7759_v46, %s8367_s28  ;;  %v2336_v46 = vld [vmem:[#allocation2 + $0xf8] sm:$0xff]  ;;  %v7075_v52 = vpack.c.bf16 %v5456_v35, %v5455_v5 }
 0x378   : > { %7755 = vrot.lane.b32.xlu1 %v7754_v24, %s8366_s6  ;;  %v7551_v26 = vpop.permute.xlu0 %7550  ;;  %7067 = vmatpush1.bf16.msra.mxu0 %v7066_v45 }
 0x379   : > { %v7553_v8 = vunpack.i.h.bf16 %v7551_v26  ;;  %v7552_v62 = vunpack.i.l.bf16 %v7551_v26  ;;  %v7556_v2 = vpop.permute.xlu1 %7555  ;;  %7068 = vmatprep.subr.bf16.mxu0 %v8363_v58 }
 0x37a   : > { %v7557_v22 = vunpack.i.l.bf16 %v7556_v2  ;;  %v7558_v6 = vunpack.i.h.bf16 %v7556_v2 }
 0x37b   : > { %v3683_v1 = vsel %vm3664_vm2, %v3650_v19, %v7552_v62  ;;  %v3684_v55 = vsel %vm3664_vm2, %v3651_v36, %v7553_v8 }
 0x37c   : > { %7765 = vrot.lane.b32.xlu1 %v7764_v25, %s8368_s29  ;;  %v7561_v13 = vpop.permute.xlu0 %7560  ;;  %v3716_v53 = vsel %vm3697_vm3, %v3683_v1, %v7557_v22  ;;  %v3717_v33 = vsel %vm3697_vm3, %v3684_v55, %v7558_v6  ;;  %7070 = vmatpush1.bf16.msra.mxu0 %v7069_v60  ;;  %v5457_v1 = vld [vmem:[%s11758_s5 + $0x60] sm:$0xff]  ;;  %v5459_v55 = vld [vmem:[%s11758_s5 + $0x70] sm:$0xff] }
 0x37d   : > { %4006 = vmatmul.mubr.f32.gmra.mrb[36].mxu1 %v3716_v53  ;;  %v7566_v28 = vpop.permute.xlu1 %7565  ;;  %v7563_v4 = vunpack.i.h.bf16 %v7561_v13  ;;  %7071 = vmatprep.subr.bf16.mxu0 %v8363_v58  ;;  %v7078_v18 = vpack.c.bf16 %v5458_v30, %v5457_v1 }
 0x37e   : > { %6758 = vmatprep.mubr.msk.f32.mxu1 %vm2226_vm12, %v10267_v17  ;;  %v7562_v17 = vunpack.i.l.bf16 %v7561_v13  ;;  %v7567_v11 = vunpack.i.l.bf16 %v7566_v28  ;;  %v7568_v49 = vunpack.i.h.bf16 %v7566_v28  ;;  %v7081_v28 = vpack.c.bf16 %v5460_v14, %v5459_v55 }
 0x37f   : > { %v3521_v0 = vsel %vm2226_vm12, %v2336_v46, %v7563_v4  ;;  %v8332_v4 = vld [vmem:[#allocation2 + $0x108] sm:$0xff]  ;;  %v5464_v46 = vld [vmem:[%s11758_s5 + $0x98] sm:$0xff] }
 0x380   : > { %v7571_v7 = vpop.permute.xlu0 %7570  ;;  %v3520_v10 = vsel %vm2226_vm12, %v2335_v40, %v7562_v17  ;;  %7073 = vmatpush1.bf16.msra.mxu0 %v7072_v41  ;;  %v3554_v25 = vsel %vm3532_vm14, %v3521_v0, %v7568_v49  ;;  %v8333_v49 = vld [vmem:[#allocation2 + $0x110] sm:$0xff] }
 0x381   : > { %4011 = vmatmul.mubr.f32.gmra.mrb[38].mxu1 %v3717_v33  ;;  %v7572_v27 = vunpack.i.l.bf16 %v7571_v7  ;;  %v7573_v34 = vunpack.i.h.bf16 %v7571_v7  ;;  %v3553_v29 = vsel %vm3532_vm14, %v3520_v10, %v7567_v11  ;;  %7074 = vmatprep.subr.bf16.mxu0 %v8363_v58  ;;  %v5462_v7 = vld [vmem:[%s11758_s5 + $0x88] sm:$0xff] }
 0x382   : > { %6759 = vmatprep.mubr.msk.f32.mxu1 %vm2226_vm12, %v10309_v16  ;;  %v7576_v16 = vpop.permute.xlu1 %7575 }
 0x383   : > { %v7577_v24 = vunpack.i.l.bf16 %v7576_v16  ;;  %v3586_v39 = vsel %vm3565_vm15, %v3553_v29, %v7572_v27  ;;  %v7578_v59 = vunpack.i.h.bf16 %v7576_v16  ;;  %v3587_v12 = vsel %vm3565_vm15, %v3554_v25, %v7573_v34  ;;  %v5463_v16 = vld [vmem:[%s11758_s5 + $0x90] sm:$0xff] }
 0x384   : > { %v7581_v31 = vpop.permute.xlu0 %7580  ;;  %7076 = vmatpush1.bf16.msra.mxu0 %v7075_v52  ;;  %v7087_v0 = vpack.c.bf16 %v5464_v46, %v5463_v16  ;;  %v8334_v16 = vld [vmem:[#allocation2 + $0x120] sm:$0xff] }
 0x385   : > { %v7582_v44 = vunpack.i.l.bf16 %v7581_v31  ;;  %v7583_v43 = vunpack.i.h.bf16 %v7581_v31  ;;  %v3619_v8 = vsel %vm3598_vm0, %v3586_v39, %v7577_v24  ;;  %v3620_v22 = vsel %vm3598_vm0, %v3587_v12, %v7578_v59  ;;  %7077 = vmatprep.subr.bf16.mxu0 %v8363_v58  ;;  %v5465_v39 = vld [vmem:[%s11758_s5 + $0xa0] sm:$0xff] }
 0x387   : > { %v3652_v15 = vsel %vm3631_vm1, %v3619_v8, %v7582_v44  ;;  %v3653_v36 = vsel %vm3631_vm1, %v3620_v22, %v7583_v43  ;;  %v5466_v44 = vld [vmem:[%s11758_s5 + $0xa8] sm:$0xff] }
 0x388   : > { %7079 = vmatpush1.bf16.msra.mxu0 %v7078_v18 }
 0x389   : > { %7080 = vmatprep.subr.bf16.mxu0 %v8363_v58 }
 0x38c   : > { %v7591_v57 = vpop.permute.xlu0 %7590  ;;  %7082 = vmatpush1.bf16.msra.mxu0 %v7081_v28  ;;  %v5469_v28 = vld [vmem:[%s11758_s5 + $0xc0] sm:$0xff] }
 0x38d   : > { %v7592_v26 = vunpack.i.l.bf16 %v7591_v57  ;;  %v7586_v38 = vpop.permute.xlu1 %7585  ;;  %v7593_v6 = vunpack.i.h.bf16 %v7591_v57  ;;  %7083 = vmatprep.subr.bf16.mxu0 %v8363_v58  ;;  %v7090_v57 = vpack.c.bf16 %v5466_v44, %v5465_v39 }
 0x38e   : > { %v7588_v62 = vunpack.i.h.bf16 %v7586_v38  ;;  %v7587_v2 = vunpack.i.l.bf16 %v7586_v38 }
 0x390   : > { %v3685_v19 = vsel %vm3664_vm2, %v3652_v15, %v7587_v2  ;;  %v3686_v50 = vsel %vm3664_vm2, %v3653_v36, %v7588_v62  ;;  %v7601_v33 = vpop.permute.xlu0 %7600  ;;  %v5467_v36 = vld [vmem:[%s11758_s5 + $0xb0] sm:$0xff] }
 0x391   : > { %v7596_v13 = vpop.permute.xlu1 %7595  ;;  %v3718_v53 = vsel %vm3697_vm3, %v3685_v19, %v7592_v26  ;;  %v3719_v63 = vsel %vm3697_vm3, %v3686_v50, %v7593_v6  ;;  %v7602_v51 = vunpack.i.l.bf16 %v7601_v33  ;;  %v7603_v10 = vunpack.i.h.bf16 %v7601_v33  ;;  %v5468_v50 = vld [vmem:[%s11758_s5 + $0xb8] sm:$0xff] }
 0x392   : > { %4016 = vmatmul.mubr.f32.gmra.mrb[40].mxu1 %v3718_v53  ;;  %v7597_v45 = vunpack.i.l.bf16 %v7596_v13  ;;  %v7598_v17 = vunpack.i.h.bf16 %v7596_v13 }
 0x393   : > { %6760 = vmatprep.mubr.msk.f32.mxu1 %vm2226_vm12, %v10311_v47  ;;  %v5461_v47 = vld [vmem:[%s11758_s5 + $0x80] sm:$0xff] }
 0x394   : > { %v7084_v48 = vpack.c.bf16 %v5462_v7, %v5461_v47  ;;  %v3522_v60 = vsel %vm2226_vm12, %v8332_v4, %v7597_v45  ;;  %v7611_v40 = vpop.permute.xlu0 %7610  ;;  %v3523_v31 = vsel %vm2226_vm12, %v8333_v49, %v7598_v17  ;;  %v5470_v45 = vld [vmem:[%s11758_s5 + $0xc8] sm:$0xff]  ;;  %v5471_v4 = vld [vmem:[%s11758_s5 + $0xd0] sm:$0xff] }
 0x395   : > { %v7606_v37 = vpop.permute.xlu1 %7605  ;;  %v7612_v34 = vunpack.i.l.bf16 %v7611_v40  ;;  %v3555_v41 = vsel %vm3532_vm14, %v3522_v60, %v7602_v51  ;;  %v7613_v52 = vunpack.i.h.bf16 %v7611_v40  ;;  %v3556_v25 = vsel %vm3532_vm14, %v3523_v31, %v7603_v10  ;;  %v5472_v60 = vld [vmem:[%s11758_s5 + $0xd8] sm:$0xff] }
 0x396   : > { %4021 = vmatmul.mubr.f32.gmra.mrb[42].mxu1 %v3719_v63  ;;  %v7607_v11 = vunpack.i.l.bf16 %v7606_v37  ;;  %7085 = vmatpush1.bf16.msra.mxu0 %v7084_v48  ;;  %v7608_v3 = vunpack.i.h.bf16 %v7606_v37  ;;  %v7093_v63 = vpack.c.bf16 %v5468_v50, %v5467_v36  ;;  %v7096_v7 = vpack.c.bf16 %v5470_v45, %v5469_v28 }
 0x397   : > { %6761 = vmatprep.mubr.msk.f32.mxu1 %vm2226_vm12, %v10383_v56  ;;  %v10623_v56 = vld [vmem:[%s11757_s4] ss:$0 sm:$0xff]  ;;  %7086 = vmatprep.subr.bf16.mxu0 %v8363_v58 }
 0x398   : > { %v3588_v5 = vsel %vm3565_vm15, %v3555_v41, %v7607_v11  ;;  %v3589_v12 = vsel %vm3565_vm15, %v3556_v25, %v7608_v3  ;;  %v7099_v11 = vpack.c.bf16 %v5472_v60, %v5471_v4  ;;  %v5473_v3 = vld [vmem:[%s11758_s5 + $0xe0] sm:$0xff] }
 0x399   : > { %v7616_v27 = vpop.permute.xlu1 %7615  ;;  %v3621_v19 = vsel %vm3598_vm0, %v3588_v5, %v7612_v34  ;;  %v3622_v53 = vsel %vm3598_vm0, %v3589_v12, %v7613_v52 }
 0x39a   : > { %v7617_v35 = vunpack.i.l.bf16 %v7616_v27  ;;  %7088 = vmatpush1.bf16.msra.mxu0 %v7087_v0  ;;  %v7618_v43 = vunpack.i.h.bf16 %v7616_v27 }
 0x39b   : > { %7089 = vmatprep.subr.bf16.mxu0 %v8363_v58 }
 0x39c   : > { %v3654_v30 = vsel %vm3631_vm1, %v3621_v19, %v7617_v35  ;;  %v3655_v33 = vsel %vm3631_vm1, %v3622_v53, %v7618_v43  ;;  %v5475_v43 = vld [vmem:[%s11758_s5 + $0xf0] sm:$0xff] }
 0x39e   : > { %v3917_v42 = vpop.f32.mrb[0].mxu1  ;;  %7091 = vmatpush1.bf16.msra.mxu0 %v7090_v57 }
 0x39f   : > { %v3918_v29 = vadd.f32 %v10623_v56, %v3917_v42  ;;  %v3919_v24 = vpop.f32.mrb[1].mxu1  ;;  %7092 = vmatprep.subr.bf16.mxu0 %v8363_v58  ;;  %v5474_v42 = vld [vmem:[%s11758_s5 + $0xe8] sm:$0xff] }
 0x3a0   : > { %v8335_v24 = vld [vmem:[#allocation2 + $0x128] sm:$0xff] }
 0x3a1   : > { %v4076_v59 = vmax.f32 %v3918_v29, 0.0  ;;  %v7621_v38 = vpop.permute.xlu0 %7620  ;;  %v7102_v29 = vpack.c.bf16 %v5474_v42, %v5473_v3  ;;  %v8336_v42 = vld [vmem:[#allocation2 + $0x138] sm:$0xff] }
 0x3a2   : > { %v3922_v26 = vpop.f32.mrb[2].mxu1  ;;  %v7623_v62 = vunpack.i.h.bf16 %v7621_v38  ;;  %v7622_v2 = vunpack.i.l.bf16 %v7621_v38  ;;  %v7626_v15 = vpop.permute.xlu1 %7625  ;;  %7094 = vmatpush1.bf16.msra.mxu0 %v7093_v63 }
 0x3a3   : > { %4164 = vst.msk [vmem:[#allocation3 + $0x19] sm:$0xff] %vm3532_vm14, %v4076_v59  ;;  %v3923_v8 = vadd.f32 %v10623_v56, %v3922_v26  ;;  %v3924_v22 = vpop.f32.mrb[3].mxu1  ;;  %v7627_v1 = vunpack.i.l.bf16 %v7626_v15  ;;  %v7628_v18 = vunpack.i.h.bf16 %v7626_v15  ;;  %7095 = vmatprep.subr.bf16.mxu0 %v8363_v58  ;;  %v5476_v26 = vld [vmem:[%s11758_s5 + $0xf8] sm:$0xff] }
 0x3a4   : > { %v3687_v13 = vsel %vm3664_vm2, %v3654_v30, %v7622_v2  ;;  %v3688_v37 = vsel %vm3664_vm2, %v3655_v33, %v7623_v62  ;;  %v7105_v15 = vpack.c.bf16 %v5476_v26, %v5475_v43 }
 0x3a5   : > { %v4077_v6 = vmax.f32 %v3923_v8, 0.0  ;;  %v7631_v55 = vpop.permute.xlu0 %7630  ;;  %v3720_v14 = vsel %vm3697_vm3, %v3687_v13, %v7627_v1  ;;  %v3721_v47 = vsel %vm3697_vm3, %v3688_v37, %v7628_v18 }
 0x3a6   : > { %4026 = vmatmul.mubr.f32.gmra.mrb[44].mxu1 %v3720_v14  ;;  %v7636_v17 = vpop.permute.xlu1 %7635  ;;  %v7632_v51 = vunpack.i.l.bf16 %v7631_v55  ;;  %7097 = vmatpush1.bf16.msra.mxu0 %v7096_v7  ;;  %v7633_v10 = vunpack.i.h.bf16 %v7631_v55  ;;  %v4260_v7 = vld [vmem:[#allocation3 + $0x2] sm:$0xff] }
 0x3a7   : > { %4165 = vst.msk [vmem:[#allocation3 + $0x21] sm:$0xff] %vm3532_vm14, %v4077_v6  ;;  %6762 = vmatprep.mubr.msk.f32.mxu1 %vm2226_vm12, %v10385_v32  ;;  %v4228_v32 = vld [vmem:[#allocation3 + $0x1] sm:$0xff]  ;;  %7098 = vmatprep.subr.bf16.mxu0 %v8363_v58  ;;  %v7638_v0 = vunpack.i.h.bf16 %v7636_v17 }
 0x3a8   : > { %v3524_v46 = vsel %vm2226_vm12, %v8334_v16, %v7632_v51  ;;  %v3525_v5 = vsel %vm2226_vm12, %v8335_v24, %v7633_v10 }
 0x3a9   : > { %v7641_v48 = vpop.permute.xlu0 %7640  ;;  %v3558_v38 = vsel %vm3532_vm14, %v3525_v5, %v7638_v0 }
 0x3aa   : > { %4031 = vmatmul.mubr.f32.gmra.mrb[46].mxu1 %v3721_v47  ;;  %v7642_v49 = vunpack.i.l.bf16 %v7641_v48  ;;  %v7646_v31 = vpop.permute.xlu1 %7645  ;;  %7100 = vmatpush1.bf16.msra.mxu0 %v7099_v11  ;;  %v7643_v35 = vunpack.i.h.bf16 %v7641_v48  ;;  %v4292_v60 = vld [vmem:[#allocation3 + $0x18] sm:$0xff] }
 0x3ab   : > { %6763 = vmatprep.mubr.msk.f32.mxu1 %vm2226_vm12, %v10426_v21  ;;  %v7637_v21 = vunpack.i.l.bf16 %v7636_v17  ;;  %7101 = vmatprep.subr.bf16.mxu0 %v8363_v58  ;;  %v7647_v25 = vunpack.i.l.bf16 %v7646_v31  ;;  %v7648_v8 = vunpack.i.h.bf16 %v7646_v31 }
 0x3ac   : > { %v3591_v22 = vsel %vm3565_vm15, %v3558_v38, %v7643_v35  ;;  %v10746_v38 = vld [vmem:[#allocation3 + $0x19] sm:$0xff] }
 0x3ad   : > { %v7651_v34 = vpop.permute.xlu0 %7650  ;;  %v3557_v52 = vsel %vm3532_vm14, %v3524_v46, %v7637_v21  ;;  %v3624_v14 = vsel %vm3598_vm0, %v3591_v22, %v7648_v8  ;;  %v4261_v21 = vld [vmem:[#allocation3 + $0xa] sm:$0xff] }
 0x3ae   : > { %v10680_v40 = vld [vmem:[#allocation3 + $0x1a] sm:$0xff]  ;;  %v3590_v59 = vsel %vm3565_vm15, %v3557_v52, %v7642_v49  ;;  %v7652_v57 = vunpack.i.l.bf16 %v7651_v34  ;;  %7103 = vmatpush1.bf16.msra.mxu0 %v7102_v29  ;;  %v7653_v19 = vunpack.i.h.bf16 %v7651_v34  ;;  %v10728_v16 = vld [vmem:[#allocation3 + $0x22] sm:$0xff] }
 0x3af   : > { %v7769_v27 = vpack.i.bf16 %v4228_v32, %v10680_v40  ;;  %7104 = vmatprep.subr.bf16.mxu0 %v8363_v58  ;;  %v3623_v53 = vsel %vm3598_vm0, %v3590_v59, %v7647_v25  ;;  %v4293_v26 = vld [vmem:[#allocation3 + $0x20] sm:$0xff] }
 0x3b0   : > { %v3656_v55 = vsel %vm3631_vm1, %v3623_v53, %v7652_v57  ;;  %v3657_v45 = vsel %vm3631_vm1, %v3624_v14, %v7653_v19 }
 0x3b1   : > { %7770 = vrot.lane.b32.xlu0 %v7769_v27, %s8361_s24  ;;  %v3927_v41 = vpop.f32.mrb[4].mxu1 }
 0x3b2   : > { %v3928_v39 = vadd.f32 %v10623_v56, %v3927_v41  ;;  %v3929_v44 = vpop.f32.mrb[5].mxu1  ;;  %7106 = vmatpush1.bf16.msra.mxu0 %v7105_v15 }
 0x3b3   : > { %7115 = vmatprep.subr.bf16.mxu0 %v8363_v58 }
 0x3b4   : > { %v4078_v12 = vmax.f32 %v3928_v39, 0.0  ;;  %v8337_v39 = vld [vmem:[#allocation2 + $0x140] sm:$0xff] }
 0x3b5   : > { %v7661_v62 = vpop.permute.xlu0 %7660  ;;  %v3932_v2 = vpop.f32.mrb[6].mxu1 }
 0x3b6   : > { %4166 = vst.msk [vmem:[#allocation3 + $0x31] sm:$0xff] %vm3532_vm14, %v4078_v12  ;;  %v7662_v1 = vunpack.i.l.bf16 %v7661_v62  ;;  %v7656_v30 = vpop.permute.xlu1 %7655  ;;  %v3933_v6 = vadd.f32 %v10623_v56, %v3932_v2  ;;  %v3934_v13 = vpop.f32.mrb[7].mxu1  ;;  %v7663_v63 = vunpack.i.h.bf16 %v7661_v62 }
 0x3b7   : > { %v7658_v36 = vunpack.i.h.bf16 %v7656_v30  ;;  %v7657_v50 = vunpack.i.l.bf16 %v7656_v30 }
 0x3b8   : > { %v4079_v18 = vmax.f32 %v3933_v6, 0.0 }
 0x3b9   : > { %v3689_v33 = vsel %vm3664_vm2, %v3656_v55, %v7657_v50  ;;  %v3690_v47 = vsel %vm3664_vm2, %v3657_v45, %v7658_v36  ;;  %v7671_v17 = vpop.permute.xlu0 %7670 }
 0x3ba   : > { %4167 = vst.msk [vmem:[#allocation3 + $0x39] sm:$0xff] %vm3532_vm14, %v4079_v18  ;;  %v7666_v37 = vpop.permute.xlu1 %7665  ;;  %v3722_v28 = vsel %vm3697_vm3, %v3689_v33, %v7662_v1  ;;  %v3723_v4 = vsel %vm3697_vm3, %v3690_v47, %v7663_v63  ;;  %v7672_v31 = vunpack.i.l.bf16 %v7671_v17  ;;  %v7673_v29 = vunpack.i.h.bf16 %v7671_v17 }
 0x3bb   : > { %4036 = vmatmul.mubr.f32.gmra.mrb[48].mxu1 %v3722_v28  ;;  %v7667_v11 = vunpack.i.l.bf16 %v7666_v37  ;;  %v7668_v46 = vunpack.i.h.bf16 %v7666_v37 }
 0x3bc   : > { %6764 = vmatprep.mubr.msk.f32.mxu1 %vm2226_vm12, %v10428_v9  ;;  %v4229_v9 = vld [vmem:[#allocation3 + $0x9] sm:$0xff] }
 0x3bd   : > { %v10719_v48 = vld [vmem:[#allocation3 + $0x31] sm:$0xff]  ;;  %v3526_v0 = vsel %vm2226_vm12, %v8336_v42, %v7667_v11  ;;  %v7681_v34 = vpop.permute.xlu0 %7680  ;;  %v3527_v44 = vsel %vm2226_vm12, %v8337_v39, %v7668_v46 }
 0x3be   : > { %v10721_v32 = vld [vmem:[#allocation3 + $0x30] sm:$0xff]  ;;  %v7676_v51 = vpop.permute.xlu1 %7675  ;;  %v7779_v10 = vpack.i.bf16 %v4292_v60, %v10719_v48  ;;  %v7682_v59 = vunpack.i.l.bf16 %v7681_v34  ;;  %v3559_v57 = vsel %vm3532_vm14, %v3526_v0, %v7672_v31  ;;  %v7683_v22 = vunpack.i.h.bf16 %v7681_v34  ;;  %v10783_v34 = vld [vmem:[#allocation3 + $0x21] sm:$0xff] }
 0x3bf   : > { %4041 = vmatmul.mubr.f32.gmra.mrb[50].mxu1 %v3723_v4  ;;  %v7774_v27 = vpack.i.bf16 %v4260_v7, %v10721_v32  ;;  %v7677_v41 = vunpack.i.l.bf16 %v7676_v51  ;;  %v7678_v52 = vunpack.i.h.bf16 %v7676_v51  ;;  %v3560_v19 = vsel %vm3532_vm14, %v3527_v44, %v7673_v29 }
 0x3c0   : > { %6765 = vmatprep.mubr.msk.f32.mxu1 %vm2226_vm12, %v10463_v54  ;;  %7780 = vrot.lane.b32.xlu0 %v7779_v10, %s8367_s28  ;;  %v7784_v54 = vpack.i.bf16 %v4229_v9, %v10728_v16 }
 0x3c1   : > { %7775 = vrot.lane.b32.xlu1 %v7774_v27, %s8364_s22  ;;  %v10732_v49 = vld [vmem:[#allocation3 + $0x38] sm:$0xff]  ;;  %v3592_v8 = vsel %vm3565_vm15, %v3559_v57, %v7677_v41  ;;  %v3593_v30 = vsel %vm3565_vm15, %v3560_v19, %v7678_v52 }
 0x3c2   : > { %v7789_v3 = vpack.i.bf16 %v4261_v21, %v10732_v49  ;;  %v7686_v24 = vpop.permute.xlu1 %7685  ;;  %v10737_v5 = vld [vmem:[#allocation3 + $0x39] sm:$0xff]  ;;  %v3625_v14 = vsel %vm3598_vm0, %v3592_v8, %v7682_v59  ;;  %v3626_v45 = vsel %vm3598_vm0, %v3593_v30, %v7683_v22  ;;  %v8339_v59 = vld [vmem:[#allocation2 + $0x158] sm:$0xff] }
 0x3c3   : > { %v10739_v35 = vld [vmem:[#allocation3 + $0x32] sm:$0xff]  ;;  %v7687_v62 = vunpack.i.l.bf16 %v7686_v24  ;;  %v7794_v2 = vpack.i.bf16 %v4293_v26, %v10737_v5  ;;  %v7688_v6 = vunpack.i.h.bf16 %v7686_v24 }
 0x3c4   : > { %7790 = vrot.lane.b32.xlu0 %v7789_v3, %s8364_s22  ;;  %v7799_v15 = vpack.i.bf16 %v10746_v38, %v10739_v35 }
 0x3c5   : > { %7785 = vrot.lane.b32.xlu1 %v7784_v54, %s8361_s24  ;;  %v3658_v37 = vsel %vm3631_vm1, %v3625_v14, %v7687_v62  ;;  %v3659_v4 = vsel %vm3631_vm1, %v3626_v45, %v7688_v6  ;;  %v8338_v54 = vld [vmem:[#allocation2 + $0x150] sm:$0xff] }
 0x3c6   : > { %v3937_v25 = vpop.f32.mrb[8].mxu1 }
 0x3c7   : > { %v3938_v12 = vadd.f32 %v10623_v56, %v3937_v25  ;;  %v3939_v43 = vpop.f32.mrb[9].mxu1 }
 0x3c8   : > { %7800 = vrot.lane.b32.xlu0 %v7799_v15, %s8361_s24 }
 0x3c9   : > { %v4080_v1 = vmax.f32 %v3938_v12, 0.0  ;;  %7795 = vrot.lane.b32.xlu1 %v7794_v2, %s8367_s28  ;;  %v7691_v13 = vpop.permute.xlu0 %7690 }
 0x3ca   : > { %v7696_v53 = vpop.permute.xlu1 %7695  ;;  %v7693_v36 = vunpack.i.h.bf16 %v7691_v13  ;;  %v7692_v50 = vunpack.i.l.bf16 %v7691_v13  ;;  %v3942_v55 = vpop.f32.mrb[10].mxu1 }
 0x3cb   : > { %4168 = vst.msk [vmem:[#allocation3 + $0x49] sm:$0xff] %vm3532_vm14, %v4080_v1  ;;  %v7697_v18 = vunpack.i.l.bf16 %v7696_v53  ;;  %v3943_v33 = vadd.f32 %v10623_v56, %v3942_v55  ;;  %v3944_v63 = vpop.f32.mrb[11].mxu1  ;;  %v7698_v47 = vunpack.i.h.bf16 %v7696_v53 }
 0x3cc   : > { %v3691_v28 = vsel %vm3664_vm2, %v3658_v37, %v7692_v50  ;;  %v3692_v60 = vsel %vm3664_vm2, %v3659_v4, %v7693_v36 }
 0x3cd   : > { %v4081_v7 = vmax.f32 %v3943_v33, 0.0  ;;  %v7701_v17 = vpop.permute.xlu0 %7700  ;;  %v3724_v51 = vsel %vm3697_vm3, %v3691_v28, %v7697_v18  ;;  %v3725_v10 = vsel %vm3697_vm3, %v3692_v60, %v7698_v47 }
 0x3ce   : > { %4046 = vmatmul.mubr.f32.gmra.mrb[52].mxu1 %v3724_v51  ;;  %v7706_v11 = vpop.permute.xlu1 %7705  ;;  %v7702_v46 = vunpack.i.l.bf16 %v7701_v17  ;;  %v7703_v42 = vunpack.i.h.bf16 %v7701_v17 }
 0x3cf   : > { %4169 = vst.msk [vmem:[#allocation3 + $0x51] sm:$0xff] %vm3532_vm14, %v4081_v7  ;;  %6766 = vmatprep.mubr.msk.f32.mxu1 %vm2226_vm12, %v10465_v20  ;;  %v10779_v20 = vld [vmem:[#allocation3 + $0x3a] sm:$0xff]  ;;  %v7707_v0 = vunpack.i.l.bf16 %v7706_v11  ;;  %v7708_v39 = vunpack.i.h.bf16 %v7706_v11 }
 0x3d0   : > { %v3529_v57 = vsel %vm2226_vm12, %v8339_v59, %v7703_v42 }
 0x3d1   : > { %v7711_v9 = vpop.permute.xlu0 %7710  ;;  %v3562_v1 = vsel %vm3532_vm14, %v3529_v57, %v7708_v39 }
 0x3d2   : > { %v10769_v27 = vld [vmem:[#allocation3 + $0x48] sm:$0xff]  ;;  %4051 = vmatmul.mubr.f32.gmra.mrb[54].mxu1 %v3725_v10  ;;  %v7712_v29 = vunpack.i.l.bf16 %v7711_v9  ;;  %v7713_v12 = vunpack.i.h.bf16 %v7711_v9 }
 0x3d3   : > { %v10771_v21 = vld [vmem:[#allocation3 + $0x49] sm:$0xff]  ;;  %6767 = vmatprep.mubr.msk.f32.mxu1 %vm2226_vm12, %v10505_v61  ;;  %v7804_v31 = vpack.i.bf16 %v10680_v40, %v10769_v27  ;;  %v3528_v61 = vsel %vm2226_vm12, %v8338_v54, %v7702_v46  ;;  %v7716_v40 = vpop.permute.xlu1 %7715  ;;  %v8340_v46 = vld [vmem:[#allocation2 + $0x168] sm:$0xff] }
 0x3d4   : > { %v7809_v3 = vpack.i.bf16 %v10721_v32, %v10771_v21  ;;  %v7814_v32 = vpack.i.bf16 %v10783_v34, %v10779_v20  ;;  %v3561_v26 = vsel %vm3532_vm14, %v3528_v61, %v7707_v0  ;;  %v7717_v8 = vunpack.i.l.bf16 %v7716_v40 }
 0x3d5   : > { %7805 = vrot.lane.b32.xlu1 %v7804_v31, %s8364_s22  ;;  %v7721_v44 = vpop.permute.xlu0 %7720  ;;  %v3594_v2 = vsel %vm3565_vm15, %v3561_v26, %v7712_v29  ;;  %v7718_v30 = vunpack.i.h.bf16 %v7716_v40  ;;  %v3595_v13 = vsel %vm3565_vm15, %v3562_v1, %v7713_v12 }
 0x3d6   : > { %7810 = vrot.lane.b32.xlu0 %v7809_v3, %s8367_s28  ;;  %v10785_v41 = vld [vmem:[#allocation3 + $0x50] sm:$0xff]  ;;  %v7722_v15 = vunpack.i.l.bf16 %v7721_v44  ;;  %v7723_v53 = vunpack.i.h.bf16 %v7721_v44  ;;  %v3627_v18 = vsel %vm3598_vm0, %v3594_v2, %v7717_v8 }
 0x3d7   : > { %v7819_v24 = vpack.i.bf16 %v10728_v16, %v10785_v41  ;;  %v10792_v52 = vld [vmem:[#allocation3 + $0x51] sm:$0xff]  ;;  %v3628_v28 = vsel %vm3598_vm0, %v3595_v13, %v7718_v30 }
 0x3d8   : > { %v10794_v25 = vld [vmem:[#allocation3 + $0x4a] sm:$0xff]  ;;  %v7824_v22 = vpack.i.bf16 %v10732_v49, %v10792_v52  ;;  %v3660_v37 = vsel %vm3631_vm1, %v3627_v18, %v7722_v15  ;;  %v3661_v60 = vsel %vm3631_vm1, %v3628_v28, %v7723_v53  ;;  %v10835_v12 = vld [vmem:[#allocation3 + $0x52] sm:$0xff] }
 0x3d9   : > { %7815 = vrot.lane.b32.xlu1 %v7814_v32, %s8361_s24  ;;  %v3947_v43 = vpop.f32.mrb[12].mxu1  ;;  %v7829_v19 = vpack.i.bf16 %v10719_v48, %v10794_v25  ;;  %v2602_v3 = vld [vmem:[#allocation2 + $0x19a] sm:$0xff] }
 0x3da   : > { %7820 = vrot.lane.b32.xlu0 %v7819_v24, %s8364_s22  ;;  %v3948_v16 = vadd.f32 %v10623_v56, %v3947_v43  ;;  %v3949_v62 = vpop.f32.mrb[13].mxu1  ;;  %v8341_v43 = vld [vmem:[#allocation2 + $0x170] sm:$0xff] }
 0x3dc   : > { %v4082_v6 = vmax.f32 %v3948_v16, 0.0 }
 0x3dd   : > { %7825 = vrot.lane.b32.xlu1 %v7824_v22, %s8367_s28  ;;  %v7731_v36 = vpop.permute.xlu0 %7730  ;;  %v3952_v14 = vpop.f32.mrb[14].mxu1  ;;  %v7844_v22 = vpack.i.bf16 %v10737_v5, %v10835_v12 }
 0x3de   : > { %7830 = vrot.lane.b32.xlu0 %v7829_v19, %s8361_s24  ;;  %v7726_v50 = vpop.permute.xlu1 %7725  ;;  %4170 = vst.msk [vmem:[#allocation3 + $0x61] sm:$0xff] %vm3532_vm14, %v4082_v6  ;;  %v7732_v49 = vunpack.i.l.bf16 %v7731_v36  ;;  %v3953_v33 = vadd.f32 %v10623_v56, %v3952_v14  ;;  %v3954_v63 = vpop.f32.mrb[15].mxu1  ;;  %v7733_v47 = vunpack.i.h.bf16 %v7731_v36 }
 0x3df   : > { %v7728_v55 = vunpack.i.h.bf16 %v7726_v50  ;;  %v7727_v48 = vunpack.i.l.bf16 %v7726_v50 }
 0x3e0   : > { %v4083_v7 = vmax.f32 %v3953_v33, 0.0 }
 0x3e1   : > { %v3693_v45 = vsel %vm3664_vm2, %v3660_v37, %v7727_v48  ;;  %v7741_v17 = vpop.permute.xlu0 %7740  ;;  %v3694_v10 = vsel %vm3664_vm2, %v3661_v60, %v7728_v55 }
 0x3e2   : > { %v7736_v51 = vpop.permute.xlu1 %7735  ;;  %v3726_v4 = vsel %vm3697_vm3, %v3693_v45, %v7732_v49  ;;  %4171 = vst.msk [vmem:[#allocation3 + $0x69] sm:$0xff] %vm3532_vm14, %v4083_v7  ;;  %v7742_v9 = vunpack.i.l.bf16 %v7741_v17  ;;  %v3727_v61 = vsel %vm3697_vm3, %v3694_v10, %v7733_v47  ;;  %v7743_v59 = vunpack.i.h.bf16 %v7741_v17  ;;  %v2603_v7 = vld [vmem:[#allocation2 + $0x1a2] sm:$0xff] }
 0x3e3   : > { %v7737_v11 = vunpack.i.l.bf16 %v7736_v51  ;;  %4056 = vmatmul.mubr.f32.gmra.mrb[56].mxu1 %v3726_v4  ;;  %v7738_v42 = vunpack.i.h.bf16 %v7736_v51 }
 0x3e4   : > { %6768 = vmatprep.mubr.msk.f32.mxu1 %vm2226_vm12, %v10507_v23 }
 0x3e5   : > { %v3530_v31 = vsel %vm2226_vm12, %v8340_v46, %v7737_v11  ;;  %v7751_v0 = vpop.permute.xlu0 %7750  ;;  %v10824_v29 = vld [vmem:[#allocation3 + $0x60] sm:$0xff]  ;;  %v3531_v26 = vsel %vm2226_vm12, %v8341_v43, %v7738_v42 }
 0x3e6   : > { %v7746_v54 = vpop.permute.xlu1 %7745  ;;  %v10826_v40 = vld [vmem:[#allocation3 + $0x61] sm:$0xff]  ;;  %v7752_v24 = vunpack.i.l.bf16 %v7751_v0  ;;  %v3563_v39 = vsel %vm3532_vm14, %v3530_v31, %v7742_v9  ;;  %v7834_v23 = vpack.i.bf16 %v10739_v35, %v10824_v29  ;;  %v7753_v30 = vunpack.i.h.bf16 %v7751_v0 }
 0x3e7   : > { %v7747_v32 = vunpack.i.l.bf16 %v7746_v54  ;;  %4061 = vmatmul.mubr.f32.gmra.mrb[58].mxu1 %v3727_v61  ;;  %v7839_v44 = vpack.i.bf16 %v10769_v27, %v10826_v40  ;;  %v7748_v8 = vunpack.i.h.bf16 %v7746_v54  ;;  %v3564_v6 = vsel %vm3532_vm14, %v3531_v26, %v7743_v59 }
 0x3e8   : > { %6769 = vmatprep.mubr.msk.f32.mxu1 %vm2226_vm12, %v2602_v3  ;;  %7835 = vrot.lane.b32.xlu1 %v7834_v23, %s8364_s22 }
 0x3e9   : > { %v3596_v57 = vsel %vm3565_vm15, %v3563_v39, %v7747_v32  ;;  %7840 = vrot.lane.b32.xlu0 %v7839_v44, %s8367_s28  ;;  %v7761_v62 = vpop.permute.xlu0 %7760  ;;  %v10840_v15 = vld [vmem:[#allocation3 + $0x68] sm:$0xff]  ;;  %v3597_v50 = vsel %vm3565_vm15, %v3564_v6, %v7748_v8 }
 0x3ea   : > { %v7756_v16 = vpop.permute.xlu1 %7755  ;;  %v7762_v27 = vunpack.i.l.bf16 %v7761_v62  ;;  %v7849_v19 = vpack.i.bf16 %v10779_v20, %v10840_v15  ;;  %v3629_v1 = vsel %vm3598_vm0, %v3596_v57, %v7752_v24  ;;  %v10848_v13 = vld [vmem:[#allocation3 + $0x69] sm:$0xff]  ;;  %v7763_v28 = vunpack.i.h.bf16 %v7761_v62 }
 0x3eb   : > { %v7757_v2 = vunpack.i.l.bf16 %v7756_v16  ;;  %v10850_v53 = vld [vmem:[#allocation3 + $0x62] sm:$0xff]  ;;  %v7758_v18 = vunpack.i.h.bf16 %v7756_v16  ;;  %v7854_v33 = vpack.i.bf16 %v10785_v41, %v10848_v13  ;;  %v3630_v17 = vsel %vm3598_vm0, %v3597_v50, %v7753_v30  ;;  %v4363_v54 = vld [vmem:[#allocation3 + $0x6a] sm:$0xff] }
 0x3ec   : > { %7845 = vrot.lane.b32.xlu1 %v7844_v22, %s8361_s24  ;;  %v7859_v63 = vpack.i.bf16 %v10771_v21, %v10850_v53  ;;  %v7874_v61 = vpack.i.bf16 %v10792_v52, %v4363_v54 }
 0x3ed   : > { %v3662_v36 = vsel %vm3631_vm1, %v3629_v1, %v7757_v2  ;;  %7850 = vrot.lane.b32.xlu0 %v7849_v19, %s8364_s22  ;;  %v3663_v41 = vsel %vm3631_vm1, %v3630_v17, %v7758_v18 }
 0x3ee   : > { %v7766_v5 = vpop.permute.xlu1 %7765  ;;  %v3957_v49 = vpop.f32.mrb[16].mxu1  ;;  %v3695_v37 = vsel %vm3664_vm2, %v3662_v36, %v7762_v27  ;;  %v3696_v9 = vsel %vm3664_vm2, %v3663_v41, %v7763_v28 }
 0x3ef   : > { %v7767_v55 = vunpack.i.l.bf16 %v7766_v5  ;;  %v3958_v48 = vadd.f32 %v10623_v56, %v3957_v49  ;;  %v3959_v14 = vpop.f32.mrb[17].mxu1  ;;  %v7768_v51 = vunpack.i.h.bf16 %v7766_v5 }
 0x3f0   : > { %7855 = vrot.lane.b32.xlu1 %v7854_v33, %s8367_s28 }
 0x3f1   : > { %v4084_v45 = vmax.f32 %v3958_v48, 0.0  ;;  %v3728_v47 = vsel %vm3697_vm3, %v3695_v37, %v7767_v55  ;;  %7860 = vrot.lane.b32.xlu0 %v7859_v63, %s8361_s24  ;;  %v3729_v46 = vsel %vm3697_vm3, %v3696_v9, %v7768_v51 }
 0x3f2   : > { %v3962_v4 = vpop.f32.mrb[18].mxu1  ;;  %4066 = vmatmul.mubr.f32.gmra.mrb[60].mxu1 %v3728_v47 }
 0x3f3   : > { %4172 = vst.msk [vmem:[#allocation3 + $0x79] sm:$0xff] %vm3532_vm14, %v4084_v45  ;;  %v3963_v60 = vadd.f32 %v10623_v56, %v3962_v4  ;;  %v3964_v11 = vpop.f32.mrb[19].mxu1  ;;  %6770 = vmatprep.mubr.msk.f32.mxu1 %vm2226_vm12, %v2603_v7 }
 0x3f5   : > { %v4085_v10 = vmax.f32 %v3963_v60, 0.0 }
 0x3f6   : > { %4071 = vmatmul.mubr.f32.gmra.mrb[62].mxu1 %v3729_v46 }
 0x3f7   : > { %4173 = vst.msk [vmem:[#allocation3 + $0x81] sm:$0xff] %vm3532_vm14, %v4085_v10  ;;  %6974 = vmatprep.mubr.msk.f32.mxu1 %vm3532_vm14, %v10739_v35 }
 0x3fa   : > { %v4395_v31 = vld [vmem:[#allocation3 + $0x78] sm:$0xff]  ;;  %6975 = vmatmul.mubr.msk.f32.vlgmr.msra.gmra.mrb[64].mxu1 %vm3532_vm14, %v10779_v20 }
 0x3fb   : > { %v10875_v3 = vld [vmem:[#allocation3 + $0x79] sm:$0xff]  ;;  %v7864_v42 = vpack.i.bf16 %v10794_v25, %v4395_v31  ;;  %6977 = vmatprep.mubr.msk.f32.mxu1 %vm3532_vm14, %v10794_v25 }
 0x3fc   : > { %v7869_v0 = vpack.i.bf16 %v10824_v29, %v10875_v3 }
 0x3fd   : > { %7865 = vrot.lane.b32.xlu1 %v7864_v42, %s8364_s22 }
 0x3fe   : > { %7870 = vrot.lane.b32.xlu0 %v7869_v0, %s8367_s28  ;;  %v4396_v35 = vld [vmem:[#allocation3 + $0x80] sm:$0xff]  ;;  %6978 = vmatmul.mubr.msk.f32.gmra.mrb[66].mxu1 %vm3532_vm14, %v10835_v12 }
 0x3ff   : > { %v7879_v20 = vpack.i.bf16 %v10835_v12, %v4396_v35  ;;  %6980 = vmatprep.mubr.msk.f32.mxu1 %vm3532_vm14, %v10850_v53  ;;  %v4459_v29 = vld [vmem:[#allocation3 + $0x7a] sm:$0xff]  ;;  %v4460_v57 = vld [vmem:[#allocation3 + $0x82] sm:$0xff] }
 0x400   : > { %v10892_v32 = vld [vmem:[#allocation3 + $0x81] sm:$0xff]  ;;  %v7889_v23 = vpack.i.bf16 %v10826_v40, %v4459_v29  ;;  %v7904_v19 = vpack.i.bf16 %v10848_v13, %v4460_v57 }
 0x401   : > { %7875 = vrot.lane.b32.xlu1 %v7874_v61, %s8361_s24  ;;  %v3967_v25 = vpop.f32.mrb[20].mxu1  ;;  %v7884_v52 = vpack.i.bf16 %v10840_v15, %v10892_v32 }
 0x402   : > { %7880 = vrot.lane.b32.xlu0 %v7879_v20, %s8364_s22  ;;  %v3968_v24 = vadd.f32 %v10623_v56, %v3967_v25  ;;  %6981 = vmatmul.mubr.msk.f32.gmra.mrb[68].mxu1 %vm3532_vm14, %v4363_v54  ;;  %v3969_v39 = vpop.f32.mrb[21].mxu1  ;;  %v4196_v20 = vld [vmem:[#allocation3] sm:$0xff] }
 0x403   : > { %6983 = vmatprep.mubr.msk.f32.mxu1 %vm3532_vm14, %v4459_v29 }
 0x404   : > { %v4086_v44 = vmax.f32 %v3968_v24, 0.0 }
 0x405   : > { %7885 = vrot.lane.b32.xlu1 %v7884_v52, %s8367_s28  ;;  %v3972_v59 = vpop.f32.mrb[22].mxu1 }
 0x406   : > { %7890 = vrot.lane.b32.xlu0 %v7889_v23, %s8361_s24  ;;  %4174 = vst.msk [vmem:[#allocation3 + $0x91] sm:$0xff] %vm3532_vm14, %v4086_v44  ;;  %v3973_v12 = vadd.f32 %v10623_v56, %v3972_v59  ;;  %6984 = vmatmul.mubr.msk.f32.gmra.mrb[70].mxu1 %vm3532_vm14, %v4460_v57  ;;  %v3974_v43 = vpop.f32.mrb[23].mxu1 }
 0x408   : > { %v4087_v26 = vmax.f32 %v3973_v12, 0.0 }
 0x40a   : > { %4175 = vst.msk [vmem:[#allocation3 + $0x99] sm:$0xff] %vm3532_vm14, %v4087_v26 }
 0x40d   : > { %v4397_v8 = vld [vmem:[#allocation3 + $0x90] sm:$0xff] }
 0x40e   : > { %v4429_v16 = vld [vmem:[#allocation3 + $0x91] sm:$0xff]  ;;  %v7894_v62 = vpack.i.bf16 %v10850_v53, %v4397_v8 }
 0x40f   : > { %v7899_v2 = vpack.i.bf16 %v4395_v31, %v4429_v16 }
 0x410   : > { %7895 = vrot.lane.b32.xlu1 %v7894_v62, %s8364_s22 }
 0x411   : > { %7900 = vrot.lane.b32.xlu0 %v7899_v2, %s8367_s28  ;;  %v10911_v15 = vld [vmem:[#allocation3 + $0x92] sm:$0xff]  ;;  %v10913_v27 = vld [vmem:[#allocation3 + $0x9a] sm:$0xff] }
 0x412   : > { %v4398_v22 = vld [vmem:[#allocation3 + $0x98] sm:$0xff]  ;;  %6986 = vmatprep.mubr.msk.f32.mxu1 %vm3532_vm14, %v10911_v15  ;;  %v7919_v36 = vpack.i.bf16 %v10875_v3, %v10911_v15  ;;  %v7934_v7 = vpack.i.bf16 %v10892_v32, %v10913_v27 }
 0x413   : > { %v7909_v1 = vpack.i.bf16 %v4363_v54, %v4398_v22  ;;  %6987 = vmatmul.mubr.msk.f32.gmra.mrb[72].mxu1 %vm3532_vm14, %v10913_v27  ;;  %v10920_v30 = vld [vmem:[#allocation3 + $0x99] sm:$0xff] }
 0x414   : > { %7905 = vrot.lane.b32.xlu1 %v7904_v19, %s8361_s24  ;;  %v7914_v53 = vpack.i.bf16 %v4396_v35, %v10920_v30 }
 0x415   : > { %7910 = vrot.lane.b32.xlu0 %v7909_v1, %s8364_s22 }
 0x416   : > { %v3977_v6 = vpop.f32.mrb[24].mxu1 }
 0x417   : > { %v3978_v50 = vadd.f32 %v10623_v56, %v3977_v6  ;;  %v3979_v18 = vpop.f32.mrb[25].mxu1 }
 0x418   : > { %7915 = vrot.lane.b32.xlu1 %v7914_v53, %s8367_s28 }
 0x419   : > { %7920 = vrot.lane.b32.xlu0 %v7919_v36, %s8361_s24  ;;  %v4088_v13 = vmax.f32 %v3978_v50, 0.0 }
 0x41a   : > { %v3982_v5 = vpop.f32.mrb[26].mxu1 }
 0x41b   : > { %4176 = vst.msk [vmem:[#allocation3 + $0xa9] sm:$0xff] %vm3532_vm14, %v4088_v13  ;;  %v3983_v49 = vadd.f32 %v10623_v56, %v3982_v5  ;;  %v3984_v55 = vpop.f32.mrb[27].mxu1 }
 0x41d   : > { %v4089_v48 = vmax.f32 %v3983_v49, 0.0 }
 0x41f   : > { %4177 = vst.msk [vmem:[#allocation3 + $0xb1] sm:$0xff] %vm3532_vm14, %v4089_v48 }
 0x422   : > { %v4399_v14 = vld [vmem:[#allocation3 + $0xa8] sm:$0xff] }
 0x423   : > { %v10933_v33 = vld [vmem:[#allocation3 + $0xa9] sm:$0xff]  ;;  %v7924_v63 = vpack.i.bf16 %v4459_v29, %v4399_v14  ;;  %v7771_v31 = vpop.permute.xlu0 %7770 }
 0x424   : > { %v7929_v37 = vpack.i.bf16 %v4397_v8, %v10933_v33  ;;  %v7773_v35 = vunpack.i.h.bf16 %v7771_v31  ;;  %v7772_v61 = vunpack.i.l.bf16 %v7771_v31 }
 0x425   : > { %7925 = vrot.lane.b32.xlu1 %v7924_v63, %s8364_s22 }
 0x426   : > { %7930 = vrot.lane.b32.xlu0 %v7929_v37, %s8367_s28  ;;  %v10938_v28 = vld [vmem:[#allocation3 + $0xaa] sm:$0xff]  ;;  %v10940_v45 = vld [vmem:[#allocation3 + $0xb2] sm:$0xff]  ;;  %v5253_v23 = vsel %vm3532_vm14, %v4196_v20, %v7773_v35  ;;  %v5349_v44 = vsel %vm3532_vm14, %v10746_v38, %v7772_v61 }
 0x427   : > { %v10942_v47 = vld [vmem:[#allocation3 + $0xb0] sm:$0xff]  ;;  %6989 = vmatprep.mubr.msk.f32.mxu1 %vm3532_vm14, %v10938_v28  ;;  %v7949_v10 = vpack.i.bf16 %v4429_v16, %v10938_v28  ;;  %v4197_v38 = vld [vmem:[#allocation3 + $0x8] sm:$0xff]  ;;  %v7964_v18 = vpack.i.bf16 %v10920_v30, %v10940_v45 }
 0x428   : > { %v7939_v17 = vpack.i.bf16 %v4460_v57, %v10942_v47  ;;  %6990 = vmatmul.mubr.msk.f32.gmra.mrb[74].mxu1 %vm3532_vm14, %v10940_v45  ;;  %v10951_v51 = vld [vmem:[#allocation3 + $0xb1] sm:$0xff] }
 0x429   : > { %7935 = vrot.lane.b32.xlu1 %v7934_v7, %s8361_s24  ;;  %v3987_v4 = vpop.f32.mrb[28].mxu1  ;;  %v7944_v11 = vpack.i.bf16 %v4398_v22, %v10951_v51 }
 0x42a   : > { %7940 = vrot.lane.b32.xlu0 %v7939_v17, %s8364_s22  ;;  %v3988_v41 = vadd.f32 %v10623_v56, %v3987_v4  ;;  %v3989_v60 = vpop.f32.mrb[29].mxu1 }
 0x42c   : > { %v4090_v9 = vmax.f32 %v3988_v41, 0.0 }
 0x42d   : > { %7945 = vrot.lane.b32.xlu1 %v7944_v11, %s8367_s28  ;;  %v3992_v46 = vpop.f32.mrb[30].mxu1 }
 0x42e   : > { %7950 = vrot.lane.b32.xlu0 %v7949_v10, %s8361_s24  ;;  %4178 = vst.msk [vmem:[#allocation3 + $0xc1] sm:$0xff] %vm3532_vm14, %v4090_v9  ;;  %v3993_v42 = vadd.f32 %v10623_v56, %v3992_v46  ;;  %v3994_v0 = vpop.f32.mrb[31].mxu1 }
 0x430   : > { %v4091_v54 = vmax.f32 %v3993_v42, 0.0 }
 0x432   : > { %4179 = vst.msk [vmem:[#allocation3 + $0xc9] sm:$0xff] %vm3532_vm14, %v4091_v54  ;;  %v7781_v29 = vpop.permute.xlu0 %7780 }
 0x433   : > { %v7776_v32 = vpop.permute.xlu1 %7775  ;;  %v7783_v25 = vunpack.i.h.bf16 %v7781_v29  ;;  %v7782_v24 = vunpack.i.l.bf16 %v7781_v29 }
 0x434   : > { %v7778_v39 = vunpack.i.h.bf16 %v7776_v32  ;;  %v7777_v52 = vunpack.i.l.bf16 %v7776_v32  ;;  %v4326_v32 = vld [vmem:[#allocation3 + $0x31] sm:$0xff] }
 0x435   : > { %v10966_v59 = vld [vmem:[#allocation3 + $0xc0] sm:$0xff] }
 0x436   : > { %v10968_v57 = vld [vmem:[#allocation3 + $0xc1] sm:$0xff]  ;;  %v5381_v12 = vsel %vm3598_vm0, %v5349_v44, %v7777_v52  ;;  %v5285_v43 = vsel %vm3598_vm0, %v5253_v23, %v7778_v39  ;;  %v7954_v26 = vpack.i.bf16 %v10911_v15, %v10966_v59  ;;  %v7791_v16 = vpop.permute.xlu0 %7790 }
 0x437   : > { %v7959_v8 = vpack.i.bf16 %v4399_v14, %v10968_v57  ;;  %v7786_v62 = vpop.permute.xlu1 %7785  ;;  %v5413_v2 = vsel %vm3664_vm2, %v5381_v12, %v7782_v24  ;;  %v5317_v22 = vsel %vm3664_vm2, %v5285_v43, %v7783_v25  ;;  %v7793_v6 = vunpack.i.h.bf16 %v7791_v16  ;;  %v4198_v25 = vld [vmem:[#allocation3 + $0x18] sm:$0xff] }
 0x438   : > { %v7788_v19 = vunpack.i.h.bf16 %v7786_v62  ;;  %v7787_v1 = vunpack.i.l.bf16 %v7786_v62  ;;  %5648 = vmatprep.mubr.f32.mxu0 %v5413_v2  ;;  %7955 = vrot.lane.b32.xlu1 %v7954_v26, %s8364_s22  ;;  %v7792_v53 = vunpack.i.l.bf16 %v7791_v16 }
 0x439   : > { %5649 = vmatmul.mubr.f32.vlgmr.msra.gmra.mrb[32].mxu0 %v5317_v22  ;;  %7960 = vrot.lane.b32.xlu0 %v7959_v8, %s8367_s28  ;;  %v10979_v15 = vld [vmem:[#allocation3 + $0xc2] sm:$0xff]  ;;  %v10981_v36 = vld [vmem:[#allocation3 + $0xca] sm:$0xff] }
 0x43a   : > { %v10983_v50 = vld [vmem:[#allocation3 + $0xc8] sm:$0xff]  ;;  %6992 = vmatprep.mubr.msk.f32.mxu1 %vm3532_vm14, %v10979_v15  ;;  %v5350_v5 = vsel %vm3532_vm14, %v10783_v34, %v7787_v1  ;;  %v5254_v49 = vsel %vm3532_vm14, %v4197_v38, %v7788_v19  ;;  %v7979_v60 = vpack.i.bf16 %v10933_v33, %v10979_v15  ;;  %v7801_v9 = vpop.permute.xlu0 %7800  ;;  %v4327_v38 = vld [vmem:[#allocation3 + $0x39] sm:$0xff] }
 0x43b   : > { %v7969_v13 = vpack.i.bf16 %v10913_v27, %v10983_v50  ;;  %v7796_v55 = vpop.permute.xlu1 %7795  ;;  %6993 = vmatmul.mubr.msk.f32.gmra.mrb[76].mxu1 %vm3532_vm14, %v10981_v36  ;;  %v10996_v48 = vld [vmem:[#allocation3 + $0xc9] sm:$0xff]  ;;  %v5382_v27 = vsel %vm3598_vm0, %v5350_v5, %v7792_v53  ;;  %v5286_v37 = vsel %vm3598_vm0, %v5254_v49, %v7793_v6  ;;  %v7803_v0 = vunpack.i.h.bf16 %v7801_v9  ;;  %v4199_v19 = vld [vmem:[#allocation3 + $0x20] sm:$0xff] }
 0x43c   : > { %v7798_v14 = vunpack.i.h.bf16 %v7796_v55  ;;  %v7797_v63 = vunpack.i.l.bf16 %v7796_v55  ;;  %7965 = vrot.lane.b32.xlu1 %v7964_v18, %s8361_s24  ;;  %v7974_v41 = vpack.i.bf16 %v10942_v47, %v10996_v48  ;;  %v7802_v47 = vunpack.i.l.bf16 %v7801_v9 }
 0x43d   : > { %7970 = vrot.lane.b32.xlu0 %v7969_v13, %s8364_s22  ;;  %v5255_v39 = vsel %vm3532_vm14, %v4198_v25, %v7803_v0  ;;  %v7994_v18 = vpack.i.bf16 %v10951_v51, %v10981_v36 }
 0x43e   : > { %v3997_v30 = vpop.f32.mrb[32].mxu1  ;;  %v5414_v17 = vsel %vm3664_vm2, %v5382_v27, %v7797_v63  ;;  %v5318_v4 = vsel %vm3664_vm2, %v5286_v37, %v7798_v14  ;;  %v5351_v24 = vsel %vm3532_vm14, %v4326_v32, %v7802_v47  ;;  %v4200_v32 = vld [vmem:[#allocation3 + $0x30] sm:$0xff] }
 0x43f   : > { %v3998_v34 = vadd.f32 %v10623_v56, %v3997_v30  ;;  %v3999_v7 = vpop.f32.mrb[33].mxu1  ;;  %5653 = vmatprep.mubr.f32.mxu0 %v5414_v17 }
 0x440   : > { %5654 = vmatmul.mubr.f32.gmra.mrb[34].mxu0 %v5318_v4  ;;  %7975 = vrot.lane.b32.xlu1 %v7974_v41, %s8367_s28 }
 0x441   : > { %v4092_v11 = vmax.f32 %v3998_v34, 0.0  ;;  %7980 = vrot.lane.b32.xlu0 %v7979_v60, %s8361_s24 }
 0x442   : > { %v4002_v10 = vpop.f32.mrb[34].mxu1 }
 0x443   : > { %4180 = vst.msk [vmem:[#allocation3 + $0xd9] sm:$0xff] %vm3532_vm14, %v4092_v11  ;;  %v4003_v46 = vadd.f32 %v10623_v56, %v4002_v10  ;;  %v4004_v31 = vpop.f32.mrb[35].mxu1 }
 0x445   : > { %v4093_v42 = vmax.f32 %v4003_v46, 0.0 }
 0x447   : > { %4181 = vst.msk [vmem:[#allocation3 + $0xe1] sm:$0xff] %vm3532_vm14, %v4093_v42  ;;  %v7806_v54 = vpop.permute.xlu1 %7805 }
 0x448   : > { %v7811_v33 = vpop.permute.xlu0 %7810  ;;  %v7808_v35 = vunpack.i.h.bf16 %v7806_v54  ;;  %v7807_v61 = vunpack.i.l.bf16 %v7806_v54 }
 0x449   : > { %v7813_v20 = vunpack.i.h.bf16 %v7811_v33  ;;  %v7812_v29 = vunpack.i.l.bf16 %v7811_v33 }
 0x44a   : > { %v11016_v52 = vld [vmem:[#allocation3 + $0xd8] sm:$0xff]  ;;  %v5383_v23 = vsel %vm3598_vm0, %v5351_v24, %v7807_v61  ;;  %v5287_v44 = vsel %vm3598_vm0, %v5255_v39, %v7808_v35 }
 0x44b   : > { %v11018_v56 = vld [vmem:[#allocation3 + $0xd9] sm:$0xff]  ;;  %v7984_v12 = vpack.i.bf16 %v10938_v28, %v11016_v52  ;;  %v7816_v26 = vpop.permute.xlu1 %7815  ;;  %v5415_v16 = vsel %vm3664_vm2, %v5383_v23, %v7812_v29  ;;  %v5319_v62 = vsel %vm3664_vm2, %v5287_v44, %v7813_v20 }
 0x44c   : > { %v7989_v43 = vpack.i.bf16 %v10966_v59, %v11018_v56  ;;  %v7821_v8 = vpop.permute.xlu0 %7820  ;;  %v7818_v2 = vunpack.i.h.bf16 %v7816_v26  ;;  %v7817_v22 = vunpack.i.l.bf16 %v7816_v26  ;;  %5658 = vmatprep.mubr.f32.mxu0 %v5415_v16 }
 0x44d   : > { %7985 = vrot.lane.b32.xlu1 %v7984_v12, %s8364_s22  ;;  %v7823_v1 = vunpack.i.h.bf16 %v7821_v8  ;;  %v7822_v6 = vunpack.i.l.bf16 %v7821_v8  ;;  %5659 = vmatmul.mubr.f32.gmra.mrb[36].mxu0 %v5319_v62 }
 0x44e   : > { %7990 = vrot.lane.b32.xlu0 %v7989_v43, %s8367_s28  ;;  %v11030_v28 = vld [vmem:[#allocation3 + $0xda] sm:$0xff]  ;;  %v11032_v59 = vld [vmem:[#allocation3 + $0xe2] sm:$0xff]  ;;  %v5352_v5 = vsel %vm3532_vm14, %v4327_v38, %v7817_v22  ;;  %v5256_v49 = vsel %vm3532_vm14, %v4199_v19, %v7818_v2 }
 0x44f   : > { %v11034_v53 = vld [vmem:[#allocation3 + $0xe0] sm:$0xff]  ;;  %6995 = vmatprep.mubr.msk.f32.mxu1 %vm3532_vm14, %v11030_v28  ;;  %v7826_v55 = vpop.permute.xlu1 %7825  ;;  %v5384_v34 = vsel %vm3598_vm0, %v5352_v5, %v7822_v6  ;;  %v5288_v7 = vsel %vm3598_vm0, %v5256_v49, %v7823_v1  ;;  %v8009_v11 = vpack.i.bf16 %v10968_v57, %v11030_v28  ;;  %v8024_v19 = vpack.i.bf16 %v10996_v48, %v11032_v59  ;;  %v4329_v6 = vld [vmem:[#allocation3 + $0x51] sm:$0xff] }
 0x450   : > { %v7999_v13 = vpack.i.bf16 %v10940_v45, %v11034_v53  ;;  %6996 = vmatmul.mubr.msk.f32.gmra.mrb[78].mxu1 %vm3532_vm14, %v11032_v59  ;;  %v11046_v14 = vld [vmem:[#allocation3 + $0xe1] sm:$0xff]  ;;  %v7828_v63 = vunpack.i.h.bf16 %v7826_v55  ;;  %v7827_v30 = vunpack.i.l.bf16 %v7826_v55  ;;  %v4007_v27 = vpop.f32.mrb[36].mxu1  ;;  %v11053_v45 = vld [vmem:[%s11757_s4] ss:$0 sm:$0xff]  ;;  %v7831_v31 = vpop.permute.xlu0 %7830 }
 0x451   : > { %7995 = vrot.lane.b32.xlu1 %v7994_v18, %s8361_s24  ;;  %v4008_v51 = vadd.f32 %v11053_v45, %v4007_v27  ;;  %v4009_v37 = vpop.f32.mrb[37].mxu1  ;;  %v8004_v41 = vpack.i.bf16 %v10983_v50, %v11046_v14  ;;  %v7833_v0 = vunpack.i.h.bf16 %v7831_v31  ;;  %v7832_v50 = vunpack.i.l.bf16 %v7831_v31  ;;  %v4201_v18 = vld [vmem:[#allocation3 + $0x38] sm:$0xff] }
 0x452   : > { %8000 = vrot.lane.b32.xlu0 %v7999_v13, %s8364_s22  ;;  %v5416_v17 = vsel %vm3664_vm2, %v5384_v34, %v7827_v30  ;;  %v5320_v4 = vsel %vm3664_vm2, %v5288_v7, %v7828_v63 }
 0x453   : > { %v4094_v60 = vmax.f32 %v4008_v51, 0.0  ;;  %5663 = vmatprep.mubr.f32.mxu0 %v5416_v17  ;;  %v5353_v25 = vsel %vm3532_vm14, %v10771_v21, %v7832_v50  ;;  %v5257_v23 = vsel %vm3532_vm14, %v4200_v32, %v7833_v0 }
 0x454   : > { %5664 = vmatmul.mubr.f32.gmra.mrb[38].mxu0 %v5320_v4  ;;  %v4012_v10 = vpop.f32.mrb[38].mxu1 }
 0x455   : > { %8005 = vrot.lane.b32.xlu1 %v8004_v41, %s8367_s28  ;;  %4182 = vst.msk [vmem:[#allocation3 + $0xf1] sm:$0xff] %vm3532_vm14, %v4094_v60  ;;  %v4013_v9 = vadd.f32 %v11053_v45, %v4012_v10  ;;  %v4014_v46 = vpop.f32.mrb[39].mxu1 }
 0x456   : > { %8010 = vrot.lane.b32.xlu0 %v8009_v11, %s8361_s24 }
 0x457   : > { %v4095_v42 = vmax.f32 %v4013_v9, 0.0 }
 0x459   : > { %4183 = vst.msk [vmem:[#allocation3 + $0xf9] sm:$0xff] %vm3532_vm14, %v4095_v42 }
 0x45a   : > { %v7836_v47 = vpop.permute.xlu1 %7835 }
 0x45b   : > { %v7841_v54 = vpop.permute.xlu0 %7840  ;;  %v7838_v57 = vunpack.i.h.bf16 %v7836_v47  ;;  %v7837_v33 = vunpack.i.l.bf16 %v7836_v47 }
 0x45c   : > { %v7843_v35 = vunpack.i.h.bf16 %v7841_v54  ;;  %v7842_v61 = vunpack.i.l.bf16 %v7841_v54  ;;  %v11069_v20 = vld [vmem:[#allocation3 + $0xf0] sm:$0xff] }
 0x45d   : > { %v11071_v29 = vld [vmem:[#allocation3 + $0xf1] sm:$0xff]  ;;  %v8014_v24 = vpack.i.bf16 %v10979_v15, %v11069_v20  ;;  %v5385_v44 = vsel %vm3598_vm0, %v5353_v25, %v7837_v33  ;;  %v5289_v12 = vsel %vm3598_vm0, %v5257_v23, %v7838_v57  ;;  %v4202_v57 = vld [vmem:[#allocation3 + $0x48] sm:$0xff] }
 0x45e   : > { %v8019_v39 = vpack.i.bf16 %v11016_v52, %v11071_v29  ;;  %v7846_v43 = vpop.permute.xlu1 %7845  ;;  %v5417_v8 = vsel %vm3664_vm2, %v5385_v44, %v7842_v61  ;;  %v5321_v21 = vsel %vm3664_vm2, %v5289_v12, %v7843_v35 }
 0x45f   : > { %v7851_v26 = vpop.permute.xlu0 %7850  ;;  %8015 = vrot.lane.b32.xlu1 %v8014_v24, %s8364_s22  ;;  %v7848_v15 = vunpack.i.h.bf16 %v7846_v43  ;;  %v7847_v16 = vunpack.i.l.bf16 %v7846_v43  ;;  %5668 = vmatprep.mubr.f32.mxu0 %v5417_v8 }
 0x460   : > { %8020 = vrot.lane.b32.xlu0 %v8019_v39, %s8367_s28  ;;  %v11086_v52 = vld [vmem:[#allocation3 + $0xf2] sm:$0xff]  ;;  %v11088_v62 = vld [vmem:[#allocation3 + $0xfa] sm:$0xff]  ;;  %v7853_v22 = vunpack.i.h.bf16 %v7851_v26  ;;  %v7852_v38 = vunpack.i.l.bf16 %v7851_v26  ;;  %5669 = vmatmul.mubr.f32.gmra.mrb[40].mxu0 %v5321_v21 }
 0x461   : > { %v11090_v2 = vld [vmem:[#allocation3 + $0xf8] sm:$0xff]  ;;  %6998 = vmatprep.mubr.msk.f32.mxu1 %vm3532_vm14, %v11086_v52  ;;  %v5354_v13 = vsel %vm3532_vm14, %v4329_v6, %v7847_v16  ;;  %v5258_v5 = vsel %vm3532_vm14, %v4201_v18, %v7848_v15  ;;  %v8039_v4 = vpack.i.bf16 %v11018_v56, %v11086_v52  ;;  %v4331_v16 = vld [vmem:[#allocation3 + $0x69] sm:$0xff]  ;;  %v8054_v18 = vpack.i.bf16 %v11046_v14, %v11088_v62 }
 0x462   : > { %v8029_v1 = vpack.i.bf16 %v10981_v36, %v11090_v2  ;;  %6999 = vmatmul.mubr.msk.f32.gmra.mrb[80].mxu1 %vm3532_vm14, %v11088_v62  ;;  %v11102_v49 = vld [vmem:[#allocation3 + $0xf9] sm:$0xff]  ;;  %v7856_v55 = vpop.permute.xlu1 %7855  ;;  %v5386_v36 = vsel %vm3598_vm0, %v5354_v13, %v7852_v38  ;;  %v5290_v27 = vsel %vm3598_vm0, %v5258_v5, %v7853_v22  ;;  %v4203_v22 = vld [vmem:[#allocation3 + $0x50] sm:$0xff] }
 0x463   : > { %8025 = vrot.lane.b32.xlu1 %v8024_v19, %s8361_s24  ;;  %v7858_v48 = vunpack.i.h.bf16 %v7856_v55  ;;  %v7857_v63 = vunpack.i.l.bf16 %v7856_v55  ;;  %v8034_v51 = vpack.i.bf16 %v11034_v53, %v11102_v49  ;;  %v7861_v60 = vpop.permute.xlu0 %7860 }
 0x464   : > { %8030 = vrot.lane.b32.xlu0 %v8029_v1, %s8364_s22  ;;  %v7863_v9 = vunpack.i.h.bf16 %v7861_v60  ;;  %v7862_v46 = vunpack.i.l.bf16 %v7861_v60 }
 0x465   : > { %v4017_v30 = vpop.f32.mrb[40].mxu1  ;;  %v5418_v7 = vsel %vm3664_vm2, %v5386_v36, %v7857_v63  ;;  %v5322_v17 = vsel %vm3664_vm2, %v5290_v27, %v7858_v48 }
 0x466   : > { %v4018_v37 = vadd.f32 %v11053_v45, %v4017_v30  ;;  %v4019_v34 = vpop.f32.mrb[41].mxu1  ;;  %5673 = vmatprep.mubr.f32.mxu0 %v5418_v7  ;;  %v5355_v33 = vsel %vm3532_vm14, %v10826_v40, %v7862_v46  ;;  %v5259_v35 = vsel %vm3532_vm14, %v4202_v57, %v7863_v9 }
 0x467   : > { %8035 = vrot.lane.b32.xlu1 %v8034_v51, %s8367_s28  ;;  %5674 = vmatmul.mubr.f32.gmra.mrb[42].mxu0 %v5322_v17 }
 0x468   : > { %v4096_v41 = vmax.f32 %v4018_v37, 0.0  ;;  %8040 = vrot.lane.b32.xlu0 %v8039_v4, %s8361_s24 }
 0x469   : > { %v4022_v11 = vpop.f32.mrb[42].mxu1 }
 0x46a   : > { %4184 = vst.msk [vmem:[#allocation3 + $0x109] sm:$0xff] %vm3532_vm14, %v4096_v41  ;;  %v4023_v53 = vadd.f32 %v11053_v45, %v4022_v11  ;;  %v4024_v10 = vpop.f32.mrb[43].mxu1 }
 0x46c   : > { %v4097_v31 = vmax.f32 %v4023_v53, 0.0 }
 0x46e   : > { %4185 = vst.msk [vmem:[#allocation3 + $0x111] sm:$0xff] %vm3532_vm14, %v4097_v31 }
 0x46f   : > { %v7866_v56 = vpop.permute.xlu1 %7865 }
 0x470   : > { %v7871_v42 = vpop.permute.xlu0 %7870  ;;  %v7868_v0 = vunpack.i.h.bf16 %v7866_v56  ;;  %v7867_v50 = vunpack.i.l.bf16 %v7866_v56 }
 0x471   : > { %v7873_v47 = vunpack.i.h.bf16 %v7871_v42  ;;  %v7872_v54 = vunpack.i.l.bf16 %v7871_v42  ;;  %v11124_v32 = vld [vmem:[#allocation3 + $0x108] sm:$0xff]  ;;  %v4204_v42 = vld [vmem:[#allocation3 + $0x60] sm:$0xff] }
 0x472   : > { %v5387_v61 = vsel %vm3598_vm0, %v5355_v33, %v7867_v50  ;;  %v11126_v25 = vld [vmem:[#allocation3 + $0x109] sm:$0xff]  ;;  %v5291_v24 = vsel %vm3598_vm0, %v5259_v35, %v7868_v0  ;;  %v8044_v12 = vpack.i.bf16 %v11030_v28, %v11124_v32 }
 0x473   : > { %v7876_v39 = vpop.permute.xlu1 %7875  ;;  %v5419_v44 = vsel %vm3664_vm2, %v5387_v61, %v7872_v54  ;;  %v8049_v40 = vpack.i.bf16 %v11069_v20, %v11126_v25  ;;  %v5323_v43 = vsel %vm3664_vm2, %v5291_v24, %v7873_v47 }
 0x474   : > { %v7881_v23 = vpop.permute.xlu0 %7880  ;;  %v7878_v26 = vunpack.i.h.bf16 %v7876_v39  ;;  %v7877_v8 = vunpack.i.l.bf16 %v7876_v39  ;;  %5678 = vmatprep.mubr.f32.mxu0 %v5419_v44  ;;  %8045 = vrot.lane.b32.xlu1 %v8044_v12, %s8364_s22 }
 0x475   : > { %v7883_v21 = vunpack.i.h.bf16 %v7881_v23  ;;  %v7882_v15 = vunpack.i.l.bf16 %v7881_v23  ;;  %8050 = vrot.lane.b32.xlu0 %v8049_v40, %s8367_s28  ;;  %5679 = vmatmul.mubr.f32.gmra.mrb[44].mxu0 %v5323_v43  ;;  %v11137_v38 = vld [vmem:[#allocation3 + $0x10a] sm:$0xff]  ;;  %v11139_v28 = vld [vmem:[#allocation3 + $0x112] sm:$0xff] }
 0x476   : > { %v11141_v19 = vld [vmem:[#allocation3 + $0x110] sm:$0xff]  ;;  %v5356_v20 = vsel %vm3532_vm14, %v4331_v16, %v7877_v8  ;;  %v5260_v1 = vsel %vm3532_vm14, %v4203_v22, %v7878_v26  ;;  %7001 = vmatprep.mubr.msk.f32.mxu1 %vm3532_vm14, %v11137_v38  ;;  %v8069_v34 = vpack.i.bf16 %v11071_v29, %v11137_v38  ;;  %v4333_v26 = vld [vmem:[#allocation3 + $0x81] sm:$0xff] }
 0x477   : > { %v7886_v6 = vpop.permute.xlu1 %7885  ;;  %v8059_v13 = vpack.i.bf16 %v11032_v59, %v11141_v19  ;;  %7002 = vmatmul.mubr.msk.f32.gmra.mrb[82].mxu1 %vm3532_vm14, %v11139_v28  ;;  %v11153_v48 = vld [vmem:[#allocation3 + $0x111] sm:$0xff]  ;;  %v5388_v63 = vsel %vm3598_vm0, %v5356_v20, %v7882_v15  ;;  %v5292_v30 = vsel %vm3598_vm0, %v5260_v1, %v7883_v21  ;;  %v4205_v8 = vld [vmem:[#allocation3 + $0x68] sm:$0xff]  ;;  %v8084_v20 = vpack.i.bf16 %v11102_v49, %v11139_v28 }
 0x478   : > { %v7888_v5 = vunpack.i.h.bf16 %v7886_v6  ;;  %v7887_v55 = vunpack.i.l.bf16 %v7886_v6  ;;  %8055 = vrot.lane.b32.xlu1 %v8054_v18, %s8361_s24  ;;  %v8064_v37 = vpack.i.bf16 %v11090_v2, %v11153_v48  ;;  %v7891_v17 = vpop.permute.xlu0 %7890 }
 0x479   : > { %8060 = vrot.lane.b32.xlu0 %v8059_v13, %s8364_s22  ;;  %v4027_v36 = vpop.f32.mrb[44].mxu1  ;;  %v7893_v11 = vunpack.i.h.bf16 %v7891_v17  ;;  %v7892_v53 = vunpack.i.l.bf16 %v7891_v17 }
 0x47a   : > { %v5420_v14 = vsel %vm3664_vm2, %v5388_v63, %v7887_v55  ;;  %v5324_v59 = vsel %vm3664_vm2, %v5292_v30, %v7888_v5  ;;  %v4028_v27 = vadd.f32 %v11053_v45, %v4027_v36  ;;  %v4029_v51 = vpop.f32.mrb[45].mxu1 }
 0x47b   : > { %5683 = vmatprep.mubr.f32.mxu0 %v5420_v14  ;;  %v5357_v0 = vsel %vm3532_vm14, %v10875_v3, %v7892_v53  ;;  %v5261_v50 = vsel %vm3532_vm14, %v4204_v42, %v7893_v11 }
 0x47c   : > { %5684 = vmatmul.mubr.f32.gmra.mrb[46].mxu0 %v5324_v59  ;;  %v4098_v7 = vmax.f32 %v4028_v27, 0.0  ;;  %8065 = vrot.lane.b32.xlu1 %v8064_v37, %s8367_s28 }
 0x47d   : > { %8070 = vrot.lane.b32.xlu0 %v8069_v34, %s8361_s24  ;;  %v4032_v4 = vpop.f32.mrb[46].mxu1 }
 0x47e   : > { %4186 = vst.msk [vmem:[#allocation3 + $0x121] sm:$0xff] %vm3532_vm14, %v4098_v7  ;;  %v4033_v41 = vadd.f32 %v11053_v45, %v4032_v4  ;;  %v4034_v60 = vpop.f32.mrb[47].mxu1 }
 0x480   : > { %v4099_v10 = vmax.f32 %v4033_v41, 0.0 }
 0x482   : > { %4187 = vst.msk [vmem:[#allocation3 + $0x129] sm:$0xff] %vm3532_vm14, %v4099_v10  ;;  %v7896_v2 = vpop.permute.xlu1 %7895 }
 0x483   : > { %v7901_v29 = vpop.permute.xlu0 %7900  ;;  %v7898_v9 = vunpack.i.h.bf16 %v7896_v2  ;;  %v7897_v46 = vunpack.i.l.bf16 %v7896_v2 }
 0x484   : > { %v7903_v31 = vunpack.i.h.bf16 %v7901_v29  ;;  %v7902_v56 = vunpack.i.l.bf16 %v7901_v29  ;;  %v4334_v29 = vld [vmem:[#allocation3 + $0x91] sm:$0xff] }
 0x485   : > { %v5389_v47 = vsel %vm3598_vm0, %v5357_v0, %v7897_v46  ;;  %v11175_v54 = vld [vmem:[#allocation3 + $0x120] sm:$0xff]  ;;  %v5293_v33 = vsel %vm3598_vm0, %v5261_v50, %v7898_v9  ;;  %v4206_v9 = vld [vmem:[#allocation3 + $0x78] sm:$0xff] }
 0x486   : > { %v11177_v57 = vld [vmem:[#allocation3 + $0x121] sm:$0xff]  ;;  %v7906_v35 = vpop.permute.xlu1 %7905  ;;  %v5421_v24 = vsel %vm3664_vm2, %v5389_v47, %v7902_v56  ;;  %v8074_v39 = vpack.i.bf16 %v11086_v52, %v11175_v54  ;;  %v5325_v23 = vsel %vm3664_vm2, %v5293_v33, %v7903_v31  ;;  %v8369_v47 = vmov 0  }
 0x487   : > { %v7911_v61 = vpop.permute.xlu0 %7910  ;;  %v8079_v3 = vpack.i.bf16 %v11124_v32, %v11177_v57  ;;  %v7908_v44 = vunpack.i.h.bf16 %v7906_v35  ;;  %v7907_v12 = vunpack.i.l.bf16 %v7906_v35  ;;  %5688 = vmatprep.mubr.f32.mxu0 %v5421_v24  ;;  %8249 = vset.pattern.permute.xlu0 %v8369_v47 }
 0x488   : > { %v7913_v40 = vunpack.i.h.bf16 %v7911_v61  ;;  %v7912_v43 = vunpack.i.l.bf16 %v7911_v61  ;;  %8075 = vrot.lane.b32.xlu1 %v8074_v39, %s8364_s22  ;;  %5689 = vmatmul.mubr.f32.gmra.mrb[48].mxu0 %v5325_v23 }
 0x489   : > { %8080 = vrot.lane.b32.xlu0 %v8079_v3, %s8367_s28  ;;  %v11188_v21 = vld [vmem:[#allocation3 + $0x122] sm:$0xff]  ;;  %v11190_v52 = vld [vmem:[#allocation3 + $0x12a] sm:$0xff]  ;;  %v5358_v32 = vsel %vm3532_vm14, %v4333_v26, %v7907_v12  ;;  %v5262_v16 = vsel %vm3532_vm14, %v4205_v8, %v7908_v44  ;;  %8255 = vset.pattern.permute.xlu1 %v8369_v47 }
 0x48a   : > { %v11192_v15 = vld [vmem:[#allocation3 + $0x128] sm:$0xff]  ;;  %7004 = vmatprep.mubr.msk.f32.mxu1 %vm3532_vm14, %v11188_v21  ;;  %v7916_v22 = vpop.permute.xlu1 %7915  ;;  %v5390_v5 = vsel %vm3598_vm0, %v5358_v32, %v7912_v43  ;;  %v5294_v55 = vsel %vm3598_vm0, %v5262_v16, %v7913_v40  ;;  %v8099_v36 = vpack.i.bf16 %v11126_v25, %v11188_v21  ;;  %v4335_v43 = vld [vmem:[#allocation3 + $0x99] sm:$0xff] }
 0x48b   : > { %v8089_v1 = vpack.i.bf16 %v11088_v62, %v11192_v15  ;;  %v7918_v6 = vunpack.i.h.bf16 %v7916_v22  ;;  %v7917_v18 = vunpack.i.l.bf16 %v7916_v22  ;;  %7005 = vmatmul.mubr.msk.f32.gmra.mrb[84].mxu1 %vm3532_vm14, %v11190_v52  ;;  %v11204_v13 = vld [vmem:[#allocation3 + $0x129] sm:$0xff]  ;;  %v7921_v51 = vpop.permute.xlu0 %7920  ;;  %v4207_v26 = vld [vmem:[#allocation3 + $0x80] sm:$0xff] }
 0x48c   : > { %8085 = vrot.lane.b32.xlu1 %v8084_v20, %s8361_s24  ;;  %v8094_v30 = vpack.i.bf16 %v11141_v19, %v11204_v13  ;;  %v7923_v19 = vunpack.i.h.bf16 %v7921_v51  ;;  %v7922_v17 = vunpack.i.l.bf16 %v7921_v51  ;;  %v8114_v20 = vpack.i.bf16 %v11153_v48, %v11190_v52 }
 0x48d   : > { %8090 = vrot.lane.b32.xlu0 %v8089_v1, %s8364_s22  ;;  %v5422_v49 = vsel %vm3664_vm2, %v5390_v5, %v7917_v18  ;;  %v5326_v63 = vsel %vm3664_vm2, %v5294_v55, %v7918_v6 }
 0x48e   : > { %v4037_v62 = vpop.f32.mrb[48].mxu1  ;;  %5693 = vmatprep.mubr.f32.mxu0 %v5422_v49  ;;  %v5359_v46 = vsel %vm3532_vm14, %v4334_v29, %v7922_v17  ;;  %v5263_v31 = vsel %vm3532_vm14, %v4206_v9, %v7923_v19 }
 0x48f   : > { %v4038_v14 = vadd.f32 %v11053_v45, %v4037_v62  ;;  %v4039_v59 = vpop.f32.mrb[49].mxu1  ;;  %5694 = vmatmul.mubr.f32.gmra.mrb[50].mxu0 %v5326_v63 }
 0x490   : > { %8095 = vrot.lane.b32.xlu1 %v8094_v30, %s8367_s28 }
 0x491   : > { %8100 = vrot.lane.b32.xlu0 %v8099_v36, %s8361_s24  ;;  %v4100_v27 = vmax.f32 %v4038_v14, 0.0 }
 0x492   : > { %v4042_v37 = vpop.f32.mrb[50].mxu1 }
 0x493   : > { %4188 = vst.msk [vmem:[#allocation3 + $0x139] sm:$0xff] %vm3532_vm14, %v4100_v27  ;;  %v4043_v34 = vadd.f32 %v11053_v45, %v4042_v37  ;;  %v4044_v7 = vpop.f32.mrb[51].mxu1 }
 0x495   : > { %v4101_v4 = vmax.f32 %v4043_v34, 0.0 }
 0x497   : > { %4189 = vst.msk [vmem:[#allocation3 + $0x141] sm:$0xff] %vm3532_vm14, %v4101_v4  ;;  %v7926_v41 = vpop.permute.xlu1 %7925 }
 0x498   : > { %v7931_v60 = vpop.permute.xlu0 %7930  ;;  %v7928_v11 = vunpack.i.h.bf16 %v7926_v41  ;;  %v7927_v53 = vunpack.i.l.bf16 %v7926_v41 }
 0x499   : > { %v7933_v10 = vunpack.i.h.bf16 %v7931_v60  ;;  %v7932_v2 = vunpack.i.l.bf16 %v7931_v60 }
 0x49a   : > { %v5391_v56 = vsel %vm3598_vm0, %v5359_v46, %v7927_v53  ;;  %v11225_v42 = vld [vmem:[#allocation3 + $0x138] sm:$0xff]  ;;  %v5295_v50 = vsel %vm3598_vm0, %v5263_v31, %v7928_v11  ;;  %v4336_v53 = vld [vmem:[#allocation3 + $0xa9] sm:$0xff] }
 0x49b   : > { %v11227_v0 = vld [vmem:[#allocation3 + $0x139] sm:$0xff]  ;;  %v7936_v33 = vpop.permute.xlu1 %7935  ;;  %v5423_v61 = vsel %vm3664_vm2, %v5391_v56, %v7932_v2  ;;  %v8104_v24 = vpack.i.bf16 %v11137_v38, %v11225_v42  ;;  %v5327_v3 = vsel %vm3664_vm2, %v5295_v50, %v7933_v10  ;;  %v4208_v10 = vld [vmem:[#allocation3 + $0x90] sm:$0xff] }
 0x49c   : > { %v7941_v35 = vpop.permute.xlu0 %7940  ;;  %v8109_v39 = vpack.i.bf16 %v11175_v54, %v11227_v0  ;;  %v7938_v23 = vunpack.i.h.bf16 %v7936_v33  ;;  %v7937_v44 = vunpack.i.l.bf16 %v7936_v33  ;;  %5698 = vmatprep.mubr.f32.mxu0 %v5423_v61 }
 0x49d   : > { %v7943_v12 = vunpack.i.h.bf16 %v7941_v35  ;;  %v7942_v40 = vunpack.i.l.bf16 %v7941_v35  ;;  %8105 = vrot.lane.b32.xlu1 %v8104_v24, %s8364_s22  ;;  %5699 = vmatmul.mubr.f32.gmra.mrb[52].mxu0 %v5327_v3 }
 0x49e   : > { %8110 = vrot.lane.b32.xlu0 %v8109_v39, %s8367_s28  ;;  %v11238_v8 = vld [vmem:[#allocation3 + $0x13a] sm:$0xff]  ;;  %v11240_v38 = vld [vmem:[#allocation3 + $0x142] sm:$0xff]  ;;  %v5360_v54 = vsel %vm3532_vm14, %v4335_v43, %v7937_v44  ;;  %v5264_v16 = vsel %vm3532_vm14, %v4207_v26, %v7938_v23  ;;  %v4337_v43 = vld [vmem:[#allocation3 + $0xb1] sm:$0xff] }
 0x49f   : > { %v11242_v32 = vld [vmem:[#allocation3 + $0x140] sm:$0xff]  ;;  %7007 = vmatprep.mubr.msk.f32.mxu1 %vm3532_vm14, %v11238_v8  ;;  %v7946_v22 = vpop.permute.xlu1 %7945  ;;  %v5392_v49 = vsel %vm3598_vm0, %v5360_v54, %v7942_v40  ;;  %v5296_v63 = vsel %vm3598_vm0, %v5264_v16, %v7943_v12  ;;  %v8129_v59 = vpack.i.bf16 %v11177_v57, %v11238_v8  ;;  %v4209_v26 = vld [vmem:[#allocation3 + $0x98] sm:$0xff] }
 0x4a0   : > { %v8119_v1 = vpack.i.bf16 %v11139_v28, %v11242_v32  ;;  %v7948_v6 = vunpack.i.h.bf16 %v7946_v22  ;;  %v7947_v18 = vunpack.i.l.bf16 %v7946_v22  ;;  %7008 = vmatmul.mubr.msk.f32.gmra.mrb[86].mxu1 %vm3532_vm14, %v11240_v38  ;;  %v11254_v5 = vld [vmem:[#allocation3 + $0x141] sm:$0xff]  ;;  %v7951_v51 = vpop.permute.xlu0 %7950 }
 0x4a1   : > { %8115 = vrot.lane.b32.xlu1 %v8114_v20, %s8361_s24  ;;  %v4047_v55 = vpop.f32.mrb[52].mxu1  ;;  %v8124_v14 = vpack.i.bf16 %v11192_v15, %v11254_v5  ;;  %v7953_v19 = vunpack.i.h.bf16 %v7951_v51  ;;  %v7952_v17 = vunpack.i.l.bf16 %v7951_v51 }
 0x4a2   : > { %8120 = vrot.lane.b32.xlu0 %v8119_v1, %s8364_s22  ;;  %v4048_v62 = vadd.f32 %v11053_v45, %v4047_v55  ;;  %v4049_v30 = vpop.f32.mrb[53].mxu1  ;;  %v5424_v28 = vsel %vm3664_vm2, %v5392_v49, %v7947_v18  ;;  %v5328_v36 = vsel %vm3664_vm2, %v5296_v63, %v7948_v6  ;;  %v8144_v1 = vpack.i.bf16 %v11204_v13, %v11240_v38 }
 0x4a3   : > { %5703 = vmatprep.mubr.f32.mxu0 %v5424_v28  ;;  %v5361_v9 = vsel %vm3532_vm14, %v4336_v53, %v7952_v17  ;;  %v5265_v46 = vsel %vm3532_vm14, %v4208_v10, %v7953_v19  ;;  %v4338_v10 = vld [vmem:[#allocation3 + $0xc1] sm:$0xff] }
 0x4a4   : > { %v4102_v27 = vmax.f32 %v4048_v62, 0.0  ;;  %5704 = vmatmul.mubr.f32.gmra.mrb[54].mxu0 %v5328_v36 }
 0x4a5   : > { %8125 = vrot.lane.b32.xlu1 %v8124_v14, %s8367_s28  ;;  %v4052_v37 = vpop.f32.mrb[54].mxu1 }
 0x4a6   : > { %8130 = vrot.lane.b32.xlu0 %v8129_v59, %s8361_s24  ;;  %4190 = vst.msk [vmem:[#allocation3 + $0x151] sm:$0xff] %vm3532_vm14, %v4102_v27  ;;  %v4053_v34 = vadd.f32 %v11053_v45, %v4052_v37  ;;  %v4054_v7 = vpop.f32.mrb[55].mxu1 }
 0x4a8   : > { %v4103_v4 = vmax.f32 %v4053_v34, 0.0 }
 0x4aa   : > { %4191 = vst.msk [vmem:[#allocation3 + $0x159] sm:$0xff] %vm3532_vm14, %v4103_v4  ;;  %v7956_v15 = vpop.permute.xlu1 %7955 }
 0x4ab   : > { %v7958_v41 = vunpack.i.h.bf16 %v7956_v15  ;;  %v7957_v60 = vunpack.i.l.bf16 %v7956_v15  ;;  %v7961_v11 = vpop.permute.xlu0 %7960 }
 0x4ac   : > { %v7963_v2 = vunpack.i.h.bf16 %v7961_v11  ;;  %v7962_v29 = vunpack.i.l.bf16 %v7961_v11 }
 0x4ad   : > { %v5393_v31 = vsel %vm3598_vm0, %v5361_v9, %v7957_v60  ;;  %v11275_v56 = vld [vmem:[#allocation3 + $0x150] sm:$0xff]  ;;  %v5297_v47 = vsel %vm3598_vm0, %v5265_v46, %v7958_v41 }
 0x4ae   : > { %v11277_v50 = vld [vmem:[#allocation3 + $0x151] sm:$0xff]  ;;  %v7966_v33 = vpop.permute.xlu1 %7965  ;;  %v5425_v35 = vsel %vm3664_vm2, %v5393_v31, %v7962_v29  ;;  %v8134_v61 = vpack.i.bf16 %v11188_v21, %v11275_v56  ;;  %v5329_v39 = vsel %vm3664_vm2, %v5297_v47, %v7963_v2  ;;  %v4210_v2 = vld [vmem:[#allocation3 + $0xa8] sm:$0xff] }
 0x4af   : > { %v8139_v24 = vpack.i.bf16 %v11225_v42, %v11277_v50  ;;  %v7968_v3 = vunpack.i.h.bf16 %v7966_v33  ;;  %v7967_v23 = vunpack.i.l.bf16 %v7966_v33  ;;  %v7971_v44 = vpop.permute.xlu0 %7970  ;;  %5708 = vmatprep.mubr.f32.mxu0 %v5425_v35 }
 0x4b0   : > { %v7973_v12 = vunpack.i.h.bf16 %v7971_v44  ;;  %v7972_v40 = vunpack.i.l.bf16 %v7971_v44  ;;  %8135 = vrot.lane.b32.xlu1 %v8134_v61, %s8364_s22  ;;  %5709 = vmatmul.mubr.f32.gmra.mrb[56].mxu0 %v5329_v39 }
 0x4b1   : > { %8140 = vrot.lane.b32.xlu0 %v8139_v24, %s8367_s28  ;;  %v11288_v54 = vld [vmem:[#allocation3 + $0x152] sm:$0xff]  ;;  %v11290_v21 = vld [vmem:[#allocation3 + $0x15a] sm:$0xff]  ;;  %v5362_v16 = vsel %vm3532_vm14, %v4337_v43, %v7967_v23  ;;  %v5266_v22 = vsel %vm3532_vm14, %v4209_v26, %v7968_v3 }
 0x4b2   : > { %v11292_v42 = vld [vmem:[#allocation3 + $0x158] sm:$0xff]  ;;  %7010 = vmatprep.mubr.msk.f32.mxu1 %vm3532_vm14, %v11288_v54  ;;  %v7976_v20 = vpop.permute.xlu1 %7975  ;;  %v5394_v63 = vsel %vm3598_vm0, %v5362_v16, %v7972_v40  ;;  %v5298_v62 = vsel %vm3598_vm0, %v5266_v22, %v7973_v12  ;;  %v8159_v27 = vpack.i.bf16 %v11227_v0, %v11288_v54  ;;  %v4339_v22 = vld [vmem:[#allocation3 + $0xc9] sm:$0xff] }
 0x4b3   : > { %v8149_v6 = vpack.i.bf16 %v11190_v52, %v11292_v42  ;;  %v7978_v18 = vunpack.i.h.bf16 %v7976_v20  ;;  %v7977_v55 = vunpack.i.l.bf16 %v7976_v20  ;;  %7011 = vmatmul.mubr.msk.f32.gmra.mrb[88].mxu1 %vm3532_vm14, %v11290_v21  ;;  %v11304_v49 = vld [vmem:[#allocation3 + $0x159] sm:$0xff]  ;;  %v7981_v37 = vpop.permute.xlu0 %7980  ;;  %v4211_v20 = vld [vmem:[#allocation3 + $0xb0] sm:$0xff] }
 0x4b4   : > { %8145 = vrot.lane.b32.xlu1 %v8144_v1, %s8361_s24  ;;  %v8154_v59 = vpack.i.bf16 %v11242_v32, %v11304_v49  ;;  %v7983_v17 = vunpack.i.h.bf16 %v7981_v37  ;;  %v7982_v4 = vunpack.i.l.bf16 %v7981_v37 }
 0x4b5   : > { %8150 = vrot.lane.b32.xlu0 %v8149_v6, %s8364_s22  ;;  %v5426_v28 = vsel %vm3664_vm2, %v5394_v63, %v7977_v55  ;;  %v5330_v52 = vsel %vm3664_vm2, %v5298_v62, %v7978_v18 }
 0x4b6   : > { %v4057_v30 = vpop.f32.mrb[56].mxu1  ;;  %5713 = vmatprep.mubr.f32.mxu0 %v5426_v28  ;;  %v5363_v46 = vsel %vm3532_vm14, %v4338_v10, %v7982_v4  ;;  %v5267_v31 = vsel %vm3532_vm14, %v4210_v2, %v7983_v17 }
 0x4b7   : > { %v4058_v36 = vadd.f32 %v11053_v45, %v4057_v30  ;;  %v4059_v14 = vpop.f32.mrb[57].mxu1  ;;  %5714 = vmatmul.mubr.f32.gmra.mrb[58].mxu0 %v5330_v52  ;;  %v8174_v52 = vpack.i.bf16 %v11254_v5, %v11290_v21 }
 0x4b8   : > { %8155 = vrot.lane.b32.xlu1 %v8154_v59, %s8367_s28 }
 0x4b9   : > { %v4104_v51 = vmax.f32 %v4058_v36, 0.0  ;;  %8160 = vrot.lane.b32.xlu0 %v8159_v27, %s8361_s24 }
 0x4ba   : > { %v4062_v34 = vpop.f32.mrb[58].mxu1 }
 0x4bb   : > { %4192 = vst.msk [vmem:[#allocation3 + $0x169] sm:$0xff] %vm3532_vm14, %v4104_v51  ;;  %v4063_v7 = vadd.f32 %v11053_v45, %v4062_v34  ;;  %v4064_v19 = vpop.f32.mrb[59].mxu1 }
 0x4bd   : > { %v4105_v15 = vmax.f32 %v4063_v7, 0.0 }
 0x4bf   : > { %4193 = vst.msk [vmem:[#allocation3 + $0x171] sm:$0xff] %vm3532_vm14, %v4105_v15  ;;  %v7986_v41 = vpop.permute.xlu1 %7985 }
 0x4c0   : > { %v7988_v60 = vunpack.i.h.bf16 %v7986_v41  ;;  %v7987_v11 = vunpack.i.l.bf16 %v7986_v41  ;;  %v7991_v53 = vpop.permute.xlu0 %7990 }
 0x4c1   : > { %v7993_v29 = vunpack.i.h.bf16 %v7991_v53  ;;  %v7992_v9 = vunpack.i.l.bf16 %v7991_v53 }
 0x4c2   : > { %v5395_v47 = vsel %vm3598_vm0, %v5363_v46, %v7987_v11  ;;  %v11325_v33 = vld [vmem:[#allocation3 + $0x168] sm:$0xff]  ;;  %v5299_v61 = vsel %vm3598_vm0, %v5267_v31, %v7988_v60 }
 0x4c3   : > { %v11327_v35 = vld [vmem:[#allocation3 + $0x169] sm:$0xff]  ;;  %v7996_v24 = vpop.permute.xlu1 %7995  ;;  %v5427_v39 = vsel %vm3664_vm2, %v5395_v47, %v7992_v9  ;;  %v8164_v3 = vpack.i.bf16 %v11238_v8, %v11325_v33  ;;  %v5331_v44 = vsel %vm3664_vm2, %v5299_v61, %v7993_v29 }
 0x4c4   : > { %v8169_v23 = vpack.i.bf16 %v11275_v56, %v11327_v35  ;;  %v7998_v12 = vunpack.i.h.bf16 %v7996_v24  ;;  %v7997_v40 = vunpack.i.l.bf16 %v7996_v24  ;;  %v8001_v43 = vpop.permute.xlu0 %8000  ;;  %5718 = vmatprep.mubr.f32.mxu0 %v5427_v39 }
 0x4c5   : > { %v8003_v26 = vunpack.i.h.bf16 %v8001_v43  ;;  %v8002_v16 = vunpack.i.l.bf16 %v8001_v43  ;;  %8165 = vrot.lane.b32.xlu1 %v8164_v3, %s8364_s22  ;;  %v4067_v1 = vpop.f32.mrb[60].mxu1  ;;  %5719 = vmatmul.mubr.f32.gmra.mrb[60].mxu0 %v5331_v44  ;;  %v4340_v44 = vld [vmem:[#allocation3 + $0xd9] sm:$0xff] }
 0x4c6   : > { %8170 = vrot.lane.b32.xlu0 %v8169_v23, %s8367_s28  ;;  %v11338_v8 = vld [vmem:[#allocation3 + $0x16a] sm:$0xff]  ;;  %v11340_v6 = vld [vmem:[#allocation3 + $0x172] sm:$0xff]  ;;  %v5364_v55 = vsel %vm3532_vm14, %v4339_v22, %v7997_v40  ;;  %v5268_v63 = vsel %vm3532_vm14, %v4211_v20, %v7998_v12  ;;  %v4068_v62 = vadd.f32 %v11053_v45, %v4067_v1  ;;  %v4069_v30 = vpop.f32.mrb[61].mxu1  ;;  %v4212_v12 = vld [vmem:[#allocation3 + $0xc0] sm:$0xff] }
 0x4c7   : > { %v11342_v18 = vld [vmem:[#allocation3 + $0x170] sm:$0xff]  ;;  %7013 = vmatprep.mubr.msk.f32.mxu1 %vm3532_vm14, %v11338_v8  ;;  %v8006_v28 = vpop.permute.xlu1 %8005  ;;  %v5396_v37 = vsel %vm3598_vm0, %v5364_v55, %v8002_v16  ;;  %v5300_v34 = vsel %vm3598_vm0, %v5268_v63, %v8003_v26  ;;  %v8189_v41 = vpack.i.bf16 %v11277_v50, %v11338_v8 }
 0x4c8   : > { %v8179_v36 = vpack.i.bf16 %v11240_v38, %v11342_v18  ;;  %v8008_v14 = vunpack.i.h.bf16 %v8006_v28  ;;  %v8007_v59 = vunpack.i.l.bf16 %v8006_v28  ;;  %7014 = vmatmul.mubr.msk.f32.gmra.mrb[90].mxu1 %vm3532_vm14, %v11340_v6  ;;  %v11355_v27 = vld [vmem:[#allocation3 + $0x171] sm:$0xff]  ;;  %v4106_v51 = vmax.f32 %v4068_v62, 0.0  ;;  %v8011_v60 = vpop.permute.xlu0 %8010 }
 0x4c9   : > { %8175 = vrot.lane.b32.xlu1 %v8174_v52, %s8361_s24  ;;  %v4072_v7 = vpop.f32.mrb[62].mxu1  ;;  %v8184_v15 = vpack.i.bf16 %v11292_v42, %v11355_v27  ;;  %v8013_v10 = vunpack.i.h.bf16 %v8011_v60  ;;  %v8012_v2 = vunpack.i.l.bf16 %v8011_v60 }
 0x4ca   : > { %8180 = vrot.lane.b32.xlu0 %v8179_v36, %s8364_s22  ;;  %v5428_v19 = vsel %vm3664_vm2, %v5396_v37, %v8007_v59  ;;  %v5332_v38 = vsel %vm3664_vm2, %v5300_v34, %v8008_v14  ;;  %4194 = vst.msk [vmem:[#allocation3 + $0x181] sm:$0xff] %vm3532_vm14, %v4106_v51  ;;  %v4073_v17 = vadd.f32 %v11053_v45, %v4072_v7  ;;  %v4074_v4 = vpop.f32.mrb[63].mxu1 }
 0x4cb   : > { %5723 = vmatprep.mubr.f32.mxu0 %v5428_v19  ;;  %v5365_v26 = vsel %vm3532_vm14, %v4340_v44, %v8012_v2  ;;  %v5269_v16 = vsel %vm3532_vm14, %v4212_v12, %v8013_v10  ;;  %v8204_v51 = vpack.i.bf16 %v11304_v49, %v11340_v6 }
 0x4cc   : > { %5724 = vmatmul.mubr.f32.gmra.mrb[62].mxu0 %v5332_v38  ;;  %v4107_v11 = vmax.f32 %v4073_v17, 0.0  ;;  %v4341_v38 = vld [vmem:[#allocation3 + $0xe1] sm:$0xff] }
 0x4cd   : > { %8185 = vrot.lane.b32.xlu1 %v8184_v15, %s8367_s28  ;;  %v11371_v53 = vpop.f32.mrb[64].mxu1  ;;  %v4213_v17 = vld [vmem:[#allocation3 + $0xc8] sm:$0xff] }
 0x4ce   : > { %8190 = vrot.lane.b32.xlu0 %v8189_v41, %s8361_s24  ;;  %4195 = vst.msk [vmem:[#allocation3 + $0x189] sm:$0xff] %vm3532_vm14, %v4107_v11  ;;  %v11374_v45 = vpop.f32.mrb[65].mxu1  ;;  %v4483_v41 = vld [vmem:[#allocation3 + $0x19a] sm:$0xff] }
 0x4d1   : > { %v11376_v29 = vpop.f32.mrb[66].mxu1  ;;  %v8016_v9 = vpop.permute.xlu1 %8015  ;;  %v11378_v46 = vld [vmem:[#allocation3 + $0x180] sm:$0xff] }
 0x4d2   : > { %v11380_v31 = vld [vmem:[#allocation3 + $0x181] sm:$0xff]  ;;  %v11382_v47 = vpop.f32.mrb[67].mxu1  ;;  %v8018_v61 = vunpack.i.h.bf16 %v8016_v9  ;;  %v8017_v24 = vunpack.i.l.bf16 %v8016_v9  ;;  %v8021_v39 = vpop.permute.xlu0 %8020  ;;  %v8194_v3 = vpack.i.bf16 %v11288_v54, %v11378_v46 }
 0x4d3   : > { %v8199_v23 = vpack.i.bf16 %v11325_v33, %v11380_v31  ;;  %v8023_v40 = vunpack.i.h.bf16 %v8021_v39  ;;  %v8022_v43 = vunpack.i.l.bf16 %v8021_v39 }
 0x4d4   : > { %8195 = vrot.lane.b32.xlu1 %v8194_v3, %s8364_s22  ;;  %v5397_v22 = vsel %vm3598_vm0, %v5365_v26, %v8017_v24  ;;  %v5301_v20 = vsel %vm3598_vm0, %v5269_v16, %v8018_v61  ;;  %v4419_v3 = vld [vmem:[#allocation3 + $0x198] sm:$0xff]  ;;  %v4420_v16 = vld [vmem:[#allocation3 + $0x1a0] sm:$0xff] }
 0x4d5   : > { %8200 = vrot.lane.b32.xlu0 %v8199_v23, %s8367_s28  ;;  %v11394_v54 = vpop.f32.mrb[68].mxu1  ;;  %v4481_v1 = vld [vmem:[#allocation3 + $0x182] sm:$0xff]  ;;  %v4482_v55 = vld [vmem:[#allocation3 + $0x18a] sm:$0xff]  ;;  %v8026_v63 = vpop.permute.xlu1 %8025  ;;  %v5429_v30 = vsel %vm3664_vm2, %v5397_v22, %v8022_v43  ;;  %v5333_v28 = vsel %vm3664_vm2, %v5301_v20, %v8023_v40  ;;  %v4451_v23 = vld [vmem:[#allocation3 + $0x199] sm:$0xff]  ;;  %v8224_v43 = vpack.i.bf16 %v11338_v8, %v4419_v3 }
 0x4d6   : > { %v11396_v62 = vld [vmem:[#allocation3 + $0x188] sm:$0xff]  ;;  %v11400_v52 = vpop.f32.mrb[69].mxu1  ;;  %7016 = vmatprep.mubr.msk.f32.mxu1 %vm3532_vm14, %v4481_v1  ;;  %v8028_v36 = vunpack.i.h.bf16 %v8026_v63  ;;  %v8027_v14 = vunpack.i.l.bf16 %v8026_v63  ;;  %v8031_v59 = vpop.permute.xlu0 %8030  ;;  %5728 = vmatprep.mubr.f32.mxu0 %v5429_v30  ;;  %v8219_v24 = vpack.i.bf16 %v11327_v35, %v4481_v1  ;;  %v8229_v26 = vpack.i.bf16 %v11378_v46, %v4451_v23  ;;  %v4215_v3 = vld [vmem:[#allocation3 + $0xe0] sm:$0xff] }
 0x4d7   : > { %v8209_v37 = vpack.i.bf16 %v11290_v21, %v11396_v62  ;;  %7017 = vmatmul.mubr.msk.f32.gmra.mrb[92].mxu1 %vm3532_vm14, %v4482_v55  ;;  %v8033_v34 = vunpack.i.h.bf16 %v8031_v59  ;;  %v8032_v7 = vunpack.i.l.bf16 %v8031_v59  ;;  %5729 = vmatmul.mubr.f32.gmra.mrb[64].mxu0 %v5333_v28  ;;  %v11408_v19 = vld [vmem:[#allocation3 + $0x189] sm:$0xff]  ;;  %v8234_v20 = vpack.i.bf16 %v11355_v27, %v4482_v55  ;;  %v4452_v63 = vld [vmem:[#allocation3 + $0x1a1] sm:$0xff]  ;;  %v4342_v55 = vld [vmem:[#allocation3 + $0xf1] sm:$0xff] }
 0x4d8   : > { %8205 = vrot.lane.b32.xlu1 %v8204_v51, %s8361_s24  ;;  %v5366_v4 = vsel %vm3532_vm14, %v4341_v38, %v8027_v14  ;;  %v5270_v15 = vsel %vm3532_vm14, %v4213_v17, %v8028_v36  ;;  %v4484_v21 = vld [vmem:[#allocation3 + $0x1a2] sm:$0xff]  ;;  %7019 = vmatprep.mubr.msk.f32.mxu1 %vm3532_vm14, %v4483_v41  ;;  %v8214_v61 = vpack.i.bf16 %v11342_v18, %v11408_v19 }
 0x4d9   : > { %8210 = vrot.lane.b32.xlu0 %v8209_v37, %s8364_s22  ;;  %v11414_v60 = vpop.f32.mrb[70].mxu1  ;;  %v8036_v11 = vpop.permute.xlu1 %8035  ;;  %v5398_v39 = vsel %vm3598_vm0, %v5366_v4, %v8032_v7  ;;  %v5302_v44 = vsel %vm3598_vm0, %v5270_v15, %v8033_v34  ;;  %v8239_v1 = vpack.i.bf16 %v11340_v6, %v4420_v16  ;;  %v8244_v36 = vpack.i.bf16 %v11396_v62, %v4452_v63  ;;  %v4214_v34 = vld [vmem:[#allocation3 + $0xd8] sm:$0xff] }
 0x4da   : > { %v11417_v10 = vpop.f32.mrb[71].mxu1  ;;  %v8038_v2 = vunpack.i.h.bf16 %v8036_v11  ;;  %v8037_v9 = vunpack.i.l.bf16 %v8036_v11  ;;  %v8041_v22 = vpop.permute.xlu0 %8040 }
 0x4db   : > { %7020 = vmatmul.mubr.msk.f32.gmra.mrb[94].mxu1 %vm3532_vm14, %v4484_v21  ;;  %v8043_v30 = vunpack.i.h.bf16 %v8041_v22  ;;  %v8042_v28 = vunpack.i.l.bf16 %v8041_v22 }
 0x4dc   : > { %8215 = vrot.lane.b32.xlu1 %v8214_v61, %s8367_s28  ;;  %v5430_v12 = vsel %vm3664_vm2, %v5398_v39, %v8037_v9  ;;  %v5334_v40 = vsel %vm3664_vm2, %v5302_v44, %v8038_v2  ;;  %v4343_v39 = vld [vmem:[#allocation3 + $0xf9] sm:$0xff] }
 0x4dd   : > { %8220 = vrot.lane.b32.xlu0 %v8219_v24, %s8361_s24  ;;  %5733 = vmatprep.mubr.f32.mxu0 %v5430_v12  ;;  %v5367_v38 = vsel %vm3532_vm14, %v4342_v55, %v8042_v28  ;;  %v5271_v17 = vsel %vm3532_vm14, %v4214_v34, %v8043_v30  ;;  %v4216_v34 = vld [vmem:[#allocation3 + $0xf0] sm:$0xff] }
 0x4de   : > { %5734 = vmatmul.mubr.f32.gmra.mrb[66].mxu0 %v5334_v40 }
 0x4e0   : > { %8225 = vrot.lane.b32.xlu1 %v8224_v43, %s8364_s22 }
 0x4e1   : > { %8230 = vrot.lane.b32.xlu0 %v8229_v26, %s8367_s28 }
 0x4e4   : > { %8235 = vrot.lane.b32.xlu1 %v8234_v20, %s8361_s24  ;;  %s6511_s24 = sshll.u32 %s11872_s27, 1 }
 0x4e5   : > { %8240 = vrot.lane.b32.xlu0 %v8239_v1, %s8364_s22  ;;  %s278_s9 = scalar_lea.vmem %s11760_s7, %s6511_s24 }
 0x4e6   : > { %v11437_v8 = vpop.f32.mrb[72].mxu1  ;;  %v8046_v46 = vpop.permute.xlu1 %8045 }
 0x4e7   : > { %v8048_v14 = vunpack.i.h.bf16 %v8046_v46  ;;  %v8047_v59 = vunpack.i.l.bf16 %v8046_v46  ;;  %v8051_v51 = vpop.permute.xlu0 %8050  ;;  %v11440_v37 = vpop.f32.mrb[73].mxu1 }
 0x4e8   : > { %v8053_v6 = vunpack.i.h.bf16 %v8051_v51  ;;  %v8052_v7 = vunpack.i.l.bf16 %v8051_v51  ;;  %8245 = vrot.lane.b32.xlu1 %v8244_v36, %s8367_s28 }
 0x4e9   : > { %v5399_v4 = vsel %vm3598_vm0, %v5367_v38, %v8047_v59  ;;  %v5303_v15 = vsel %vm3598_vm0, %v5271_v17, %v8048_v14 }
 0x4ea   : > { %v8056_v62 = vpop.permute.xlu1 %8055  ;;  %v5431_v41 = vsel %vm3664_vm2, %v5399_v4, %v8052_v7  ;;  %v5335_v21 = vsel %vm3664_vm2, %v5303_v15, %v8053_v6 }
 0x4eb   : > { %v8058_v11 = vunpack.i.h.bf16 %v8056_v62  ;;  %v8057_v2 = vunpack.i.l.bf16 %v8056_v62  ;;  %v8061_v9 = vpop.permute.xlu0 %8060  ;;  %5738 = vmatprep.mubr.f32.mxu0 %v5431_v41 }
 0x4ec   : > { %v8063_v61 = vunpack.i.h.bf16 %v8061_v9  ;;  %v8062_v24 = vunpack.i.l.bf16 %v8061_v9  ;;  %5739 = vmatmul.mubr.f32.gmra.mrb[68].mxu0 %v5335_v21 }
 0x4ed   : > { %v5368_v23 = vsel %vm3532_vm14, %v4343_v39, %v8057_v2  ;;  %v5272_v44 = vsel %vm3532_vm14, %v4215_v3, %v8058_v11 }
 0x4ee   : > { %v8066_v12 = vpop.permute.xlu1 %8065  ;;  %v5400_v26 = vsel %vm3598_vm0, %v5368_v23, %v8062_v24  ;;  %v5304_v16 = vsel %vm3598_vm0, %v5272_v44, %v8063_v61  ;;  %v4217_v24 = vld [vmem:[#allocation3 + $0xf8] sm:$0xff] }
 0x4ef   : > { %v8068_v40 = vunpack.i.h.bf16 %v8066_v12  ;;  %v8067_v43 = vunpack.i.l.bf16 %v8066_v12  ;;  %v8071_v1 = vpop.permute.xlu0 %8070 }
 0x4f0   : > { %v8073_v63 = vunpack.i.h.bf16 %v8071_v1  ;;  %v8072_v30 = vunpack.i.l.bf16 %v8071_v1 }
 0x4f1   : > { %v5432_v22 = vsel %vm3664_vm2, %v5400_v26, %v8067_v43  ;;  %v5336_v20 = vsel %vm3664_vm2, %v5304_v16, %v8068_v40 }
 0x4f2   : > { %5743 = vmatprep.mubr.f32.mxu0 %v5432_v22  ;;  %v5369_v7 = vsel %vm3532_vm14, %v11126_v25, %v8072_v30  ;;  %v5273_v38 = vsel %vm3532_vm14, %v4216_v34, %v8073_v63  ;;  %v11473_v22 = vld [vmem:[#allocation4] ss:$0 sm:$0xff] }
 0x4f3   : > { %5744 = vmatmul.mubr.f32.gmra.mrb[70].mxu0 %v5336_v20 }
 0x4fa   : > { %v8076_v28 = vpop.permute.xlu1 %8075 }
 0x4fb   : > { %v8081_v46 = vpop.permute.xlu0 %8080  ;;  %v11455_v36 = vpop.f32.mrb[74].mxu1  ;;  %v8078_v14 = vunpack.i.h.bf16 %v8076_v28  ;;  %v8077_v59 = vunpack.i.l.bf16 %v8076_v28 }
 0x4fc   : > { %v8083_v51 = vunpack.i.h.bf16 %v8081_v46  ;;  %v8082_v55 = vunpack.i.l.bf16 %v8081_v46  ;;  %v11457_v6 = vpop.f32.mrb[75].mxu1 }
 0x4fd   : > { %v5401_v17 = vsel %vm3598_vm0, %v5369_v7, %v8077_v59  ;;  %v5305_v4 = vsel %vm3598_vm0, %v5273_v38, %v8078_v14 }
 0x4fe   : > { %v8086_v15 = vpop.permute.xlu1 %8085  ;;  %v5433_v41 = vsel %vm3664_vm2, %v5401_v17, %v8082_v55  ;;  %v5337_v21 = vsel %vm3664_vm2, %v5305_v4, %v8083_v51  ;;  %v4218_v17 = vld [vmem:[#allocation3 + $0x108] sm:$0xff] }
 0x4ff   : > { %v8091_v62 = vpop.permute.xlu0 %8090  ;;  %v8088_v11 = vunpack.i.h.bf16 %v8086_v15  ;;  %v8087_v2 = vunpack.i.l.bf16 %v8086_v15  ;;  %5748 = vmatprep.mubr.f32.mxu0 %v5433_v41 }
 0x500   : > { %v8093_v9 = vunpack.i.h.bf16 %v8091_v62  ;;  %v8092_v61 = vunpack.i.l.bf16 %v8091_v62  ;;  %5749 = vmatmul.mubr.f32.gmra.mrb[72].mxu0 %v5337_v21 }
 0x501   : > { %v5370_v25 = vsel %vm3532_vm14, %v11153_v48, %v8087_v2  ;;  %v5274_v39 = vsel %vm3532_vm14, %v4217_v24, %v8088_v11 }
 0x502   : > { %v8096_v3 = vpop.permute.xlu1 %8095  ;;  %v5402_v12 = vsel %vm3598_vm0, %v5370_v25, %v8092_v61  ;;  %v5306_v40 = vsel %vm3598_vm0, %v5274_v39, %v8093_v9 }
 0x503   : > { %v8098_v23 = vunpack.i.h.bf16 %v8096_v3  ;;  %v8097_v44 = vunpack.i.l.bf16 %v8096_v3  ;;  %v8101_v16 = vpop.permute.xlu0 %8100 }
 0x504   : > { %v8103_v48 = vunpack.i.h.bf16 %v8101_v16  ;;  %v8102_v1 = vunpack.i.l.bf16 %v8101_v16 }
 0x505   : > { %v5434_v43 = vsel %vm3664_vm2, %v5402_v12, %v8097_v44  ;;  %v5338_v26 = vsel %vm3664_vm2, %v5306_v40, %v8098_v23  ;;  %v4219_v23 = vld [vmem:[#allocation3 + $0x110] sm:$0xff] }
 0x506   : > { %5753 = vmatprep.mubr.f32.mxu0 %v5434_v43  ;;  %v5371_v4 = vsel %vm3532_vm14, %v11177_v57, %v8102_v1  ;;  %v5275_v15 = vsel %vm3532_vm14, %v4218_v17, %v8103_v48 }
 0x507   : > { %5754 = vmatmul.mubr.f32.gmra.mrb[74].mxu0 %v5338_v26 }
 0x50c   : > { %v5650_v20 = vpop.f32.mrb[32].mxu0 }
 0x50d   : > { %v5651_v63 = vadd.f32 %v11473_v22, %v5650_v20  ;;  %v5652_v30 = vpop.f32.mrb[33].mxu0 }
 0x50e   : > { %v11476_v28 = vpop.f32.mrb[76].mxu1 }
 0x50f   : > { %v5876_v46 = vadd.f32 %v11374_v45, %v5651_v63  ;;  %v8106_v14 = vpop.permute.xlu1 %8105  ;;  %v11479_v38 = vpop.f32.mrb[77].mxu1 }
 0x510   : > { %v8111_v59 = vpop.permute.xlu0 %8110  ;;  %v8108_v51 = vunpack.i.h.bf16 %v8106_v14  ;;  %v8107_v55 = vunpack.i.l.bf16 %v8106_v14 }
 0x511   : > { %v8113_v34 = vunpack.i.h.bf16 %v8111_v59  ;;  %v8112_v7 = vunpack.i.l.bf16 %v8111_v59 }
 0x512   : > { %v5403_v62 = vsel %vm3598_vm0, %v5371_v4, %v8107_v55  ;;  %v5307_v41 = vsel %vm3598_vm0, %v5275_v15, %v8108_v51 }
 0x513   : > { %v5655_v21 = vpop.f32.mrb[34].mxu0  ;;  %v8116_v45 = vpop.permute.xlu1 %8115  ;;  %v5435_v11 = vsel %vm3664_vm2, %v5403_v62, %v8112_v7  ;;  %v5339_v2 = vsel %vm3664_vm2, %v5307_v41, %v8113_v34  ;;  %v4220_v41 = vld [vmem:[#allocation3 + $0x120] sm:$0xff] }
 0x514   : > { %v5656_v9 = vadd.f32 %v11473_v22, %v5655_v21  ;;  %v8118_v61 = vunpack.i.h.bf16 %v8116_v45  ;;  %v8117_v24 = vunpack.i.l.bf16 %v8116_v45  ;;  %v8121_v25 = vpop.permute.xlu0 %8120  ;;  %v5657_v39 = vpop.f32.mrb[35].mxu0  ;;  %5758 = vmatprep.mubr.f32.mxu0 %v5435_v11 }
 0x515   : > { %v8123_v57 = vunpack.i.h.bf16 %v8121_v25  ;;  %v8122_v3 = vunpack.i.l.bf16 %v8121_v25  ;;  %5759 = vmatmul.mubr.f32.gmra.mrb[76].mxu0 %v5339_v2 }
 0x516   : > { %v5881_v44 = vadd.f32 %v11371_v53, %v5656_v9  ;;  %v5372_v12 = vsel %vm3532_vm14, %v11204_v13, %v8117_v24  ;;  %v5276_v40 = vsel %vm3532_vm14, %v4219_v23, %v8118_v61 }
 0x517   : > { %v8126_v43 = vpop.permute.xlu1 %8125  ;;  %v5404_v48 = vsel %vm3598_vm0, %v5372_v12, %v8122_v3  ;;  %v5308_v1 = vsel %vm3598_vm0, %v5276_v40, %v8123_v57 }
 0x518   : > { %v8250_v26 = vpack.i.bf16 %v5881_v44, %v5876_v46  ;;  %v8128_v16 = vunpack.i.h.bf16 %v8126_v43  ;;  %v8127_v20 = vunpack.i.l.bf16 %v8126_v43  ;;  %v8131_v53 = vpop.permute.xlu0 %8130  ;;  %v4221_v43 = vld [vmem:[#allocation3 + $0x128] sm:$0xff] }
 0x519   : > { %v8133_v14 = vunpack.i.h.bf16 %v8131_v53  ;;  %v8132_v13 = vunpack.i.l.bf16 %v8131_v53 }
 0x51a   : > { %8251 = vperm.xlu0 %8249, %v8250_v26   ;;  %v5436_v63 = vsel %vm3664_vm2, %v5404_v48, %v8127_v20  ;;  %v5340_v30 = vsel %vm3664_vm2, %v5308_v1, %v8128_v16 }
 0x51b   : > { %5763 = vmatprep.mubr.f32.mxu0 %v5436_v63  ;;  %v5373_v11 = vsel %vm3532_vm14, %v11227_v0, %v8132_v13  ;;  %v5277_v2 = vsel %vm3532_vm14, %v4220_v41, %v8133_v14 }
 0x51c   : > { %5764 = vmatmul.mubr.f32.gmra.mrb[78].mxu0 %v5340_v30 }
 0x520   : > { %v5660_v59 = vpop.f32.mrb[36].mxu0 }
 0x521   : > { %v5661_v51 = vadd.f32 %v11473_v22, %v5660_v59  ;;  %v5662_v46 = vpop.f32.mrb[37].mxu0 }
 0x522   : > { %v8136_v34 = vpop.permute.xlu1 %8135 }
 0x523   : > { %v11498_v55 = vpop.f32.mrb[78].mxu1  ;;  %v5886_v7 = vadd.f32 %v11382_v47, %v5661_v51  ;;  %v8138_v17 = vunpack.i.h.bf16 %v8136_v34  ;;  %v8137_v4 = vunpack.i.l.bf16 %v8136_v34  ;;  %v8141_v15 = vpop.permute.xlu0 %8140 }
 0x524   : > { %v11501_v62 = vpop.f32.mrb[79].mxu1  ;;  %v8143_v21 = vunpack.i.h.bf16 %v8141_v15  ;;  %v8142_v45 = vunpack.i.l.bf16 %v8141_v15 }
 0x525   : > { %v5405_v9 = vsel %vm3598_vm0, %v5373_v11, %v8137_v4  ;;  %v5309_v61 = vsel %vm3598_vm0, %v5277_v2, %v8138_v17 }
 0x526   : > { %v8146_v24 = vpop.permute.xlu1 %8145  ;;  %v5437_v47 = vsel %vm3664_vm2, %v5405_v9, %v8142_v45  ;;  %v5341_v25 = vsel %vm3664_vm2, %v5309_v61, %v8143_v21  ;;  %v4222_v9 = vld [vmem:[#allocation3 + $0x138] sm:$0xff] }
 0x527   : > { %v5665_v39 = vpop.f32.mrb[38].mxu0  ;;  %v8148_v57 = vunpack.i.h.bf16 %v8146_v24  ;;  %v8147_v3 = vunpack.i.l.bf16 %v8146_v24  ;;  %v8151_v23 = vpop.permute.xlu0 %8150  ;;  %5768 = vmatprep.mubr.f32.mxu0 %v5437_v47 }
 0x528   : > { %v5666_v44 = vadd.f32 %v11473_v22, %v5665_v39  ;;  %v8153_v12 = vunpack.i.h.bf16 %v8151_v23  ;;  %v8152_v0 = vunpack.i.l.bf16 %v8151_v23  ;;  %v5667_v40 = vpop.f32.mrb[39].mxu0  ;;  %5769 = vmatmul.mubr.f32.gmra.mrb[80].mxu0 %v5341_v25 }
 0x529   : > { %v5374_v26 = vsel %vm3532_vm14, %v11254_v5, %v8147_v3  ;;  %v5278_v16 = vsel %vm3532_vm14, %v4221_v43, %v8148_v57 }
 0x52a   : > { %v5891_v20 = vadd.f32 %v11376_v29, %v5666_v44  ;;  %v8156_v48 = vpop.permute.xlu1 %8155  ;;  %v5406_v53 = vsel %vm3598_vm0, %v5374_v26, %v8152_v0  ;;  %v5310_v14 = vsel %vm3598_vm0, %v5278_v16, %v8153_v12 }
 0x52b   : > { %v8158_v1 = vunpack.i.h.bf16 %v8156_v48  ;;  %v8157_v63 = vunpack.i.l.bf16 %v8156_v48  ;;  %v8161_v5 = vpop.permute.xlu0 %8160 }
 0x52c   : > { %v8256_v30 = vpack.i.bf16 %v5891_v20, %v5886_v7  ;;  %v8163_v51 = vunpack.i.h.bf16 %v8161_v5  ;;  %v8162_v46 = vunpack.i.l.bf16 %v8161_v5 }
 0x52d   : > { %v5438_v13 = vsel %vm3664_vm2, %v5406_v53, %v8157_v63  ;;  %v5342_v59 = vsel %vm3664_vm2, %v5310_v14, %v8158_v1 }
 0x52e   : > { %8257 = vperm.xlu1 %8255, %v8256_v30   ;;  %5773 = vmatprep.mubr.f32.mxu0 %v5438_v13  ;;  %v5375_v24 = vsel %vm3532_vm14, %v11277_v50, %v8162_v46  ;;  %v5279_v47 = vsel %vm3532_vm14, %v4222_v9, %v8163_v51 }
 0x52f   : > { %5774 = vmatmul.mubr.f32.gmra.mrb[82].mxu0 %v5342_v59 }
 0x533   : > { %v5670_v34 = vpop.f32.mrb[40].mxu0 }
 0x534   : > { %v5671_v29 = vadd.f32 %v11473_v22, %v5670_v34  ;;  %v5672_v17 = vpop.f32.mrb[41].mxu0 }
 0x535   : > { %v11520_v4 = vpop.f32.mrb[80].mxu1 }
 0x536   : > { %v5896_v41 = vadd.f32 %v11400_v52, %v5671_v29  ;;  %v11523_v2 = vpop.f32.mrb[81].mxu1 }
 0x537   : > { %v8166_v7 = vpop.permute.xlu1 %8165 }
 0x538   : > { %v8171_v15 = vpop.permute.xlu0 %8170  ;;  %v8168_v21 = vunpack.i.h.bf16 %v8166_v7  ;;  %v8167_v45 = vunpack.i.l.bf16 %v8166_v7 }
 0x539   : > { %v8173_v11 = vunpack.i.h.bf16 %v8171_v15  ;;  %v8172_v61 = vunpack.i.l.bf16 %v8171_v15 }
 0x53a   : > { %v5407_v25 = vsel %vm3598_vm0, %v5375_v24, %v8167_v45  ;;  %v5311_v39 = vsel %vm3598_vm0, %v5279_v47, %v8168_v21  ;;  %v5675_v0 = vpop.f32.mrb[42].mxu0 }
 0x53b   : > { %v8176_v57 = vpop.permute.xlu1 %8175  ;;  %v5439_v52 = vsel %vm3664_vm2, %v5407_v25, %v8172_v61  ;;  %v5343_v23 = vsel %vm3664_vm2, %v5311_v39, %v8173_v11  ;;  %v5676_v50 = vadd.f32 %v11473_v22, %v5675_v0  ;;  %v5677_v26 = vpop.f32.mrb[43].mxu0 }
 0x53c   : > { %v8181_v3 = vpop.permute.xlu0 %8180  ;;  %v8178_v44 = vunpack.i.h.bf16 %v8176_v57  ;;  %v8177_v12 = vunpack.i.l.bf16 %v8176_v57  ;;  %5778 = vmatprep.mubr.f32.mxu0 %v5439_v52 }
 0x53d   : > { %v8183_v40 = vunpack.i.h.bf16 %v8181_v3  ;;  %v8182_v43 = vunpack.i.l.bf16 %v8181_v3  ;;  %5779 = vmatmul.mubr.f32.gmra.mrb[84].mxu0 %v5343_v23  ;;  %v5901_v48 = vadd.f32 %v11394_v54, %v5676_v50 }
 0x53e   : > { %v5376_v16 = vsel %vm3532_vm14, %v11304_v49, %v8177_v12  ;;  %v5280_v20 = vsel %vm3532_vm14, %v11242_v32, %v8178_v44 }
 0x53f   : > { %v8186_v1 = vpop.permute.xlu1 %8185  ;;  %v8261_v53 = vpack.i.bf16 %v5901_v48, %v5896_v41  ;;  %v5408_v14 = vsel %vm3598_vm0, %v5376_v16, %v8182_v43  ;;  %v5312_v13 = vsel %vm3598_vm0, %v5280_v20, %v8183_v40 }
 0x540   : > { %v8188_v63 = vunpack.i.h.bf16 %v8186_v1  ;;  %v8187_v30 = vunpack.i.l.bf16 %v8186_v1  ;;  %v8191_v59 = vpop.permute.xlu0 %8190 }
 0x541   : > { %8262 = vperm.xlu1 %8255, %v8261_v53   ;;  %v8193_v49 = vunpack.i.h.bf16 %v8191_v59  ;;  %v8192_v32 = vunpack.i.l.bf16 %v8191_v59 }
 0x542   : > { %v5440_v5 = vsel %vm3664_vm2, %v5408_v14, %v8187_v30  ;;  %v5344_v51 = vsel %vm3664_vm2, %v5312_v13, %v8188_v63 }
 0x543   : > { %5783 = vmatprep.mubr.f32.mxu0 %v5440_v5  ;;  %v5377_v41 = vsel %vm3532_vm14, %v11327_v35, %v8192_v32  ;;  %v5281_v21 = vsel %vm3532_vm14, %v11275_v56, %v8193_v49 }
 0x544   : > { %5784 = vmatmul.mubr.f32.gmra.mrb[86].mxu0 %v5344_v51 }
 0x546   : > { %v8196_v46 = vpop.permute.xlu1 %8195 }
 0x547   : > { %v8201_v54 = vpop.permute.xlu0 %8200  ;;  %v8198_v34 = vunpack.i.h.bf16 %v8196_v46  ;;  %v8197_v29 = vunpack.i.l.bf16 %v8196_v46 }
 0x548   : > { %v8203_v17 = vunpack.i.h.bf16 %v8201_v54  ;;  %v8202_v7 = vunpack.i.l.bf16 %v8201_v54  ;;  %v5680_v15 = vpop.f32.mrb[44].mxu0 }
 0x549   : > { %v5681_v45 = vadd.f32 %v11473_v22, %v5680_v15  ;;  %v5682_v11 = vpop.f32.mrb[45].mxu0  ;;  %v5409_v9 = vsel %vm3598_vm0, %v5377_v41, %v8197_v29  ;;  %v5313_v61 = vsel %vm3598_vm0, %v5281_v21, %v8198_v34 }
 0x54a   : > { %v8206_v24 = vpop.permute.xlu1 %8205  ;;  %v5441_v25 = vsel %vm3664_vm2, %v5409_v9, %v8202_v7  ;;  %v5345_v39 = vsel %vm3664_vm2, %v5313_v61, %v8203_v17  ;;  %v11552_v52 = vpop.f32.mrb[82].mxu1 }
 0x54b   : > { %v8211_v47 = vpop.permute.xlu0 %8210  ;;  %v5906_v57 = vadd.f32 %v11417_v10, %v5681_v45  ;;  %v8208_v3 = vunpack.i.h.bf16 %v8206_v24  ;;  %v8207_v35 = vunpack.i.l.bf16 %v8206_v24  ;;  %5788 = vmatprep.mubr.f32.mxu0 %v5441_v25  ;;  %v11554_v44 = vpop.f32.mrb[83].mxu1 }
 0x54c   : > { %v8213_v56 = vunpack.i.h.bf16 %v8211_v47  ;;  %v8212_v23 = vunpack.i.l.bf16 %v8211_v47  ;;  %5789 = vmatmul.mubr.f32.gmra.mrb[88].mxu0 %v5345_v39 }
 0x54d   : > { %v5378_v12 = vsel %vm3532_vm14, %v11355_v27, %v8207_v35  ;;  %v5282_v0 = vsel %vm3532_vm14, %v11292_v42, %v8208_v3 }
 0x54e   : > { %v8216_v40 = vpop.permute.xlu1 %8215  ;;  %v5410_v16 = vsel %vm3598_vm0, %v5378_v12, %v8212_v23  ;;  %v5314_v30 = vsel %vm3598_vm0, %v5282_v0, %v8213_v56 }
 0x54f   : > { %v8221_v43 = vpop.permute.xlu0 %8220  ;;  %v8218_v50 = vunpack.i.h.bf16 %v8216_v40  ;;  %v8217_v10 = vunpack.i.l.bf16 %v8216_v40  ;;  %v5685_v26 = vpop.f32.mrb[46].mxu0 }
 0x550   : > { %v8223_v20 = vunpack.i.h.bf16 %v8221_v43  ;;  %v8222_v48 = vunpack.i.l.bf16 %v8221_v43  ;;  %v5686_v1 = vadd.f32 %v11473_v22, %v5685_v26  ;;  %v5687_v63 = vpop.f32.mrb[47].mxu0 }
 0x551   : > { %v5442_v53 = vsel %vm3664_vm2, %v5410_v16, %v8217_v10  ;;  %v5346_v27 = vsel %vm3664_vm2, %v5314_v30, %v8218_v50 }
 0x552   : > { %v5911_v42 = vadd.f32 %v11414_v60, %v5686_v1  ;;  %v8226_v14 = vpop.permute.xlu1 %8225  ;;  %5793 = vmatprep.mubr.f32.mxu0 %v5442_v53  ;;  %v5379_v46 = vsel %vm3532_vm14, %v11380_v31, %v8222_v48  ;;  %v5283_v54 = vsel %vm3532_vm14, %v11325_v33, %v8223_v20 }
 0x553   : > { %v8231_v13 = vpop.permute.xlu0 %8230  ;;  %v8228_v59 = vunpack.i.h.bf16 %v8226_v14  ;;  %v8227_v5 = vunpack.i.l.bf16 %v8226_v14  ;;  %5794 = vmatmul.mubr.f32.gmra.mrb[90].mxu0 %v5346_v27 }
 0x554   : > { %v8233_v51 = vunpack.i.h.bf16 %v8231_v13  ;;  %v8232_v49 = vunpack.i.l.bf16 %v8231_v13  ;;  %v8266_v32 = vpack.i.bf16 %v5911_v42, %v5906_v57 }
 0x555   : > { %v5411_v34 = vsel %vm3598_vm0, %v5379_v46, %v8227_v5  ;;  %v5315_v29 = vsel %vm3598_vm0, %v5283_v54, %v8228_v59 }
 0x556   : > { %v8236_v60 = vpop.permute.xlu1 %8235  ;;  %8267 = vperm.xlu0 %8249, %v8266_v32   ;;  %v5443_v7 = vsel %vm3664_vm2, %v5411_v34, %v8232_v49  ;;  %v5347_v15 = vsel %vm3664_vm2, %v5315_v29, %v8233_v51  ;;  %v6034_v32 = vlaneseq }
 0x557   : > { %v8241_v17 = vpop.permute.xlu0 %8240  ;;  %v8238_v41 = vunpack.i.h.bf16 %v8236_v60  ;;  %v8237_v21 = vunpack.i.l.bf16 %v8236_v60  ;;  %5798 = vmatprep.mubr.f32.mxu0 %v5443_v7 }
 0x558   : > { %v8243_v45 = vunpack.i.h.bf16 %v8241_v17  ;;  %v8242_v11 = vunpack.i.l.bf16 %v8241_v17  ;;  %5799 = vmatmul.mubr.f32.gmra.mrb[92].mxu0 %v5347_v15  ;;  %v11607_v54 = vshrl.u32 %v6034_v32, 7  ;;  %v11611_v29 = vand.u32 127, %v6034_v32 }
 0x559   : > { %v5380_v33 = vsel %vm3532_vm14, %v11408_v19, %v8237_v21  ;;  %v5284_v31 = vsel %vm3532_vm14, %v11342_v18, %v8238_v41 }
 0x55a   : > { %v8246_v9 = vpop.permute.xlu1 %8245  ;;  %v5412_v25 = vsel %vm3598_vm0, %v5380_v33, %v8242_v11  ;;  %v5316_v39 = vsel %vm3598_vm0, %v5284_v31, %v8243_v45  ;;  %v6036_v34 = vadd.s32 8, %v11607_v54  ;;  %vm6070_vm5 = vcmp.eq.s32.totalorder %v11607_v54, %v11611_v29 }
 0x55b   : > { %v8248_v61 = vunpack.i.h.bf16 %v8246_v9  ;;  %v8247_v24 = vunpack.i.l.bf16 %v8246_v9  ;;  %v5690_v47 = vpop.f32.mrb[48].mxu0 }
 0x55c   : > { %v5691_v57 = vadd.f32 %v11473_v22, %v5690_v47  ;;  %v5692_v3 = vpop.f32.mrb[49].mxu0  ;;  %vm6072_vm6 = vcmp.eq.s32.totalorder %v6036_v34, %v11611_v29  ;;  %v6037_v47 = vadd.s32 16, %v11607_v54  ;;  %v6042_v34 = vadd.s32 56, %v11607_v54 }
 0x55d   : > { %v5444_v35 = vsel %vm3664_vm2, %v5412_v25, %v8247_v24  ;;  %v5348_v56 = vsel %vm3664_vm2, %v5316_v39, %v8248_v61  ;;  %vm7117_vm7 = vmpackc.low %vm6072_vm6, %vm6070_vm5  ;;  %v6038_v25 = vadd.s32 24, %v11607_v54 }
 0x55e   : > { %5803 = vmatprep.mubr.f32.mxu0 %v5444_v35  ;;  %v11583_v19 = vpop.f32.mrb[84].mxu1  ;;  %v5916_v18 = vadd.f32 %v11440_v37, %v5691_v57  ;;  %vm6074_vm8 = vcmp.eq.s32.totalorder %v6037_v47, %v11611_v29  ;;  %vm6084_vm15 = vcmp.eq.s32.totalorder %v6042_v34, %v11611_v29 }
 0x55f   : > { %5804 = vmatmul.mubr.f32.gmra.mrb[94].mxu0 %v5348_v56  ;;  %v11586_v23 = vpop.f32.mrb[85].mxu1  ;;  %vm6076_vm9 = vcmp.eq.s32.totalorder %v6038_v25, %v11611_v29 }
 0x560   : > { %vm7121_vm10 = vmpackc.low %vm6076_vm9, %vm6074_vm8 }
 0x562   : > { %v5695_v12 = vpop.f32.mrb[50].mxu0 }
 0x563   : > { %v5696_v0 = vadd.f32 %v11473_v22, %v5695_v12  ;;  %v5697_v40 = vpop.f32.mrb[51].mxu0 }
 0x565   : > { %v5921_v43 = vadd.f32 %v11437_v8, %v5696_v0 }
 0x567   : > { %v8271_v50 = vpack.i.bf16 %v5921_v43, %v5916_v18 }
 0x569   : > { %8272 = vperm.xlu1 %8255, %v8271_v50  }
 0x570   : > { %v5700_v10 = vpop.f32.mrb[52].mxu0 }
 0x571   : > { %v5701_v26 = vadd.f32 %v11473_v22, %v5700_v10  ;;  %v5702_v16 = vpop.f32.mrb[53].mxu0 }
 0x573   : > { %v11591_v20 = vpop.f32.mrb[86].mxu1  ;;  %v5926_v48 = vadd.f32 %v11457_v6, %v5701_v26 }
 0x574   : > { %v11594_v37 = vpop.f32.mrb[87].mxu1 }
 0x577   : > { %v5705_v1 = vpop.f32.mrb[54].mxu0 }
 0x578   : > { %v5706_v63 = vadd.f32 %v11473_v22, %v5705_v1  ;;  %v5707_v30 = vpop.f32.mrb[55].mxu0  ;;  %v6040_v1 = vadd.s32 40, %v11607_v54 }
 0x57a   : > { %v5931_v53 = vadd.f32 %v11455_v36, %v5706_v63  ;;  %vm6080_vm12 = vcmp.eq.s32.totalorder %v6040_v1, %v11611_v29 }
 0x57c   : > { %v8276_v27 = vpack.i.bf16 %v5931_v53, %v5926_v48 }
 0x57e   : > { %8277 = vperm.xlu0 %8249, %v8276_v27  }
 0x583   : > { %v5710_v8 = vpop.f32.mrb[56].mxu0 }
 0x584   : > { %v5711_v42 = vadd.f32 %v11473_v22, %v5710_v8  ;;  %v5712_v14 = vpop.f32.mrb[57].mxu0 }
 0x586   : > { %v11599_v13 = vpop.f32.mrb[88].mxu1  ;;  %v5936_v59 = vadd.f32 %v11479_v38, %v5711_v42 }
 0x587   : > { %v11602_v5 = vpop.f32.mrb[89].mxu1 }
 0x58a   : > { %v5715_v6 = vpop.f32.mrb[58].mxu0 }
 0x58b   : > { %v5716_v51 = vadd.f32 %v11473_v22, %v5715_v6  ;;  %v5717_v49 = vpop.f32.mrb[59].mxu0 }
 0x58d   : > { %v5941_v46 = vadd.f32 %v11476_v28, %v5716_v51 }
 0x58f   : > { %v8281_v36 = vpack.i.bf16 %v5941_v46, %v5936_v59 }
 0x591   : > { %8282 = vperm.xlu1 %8255, %v8281_v36   ;;  %v6041_v36 = vadd.s32 48, %v11607_v54 }
 0x593   : > { %vm6082_vm14 = vcmp.eq.s32.totalorder %v6041_v36, %v11611_v29 }
 0x594   : > { %vm7129_vm0 = vmpackc.low %vm6084_vm15, %vm6082_vm14 }
 0x598   : > { %v5720_v38 = vpop.f32.mrb[60].mxu0 }
 0x599   : > { %v5721_v60 = vadd.f32 %v11473_v22, %v5720_v38  ;;  %v8252_v17 = vpop.permute.xlu0 %8251  ;;  %v5722_v28 = vpop.f32.mrb[61].mxu0 }
 0x59a   : > { %v8254_v7 = vunpack.i.h.bf16 %v8252_v17  ;;  %v8253_v15 = vunpack.i.l.bf16 %v8252_v17 }
 0x59b   : > { %v11617_v41 = vpop.f32.mrb[90].mxu1  ;;  %v5946_v21 = vadd.f32 %v11501_v62, %v5721_v60 }
 0x59c   : > { %v11620_v45 = vpop.f32.mrb[91].mxu1  ;;  %v7116_v11 = vpack.c.bf16 %v8254_v7, %v8253_v15 }
 0x59e   : > { %7118 = vmatpush1.bf16.msk.msra.mxu0 %vm7117_vm7, %v7116_v11 }
 0x59f   : > { %v5725_v33 = vpop.f32.mrb[62].mxu0  ;;  %7119 = vmatprep.subr.bf16.mxu0 %v8363_v58 }
 0x5a0   : > { %v5726_v31 = vadd.f32 %v11473_v22, %v5725_v33  ;;  %v5727_v9 = vpop.f32.mrb[63].mxu0 }
 0x5a2   : > { %v5951_v61 = vadd.f32 %v11498_v55, %v5726_v31 }
 0x5a4   : > { %v8286_v24 = vpack.i.bf16 %v5951_v61, %v5946_v21  ;;  %v6043_v61 = vadd.s32 64, %v11607_v54 }
 0x5a6   : > { %8287 = vperm.xlu0 %8249, %v8286_v24   ;;  %v6044_v24 = vadd.s32 72, %v11607_v54  ;;  %vm6086_vm1 = vcmp.eq.s32.totalorder %v6043_v61, %v11611_v29 }
 0x5a8   : > { %vm6088_vm2 = vcmp.eq.s32.totalorder %v6044_v24, %v11611_v29 }
 0x5a9   : > { %vm7133_vm3 = vmpackc.low %vm6088_vm2, %vm6086_vm1 }
 0x5aa   : > { %v11627_v62 = vpop.f32.mrb[92].mxu1  ;;  %v5730_v39 = vpop.f32.mrb[64].mxu0 }
 0x5ab   : > { %v11629_v57 = vpop.f32.mrb[93].mxu1  ;;  %v5731_v3 = vadd.f32 %v11473_v22, %v5730_v39  ;;  %v5732_v35 = vpop.f32.mrb[65].mxu0 }
 0x5ad   : > { %v5956_v55 = vadd.f32 %v11523_v2, %v5731_v3  ;;  %v8258_v56 = vpop.permute.xlu1 %8257  ;;  %v6039_v2 = vadd.s32 32, %v11607_v54 }
 0x5ae   : > { %v8260_v18 = vunpack.i.h.bf16 %v8258_v56  ;;  %v8259_v12 = vunpack.i.l.bf16 %v8258_v56  ;;  %v11635_v0 = vpop.f32.mrb[94].mxu1 }
 0x5af   : > { %v11637_v40 = vpop.f32.mrb[95].mxu1  ;;  %vm6078_vm11 = vcmp.eq.s32.totalorder %v6039_v2, %v11611_v29 }
 0x5b0   : > { %v7120_v43 = vpack.c.bf16 %v8260_v18, %v8259_v12  ;;  %vm7125_vm13 = vmpackc.low %vm6080_vm12, %vm6078_vm11 }
 0x5b1   : > { %v5735_v50 = vpop.f32.mrb[66].mxu0 }
 0x5b2   : > { %7122 = vmatpush1.bf16.msk.msra.mxu0 %vm7121_vm10, %v7120_v43  ;;  %v5736_v10 = vadd.f32 %v11473_v22, %v5735_v50  ;;  %v5737_v26 = vpop.f32.mrb[67].mxu0 }
 0x5b3   : > { %7123 = vmatprep.subr.bf16.mxu0 %v8363_v58  ;;  %v6046_v26 = vadd.s32 88, %v11607_v54 }
 0x5b4   : > { %v5961_v16 = vadd.f32 %v11520_v4, %v5736_v10  ;;  %v6045_v10 = vadd.s32 80, %v11607_v54 }
 0x5b5   : > { %vm6092_vm5 = vcmp.eq.s32.totalorder %v6046_v26, %v11611_v29 }
 0x5b6   : > { %v8291_v48 = vpack.i.bf16 %v5961_v16, %v5956_v55  ;;  %vm6090_vm4 = vcmp.eq.s32.totalorder %v6045_v10, %v11611_v29 }
 0x5b7   : > { %vm7137_vm6 = vmpackc.low %vm6092_vm5, %vm6090_vm4 }
 0x5b8   : > { %8292 = vperm.xlu1 %8255, %v8291_v48  }
 0x5bf   : > { %v5740_v63 = vpop.f32.mrb[68].mxu0 }
 0x5c0   : > { %v5741_v30 = vadd.f32 %v11473_v22, %v5740_v63  ;;  %v5742_v53 = vpop.f32.mrb[69].mxu0  ;;  %v8263_v27 = vpop.permute.xlu1 %8262 }
 0x5c1   : > { %v8265_v42 = vunpack.i.h.bf16 %v8263_v27  ;;  %v8264_v14 = vunpack.i.l.bf16 %v8263_v27 }
 0x5c2   : > { %v5966_v8 = vadd.f32 %v11554_v44, %v5741_v30 }
 0x5c3   : > { %v7124_v4 = vpack.c.bf16 %v8265_v42, %v8264_v14 }
 0x5c5   : > { %7126 = vmatpush1.bf16.msk.msra.mxu0 %vm7125_vm13, %v7124_v4  ;;  %v6047_v4 = vadd.s32 96, %v11607_v54 }
 0x5c6   : > { %v5745_v59 = vpop.f32.mrb[70].mxu0  ;;  %7127 = vmatprep.subr.bf16.mxu0 %v8363_v58 }
 0x5c7   : > { %v5746_v6 = vadd.f32 %v11473_v22, %v5745_v59  ;;  %v5747_v51 = vpop.f32.mrb[71].mxu0  ;;  %v6048_v59 = vadd.s32 104, %v11607_v54  ;;  %vm6094_vm7 = vcmp.eq.s32.totalorder %v6047_v4, %v11611_v29 }
 0x5c9   : > { %v5971_v49 = vadd.f32 %v11552_v52, %v5746_v6  ;;  %vm6096_vm8 = vcmp.eq.s32.totalorder %v6048_v59, %v11611_v29 }
 0x5ca   : > { %vm7141_vm9 = vmpackc.low %vm6096_vm8, %vm6094_vm7 }
 0x5cb   : > { %v8296_v46 = vpack.i.bf16 %v5971_v49, %v5966_v8 }
 0x5cd   : > { %8297 = vperm.xlu0 %8249, %v8296_v46  }
 0x5d3   : > { %v5750_v44 = vpop.f32.mrb[72].mxu0 }
 0x5d4   : > { %v5751_v38 = vadd.f32 %v11473_v22, %v5750_v44  ;;  %v5752_v60 = vpop.f32.mrb[73].mxu0 }
 0x5d5   : > { %v8268_v17 = vpop.permute.xlu0 %8267 }
 0x5d6   : > { %v5976_v28 = vadd.f32 %v11586_v23, %v5751_v38  ;;  %v8270_v7 = vunpack.i.h.bf16 %v8268_v17  ;;  %v8269_v15 = vunpack.i.l.bf16 %v8268_v17 }
 0x5d8   : > { %v7128_v52 = vpack.c.bf16 %v8270_v7, %v8269_v15  ;;  %v6049_v15 = vadd.s32 112, %v11607_v54 }
 0x5da   : > { %7130 = vmatpush1.bf16.msk.msra.mxu0 %vm7129_vm0, %v7128_v52  ;;  %v5755_v21 = vpop.f32.mrb[74].mxu0  ;;  %v6050_v52 = vadd.s32 120, %v11607_v54  ;;  %vm6098_vm10 = vcmp.eq.s32.totalorder %v6049_v15, %v11611_v29  ;;  %v6063_v15 = vadd.s32 224, %v11607_v54 }
 0x5db   : > { %v5756_v11 = vadd.f32 %v11473_v22, %v5755_v21  ;;  %v5757_v33 = vpop.f32.mrb[75].mxu0  ;;  %7131 = vmatprep.subr.bf16.mxu0 %v8363_v58 }
 0x5dc   : > { %vm6100_vm11 = vcmp.eq.s32.totalorder %v6050_v52, %v11611_v29  ;;  %v6064_v52 = vadd.s32 232, %v11607_v54 }
 0x5dd   : > { %v5981_v31 = vadd.f32 %v11583_v19, %v5756_v11  ;;  %vm7145_vm12 = vmpackc.low %vm6100_vm11, %vm6098_vm10 }
 0x5df   : > { %v8301_v9 = vpack.i.bf16 %v5981_v31, %v5976_v28 }
 0x5e1   : > { %8302 = vperm.xlu1 %8255, %v8301_v9  }
 0x5e8   : > { %v5760_v23 = vpop.f32.mrb[76].mxu0  ;;  %v8273_v47 = vpop.permute.xlu1 %8272 }
 0x5e9   : > { %v5761_v25 = vadd.f32 %v11473_v22, %v5760_v23  ;;  %v5762_v39 = vpop.f32.mrb[77].mxu0  ;;  %v8275_v3 = vunpack.i.h.bf16 %v8273_v47  ;;  %v8274_v35 = vunpack.i.l.bf16 %v8273_v47 }
 0x5eb   : > { %v5986_v19 = vadd.f32 %v11594_v37, %v5761_v25  ;;  %v7132_v55 = vpack.c.bf16 %v8275_v3, %v8274_v35 }
 0x5ed   : > { %7134 = vmatpush1.bf16.msk.msra.mxu0 %vm7133_vm3, %v7132_v55  ;;  %v6051_v55 = vadd.s32 128, %v11607_v54 }
 0x5ee   : > { %7135 = vmatprep.subr.bf16.mxu0 %v8363_v58 }
 0x5ef   : > { %v5765_v56 = vpop.f32.mrb[78].mxu0 }
 0x5f0   : > { %v5766_v18 = vadd.f32 %v11473_v22, %v5765_v56  ;;  %v5767_v12 = vpop.f32.mrb[79].mxu0  ;;  %v6052_v56 = vadd.s32 136, %v11607_v54 }
 0x5f2   : > { %v5991_v43 = vadd.f32 %v11591_v20, %v5766_v18  ;;  %v11700_v18 = vadd.s32 128, %v11611_v29  ;;  %v8370_v29 = vmov 1.0  }
 0x5f3   : > { %6422 = vmatprep.mubr.f32.mxu0 %v8370_v29 }
 0x5f4   : > { %v8306_v50 = vpack.i.bf16 %v5991_v43, %v5986_v19  ;;  %vm6103_vm13 = vcmp.eq.s32.totalorder %v6051_v55, %v11700_v18  ;;  %vm6105_vm14 = vcmp.eq.s32.totalorder %v6052_v56, %v11700_v18 }
 0x5f5   : > { %vm7148_vm15 = vmpackc.low %vm6105_vm14, %vm6103_vm13 }
 0x5f6   : > { %8307 = vperm.xlu0 %8249, %v8306_v50  }
 0x5fb   : > { %v5770_v16 = vpop.f32.mrb[80].mxu0 }
 0x5fc   : > { %v5771_v48 = vadd.f32 %v11473_v22, %v5770_v16  ;;  %v5772_v37 = vpop.f32.mrb[81].mxu0 }
 0x5fd   : > { %v8278_v2 = vpop.permute.xlu0 %8277 }
 0x5fe   : > { %v5996_v1 = vadd.f32 %v11602_v5, %v5771_v48  ;;  %v8280_v63 = vunpack.i.h.bf16 %v8278_v2  ;;  %v8279_v30 = vunpack.i.l.bf16 %v8278_v2 }
 0x600   : > { %v7136_v20 = vpack.c.bf16 %v8280_v63, %v8279_v30  ;;  %v6055_v63 = vadd.s32 160, %v11607_v54  ;;  %v6056_v30 = vadd.s32 168, %v11607_v54 }
 0x602   : > { %7138 = vmatpush1.bf16.msk.msra.mxu0 %vm7137_vm6, %v7136_v20  ;;  %v5775_v53 = vpop.f32.mrb[82].mxu0  ;;  %vm6111_vm3 = vcmp.eq.s32.totalorder %v6055_v63, %v11700_v18  ;;  %vm6113_vm4 = vcmp.eq.s32.totalorder %v6056_v30, %v11700_v18 }
 0x603   : > { %v5776_v27 = vadd.f32 %v11473_v22, %v5775_v53  ;;  %v5777_v8 = vpop.f32.mrb[83].mxu0  ;;  %7139 = vmatprep.subr.bf16.mxu0 %v8363_v58  ;;  %vm7156_vm5 = vmpackc.low %vm6113_vm4, %vm6111_vm3 }
 0x605   : > { %v6001_v42 = vadd.f32 %v11599_v13, %v5776_v27 }
 0x607   : > { %v8311_v14 = vpack.i.bf16 %v6001_v42, %v5996_v1  ;;  %v6057_v42 = vadd.s32 176, %v11607_v54 }
 0x609   : > { %8312 = vperm.xlu1 %8255, %v8311_v14   ;;  %v6058_v14 = vadd.s32 184, %v11607_v54  ;;  %vm6115_vm6 = vcmp.eq.s32.totalorder %v6057_v42, %v11700_v18 }
 0x60b   : > { %vm6117_vm7 = vcmp.eq.s32.totalorder %v6058_v14, %v11700_v18 }
 0x60c   : > { %vm7160_vm8 = vmpackc.low %vm6117_vm7, %vm6115_vm6 }
 0x610   : > { %v5780_v5 = vpop.f32.mrb[84].mxu0  ;;  %v8283_v49 = vpop.permute.xlu1 %8282 }
 0x611   : > { %v5781_v6 = vadd.f32 %v11473_v22, %v5780_v5  ;;  %v5782_v51 = vpop.f32.mrb[85].mxu0  ;;  %v8285_v46 = vunpack.i.h.bf16 %v8283_v49  ;;  %v8284_v36 = vunpack.i.l.bf16 %v8283_v49  ;;  %v6060_v49 = vadd.s32 200, %v11607_v54 }
 0x612   : > { %v6059_v51 = vadd.s32 192, %v11607_v54 }
 0x613   : > { %v6006_v34 = vadd.f32 %v11620_v45, %v5781_v6  ;;  %v7140_v13 = vpack.c.bf16 %v8285_v46, %v8284_v36  ;;  %vm6121_vm10 = vcmp.eq.s32.totalorder %v6060_v49, %v11700_v18 }
 0x615   : > { %7142 = vmatpush1.bf16.msk.msra.mxu0 %vm7141_vm9, %v7140_v13  ;;  %vm6119_vm9 = vcmp.eq.s32.totalorder %v6059_v51, %v11700_v18 }
 0x616   : > { %7143 = vmatprep.subr.bf16.mxu0 %v8363_v58  ;;  %vm7164_vm11 = vmpackc.low %vm6121_vm10, %vm6119_vm9 }
 0x617   : > { %v5785_v44 = vpop.f32.mrb[86].mxu0 }
 0x618   : > { %v5786_v38 = vadd.f32 %v11473_v22, %v5785_v44  ;;  %v5787_v60 = vpop.f32.mrb[87].mxu0  ;;  %v6061_v44 = vadd.s32 208, %v11607_v54 }
 0x61a   : > { %v6011_v17 = vadd.f32 %v11617_v41, %v5786_v38  ;;  %v6062_v38 = vadd.s32 216, %v11607_v54 }
 0x61c   : > { %v8316_v28 = vpack.i.bf16 %v6011_v17, %v6006_v34  ;;  %vm6125_vm13 = vcmp.eq.s32.totalorder %v6062_v38, %v11700_v18 }
 0x61e   : > { %8317 = vperm.xlu0 %8249, %v8316_v28  }
 0x61f   : > { %v5790_v7 = vpop.f32.mrb[88].mxu0 }
 0x620   : > { %v5791_v45 = vadd.f32 %v11473_v22, %v5790_v7  ;;  %v5792_v21 = vpop.f32.mrb[89].mxu0 }
 0x622   : > { %v6016_v11 = vadd.f32 %v11629_v57, %v5791_v45 }
 0x625   : > { %v8288_v33 = vpop.permute.xlu0 %8287 }
 0x626   : > { %v8290_v31 = vunpack.i.h.bf16 %v8288_v33  ;;  %v8289_v9 = vunpack.i.l.bf16 %v8288_v33  ;;  %v5795_v41 = vpop.f32.mrb[90].mxu0 }
 0x627   : > { %v5796_v24 = vadd.f32 %v11473_v22, %v5795_v41  ;;  %v5797_v23 = vpop.f32.mrb[91].mxu0 }
 0x628   : > { %v7144_v61 = vpack.c.bf16 %v8290_v31, %v8289_v9  ;;  %v6065_v31 = vadd.s32 240, %v11607_v54  ;;  %v6066_v9 = vadd.s32 248, %v11607_v54 }
 0x629   : > { %v6021_v47 = vadd.f32 %v11627_v62, %v5796_v24 }
 0x62a   : > { %7146 = vmatpush1.bf16.msk.msra.mxu0 %vm7145_vm12, %v7144_v61  ;;  %vm6123_vm12 = vcmp.eq.s32.totalorder %v6061_v44, %v11700_v18  ;;  %vm6133_vm3 = vcmp.eq.s32.totalorder %v6066_v9, %v11700_v18 }
 0x62b   : > { %v8321_v25 = vpack.i.bf16 %v6021_v47, %v6016_v11  ;;  %v5800_v39 = vpop.f32.mrb[92].mxu0  ;;  %vm7168_vm14 = vmpackc.low %vm6125_vm13, %vm6123_vm12  ;;  %v8371_v47 = vmov 1966171168  }
 0x62c   : > { %v5801_v57 = vadd.f32 %v11473_v22, %v5800_v39  ;;  %v5802_v3 = vpop.f32.mrb[93].mxu0 }
 0x62d   : > { %8322 = vperm.xlu1 %8255, %v8321_v25   ;;  %v6433_v25 = vunpack.c.l.s4 %v8371_v47 }
 0x62e   : > { %v6026_v35 = vadd.f32 %v11637_v40, %v5801_v57 }
 0x62f   : > { %v6434_v39 = vunpack.c.0.s8 %v6433_v25 }
 0x631   : > { %v6437_v3 = vsub.s32 %v6434_v39, %v11607_v54 }
 0x632   : > { %v5805_v19 = vpop.f32.mrb[94].mxu0 }
 0x633   : > { %v5806_v12 = vadd.f32 %v11473_v22, %v5805_v19  ;;  %v5807_v62 = vpop.f32.mrb[95].mxu0  ;;  %v6053_v22 = vadd.s32 144, %v11607_v54 }
 0x635   : > { %v6031_v43 = vadd.f32 %v11635_v0, %v5806_v12  ;;  %v6054_v0 = vadd.s32 152, %v11607_v54  ;;  %vm6107_vm0 = vcmp.eq.s32.totalorder %v6053_v22, %v11700_v18 }
 0x637   : > { %v8326_v50 = vpack.i.bf16 %v6031_v43, %v6026_v35  ;;  %v8293_v10 = vpop.permute.xlu1 %8292  ;;  %vm6109_vm1 = vcmp.eq.s32.totalorder %v6054_v0, %v11700_v18 }
 0x638   : > { %v8295_v40 = vunpack.i.h.bf16 %v8293_v10  ;;  %v8294_v26 = vunpack.i.l.bf16 %v8293_v10  ;;  %vm7152_vm2 = vmpackc.low %vm6109_vm1, %vm6107_vm0  ;;  %vm6129_vm0 = vcmp.eq.s32.totalorder %v6064_v52, %v11700_v18 }
 0x639   : > { %8327 = vperm.xlu0 %8249, %v8326_v50  }
 0x63a   : > { %v7147_v16 = vpack.c.bf16 %v8295_v40, %v8294_v26 }
 0x63c   : > { %7149 = vmatprep.subr.msk.bf16.mxu0 %vm7148_vm15, %v7147_v16  ;;  %vm6127_vm15 = vcmp.eq.s32.totalorder %v6063_v15, %v11700_v18 }
 0x63d   : > { %7150 = vmatpush1.bf16.msra.mxu0 %v8363_v58  ;;  %vm7172_vm1 = vmpackc.low %vm6129_vm0, %vm6127_vm15 }
 0x64c   : > { %v8298_v48 = vpop.permute.xlu0 %8297 }
 0x64d   : > { %v8300_v37 = vunpack.i.h.bf16 %v8298_v48  ;;  %v8299_v2 = vunpack.i.l.bf16 %v8298_v48 }
 0x64f   : > { %v7151_v1 = vpack.c.bf16 %v8300_v37, %v8299_v2 }
 0x651   : > { %7153 = vmatprep.subr.msk.bf16.mxu0 %vm7152_vm2, %v7151_v1  ;;  %vm6131_vm2 = vcmp.eq.s32.totalorder %v6065_v31, %v11700_v18 }
 0x652   : > { %7154 = vmatpush1.bf16.msra.mxu0 %v8363_v58  ;;  %vm7176_vm4 = vmpackc.low %vm6133_vm3, %vm6131_vm2 }
 0x660   : > { %v8303_v20 = vpop.permute.xlu1 %8302 }
 0x661   : > { %v8305_v53 = vunpack.i.h.bf16 %v8303_v20  ;;  %v8304_v27 = vunpack.i.l.bf16 %v8303_v20 }
 0x663   : > { %v7155_v8 = vpack.c.bf16 %v8305_v53, %v8304_v27 }
 0x665   : > { %7157 = vmatprep.subr.msk.bf16.mxu0 %vm7156_vm5, %v7155_v8  ;;  %vm6449_vm5 = vcmp.lt.s32.totalorder %v6034_v32, 256 }
 0x666   : > { %7158 = vmatpush1.bf16.msra.mxu0 %v8363_v58 }
 0x675   : > { %v8308_v4 = vpop.permute.xlu0 %8307 }
 0x676   : > { %v8310_v59 = vunpack.i.h.bf16 %v8308_v4  ;;  %v8309_v5 = vunpack.i.l.bf16 %v8308_v4 }
 0x678   : > { %v7159_v6 = vpack.c.bf16 %v8310_v59, %v8309_v5 }
 0x67a   : > { %7161 = vmatprep.subr.msk.bf16.mxu0 %vm7160_vm8, %v7159_v6 }
 0x67b   : > { %7162 = vmatpush1.bf16.msra.mxu0 %v8363_v58 }
 0x688   : > { %v8313_v46 = vpop.permute.xlu1 %8312 }
 0x689   : > { %v8315_v36 = vunpack.i.h.bf16 %v8313_v46  ;;  %v8314_v34 = vunpack.i.l.bf16 %v8313_v46 }
 0x68b   : > { %v7163_v13 = vpack.c.bf16 %v8315_v36, %v8314_v34 }
 0x68d   : > { %7165 = vmatprep.subr.msk.bf16.mxu0 %vm7164_vm11, %v7163_v13 }
 0x68e   : > { %7166 = vmatpush1.bf16.msra.mxu0 %v8363_v58 }
 0x69d   : > { %v8318_v60 = vpop.permute.xlu0 %8317 }
 0x69e   : > { %v8320_v17 = vunpack.i.h.bf16 %v8318_v60  ;;  %v8319_v28 = vunpack.i.l.bf16 %v8318_v60 }
 0x6a0   : > { %v7167_v7 = vpack.c.bf16 %v8320_v17, %v8319_v28 }
 0x6a2   : > { %7169 = vmatprep.subr.msk.bf16.mxu0 %vm7168_vm14, %v7167_v7 }
 0x6a3   : > { %7170 = vmatpush1.bf16.msra.mxu0 %v8363_v58 }
 0x6ac   : > { %v8323_v45 = vpop.permute.xlu1 %8322 }
 0x6ad   : > { %v8325_v21 = vunpack.i.h.bf16 %v8323_v45  ;;  %v8324_v11 = vunpack.i.l.bf16 %v8323_v45 }
 0x6af   : > { %v7171_v33 = vpack.c.bf16 %v8325_v21, %v8324_v11 }
 0x6b1   : > { %7173 = vmatprep.subr.msk.bf16.mxu0 %vm7172_vm1, %v7171_v33 }
 0x6b2   : > { %7174 = vmatpush1.bf16.msra.mxu0 %v8363_v58 }
 0x6b8   : > { %v8328_v41 = vpop.permute.xlu0 %8327 }
 0x6b9   : > { %v8330_v61 = vunpack.i.h.bf16 %v8328_v41  ;;  %v8329_v24 = vunpack.i.l.bf16 %v8328_v41 }
 0x6bb   : > { %v7175_v23 = vpack.c.bf16 %v8330_v61, %v8329_v24 }
 0x6bd   : > { %7177 = vmatprep.subr.msk.bf16.mxu0 %vm7176_vm4, %v7175_v23 }
 0x6be   : > { %7178 = vmatpush1.bf16.msra.mxu0 %v8363_v58 }
 0x6c1   : > { %6423 = vmatmul.mubr.f32.vlgmr.msra.gmra.mrb[96].mxu0 %v8370_v29 }
 0x794   : > { %v6424_v57 = vpop.f32.mrb[96].mxu0 }
 0x795   : > { %v6426_v35 = vpop.f32.mrb[97].mxu0 }
 0x796   : > { %v6431_v19 = vcombine.low %v6424_v57, %v6426_v35 }
 0x798   : > { %v6438_v55 = vrot.slane %v6431_v19, %v6437_v3 }
 0x79a   : > { %v6445_v56 = vrot.slane %v6438_v55, %v6437_v3 }
 0x79c   : > { %6451 = vst.msk [vmem:[%s278_s9] sm:$0x3] %vm6449_vm5, %v6445_v56 }
 0x79d PF: > { %s19_s26 = sadd.s32 1, %s8349_s26  }
 0x79e   : > { %p16_p4 = scmp.ge.s32.totalorder %s19_s26, 4  }
 0x7a0   :  { %18 = sbr.rel (!%p16_p4) target bundleno = 3 (0x3), region = 84 }

</bundles_post_ra>
